<compile_context>
chip_gen: v5e
topology: v5e:2x2
jax: 0.10.0
libtpu: 0.0.40
codegen_flags: <defaults>
</compile_context>

<pallas_src>
import functools

import jax
import jax.numpy as jnp
from jax.experimental import pallas as pl
from jax.experimental.pallas import tpu as pltpu


ARGS = {
    "coder_actf": "relu",
    "coder_layers": 2,
    "coder_units": 32,
    "coder_kernel": 5,
    "coder_dropout": 0.0,
    "block_length": 12,
    "block_padding": 2,
    "redundancy": 2,
    "batch_norm": False,          # BN branch disabled (matches config)
    "rate": "onethird",           # 3 streams
    "channel": "continuous",
    "continuous_coder": False,    # -> Quantizer branch skipped
}


def _apply_actf(x, name):
    if name == "tanh":
        return jnp.tanh(x)
    if name == "relu":
        return jnp.maximum(x, 0.0)
    if name == "sigmoid":
        return jax.nn.sigmoid(x)
    if name == "elu":
        return jnp.where(x > 0, x, jnp.exp(jnp.minimum(x, 0.0)) - 1.0)
    if name == "selu":
        return jax.nn.selu(x)
    if name == "leakyrelu":
        return jnp.where(x > 0, x, 0.01 * x)
    if name == "gelu":
        return jax.nn.gelu(x, approximate=True)
    return x  # 'identity' / fallback


# ---------------------------------------------------------------------------
# Fused Pallas kernel: conv stacks -> stacked GRU (all streams) -> final linears
# ---------------------------------------------------------------------------

def _fused_coder_kernel(xall_ref, m_ref, w1_ref, b1_ref, w2_ref, b2_ref,
                        wih_ref, bih_ref, whh_ref, bhh_ref, wlin_ref, blin_ref,
                        out_ref, pad_s, hs_s, gi_s,
                        *, L, BP, K, HW, OUTW, n_layers, actf):
    f32 = jnp.float32
    pad_l = (K - 1) // 2
    N = L * BP                       # rows, ordered t*BP + b

    # ---------------- fused conv stack (all streams, block weights) ----------------
    pad_s[...] = jnp.zeros_like(pad_s)        # zero halo once; interior overwritten below
    # Broadcast each stream's scalar across its U lanes with one small matmul
    # (replaces K*S XLU lane broadcasts); pad lanes stay zero.
    xb = jnp.dot(xall_ref[...], m_ref[...], preferred_element_type=f32)     # (N, HW)
    pad_s[pad_l * BP:pad_l * BP + N, :] = xb

    w1 = w1_ref[...]                                                        # (K, HW)
    acc = jnp.zeros((N, HW), f32)
    for k in range(K):                          # layer 0 (Cin=1): pure VPU MAC per tap
        acc = acc + pad_s[k * BP:k * BP + N, :] * w1[k:k + 1, :]
    h = _apply_actf(acc + b1_ref[...], actf)                                # (N, HW)

    for j in range(n_layers - 1):               # later layers: K tap-accumulated 128x128 matmuls
        pad_s[pad_l * BP:pad_l * BP + N, :] = h
        acc = jnp.zeros((N, HW), f32)
        for k in range(K):
            acc = acc + jnp.dot(pad_s[k * BP:k * BP + N, :], w2_ref[j, k],
                                preferred_element_type=f32)
        h = _apply_actf(acc + b2_ref[j], actf)

    # ---------- stacked GRU: streams fused via block-diag, gates fused per step ----------
    X = h                                                                   # (N, HW)
    for l in range(n_layers):
        # hoisted input projections for all gates: one matmul, stored in a VMEM slab
        gi_s[...] = jnp.dot(X, wih_ref[l], preferred_element_type=f32) + bih_ref[l]
        whh_l = whh_ref[l]                                                  # (HW, 3*HW)
        bhh_l = bhh_ref[l]                                                  # (1, 3*HW)
        hstate = jnp.zeros((BP, HW), f32)
        for t in range(L):                       # fully unrolled (static L); serial chain
            gh = jnp.dot(hstate, whh_l, preferred_element_type=f32) + bhh_l  # one MXU op/step
            gi_t = gi_s[t * BP:(t + 1) * BP, :]
            r = jax.nn.sigmoid(gi_t[:, 0:HW] + gh[:, 0:HW])
            z = jax.nn.sigmoid(gi_t[:, HW:2 * HW] + gh[:, HW:2 * HW])
            n = jnp.tanh(gi_t[:, 2 * HW:3 * HW] + r * gh[:, 2 * HW:3 * HW])
            hstate = (1.0 - z) * n + z * hstate
            hs_s[t * BP:(t + 1) * BP, :] = hstate                           # bounded live range
        if l < n_layers - 1:
            X = hs_s[...]                        # consumed by next layer's gi before overwrite

    # ------- flatten + all per-stream Linears: time-accumulated sum from the slab -------
    out = jnp.zeros((BP, OUTW), f32) + blin_ref[...]
    for t in range(L):
        out = out + jnp.dot(hs_s[t * BP:(t + 1) * BP, :], wlin_ref[t],
                            preferred_element_type=f32)
    # Reference applies actf AFTER the final Linear (dropout p=0 == identity).
    out_ref[...] = _apply_actf(out, actf)        # single lane-dense (BP, 128) store


# ---------------------------------------------------------------------------
# Parameter init (synthetic, deterministic) + packing into kernel layout
# ---------------------------------------------------------------------------

def init_params(key, args):
    U = args["coder_units"]
    K = args["coder_kernel"]
    nl = args["coder_layers"]
    L = args["block_length"] + args["block_padding"] + args["redundancy"]
    BL = args["block_length"]
    S = 3 if args["rate"] == "onethird" else 2

    keys = iter(jax.random.split(key, 512))

    def nrm(shape, scale=0.2):
        return jax.random.normal(next(keys), shape, jnp.float32) * scale

    p = {}
    for i in range(1, S + 1):                      # conv stacks (first layer 1->U)
        layers = []
        cin = 1
        for _ in range(nl):
            layers.append({"w": nrm((K, cin, U)), "b": nrm((1, U), 0.05)})
            cin = U
        p[f"cnn{i}"] = layers
    # GRU stacks; gate-separated (r,z,n).  rnn2 exists in __init__ but is unused.
    for name in ["rnn1", "rnn2"] + (["rnn3"] if S == 3 else []):
        layers = []
        for _ in range(nl):
            layers.append({"wih": nrm((3, U, U)), "whh": nrm((3, U, U)),
                           "bih": nrm((3, 1, U), 0.05), "bhh": nrm((3, 1, U), 0.05)})
        p[name] = layers
    for i in range(1, S + 1):                      # final linears (U*L) -> block_length
        p[f"lin{i}"] = {"w": nrm((L * U, BL), 0.05), "b": nrm((1, BL), 0.05)}
    return p


def pack_params(p, args):
    U = args["coder_units"]
    K = args["coder_kernel"]
    nl = args["coder_layers"]
    L = args["block_length"] + args["block_padding"] + args["redundancy"]
    BL = args["block_length"]
    S = 3 if args["rate"] == "onethird" else 2
    HW = ((S * U + 127) // 128) * 128              # fused hidden width padded to 128
    OUTW = ((S * BL + 127) // 128) * 128           # lane-dense padded output width

    cnns = [p[f"cnn{i + 1}"] for i in range(S)]

    # stream-scalar -> lane-block broadcast matrix, and fused layer-0 weights
    m = jnp.zeros((S, HW), jnp.float32)
    w1 = jnp.zeros((K, HW), jnp.float32)
    b1 = jnp.zeros((1, HW), jnp.float32)
    for s in range(S):
        m = m.at[s, s * U:(s + 1) * U].set(1.0)
        w1 = w1.at[:, s * U:(s + 1) * U].set(cnns[s][0]["w"][:, 0, :])
        b1 = b1.at[:, s * U:(s + 1) * U].set(cnns[s][0]["b"])

    # later conv layers: per-tap block-diagonal (HW, HW) weights
    n2 = max(nl - 1, 1)
    w2 = jnp.zeros((n2, K, HW, HW), jnp.float32)
    b2 = jnp.zeros((n2, 1, HW), jnp.float32)
    for j in range(1, nl):
        for s in range(S):
            for k in range(K):
                w2 = w2.at[j - 1, k, s * U:(s + 1) * U, s * U:(s + 1) * U].set(
                    cnns[s][j]["w"][k])
            b2 = b2.at[j - 1, :, s * U:(s + 1) * U].set(cnns[s][j]["b"])

    # GRU: reference quirk -> streams 0 and 1 both run _rnn_1; stream 2 uses _rnn_3.
    stream_rnns = ["rnn1", "rnn1", "rnn3"] if S == 3 else ["rnn1", "rnn1"]
    wih = jnp.zeros((nl, HW, 3 * HW), jnp.float32)
    whh = jnp.zeros((nl, HW, 3 * HW), jnp.float32)
    bih = jnp.zeros((nl, 1, 3 * HW), jnp.float32)
    bhh = jnp.zeros((nl, 1, 3 * HW), jnp.float32)
    for l in range(nl):
        for g in range(3):                         # gate order r, z, n
            for s, rname in enumerate(stream_rnns):
                ro, co = s * U, g * HW + s * U
                wih = wih.at[l, ro:ro + U, co:co + U].set(p[rname][l]["wih"][g])
                whh = whh.at[l, ro:ro + U, co:co + U].set(p[rname][l]["whh"][g])
                bih = bih.at[l, :, co:co + U].set(p[rname][l]["bih"][g])
                bhh = bhh.at[l, :, co:co + U].set(p[rname][l]["bhh"][g])

    # final linears: per-timestep block weights (applied as a sum over t in-kernel)
    wlin = jnp.zeros((L, HW, OUTW), jnp.float32)
    blin = jnp.zeros((1, OUTW), jnp.float32)
    for s in range(S):
        w = p[f"lin{s + 1}"]["w"].reshape(L, U, BL)
        wlin = wlin.at[:, s * U:(s + 1) * U, s * BL:(s + 1) * BL].set(w)
        blin = blin.at[:, s * BL:(s + 1) * BL].set(p[f"lin{s + 1}"]["b"])

    return {"m": m, "w1": w1, "b1": b1, "w2": w2, "b2": b2,
            "wih": wih, "bih": bih, "whh": whh, "bhh": bhh,
            "wlin": wlin, "blin": blin, "HW": HW, "OUTW": OUTW}


# ---------------------------------------------------------------------------
# Forward pass: one fused pallas_call (+ trivial XLA layout ops in the wrapper)
# ---------------------------------------------------------------------------

def coder_cnn_rnn_forward(inputs, packed, args):
    B, Ltot, S = inputs.shape
    K = args["coder_kernel"]
    nl = args["coder_layers"]
    BL = args["block_length"]
    HW = packed["HW"]
    OUTW = packed["OUTW"]

    BP = max(8, ((B + 7) // 8) * 8)              # pad batch to a sublane multiple
    xall = jnp.pad(inputs, ((0, BP - B), (0, 0), (0, 0)))         # (BP, Ltot, S)
    xall = jnp.transpose(xall, (1, 0, 2)).reshape(Ltot * BP, S)   # row = t*BP + b
    N = Ltot * BP

    kern = functools.partial(_fused_coder_kernel, L=Ltot, BP=BP, K=K, HW=HW,
                             OUTW=OUTW, n_layers=nl, actf=args["coder_actf"])
    vmem = pl.BlockSpec(memory_space=pltpu.MemorySpace.VMEM)
    out = pl.pallas_call(
        kern,
        out_shape=jax.ShapeDtypeStruct((BP, OUTW), jnp.float32),
        in_specs=[vmem] * 12,
        out_specs=vmem,
        scratch_shapes=[
            pltpu.VMEM((N + (K - 1) * BP, HW), jnp.float32),   # conv zero-halo slab
            pltpu.VMEM((N, HW), jnp.float32),                  # per-step hidden slab
            pltpu.VMEM((N, 3 * HW), jnp.float32),              # hoisted gate inputs
        ],
    )(xall, packed["m"], packed["w1"], packed["b1"], packed["w2"], packed["b2"],
      packed["wih"], packed["bih"], packed["whh"], packed["bhh"],
      packed["wlin"], packed["blin"])

    # lane-dense (BP, OUTW) slab -> drop batch/lane padding -> (B, BL, S)
    # (matches torch.cat([x_sys, x_p1, x_p2], dim=2)); Quantizer.apply skipped.
    out = out[:B, :S * BL].reshape(B, S, BL)
    return jnp.transpose(out, (0, 2, 1))


if __name__ == "__main__":
    key = jax.random.PRNGKey(0)
    k_param, k_in = jax.random.split(key)

    L_total = ARGS["block_length"] + ARGS["block_padding"] + ARGS["redundancy"]  # 16
    n_streams = 3 if ARGS["rate"] == "onethird" else 2
    B = 2

    raw_params = init_params(k_param, ARGS)
    packed = pack_params(raw_params, ARGS)
    inputs = jax.random.normal(k_in, (B, L_total, n_streams), jnp.float32)

    fwd = jax.jit(functools.partial(coder_cnn_rnn_forward, packed=packed, args=ARGS))
    out = jax.block_until_ready(fwd(inputs))

    assert out.shape == (B, ARGS["block_length"], n_streams), out.shape
    assert out.dtype == jnp.float32
    assert bool(jnp.all(jnp.isfinite(out)))
    print("KERNEL_OK")
</pallas_src>

<mosaic_0001>
module attributes {stable_mosaic.version = 11 : i64} {
  func.func @_fused_coder_kernel(%arg0: memref<128x3xf32, #tpu.memory_space<vmem>>, %arg1: memref<3x128xf32, #tpu.memory_space<vmem>>, %arg2: memref<5x128xf32, #tpu.memory_space<vmem>>, %arg3: memref<1x128xf32, #tpu.memory_space<vmem>>, %arg4: memref<1x5x128x128xf32, #tpu.memory_space<vmem>>, %arg5: memref<1x1x128xf32, #tpu.memory_space<vmem>>, %arg6: memref<2x128x384xf32, #tpu.memory_space<vmem>>, %arg7: memref<2x1x384xf32, #tpu.memory_space<vmem>>, %arg8: memref<2x128x384xf32, #tpu.memory_space<vmem>>, %arg9: memref<2x1x384xf32, #tpu.memory_space<vmem>>, %arg10: memref<16x128x128xf32, #tpu.memory_space<vmem>>, %arg11: memref<1x128xf32, #tpu.memory_space<vmem>>, %arg12: memref<8x128xf32, #tpu.memory_space<vmem>>, %arg13: memref<160x128xf32, #tpu.memory_space<vmem>>, %arg14: memref<128x128xf32, #tpu.memory_space<vmem>>, %arg15: memref<128x384xf32, #tpu.memory_space<vmem>>) attributes {dimension_semantics = [], scalar_prefetch = 0 : i64, scratch_operands = 3 : i64, tpu.core_type = #tpu.core_type<tc>} {
    %cst = arith.constant 0.000000e+00 : f32
    %0 = vector.broadcast %cst : f32 to vector<160x128xf32>
    %c0 = arith.constant 0 : index
    %c0_0 = arith.constant 0 : index
    %1 = vector.load %arg13[%c0, %c0_0] : memref<160x128xf32, #tpu.memory_space<vmem>>, vector<160x128xf32>
    tpu.vector_store %arg13[%c0, %c0_0], %0 {strides = array<i32>} : memref<160x128xf32, #tpu.memory_space<vmem>>, vector<160x128xf32>,
    %c0_1 = arith.constant 0 : index
    %c0_2 = arith.constant 0 : index
    %2 = vector.load %arg0[%c0_1, %c0_2] : memref<128x3xf32, #tpu.memory_space<vmem>>, vector<128x3xf32>
    %c0_3 = arith.constant 0 : index
    %c0_4 = arith.constant 0 : index
    %3 = vector.load %arg1[%c0_3, %c0_4] : memref<3x128xf32, #tpu.memory_space<vmem>>, vector<3x128xf32>
    %cst_5 = arith.constant dense<0.000000e+00> : vector<128x128xf32>
    %4 = tpu.matmul %2, %3, %cst_5 {dimension_numbers = #tpu.dot_dimension_numbers<[1], [0], [0], [1], [0, 0, 1, 1], [], []>} : vector<128x3xf32>, vector<3x128xf32>, vector<128x128xf32> -> vector<128x128xf32>
    %c16 = arith.constant 16 : index
    %c0_6 = arith.constant 0 : index
    %5 = vector.load %arg13[%c16, %c0_6] : memref<160x128xf32, #tpu.memory_space<vmem>>, vector<128x128xf32>
    tpu.vector_store %arg13[%c16, %c0_6], %4 {strides = array<i32>} : memref<160x128xf32, #tpu.memory_space<vmem>>, vector<128x128xf32>,
    %c0_7 = arith.constant 0 : index
    %c0_8 = arith.constant 0 : index
    %6 = vector.load %arg2[%c0_7, %c0_8] : memref<5x128xf32, #tpu.memory_space<vmem>>, vector<5x128xf32>
    %cst_9 = arith.constant 0.000000e+00 : f32
    %7 = vector.broadcast %cst_9 : f32 to vector<128x128xf32>
    %c0_10 = arith.constant 0 : index
    %c0_11 = arith.constant 0 : index
    %8 = vector.load %arg13[%c0_10, %c0_11] : memref<160x128xf32, #tpu.memory_space<vmem>>, vector<128x128xf32>
    %9 = vector.extract_strided_slice %6 {offsets = [0, 0], sizes = [1, 128], strides = [1, 1]} : vector<5x128xf32> to vector<1x128xf32>
    %10 = vector.broadcast %9 : vector<1x128xf32> to vector<128x128xf32>
    %11 = arith.mulf %8, %10 : vector<128x128xf32>
    %12 = arith.addf %7, %11 : vector<128x128xf32>
    %c8 = arith.constant 8 : index
    %c0_12 = arith.constant 0 : index
    %13 = vector.load %arg13[%c8, %c0_12] : memref<160x128xf32, #tpu.memory_space<vmem>>, vector<128x128xf32>
    %14 = vector.extract_strided_slice %6 {offsets = [1, 0], sizes = [1, 128], strides = [1, 1]} : vector<5x128xf32> to vector<1x128xf32>
    %15 = vector.broadcast %14 : vector<1x128xf32> to vector<128x128xf32>
    %16 = arith.mulf %13, %15 : vector<128x128xf32>
    %17 = arith.addf %12, %16 : vector<128x128xf32>
    %c16_13 = arith.constant 16 : index
    %c0_14 = arith.constant 0 : index
    %18 = vector.load %arg13[%c16_13, %c0_14] : memref<160x128xf32, #tpu.memory_space<vmem>>, vector<128x128xf32>
    %19 = vector.extract_strided_slice %6 {offsets = [2, 0], sizes = [1, 128], strides = [1, 1]} : vector<5x128xf32> to vector<1x128xf32>
    %20 = vector.broadcast %19 : vector<1x128xf32> to vector<128x128xf32>
    %21 = arith.mulf %18, %20 : vector<128x128xf32>
    %22 = arith.addf %17, %21 : vector<128x128xf32>
    %c24 = arith.constant 24 : index
    %c0_15 = arith.constant 0 : index
    %23 = vector.load %arg13[%c24, %c0_15] : memref<160x128xf32, #tpu.memory_space<vmem>>, vector<128x128xf32>
    %24 = vector.extract_strided_slice %6 {offsets = [3, 0], sizes = [1, 128], strides = [1, 1]} : vector<5x128xf32> to vector<1x128xf32>
    %25 = vector.broadcast %24 : vector<1x128xf32> to vector<128x128xf32>
    %26 = arith.mulf %23, %25 : vector<128x128xf32>
    %27 = arith.addf %22, %26 : vector<128x128xf32>
    %c32 = arith.constant 32 : index
    %c0_16 = arith.constant 0 : index
    %28 = vector.load %arg13[%c32, %c0_16] : memref<160x128xf32, #tpu.memory_space<vmem>>, vector<128x128xf32>
    %29 = vector.extract_strided_slice %6 {offsets = [4, 0], sizes = [1, 128], strides = [1, 1]} : vector<5x128xf32> to vector<1x128xf32>
    %30 = vector.broadcast %29 : vector<1x128xf32> to vector<128x128xf32>
    %31 = arith.mulf %28, %30 : vector<128x128xf32>
    %32 = arith.addf %27, %31 : vector<128x128xf32>
    %c0_17 = arith.constant 0 : index
    %c0_18 = arith.constant 0 : index
    %33 = vector.load %arg3[%c0_17, %c0_18] : memref<1x128xf32, #tpu.memory_space<vmem>>, vector<1x128xf32>
    %34 = vector.broadcast %33 : vector<1x128xf32> to vector<128x128xf32>
    %35 = arith.addf %32, %34 : vector<128x128xf32>
    %cst_19 = arith.constant 0.000000e+00 : f32
    %36 = vector.broadcast %cst_19 : f32 to vector<128x128xf32>
    %37 = arith.maximumf %35, %36 : vector<128x128xf32>
    %c16_20 = arith.constant 16 : index
    %c0_21 = arith.constant 0 : index
    %38 = vector.load %arg13[%c16_20, %c0_21] : memref<160x128xf32, #tpu.memory_space<vmem>>, vector<128x128xf32>
    tpu.vector_store %arg13[%c16_20, %c0_21], %37 {strides = array<i32>} : memref<160x128xf32, #tpu.memory_space<vmem>>, vector<128x128xf32>,
    %cst_22 = arith.constant 0.000000e+00 : f32
    %39 = vector.broadcast %cst_22 : f32 to vector<128x128xf32>
    %c0_23 = arith.constant 0 : index
    %c0_24 = arith.constant 0 : index
    %40 = vector.load %arg13[%c0_23, %c0_24] : memref<160x128xf32, #tpu.memory_space<vmem>>, vector<128x128xf32>
    %c0_25 = arith.constant 0 : index
    %c0_26 = arith.constant 0 : index
    %c0_27 = arith.constant 0 : index
    %c0_28 = arith.constant 0 : index
    %41 = vector.load %arg4[%c0_25, %c0_26, %c0_27, %c0_28] : memref<1x5x128x128xf32, #tpu.memory_space<vmem>>, vector<1x1x128x128xf32>
    %42 = vector.shape_cast %41 : vector<1x1x128x128xf32> to vector<128x128xf32>
    %cst_29 = arith.constant dense<0.000000e+00> : vector<128x128xf32>
    %43 = tpu.matmul %40, %42, %cst_29 {dimension_numbers = #tpu.dot_dimension_numbers<[1], [0], [0], [1], [0, 0, 1, 1], [], []>} : vector<128x128xf32>, vector<128x128xf32>, vector<128x128xf32> -> vector<128x128xf32>
    %44 = arith.addf %39, %43 : vector<128x128xf32>
    %c8_30 = arith.constant 8 : index
    %c0_31 = arith.constant 0 : index
    %45 = vector.load %arg13[%c8_30, %c0_31] : memref<160x128xf32, #tpu.memory_space<vmem>>, vector<128x128xf32>
    %c0_32 = arith.constant 0 : index
    %c1 = arith.constant 1 : index
    %c0_33 = arith.constant 0 : index
    %c0_34 = arith.constant 0 : index
    %46 = vector.load %arg4[%c0_32, %c1, %c0_33, %c0_34] : memref<1x5x128x128xf32, #tpu.memory_space<vmem>>, vector<1x1x128x128xf32>
    %47 = vector.shape_cast %46 : vector<1x1x128x128xf32> to vector<128x128xf32>
    %cst_35 = arith.constant dense<0.000000e+00> : vector<128x128xf32>
    %48 = tpu.matmul %45, %47, %cst_35 {dimension_numbers = #tpu.dot_dimension_numbers<[1], [0], [0], [1], [0, 0, 1, 1], [], []>} : vector<128x128xf32>, vector<128x128xf32>, vector<128x128xf32> -> vector<128x128xf32>
    %49 = arith.addf %44, %48 : vector<128x128xf32>
    %c16_36 = arith.constant 16 : index
    %c0_37 = arith.constant 0 : index
    %50 = vector.load %arg13[%c16_36, %c0_37] : memref<160x128xf32, #tpu.memory_space<vmem>>, vector<128x128xf32>
    %c0_38 = arith.constant 0 : index
    %c2 = arith.constant 2 : index
    %c0_39 = arith.constant 0 : index
    %c0_40 = arith.constant 0 : index
    %51 = vector.load %arg4[%c0_38, %c2, %c0_39, %c0_40] : memref<1x5x128x128xf32, #tpu.memory_space<vmem>>, vector<1x1x128x128xf32>
    %52 = vector.shape_cast %51 : vector<1x1x128x128xf32> to vector<128x128xf32>
    %cst_41 = arith.constant dense<0.000000e+00> : vector<128x128xf32>
    %53 = tpu.matmul %50, %52, %cst_41 {dimension_numbers = #tpu.dot_dimension_numbers<[1], [0], [0], [1], [0, 0, 1, 1], [], []>} : vector<128x128xf32>, vector<128x128xf32>, vector<128x128xf32> -> vector<128x128xf32>
    %54 = arith.addf %49, %53 : vector<128x128xf32>
    %c24_42 = arith.constant 24 : index
    %c0_43 = arith.constant 0 : index
    %55 = vector.load %arg13[%c24_42, %c0_43] : memref<160x128xf32, #tpu.memory_space<vmem>>, vector<128x128xf32>
    %c0_44 = arith.constant 0 : index
    %c3 = arith.constant 3 : index
    %c0_45 = arith.constant 0 : index
    %c0_46 = arith.constant 0 : index
    %56 = vector.load %arg4[%c0_44, %c3, %c0_45, %c0_46] : memref<1x5x128x128xf32, #tpu.memory_space<vmem>>, vector<1x1x128x128xf32>
    %57 = vector.shape_cast %56 : vector<1x1x128x128xf32> to vector<128x128xf32>
    %cst_47 = arith.constant dense<0.000000e+00> : vector<128x128xf32>
    %58 = tpu.matmul %55, %57, %cst_47 {dimension_numbers = #tpu.dot_dimension_numbers<[1], [0], [0], [1], [0, 0, 1, 1], [], []>} : vector<128x128xf32>, vector<128x128xf32>, vector<128x128xf32> -> vector<128x128xf32>
    %59 = arith.addf %54, %58 : vector<128x128xf32>
    %c32_48 = arith.constant 32 : index
    %c0_49 = arith.constant 0 : index
    %60 = vector.load %arg13[%c32_48, %c0_49] : memref<160x128xf32, #tpu.memory_space<vmem>>, vector<128x128xf32>
    %c0_50 = arith.constant 0 : index
    %c4 = arith.constant 4 : index
    %c0_51 = arith.constant 0 : index
    %c0_52 = arith.constant 0 : index
    %61 = vector.load %arg4[%c0_50, %c4, %c0_51, %c0_52] : memref<1x5x128x128xf32, #tpu.memory_space<vmem>>, vector<1x1x128x128xf32>
    %62 = vector.shape_cast %61 : vector<1x1x128x128xf32> to vector<128x128xf32>
    %cst_53 = arith.constant dense<0.000000e+00> : vector<128x128xf32>
    %63 = tpu.matmul %60, %62, %cst_53 {dimension_numbers = #tpu.dot_dimension_numbers<[1], [0], [0], [1], [0, 0, 1, 1], [], []>} : vector<128x128xf32>, vector<128x128xf32>, vector<128x128xf32> -> vector<128x128xf32>
    %64 = arith.addf %59, %63 : vector<128x128xf32>
    %c0_54 = arith.constant 0 : index
    %c0_55 = arith.constant 0 : index
    %c0_56 = arith.constant 0 : index
    %65 = vector.load %arg5[%c0_54, %c0_55, %c0_56] : memref<1x1x128xf32, #tpu.memory_space<vmem>>, vector<1x1x128xf32>
    %66 = vector.shape_cast %65 : vector<1x1x128xf32> to vector<1x128xf32>
    %67 = vector.broadcast %66 : vector<1x128xf32> to vector<128x128xf32>
    %68 = arith.addf %64, %67 : vector<128x128xf32>
    %cst_57 = arith.constant 0.000000e+00 : f32
    %69 = vector.broadcast %cst_57 : f32 to vector<128x128xf32>
    %70 = arith.maximumf %68, %69 : vector<128x128xf32>
    %c0_58 = arith.constant 0 : index
    %c0_59 = arith.constant 0 : index
    %c0_60 = arith.constant 0 : index
    %71 = vector.load %arg6[%c0_58, %c0_59, %c0_60] : memref<2x128x384xf32, #tpu.memory_space<vmem>>, vector<1x128x384xf32>
    %72 = vector.shape_cast %71 : vector<1x128x384xf32> to vector<128x384xf32>
    %cst_61 = arith.constant dense<0.000000e+00> : vector<128x384xf32>
    %73 = tpu.matmul %70, %72, %cst_61 {dimension_numbers = #tpu.dot_dimension_numbers<[1], [0], [0], [1], [0, 0, 1, 1], [], []>} : vector<128x128xf32>, vector<128x384xf32>, vector<128x384xf32> -> vector<128x384xf32>
    %c0_62 = arith.constant 0 : index
    %c0_63 = arith.constant 0 : index
    %c0_64 = arith.constant 0 : index
    %74 = vector.load %arg7[%c0_62, %c0_63, %c0_64] : memref<2x1x384xf32, #tpu.memory_space<vmem>>, vector<1x1x384xf32>
    %75 = vector.shape_cast %74 : vector<1x1x384xf32> to vector<1x384xf32>
    %76 = vector.broadcast %75 : vector<1x384xf32> to vector<128x384xf32>
    %77 = arith.addf %73, %76 : vector<128x384xf32>
    %c0_65 = arith.constant 0 : index
    %c0_66 = arith.constant 0 : index
    %78 = vector.load %arg15[%c0_65, %c0_66] : memref<128x384xf32, #tpu.memory_space<vmem>>, vector<128x384xf32>
    tpu.vector_store %arg15[%c0_65, %c0_66], %77 {strides = array<i32>} : memref<128x384xf32, #tpu.memory_space<vmem>>, vector<128x384xf32>,
    %c0_67 = arith.constant 0 : index
    %c0_68 = arith.constant 0 : index
    %c0_69 = arith.constant 0 : index
    %79 = vector.load %arg8[%c0_67, %c0_68, %c0_69] : memref<2x128x384xf32, #tpu.memory_space<vmem>>, vector<1x128x384xf32>
    %80 = vector.shape_cast %79 : vector<1x128x384xf32> to vector<128x384xf32>
    %c0_70 = arith.constant 0 : index
    %c0_71 = arith.constant 0 : index
    %c0_72 = arith.constant 0 : index
    %81 = vector.load %arg9[%c0_70, %c0_71, %c0_72] : memref<2x1x384xf32, #tpu.memory_space<vmem>>, vector<1x1x384xf32>
    %82 = vector.shape_cast %81 : vector<1x1x384xf32> to vector<1x384xf32>
    %cst_73 = arith.constant 0.000000e+00 : f32
    %83 = vector.broadcast %cst_73 : f32 to vector<8x128xf32>
    %cst_74 = arith.constant dense<0.000000e+00> : vector<8x384xf32>
    %84 = tpu.matmul %83, %80, %cst_74 {dimension_numbers = #tpu.dot_dimension_numbers<[1], [0], [0], [1], [0, 0, 1, 1], [], []>} : vector<8x128xf32>, vector<128x384xf32>, vector<8x384xf32> -> vector<8x384xf32>
    %85 = vector.broadcast %82 : vector<1x384xf32> to vector<8x384xf32>
    %86 = arith.addf %84, %85 : vector<8x384xf32>
    %c0_75 = arith.constant 0 : index
    %c0_76 = arith.constant 0 : index
    %87 = vector.load %arg15[%c0_75, %c0_76] : memref<128x384xf32, #tpu.memory_space<vmem>>, vector<8x384xf32>
    %88 = vector.extract_strided_slice %87 {offsets = [0, 0], sizes = [8, 128], strides = [1, 1]} : vector<8x384xf32> to vector<8x128xf32>
    %89 = vector.extract_strided_slice %86 {offsets = [0, 0], sizes = [8, 128], strides = [1, 1]} : vector<8x384xf32> to vector<8x128xf32>
    %90 = arith.addf %88, %89 : vector<8x128xf32>
    %91 = arith.negf %90 : vector<8x128xf32>
    %92 = math.exp %91 : vector<8x128xf32>
    %cst_77 = arith.constant 1.000000e+00 : f32
    %93 = vector.broadcast %cst_77 : f32 to vector<8x128xf32>
    %94 = arith.addf %93, %92 : vector<8x128xf32>
    %95 = arith.divf %93, %94 : vector<8x128xf32>
    %96 = vector.extract_strided_slice %87 {offsets = [0, 128], sizes = [8, 128], strides = [1, 1]} : vector<8x384xf32> to vector<8x128xf32>
    %97 = vector.extract_strided_slice %86 {offsets = [0, 128], sizes = [8, 128], strides = [1, 1]} : vector<8x384xf32> to vector<8x128xf32>
    %98 = arith.addf %96, %97 : vector<8x128xf32>
    %99 = arith.negf %98 : vector<8x128xf32>
    %100 = math.exp %99 : vector<8x128xf32>
    %cst_78 = arith.constant 1.000000e+00 : f32
    %101 = vector.broadcast %cst_78 : f32 to vector<8x128xf32>
    %102 = arith.addf %101, %100 : vector<8x128xf32>
    %103 = arith.divf %101, %102 : vector<8x128xf32>
    %104 = vector.extract_strided_slice %87 {offsets = [0, 256], sizes = [8, 128], strides = [1, 1]} : vector<8x384xf32> to vector<8x128xf32>
    %105 = vector.extract_strided_slice %86 {offsets = [0, 256], sizes = [8, 128], strides = [1, 1]} : vector<8x384xf32> to vector<8x128xf32>
    %106 = arith.mulf %95, %105 : vector<8x128xf32>
    %107 = arith.addf %104, %106 : vector<8x128xf32>
    %108 = math.tanh %107 : vector<8x128xf32>
    %cst_79 = arith.constant 1.000000e+00 : f32
    %109 = vector.broadcast %cst_79 : f32 to vector<8x128xf32>
    %110 = arith.subf %109, %103 : vector<8x128xf32>
    %111 = arith.mulf %110, %108 : vector<8x128xf32>
    %112 = arith.mulf %103, %83 : vector<8x128xf32>
    %113 = arith.addf %111, %112 : vector<8x128xf32>
    %c0_80 = arith.constant 0 : index
    %c0_81 = arith.constant 0 : index
    %114 = vector.load %arg14[%c0_80, %c0_81] : memref<128x128xf32, #tpu.memory_space<vmem>>, vector<8x128xf32>
    tpu.vector_store %arg14[%c0_80, %c0_81], %113 {strides = array<i32>} : memref<128x128xf32, #tpu.memory_space<vmem>>, vector<8x128xf32>,
    %cst_82 = arith.constant dense<0.000000e+00> : vector<8x384xf32>
    %115 = tpu.matmul %113, %80, %cst_82 {dimension_numbers = #tpu.dot_dimension_numbers<[1], [0], [0], [1], [0, 0, 1, 1], [], []>} : vector<8x128xf32>, vector<128x384xf32>, vector<8x384xf32> -> vector<8x384xf32>
    %116 = vector.broadcast %82 : vector<1x384xf32> to vector<8x384xf32>
    %117 = arith.addf %115, %116 : vector<8x384xf32>
    %c8_83 = arith.constant 8 : index
    %c0_84 = arith.constant 0 : index
    %118 = vector.load %arg15[%c8_83, %c0_84] : memref<128x384xf32, #tpu.memory_space<vmem>>, vector<8x384xf32>
    %119 = vector.extract_strided_slice %118 {offsets = [0, 0], sizes = [8, 128], strides = [1, 1]} : vector<8x384xf32> to vector<8x128xf32>
    %120 = vector.extract_strided_slice %117 {offsets = [0, 0], sizes = [8, 128], strides = [1, 1]} : vector<8x384xf32> to vector<8x128xf32>
    %121 = arith.addf %119, %120 : vector<8x128xf32>
    %122 = arith.negf %121 : vector<8x128xf32>
    %123 = math.exp %122 : vector<8x128xf32>
    %cst_85 = arith.constant 1.000000e+00 : f32
    %124 = vector.broadcast %cst_85 : f32 to vector<8x128xf32>
    %125 = arith.addf %124, %123 : vector<8x128xf32>
    %126 = arith.divf %124, %125 : vector<8x128xf32>
    %127 = vector.extract_strided_slice %118 {offsets = [0, 128], sizes = [8, 128], strides = [1, 1]} : vector<8x384xf32> to vector<8x128xf32>
    %128 = vector.extract_strided_slice %117 {offsets = [0, 128], sizes = [8, 128], strides = [1, 1]} : vector<8x384xf32> to vector<8x128xf32>
    %129 = arith.addf %127, %128 : vector<8x128xf32>
    %130 = arith.negf %129 : vector<8x128xf32>
    %131 = math.exp %130 : vector<8x128xf32>
    %cst_86 = arith.constant 1.000000e+00 : f32
    %132 = vector.broadcast %cst_86 : f32 to vector<8x128xf32>
    %133 = arith.addf %132, %131 : vector<8x128xf32>
    %134 = arith.divf %132, %133 : vector<8x128xf32>
    %135 = vector.extract_strided_slice %118 {offsets = [0, 256], sizes = [8, 128], strides = [1, 1]} : vector<8x384xf32> to vector<8x128xf32>
    %136 = vector.extract_strided_slice %117 {offsets = [0, 256], sizes = [8, 128], strides = [1, 1]} : vector<8x384xf32> to vector<8x128xf32>
    %137 = arith.mulf %126, %136 : vector<8x128xf32>
    %138 = arith.addf %135, %137 : vector<8x128xf32>
    %139 = math.tanh %138 : vector<8x128xf32>
    %cst_87 = arith.constant 1.000000e+00 : f32
    %140 = vector.broadcast %cst_87 : f32 to vector<8x128xf32>
    %141 = arith.subf %140, %134 : vector<8x128xf32>
    %142 = arith.mulf %141, %139 : vector<8x128xf32>
    %143 = arith.mulf %134, %113 : vector<8x128xf32>
    %144 = arith.addf %142, %143 : vector<8x128xf32>
    %c8_88 = arith.constant 8 : index
    %c0_89 = arith.constant 0 : index
    %145 = vector.load %arg14[%c8_88, %c0_89] : memref<128x128xf32, #tpu.memory_space<vmem>>, vector<8x128xf32>
    tpu.vector_store %arg14[%c8_88, %c0_89], %144 {strides = array<i32>} : memref<128x128xf32, #tpu.memory_space<vmem>>, vector<8x128xf32>,
    %cst_90 = arith.constant dense<0.000000e+00> : vector<8x384xf32>
    %146 = tpu.matmul %144, %80, %cst_90 {dimension_numbers = #tpu.dot_dimension_numbers<[1], [0], [0], [1], [0, 0, 1, 1], [], []>} : vector<8x128xf32>, vector<128x384xf32>, vector<8x384xf32> -> vector<8x384xf32>
    %147 = vector.broadcast %82 : vector<1x384xf32> to vector<8x384xf32>
    %148 = arith.addf %146, %147 : vector<8x384xf32>
    %c16_91 = arith.constant 16 : index
    %c0_92 = arith.constant 0 : index
    %149 = vector.load %arg15[%c16_91, %c0_92] : memref<128x384xf32, #tpu.memory_space<vmem>>, vector<8x384xf32>
    %150 = vector.extract_strided_slice %149 {offsets = [0, 0], sizes = [8, 128], strides = [1, 1]} : vector<8x384xf32> to vector<8x128xf32>
    %151 = vector.extract_strided_slice %148 {offsets = [0, 0], sizes = [8, 128], strides = [1, 1]} : vector<8x384xf32> to vector<8x128xf32>
    %152 = arith.addf %150, %151 : vector<8x128xf32>
    %153 = arith.negf %152 : vector<8x128xf32>
    %154 = math.exp %153 : vector<8x128xf32>
    %cst_93 = arith.constant 1.000000e+00 : f32
    %155 = vector.broadcast %cst_93 : f32 to vector<8x128xf32>
    %156 = arith.addf %155, %154 : vector<8x128xf32>
    %157 = arith.divf %155, %156 : vector<8x128xf32>
    %158 = vector.extract_strided_slice %149 {offsets = [0, 128], sizes = [8, 128], strides = [1, 1]} : vector<8x384xf32> to vector<8x128xf32>
    %159 = vector.extract_strided_slice %148 {offsets = [0, 128], sizes = [8, 128], strides = [1, 1]} : vector<8x384xf32> to vector<8x128xf32>
    %160 = arith.addf %158, %159 : vector<8x128xf32>
    %161 = arith.negf %160 : vector<8x128xf32>
    %162 = math.exp %161 : vector<8x128xf32>
    %cst_94 = arith.constant 1.000000e+00 : f32
    %163 = vector.broadcast %cst_94 : f32 to vector<8x128xf32>
    %164 = arith.addf %163, %162 : vector<8x128xf32>
    %165 = arith.divf %163, %164 : vector<8x128xf32>
    %166 = vector.extract_strided_slice %149 {offsets = [0, 256], sizes = [8, 128], strides = [1, 1]} : vector<8x384xf32> to vector<8x128xf32>
    %167 = vector.extract_strided_slice %148 {offsets = [0, 256], sizes = [8, 128], strides = [1, 1]} : vector<8x384xf32> to vector<8x128xf32>
    %168 = arith.mulf %157, %167 : vector<8x128xf32>
    %169 = arith.addf %166, %168 : vector<8x128xf32>
    %170 = math.tanh %169 : vector<8x128xf32>
    %cst_95 = arith.constant 1.000000e+00 : f32
    %171 = vector.broadcast %cst_95 : f32 to vector<8x128xf32>
    %172 = arith.subf %171, %165 : vector<8x128xf32>
    %173 = arith.mulf %172, %170 : vector<8x128xf32>
    %174 = arith.mulf %165, %144 : vector<8x128xf32>
    %175 = arith.addf %173, %174 : vector<8x128xf32>
    %c16_96 = arith.constant 16 : index
    %c0_97 = arith.constant 0 : index
    %176 = vector.load %arg14[%c16_96, %c0_97] : memref<128x128xf32, #tpu.memory_space<vmem>>, vector<8x128xf32>
    tpu.vector_store %arg14[%c16_96, %c0_97], %175 {strides = array<i32>} : memref<128x128xf32, #tpu.memory_space<vmem>>, vector<8x128xf32>,
    %cst_98 = arith.constant dense<0.000000e+00> : vector<8x384xf32>
    %177 = tpu.matmul %175, %80, %cst_98 {dimension_numbers = #tpu.dot_dimension_numbers<[1], [0], [0], [1], [0, 0, 1, 1], [], []>} : vector<8x128xf32>, vector<128x384xf32>, vector<8x384xf32> -> vector<8x384xf32>
    %178 = vector.broadcast %82 : vector<1x384xf32> to vector<8x384xf32>
    %179 = arith.addf %177, %178 : vector<8x384xf32>
    %c24_99 = arith.constant 24 : index
    %c0_100 = arith.constant 0 : index
    %180 = vector.load %arg15[%c24_99, %c0_100] : memref<128x384xf32, #tpu.memory_space<vmem>>, vector<8x384xf32>
    %181 = vector.extract_strided_slice %180 {offsets = [0, 0], sizes = [8, 128], strides = [1, 1]} : vector<8x384xf32> to vector<8x128xf32>
    %182 = vector.extract_strided_slice %179 {offsets = [0, 0], sizes = [8, 128], strides = [1, 1]} : vector<8x384xf32> to vector<8x128xf32>
    %183 = arith.addf %181, %182 : vector<8x128xf32>
    %184 = arith.negf %183 : vector<8x128xf32>
    %185 = math.exp %184 : vector<8x128xf32>
    %cst_101 = arith.constant 1.000000e+00 : f32
    %186 = vector.broadcast %cst_101 : f32 to vector<8x128xf32>
    %187 = arith.addf %186, %185 : vector<8x128xf32>
    %188 = arith.divf %186, %187 : vector<8x128xf32>
    %189 = vector.extract_strided_slice %180 {offsets = [0, 128], sizes = [8, 128], strides = [1, 1]} : vector<8x384xf32> to vector<8x128xf32>
    %190 = vector.extract_strided_slice %179 {offsets = [0, 128], sizes = [8, 128], strides = [1, 1]} : vector<8x384xf32> to vector<8x128xf32>
    %191 = arith.addf %189, %190 : vector<8x128xf32>
    %192 = arith.negf %191 : vector<8x128xf32>
    %193 = math.exp %192 : vector<8x128xf32>
    %cst_102 = arith.constant 1.000000e+00 : f32
    %194 = vector.broadcast %cst_102 : f32 to vector<8x128xf32>
    %195 = arith.addf %194, %193 : vector<8x128xf32>
    %196 = arith.divf %194, %195 : vector<8x128xf32>
    %197 = vector.extract_strided_slice %180 {offsets = [0, 256], sizes = [8, 128], strides = [1, 1]} : vector<8x384xf32> to vector<8x128xf32>
    %198 = vector.extract_strided_slice %179 {offsets = [0, 256], sizes = [8, 128], strides = [1, 1]} : vector<8x384xf32> to vector<8x128xf32>
    %199 = arith.mulf %188, %198 : vector<8x128xf32>
    %200 = arith.addf %197, %199 : vector<8x128xf32>
    %201 = math.tanh %200 : vector<8x128xf32>
    %cst_103 = arith.constant 1.000000e+00 : f32
    %202 = vector.broadcast %cst_103 : f32 to vector<8x128xf32>
    %203 = arith.subf %202, %196 : vector<8x128xf32>
    %204 = arith.mulf %203, %201 : vector<8x128xf32>
    %205 = arith.mulf %196, %175 : vector<8x128xf32>
    %206 = arith.addf %204, %205 : vector<8x128xf32>
    %c24_104 = arith.constant 24 : index
    %c0_105 = arith.constant 0 : index
    %207 = vector.load %arg14[%c24_104, %c0_105] : memref<128x128xf32, #tpu.memory_space<vmem>>, vector<8x128xf32>
    tpu.vector_store %arg14[%c24_104, %c0_105], %206 {strides = array<i32>} : memref<128x128xf32, #tpu.memory_space<vmem>>, vector<8x128xf32>,
    %cst_106 = arith.constant dense<0.000000e+00> : vector<8x384xf32>
    %208 = tpu.matmul %206, %80, %cst_106 {dimension_numbers = #tpu.dot_dimension_numbers<[1], [0], [0], [1], [0, 0, 1, 1], [], []>} : vector<8x128xf32>, vector<128x384xf32>, vector<8x384xf32> -> vector<8x384xf32>
    %209 = vector.broadcast %82 : vector<1x384xf32> to vector<8x384xf32>
    %210 = arith.addf %208, %209 : vector<8x384xf32>
    %c32_107 = arith.constant 32 : index
    %c0_108 = arith.constant 0 : index
    %211 = vector.load %arg15[%c32_107, %c0_108] : memref<128x384xf32, #tpu.memory_space<vmem>>, vector<8x384xf32>
    %212 = vector.extract_strided_slice %211 {offsets = [0, 0], sizes = [8, 128], strides = [1, 1]} : vector<8x384xf32> to vector<8x128xf32>
    %213 = vector.extract_strided_slice %210 {offsets = [0, 0], sizes = [8, 128], strides = [1, 1]} : vector<8x384xf32> to vector<8x128xf32>
    %214 = arith.addf %212, %213 : vector<8x128xf32>
    %215 = arith.negf %214 : vector<8x128xf32>
    %216 = math.exp %215 : vector<8x128xf32>
    %cst_109 = arith.constant 1.000000e+00 : f32
    %217 = vector.broadcast %cst_109 : f32 to vector<8x128xf32>
    %218 = arith.addf %217, %216 : vector<8x128xf32>
    %219 = arith.divf %217, %218 : vector<8x128xf32>
    %220 = vector.extract_strided_slice %211 {offsets = [0, 128], sizes = [8, 128], strides = [1, 1]} : vector<8x384xf32> to vector<8x128xf32>
    %221 = vector.extract_strided_slice %210 {offsets = [0, 128], sizes = [8, 128], strides = [1, 1]} : vector<8x384xf32> to vector<8x128xf32>
    %222 = arith.addf %220, %221 : vector<8x128xf32>
    %223 = arith.negf %222 : vector<8x128xf32>
    %224 = math.exp %223 : vector<8x128xf32>
    %cst_110 = arith.constant 1.000000e+00 : f32
    %225 = vector.broadcast %cst_110 : f32 to vector<8x128xf32>
    %226 = arith.addf %225, %224 : vector<8x128xf32>
    %227 = arith.divf %225, %226 : vector<8x128xf32>
    %228 = vector.extract_strided_slice %211 {offsets = [0, 256], sizes = [8, 128], strides = [1, 1]} : vector<8x384xf32> to vector<8x128xf32>
    %229 = vector.extract_strided_slice %210 {offsets = [0, 256], sizes = [8, 128], strides = [1, 1]} : vector<8x384xf32> to vector<8x128xf32>
    %230 = arith.mulf %219, %229 : vector<8x128xf32>
    %231 = arith.addf %228, %230 : vector<8x128xf32>
    %232 = math.tanh %231 : vector<8x128xf32>
    %cst_111 = arith.constant 1.000000e+00 : f32
    %233 = vector.broadcast %cst_111 : f32 to vector<8x128xf32>
    %234 = arith.subf %233, %227 : vector<8x128xf32>
    %235 = arith.mulf %234, %232 : vector<8x128xf32>
    %236 = arith.mulf %227, %206 : vector<8x128xf32>
    %237 = arith.addf %235, %236 : vector<8x128xf32>
    %c32_112 = arith.constant 32 : index
    %c0_113 = arith.constant 0 : index
    %238 = vector.load %arg14[%c32_112, %c0_113] : memref<128x128xf32, #tpu.memory_space<vmem>>, vector<8x128xf32>
    tpu.vector_store %arg14[%c32_112, %c0_113], %237 {strides = array<i32>} : memref<128x128xf32, #tpu.memory_space<vmem>>, vector<8x128xf32>,
    %cst_114 = arith.constant dense<0.000000e+00> : vector<8x384xf32>
    %239 = tpu.matmul %237, %80, %cst_114 {dimension_numbers = #tpu.dot_dimension_numbers<[1], [0], [0], [1], [0, 0, 1, 1], [], []>} : vector<8x128xf32>, vector<128x384xf32>, vector<8x384xf32> -> vector<8x384xf32>
    %240 = vector.broadcast %82 : vector<1x384xf32> to vector<8x384xf32>
    %241 = arith.addf %239, %240 : vector<8x384xf32>
    %c40 = arith.constant 40 : index
    %c0_115 = arith.constant 0 : index
    %242 = vector.load %arg15[%c40, %c0_115] : memref<128x384xf32, #tpu.memory_space<vmem>>, vector<8x384xf32>
    %243 = vector.extract_strided_slice %242 {offsets = [0, 0], sizes = [8, 128], strides = [1, 1]} : vector<8x384xf32> to vector<8x128xf32>
    %244 = vector.extract_strided_slice %241 {offsets = [0, 0], sizes = [8, 128], strides = [1, 1]} : vector<8x384xf32> to vector<8x128xf32>
    %245 = arith.addf %243, %244 : vector<8x128xf32>
    %246 = arith.negf %245 : vector<8x128xf32>
    %247 = math.exp %246 : vector<8x128xf32>
    %cst_116 = arith.constant 1.000000e+00 : f32
    %248 = vector.broadcast %cst_116 : f32 to vector<8x128xf32>
    %249 = arith.addf %248, %247 : vector<8x128xf32>
    %250 = arith.divf %248, %249 : vector<8x128xf32>
    %251 = vector.extract_strided_slice %242 {offsets = [0, 128], sizes = [8, 128], strides = [1, 1]} : vector<8x384xf32> to vector<8x128xf32>
    %252 = vector.extract_strided_slice %241 {offsets = [0, 128], sizes = [8, 128], strides = [1, 1]} : vector<8x384xf32> to vector<8x128xf32>
    %253 = arith.addf %251, %252 : vector<8x128xf32>
    %254 = arith.negf %253 : vector<8x128xf32>
    %255 = math.exp %254 : vector<8x128xf32>
    %cst_117 = arith.constant 1.000000e+00 : f32
    %256 = vector.broadcast %cst_117 : f32 to vector<8x128xf32>
    %257 = arith.addf %256, %255 : vector<8x128xf32>
    %258 = arith.divf %256, %257 : vector<8x128xf32>
    %259 = vector.extract_strided_slice %242 {offsets = [0, 256], sizes = [8, 128], strides = [1, 1]} : vector<8x384xf32> to vector<8x128xf32>
    %260 = vector.extract_strided_slice %241 {offsets = [0, 256], sizes = [8, 128], strides = [1, 1]} : vector<8x384xf32> to vector<8x128xf32>
    %261 = arith.mulf %250, %260 : vector<8x128xf32>
    %262 = arith.addf %259, %261 : vector<8x128xf32>
    %263 = math.tanh %262 : vector<8x128xf32>
    %cst_118 = arith.constant 1.000000e+00 : f32
    %264 = vector.broadcast %cst_118 : f32 to vector<8x128xf32>
    %265 = arith.subf %264, %258 : vector<8x128xf32>
    %266 = arith.mulf %265, %263 : vector<8x128xf32>
    %267 = arith.mulf %258, %237 : vector<8x128xf32>
    %268 = arith.addf %266, %267 : vector<8x128xf32>
    %c40_119 = arith.constant 40 : index
    %c0_120 = arith.constant 0 : index
    %269 = vector.load %arg14[%c40_119, %c0_120] : memref<128x128xf32, #tpu.memory_space<vmem>>, vector<8x128xf32>
    tpu.vector_store %arg14[%c40_119, %c0_120], %268 {strides = array<i32>} : memref<128x128xf32, #tpu.memory_space<vmem>>, vector<8x128xf32>,
    %cst_121 = arith.constant dense<0.000000e+00> : vector<8x384xf32>
    %270 = tpu.matmul %268, %80, %cst_121 {dimension_numbers = #tpu.dot_dimension_numbers<[1], [0], [0], [1], [0, 0, 1, 1], [], []>} : vector<8x128xf32>, vector<128x384xf32>, vector<8x384xf32> -> vector<8x384xf32>
    %271 = vector.broadcast %82 : vector<1x384xf32> to vector<8x384xf32>
    %272 = arith.addf %270, %271 : vector<8x384xf32>
    %c48 = arith.constant 48 : index
    %c0_122 = arith.constant 0 : index
    %273 = vector.load %arg15[%c48, %c0_122] : memref<128x384xf32, #tpu.memory_space<vmem>>, vector<8x384xf32>
    %274 = vector.extract_strided_slice %273 {offsets = [0, 0], sizes = [8, 128], strides = [1, 1]} : vector<8x384xf32> to vector<8x128xf32>
    %275 = vector.extract_strided_slice %272 {offsets = [0, 0], sizes = [8, 128], strides = [1, 1]} : vector<8x384xf32> to vector<8x128xf32>
    %276 = arith.addf %274, %275 : vector<8x128xf32>
    %277 = arith.negf %276 : vector<8x128xf32>
    %278 = math.exp %277 : vector<8x128xf32>
    %cst_123 = arith.constant 1.000000e+00 : f32
    %279 = vector.broadcast %cst_123 : f32 to vector<8x128xf32>
    %280 = arith.addf %279, %278 : vector<8x128xf32>
    %281 = arith.divf %279, %280 : vector<8x128xf32>
    %282 = vector.extract_strided_slice %273 {offsets = [0, 128], sizes = [8, 128], strides = [1, 1]} : vector<8x384xf32> to vector<8x128xf32>
    %283 = vector.extract_strided_slice %272 {offsets = [0, 128], sizes = [8, 128], strides = [1, 1]} : vector<8x384xf32> to vector<8x128xf32>
    %284 = arith.addf %282, %283 : vector<8x128xf32>
    %285 = arith.negf %284 : vector<8x128xf32>
    %286 = math.exp %285 : vector<8x128xf32>
    %cst_124 = arith.constant 1.000000e+00 : f32
    %287 = vector.broadcast %cst_124 : f32 to vector<8x128xf32>
    %288 = arith.addf %287, %286 : vector<8x128xf32>
    %289 = arith.divf %287, %288 : vector<8x128xf32>
    %290 = vector.extract_strided_slice %273 {offsets = [0, 256], sizes = [8, 128], strides = [1, 1]} : vector<8x384xf32> to vector<8x128xf32>
    %291 = vector.extract_strided_slice %272 {offsets = [0, 256], sizes = [8, 128], strides = [1, 1]} : vector<8x384xf32> to vector<8x128xf32>
    %292 = arith.mulf %281, %291 : vector<8x128xf32>
    %293 = arith.addf %290, %292 : vector<8x128xf32>
    %294 = math.tanh %293 : vector<8x128xf32>
    %cst_125 = arith.constant 1.000000e+00 : f32
    %295 = vector.broadcast %cst_125 : f32 to vector<8x128xf32>
    %296 = arith.subf %295, %289 : vector<8x128xf32>
    %297 = arith.mulf %296, %294 : vector<8x128xf32>
    %298 = arith.mulf %289, %268 : vector<8x128xf32>
    %299 = arith.addf %297, %298 : vector<8x128xf32>
    %c48_126 = arith.constant 48 : index
    %c0_127 = arith.constant 0 : index
    %300 = vector.load %arg14[%c48_126, %c0_127] : memref<128x128xf32, #tpu.memory_space<vmem>>, vector<8x128xf32>
    tpu.vector_store %arg14[%c48_126, %c0_127], %299 {strides = array<i32>} : memref<128x128xf32, #tpu.memory_space<vmem>>, vector<8x128xf32>,
    %cst_128 = arith.constant dense<0.000000e+00> : vector<8x384xf32>
    %301 = tpu.matmul %299, %80, %cst_128 {dimension_numbers = #tpu.dot_dimension_numbers<[1], [0], [0], [1], [0, 0, 1, 1], [], []>} : vector<8x128xf32>, vector<128x384xf32>, vector<8x384xf32> -> vector<8x384xf32>
    %302 = vector.broadcast %82 : vector<1x384xf32> to vector<8x384xf32>
    %303 = arith.addf %301, %302 : vector<8x384xf32>
    %c56 = arith.constant 56 : index
    %c0_129 = arith.constant 0 : index
    %304 = vector.load %arg15[%c56, %c0_129] : memref<128x384xf32, #tpu.memory_space<vmem>>, vector<8x384xf32>
    %305 = vector.extract_strided_slice %304 {offsets = [0, 0], sizes = [8, 128], strides = [1, 1]} : vector<8x384xf32> to vector<8x128xf32>
    %306 = vector.extract_strided_slice %303 {offsets = [0, 0], sizes = [8, 128], strides = [1, 1]} : vector<8x384xf32> to vector<8x128xf32>
    %307 = arith.addf %305, %306 : vector<8x128xf32>
    %308 = arith.negf %307 : vector<8x128xf32>
    %309 = math.exp %308 : vector<8x128xf32>
    %cst_130 = arith.constant 1.000000e+00 : f32
    %310 = vector.broadcast %cst_130 : f32 to vector<8x128xf32>
    %311 = arith.addf %310, %309 : vector<8x128xf32>
    %312 = arith.divf %310, %311 : vector<8x128xf32>
    %313 = vector.extract_strided_slice %304 {offsets = [0, 128], sizes = [8, 128], strides = [1, 1]} : vector<8x384xf32> to vector<8x128xf32>
    %314 = vector.extract_strided_slice %303 {offsets = [0, 128], sizes = [8, 128], strides = [1, 1]} : vector<8x384xf32> to vector<8x128xf32>
    %315 = arith.addf %313, %314 : vector<8x128xf32>
    %316 = arith.negf %315 : vector<8x128xf32>
    %317 = math.exp %316 : vector<8x128xf32>
    %cst_131 = arith.constant 1.000000e+00 : f32
    %318 = vector.broadcast %cst_131 : f32 to vector<8x128xf32>
    %319 = arith.addf %318, %317 : vector<8x128xf32>
    %320 = arith.divf %318, %319 : vector<8x128xf32>
    %321 = vector.extract_strided_slice %304 {offsets = [0, 256], sizes = [8, 128], strides = [1, 1]} : vector<8x384xf32> to vector<8x128xf32>
    %322 = vector.extract_strided_slice %303 {offsets = [0, 256], sizes = [8, 128], strides = [1, 1]} : vector<8x384xf32> to vector<8x128xf32>
    %323 = arith.mulf %312, %322 : vector<8x128xf32>
    %324 = arith.addf %321, %323 : vector<8x128xf32>
    %325 = math.tanh %324 : vector<8x128xf32>
    %cst_132 = arith.constant 1.000000e+00 : f32
    %326 = vector.broadcast %cst_132 : f32 to vector<8x128xf32>
    %327 = arith.subf %326, %320 : vector<8x128xf32>
    %328 = arith.mulf %327, %325 : vector<8x128xf32>
    %329 = arith.mulf %320, %299 : vector<8x128xf32>
    %330 = arith.addf %328, %329 : vector<8x128xf32>
    %c56_133 = arith.constant 56 : index
    %c0_134 = arith.constant 0 : index
    %331 = vector.load %arg14[%c56_133, %c0_134] : memref<128x128xf32, #tpu.memory_space<vmem>>, vector<8x128xf32>
    tpu.vector_store %arg14[%c56_133, %c0_134], %330 {strides = array<i32>} : memref<128x128xf32, #tpu.memory_space<vmem>>, vector<8x128xf32>,
    %cst_135 = arith.constant dense<0.000000e+00> : vector<8x384xf32>
    %332 = tpu.matmul %330, %80, %cst_135 {dimension_numbers = #tpu.dot_dimension_numbers<[1], [0], [0], [1], [0, 0, 1, 1], [], []>} : vector<8x128xf32>, vector<128x384xf32>, vector<8x384xf32> -> vector<8x384xf32>
    %333 = vector.broadcast %82 : vector<1x384xf32> to vector<8x384xf32>
    %334 = arith.addf %332, %333 : vector<8x384xf32>
    %c64 = arith.constant 64 : index
    %c0_136 = arith.constant 0 : index
    %335 = vector.load %arg15[%c64, %c0_136] : memref<128x384xf32, #tpu.memory_space<vmem>>, vector<8x384xf32>
    %336 = vector.extract_strided_slice %335 {offsets = [0, 0], sizes = [8, 128], strides = [1, 1]} : vector<8x384xf32> to vector<8x128xf32>
    %337 = vector.extract_strided_slice %334 {offsets = [0, 0], sizes = [8, 128], strides = [1, 1]} : vector<8x384xf32> to vector<8x128xf32>
    %338 = arith.addf %336, %337 : vector<8x128xf32>
    %339 = arith.negf %338 : vector<8x128xf32>
    %340 = math.exp %339 : vector<8x128xf32>
    %cst_137 = arith.constant 1.000000e+00 : f32
    %341 = vector.broadcast %cst_137 : f32 to vector<8x128xf32>
    %342 = arith.addf %341, %340 : vector<8x128xf32>
    %343 = arith.divf %341, %342 : vector<8x128xf32>
    %344 = vector.extract_strided_slice %335 {offsets = [0, 128], sizes = [8, 128], strides = [1, 1]} : vector<8x384xf32> to vector<8x128xf32>
    %345 = vector.extract_strided_slice %334 {offsets = [0, 128], sizes = [8, 128], strides = [1, 1]} : vector<8x384xf32> to vector<8x128xf32>
    %346 = arith.addf %344, %345 : vector<8x128xf32>
    %347 = arith.negf %346 : vector<8x128xf32>
    %348 = math.exp %347 : vector<8x128xf32>
    %cst_138 = arith.constant 1.000000e+00 : f32
    %349 = vector.broadcast %cst_138 : f32 to vector<8x128xf32>
    %350 = arith.addf %349, %348 : vector<8x128xf32>
    %351 = arith.divf %349, %350 : vector<8x128xf32>
    %352 = vector.extract_strided_slice %335 {offsets = [0, 256], sizes = [8, 128], strides = [1, 1]} : vector<8x384xf32> to vector<8x128xf32>
    %353 = vector.extract_strided_slice %334 {offsets = [0, 256], sizes = [8, 128], strides = [1, 1]} : vector<8x384xf32> to vector<8x128xf32>
    %354 = arith.mulf %343, %353 : vector<8x128xf32>
    %355 = arith.addf %352, %354 : vector<8x128xf32>
    %356 = math.tanh %355 : vector<8x128xf32>
    %cst_139 = arith.constant 1.000000e+00 : f32
    %357 = vector.broadcast %cst_139 : f32 to vector<8x128xf32>
    %358 = arith.subf %357, %351 : vector<8x128xf32>
    %359 = arith.mulf %358, %356 : vector<8x128xf32>
    %360 = arith.mulf %351, %330 : vector<8x128xf32>
    %361 = arith.addf %359, %360 : vector<8x128xf32>
    %c64_140 = arith.constant 64 : index
    %c0_141 = arith.constant 0 : index
    %362 = vector.load %arg14[%c64_140, %c0_141] : memref<128x128xf32, #tpu.memory_space<vmem>>, vector<8x128xf32>
    tpu.vector_store %arg14[%c64_140, %c0_141], %361 {strides = array<i32>} : memref<128x128xf32, #tpu.memory_space<vmem>>, vector<8x128xf32>,
    %cst_142 = arith.constant dense<0.000000e+00> : vector<8x384xf32>
    %363 = tpu.matmul %361, %80, %cst_142 {dimension_numbers = #tpu.dot_dimension_numbers<[1], [0], [0], [1], [0, 0, 1, 1], [], []>} : vector<8x128xf32>, vector<128x384xf32>, vector<8x384xf32> -> vector<8x384xf32>
    %364 = vector.broadcast %82 : vector<1x384xf32> to vector<8x384xf32>
    %365 = arith.addf %363, %364 : vector<8x384xf32>
    %c72 = arith.constant 72 : index
    %c0_143 = arith.constant 0 : index
    %366 = vector.load %arg15[%c72, %c0_143] : memref<128x384xf32, #tpu.memory_space<vmem>>, vector<8x384xf32>
    %367 = vector.extract_strided_slice %366 {offsets = [0, 0], sizes = [8, 128], strides = [1, 1]} : vector<8x384xf32> to vector<8x128xf32>
    %368 = vector.extract_strided_slice %365 {offsets = [0, 0], sizes = [8, 128], strides = [1, 1]} : vector<8x384xf32> to vector<8x128xf32>
    %369 = arith.addf %367, %368 : vector<8x128xf32>
    %370 = arith.negf %369 : vector<8x128xf32>
    %371 = math.exp %370 : vector<8x128xf32>
    %cst_144 = arith.constant 1.000000e+00 : f32
    %372 = vector.broadcast %cst_144 : f32 to vector<8x128xf32>
    %373 = arith.addf %372, %371 : vector<8x128xf32>
    %374 = arith.divf %372, %373 : vector<8x128xf32>
    %375 = vector.extract_strided_slice %366 {offsets = [0, 128], sizes = [8, 128], strides = [1, 1]} : vector<8x384xf32> to vector<8x128xf32>
    %376 = vector.extract_strided_slice %365 {offsets = [0, 128], sizes = [8, 128], strides = [1, 1]} : vector<8x384xf32> to vector<8x128xf32>
    %377 = arith.addf %375, %376 : vector<8x128xf32>
    %378 = arith.negf %377 : vector<8x128xf32>
    %379 = math.exp %378 : vector<8x128xf32>
    %cst_145 = arith.constant 1.000000e+00 : f32
    %380 = vector.broadcast %cst_145 : f32 to vector<8x128xf32>
    %381 = arith.addf %380, %379 : vector<8x128xf32>
    %382 = arith.divf %380, %381 : vector<8x128xf32>
    %383 = vector.extract_strided_slice %366 {offsets = [0, 256], sizes = [8, 128], strides = [1, 1]} : vector<8x384xf32> to vector<8x128xf32>
    %384 = vector.extract_strided_slice %365 {offsets = [0, 256], sizes = [8, 128], strides = [1, 1]} : vector<8x384xf32> to vector<8x128xf32>
    %385 = arith.mulf %374, %384 : vector<8x128xf32>
    %386 = arith.addf %383, %385 : vector<8x128xf32>
    %387 = math.tanh %386 : vector<8x128xf32>
    %cst_146 = arith.constant 1.000000e+00 : f32
    %388 = vector.broadcast %cst_146 : f32 to vector<8x128xf32>
    %389 = arith.subf %388, %382 : vector<8x128xf32>
    %390 = arith.mulf %389, %387 : vector<8x128xf32>
    %391 = arith.mulf %382, %361 : vector<8x128xf32>
    %392 = arith.addf %390, %391 : vector<8x128xf32>
    %c72_147 = arith.constant 72 : index
    %c0_148 = arith.constant 0 : index
    %393 = vector.load %arg14[%c72_147, %c0_148] : memref<128x128xf32, #tpu.memory_space<vmem>>, vector<8x128xf32>
    tpu.vector_store %arg14[%c72_147, %c0_148], %392 {strides = array<i32>} : memref<128x128xf32, #tpu.memory_space<vmem>>, vector<8x128xf32>,
    %cst_149 = arith.constant dense<0.000000e+00> : vector<8x384xf32>
    %394 = tpu.matmul %392, %80, %cst_149 {dimension_numbers = #tpu.dot_dimension_numbers<[1], [0], [0], [1], [0, 0, 1, 1], [], []>} : vector<8x128xf32>, vector<128x384xf32>, vector<8x384xf32> -> vector<8x384xf32>
    %395 = vector.broadcast %82 : vector<1x384xf32> to vector<8x384xf32>
    %396 = arith.addf %394, %395 : vector<8x384xf32>
    %c80 = arith.constant 80 : index
    %c0_150 = arith.constant 0 : index
    %397 = vector.load %arg15[%c80, %c0_150] : memref<128x384xf32, #tpu.memory_space<vmem>>, vector<8x384xf32>
    %398 = vector.extract_strided_slice %397 {offsets = [0, 0], sizes = [8, 128], strides = [1, 1]} : vector<8x384xf32> to vector<8x128xf32>
    %399 = vector.extract_strided_slice %396 {offsets = [0, 0], sizes = [8, 128], strides = [1, 1]} : vector<8x384xf32> to vector<8x128xf32>
    %400 = arith.addf %398, %399 : vector<8x128xf32>
    %401 = arith.negf %400 : vector<8x128xf32>
    %402 = math.exp %401 : vector<8x128xf32>
    %cst_151 = arith.constant 1.000000e+00 : f32
    %403 = vector.broadcast %cst_151 : f32 to vector<8x128xf32>
    %404 = arith.addf %403, %402 : vector<8x128xf32>
    %405 = arith.divf %403, %404 : vector<8x128xf32>
    %406 = vector.extract_strided_slice %397 {offsets = [0, 128], sizes = [8, 128], strides = [1, 1]} : vector<8x384xf32> to vector<8x128xf32>
    %407 = vector.extract_strided_slice %396 {offsets = [0, 128], sizes = [8, 128], strides = [1, 1]} : vector<8x384xf32> to vector<8x128xf32>
    %408 = arith.addf %406, %407 : vector<8x128xf32>
    %409 = arith.negf %408 : vector<8x128xf32>
    %410 = math.exp %409 : vector<8x128xf32>
    %cst_152 = arith.constant 1.000000e+00 : f32
    %411 = vector.broadcast %cst_152 : f32 to vector<8x128xf32>
    %412 = arith.addf %411, %410 : vector<8x128xf32>
    %413 = arith.divf %411, %412 : vector<8x128xf32>
    %414 = vector.extract_strided_slice %397 {offsets = [0, 256], sizes = [8, 128], strides = [1, 1]} : vector<8x384xf32> to vector<8x128xf32>
    %415 = vector.extract_strided_slice %396 {offsets = [0, 256], sizes = [8, 128], strides = [1, 1]} : vector<8x384xf32> to vector<8x128xf32>
    %416 = arith.mulf %405, %415 : vector<8x128xf32>
    %417 = arith.addf %414, %416 : vector<8x128xf32>
    %418 = math.tanh %417 : vector<8x128xf32>
    %cst_153 = arith.constant 1.000000e+00 : f32
    %419 = vector.broadcast %cst_153 : f32 to vector<8x128xf32>
    %420 = arith.subf %419, %413 : vector<8x128xf32>
    %421 = arith.mulf %420, %418 : vector<8x128xf32>
    %422 = arith.mulf %413, %392 : vector<8x128xf32>
    %423 = arith.addf %421, %422 : vector<8x128xf32>
    %c80_154 = arith.constant 80 : index
    %c0_155 = arith.constant 0 : index
    %424 = vector.load %arg14[%c80_154, %c0_155] : memref<128x128xf32, #tpu.memory_space<vmem>>, vector<8x128xf32>
    tpu.vector_store %arg14[%c80_154, %c0_155], %423 {strides = array<i32>} : memref<128x128xf32, #tpu.memory_space<vmem>>, vector<8x128xf32>,
    %cst_156 = arith.constant dense<0.000000e+00> : vector<8x384xf32>
    %425 = tpu.matmul %423, %80, %cst_156 {dimension_numbers = #tpu.dot_dimension_numbers<[1], [0], [0], [1], [0, 0, 1, 1], [], []>} : vector<8x128xf32>, vector<128x384xf32>, vector<8x384xf32> -> vector<8x384xf32>
    %426 = vector.broadcast %82 : vector<1x384xf32> to vector<8x384xf32>
    %427 = arith.addf %425, %426 : vector<8x384xf32>
    %c88 = arith.constant 88 : index
    %c0_157 = arith.constant 0 : index
    %428 = vector.load %arg15[%c88, %c0_157] : memref<128x384xf32, #tpu.memory_space<vmem>>, vector<8x384xf32>
    %429 = vector.extract_strided_slice %428 {offsets = [0, 0], sizes = [8, 128], strides = [1, 1]} : vector<8x384xf32> to vector<8x128xf32>
    %430 = vector.extract_strided_slice %427 {offsets = [0, 0], sizes = [8, 128], strides = [1, 1]} : vector<8x384xf32> to vector<8x128xf32>
    %431 = arith.addf %429, %430 : vector<8x128xf32>
    %432 = arith.negf %431 : vector<8x128xf32>
    %433 = math.exp %432 : vector<8x128xf32>
    %cst_158 = arith.constant 1.000000e+00 : f32
    %434 = vector.broadcast %cst_158 : f32 to vector<8x128xf32>
    %435 = arith.addf %434, %433 : vector<8x128xf32>
    %436 = arith.divf %434, %435 : vector<8x128xf32>
    %437 = vector.extract_strided_slice %428 {offsets = [0, 128], sizes = [8, 128], strides = [1, 1]} : vector<8x384xf32> to vector<8x128xf32>
    %438 = vector.extract_strided_slice %427 {offsets = [0, 128], sizes = [8, 128], strides = [1, 1]} : vector<8x384xf32> to vector<8x128xf32>
    %439 = arith.addf %437, %438 : vector<8x128xf32>
    %440 = arith.negf %439 : vector<8x128xf32>
    %441 = math.exp %440 : vector<8x128xf32>
    %cst_159 = arith.constant 1.000000e+00 : f32
    %442 = vector.broadcast %cst_159 : f32 to vector<8x128xf32>
    %443 = arith.addf %442, %441 : vector<8x128xf32>
    %444 = arith.divf %442, %443 : vector<8x128xf32>
    %445 = vector.extract_strided_slice %428 {offsets = [0, 256], sizes = [8, 128], strides = [1, 1]} : vector<8x384xf32> to vector<8x128xf32>
    %446 = vector.extract_strided_slice %427 {offsets = [0, 256], sizes = [8, 128], strides = [1, 1]} : vector<8x384xf32> to vector<8x128xf32>
    %447 = arith.mulf %436, %446 : vector<8x128xf32>
    %448 = arith.addf %445, %447 : vector<8x128xf32>
    %449 = math.tanh %448 : vector<8x128xf32>
    %cst_160 = arith.constant 1.000000e+00 : f32
    %450 = vector.broadcast %cst_160 : f32 to vector<8x128xf32>
    %451 = arith.subf %450, %444 : vector<8x128xf32>
    %452 = arith.mulf %451, %449 : vector<8x128xf32>
    %453 = arith.mulf %444, %423 : vector<8x128xf32>
    %454 = arith.addf %452, %453 : vector<8x128xf32>
    %c88_161 = arith.constant 88 : index
    %c0_162 = arith.constant 0 : index
    %455 = vector.load %arg14[%c88_161, %c0_162] : memref<128x128xf32, #tpu.memory_space<vmem>>, vector<8x128xf32>
    tpu.vector_store %arg14[%c88_161, %c0_162], %454 {strides = array<i32>} : memref<128x128xf32, #tpu.memory_space<vmem>>, vector<8x128xf32>,
    %cst_163 = arith.constant dense<0.000000e+00> : vector<8x384xf32>
    %456 = tpu.matmul %454, %80, %cst_163 {dimension_numbers = #tpu.dot_dimension_numbers<[1], [0], [0], [1], [0, 0, 1, 1], [], []>} : vector<8x128xf32>, vector<128x384xf32>, vector<8x384xf32> -> vector<8x384xf32>
    %457 = vector.broadcast %82 : vector<1x384xf32> to vector<8x384xf32>
    %458 = arith.addf %456, %457 : vector<8x384xf32>
    %c96 = arith.constant 96 : index
    %c0_164 = arith.constant 0 : index
    %459 = vector.load %arg15[%c96, %c0_164] : memref<128x384xf32, #tpu.memory_space<vmem>>, vector<8x384xf32>
    %460 = vector.extract_strided_slice %459 {offsets = [0, 0], sizes = [8, 128], strides = [1, 1]} : vector<8x384xf32> to vector<8x128xf32>
    %461 = vector.extract_strided_slice %458 {offsets = [0, 0], sizes = [8, 128], strides = [1, 1]} : vector<8x384xf32> to vector<8x128xf32>
    %462 = arith.addf %460, %461 : vector<8x128xf32>
    %463 = arith.negf %462 : vector<8x128xf32>
    %464 = math.exp %463 : vector<8x128xf32>
    %cst_165 = arith.constant 1.000000e+00 : f32
    %465 = vector.broadcast %cst_165 : f32 to vector<8x128xf32>
    %466 = arith.addf %465, %464 : vector<8x128xf32>
    %467 = arith.divf %465, %466 : vector<8x128xf32>
    %468 = vector.extract_strided_slice %459 {offsets = [0, 128], sizes = [8, 128], strides = [1, 1]} : vector<8x384xf32> to vector<8x128xf32>
    %469 = vector.extract_strided_slice %458 {offsets = [0, 128], sizes = [8, 128], strides = [1, 1]} : vector<8x384xf32> to vector<8x128xf32>
    %470 = arith.addf %468, %469 : vector<8x128xf32>
    %471 = arith.negf %470 : vector<8x128xf32>
    %472 = math.exp %471 : vector<8x128xf32>
    %cst_166 = arith.constant 1.000000e+00 : f32
    %473 = vector.broadcast %cst_166 : f32 to vector<8x128xf32>
    %474 = arith.addf %473, %472 : vector<8x128xf32>
    %475 = arith.divf %473, %474 : vector<8x128xf32>
    %476 = vector.extract_strided_slice %459 {offsets = [0, 256], sizes = [8, 128], strides = [1, 1]} : vector<8x384xf32> to vector<8x128xf32>
    %477 = vector.extract_strided_slice %458 {offsets = [0, 256], sizes = [8, 128], strides = [1, 1]} : vector<8x384xf32> to vector<8x128xf32>
    %478 = arith.mulf %467, %477 : vector<8x128xf32>
    %479 = arith.addf %476, %478 : vector<8x128xf32>
    %480 = math.tanh %479 : vector<8x128xf32>
    %cst_167 = arith.constant 1.000000e+00 : f32
    %481 = vector.broadcast %cst_167 : f32 to vector<8x128xf32>
    %482 = arith.subf %481, %475 : vector<8x128xf32>
    %483 = arith.mulf %482, %480 : vector<8x128xf32>
    %484 = arith.mulf %475, %454 : vector<8x128xf32>
    %485 = arith.addf %483, %484 : vector<8x128xf32>
    %c96_168 = arith.constant 96 : index
    %c0_169 = arith.constant 0 : index
    %486 = vector.load %arg14[%c96_168, %c0_169] : memref<128x128xf32, #tpu.memory_space<vmem>>, vector<8x128xf32>
    tpu.vector_store %arg14[%c96_168, %c0_169], %485 {strides = array<i32>} : memref<128x128xf32, #tpu.memory_space<vmem>>, vector<8x128xf32>,
    %cst_170 = arith.constant dense<0.000000e+00> : vector<8x384xf32>
    %487 = tpu.matmul %485, %80, %cst_170 {dimension_numbers = #tpu.dot_dimension_numbers<[1], [0], [0], [1], [0, 0, 1, 1], [], []>} : vector<8x128xf32>, vector<128x384xf32>, vector<8x384xf32> -> vector<8x384xf32>
    %488 = vector.broadcast %82 : vector<1x384xf32> to vector<8x384xf32>
    %489 = arith.addf %487, %488 : vector<8x384xf32>
    %c104 = arith.constant 104 : index
    %c0_171 = arith.constant 0 : index
    %490 = vector.load %arg15[%c104, %c0_171] : memref<128x384xf32, #tpu.memory_space<vmem>>, vector<8x384xf32>
    %491 = vector.extract_strided_slice %490 {offsets = [0, 0], sizes = [8, 128], strides = [1, 1]} : vector<8x384xf32> to vector<8x128xf32>
    %492 = vector.extract_strided_slice %489 {offsets = [0, 0], sizes = [8, 128], strides = [1, 1]} : vector<8x384xf32> to vector<8x128xf32>
    %493 = arith.addf %491, %492 : vector<8x128xf32>
    %494 = arith.negf %493 : vector<8x128xf32>
    %495 = math.exp %494 : vector<8x128xf32>
    %cst_172 = arith.constant 1.000000e+00 : f32
    %496 = vector.broadcast %cst_172 : f32 to vector<8x128xf32>
    %497 = arith.addf %496, %495 : vector<8x128xf32>
    %498 = arith.divf %496, %497 : vector<8x128xf32>
    %499 = vector.extract_strided_slice %490 {offsets = [0, 128], sizes = [8, 128], strides = [1, 1]} : vector<8x384xf32> to vector<8x128xf32>
    %500 = vector.extract_strided_slice %489 {offsets = [0, 128], sizes = [8, 128], strides = [1, 1]} : vector<8x384xf32> to vector<8x128xf32>
    %501 = arith.addf %499, %500 : vector<8x128xf32>
    %502 = arith.negf %501 : vector<8x128xf32>
    %503 = math.exp %502 : vector<8x128xf32>
    %cst_173 = arith.constant 1.000000e+00 : f32
    %504 = vector.broadcast %cst_173 : f32 to vector<8x128xf32>
    %505 = arith.addf %504, %503 : vector<8x128xf32>
    %506 = arith.divf %504, %505 : vector<8x128xf32>
    %507 = vector.extract_strided_slice %490 {offsets = [0, 256], sizes = [8, 128], strides = [1, 1]} : vector<8x384xf32> to vector<8x128xf32>
    %508 = vector.extract_strided_slice %489 {offsets = [0, 256], sizes = [8, 128], strides = [1, 1]} : vector<8x384xf32> to vector<8x128xf32>
    %509 = arith.mulf %498, %508 : vector<8x128xf32>
    %510 = arith.addf %507, %509 : vector<8x128xf32>
    %511 = math.tanh %510 : vector<8x128xf32>
    %cst_174 = arith.constant 1.000000e+00 : f32
    %512 = vector.broadcast %cst_174 : f32 to vector<8x128xf32>
    %513 = arith.subf %512, %506 : vector<8x128xf32>
    %514 = arith.mulf %513, %511 : vector<8x128xf32>
    %515 = arith.mulf %506, %485 : vector<8x128xf32>
    %516 = arith.addf %514, %515 : vector<8x128xf32>
    %c104_175 = arith.constant 104 : index
    %c0_176 = arith.constant 0 : index
    %517 = vector.load %arg14[%c104_175, %c0_176] : memref<128x128xf32, #tpu.memory_space<vmem>>, vector<8x128xf32>
    tpu.vector_store %arg14[%c104_175, %c0_176], %516 {strides = array<i32>} : memref<128x128xf32, #tpu.memory_space<vmem>>, vector<8x128xf32>,
    %cst_177 = arith.constant dense<0.000000e+00> : vector<8x384xf32>
    %518 = tpu.matmul %516, %80, %cst_177 {dimension_numbers = #tpu.dot_dimension_numbers<[1], [0], [0], [1], [0, 0, 1, 1], [], []>} : vector<8x128xf32>, vector<128x384xf32>, vector<8x384xf32> -> vector<8x384xf32>
    %519 = vector.broadcast %82 : vector<1x384xf32> to vector<8x384xf32>
    %520 = arith.addf %518, %519 : vector<8x384xf32>
    %c112 = arith.constant 112 : index
    %c0_178 = arith.constant 0 : index
    %521 = vector.load %arg15[%c112, %c0_178] : memref<128x384xf32, #tpu.memory_space<vmem>>, vector<8x384xf32>
    %522 = vector.extract_strided_slice %521 {offsets = [0, 0], sizes = [8, 128], strides = [1, 1]} : vector<8x384xf32> to vector<8x128xf32>
    %523 = vector.extract_strided_slice %520 {offsets = [0, 0], sizes = [8, 128], strides = [1, 1]} : vector<8x384xf32> to vector<8x128xf32>
    %524 = arith.addf %522, %523 : vector<8x128xf32>
    %525 = arith.negf %524 : vector<8x128xf32>
    %526 = math.exp %525 : vector<8x128xf32>
    %cst_179 = arith.constant 1.000000e+00 : f32
    %527 = vector.broadcast %cst_179 : f32 to vector<8x128xf32>
    %528 = arith.addf %527, %526 : vector<8x128xf32>
    %529 = arith.divf %527, %528 : vector<8x128xf32>
    %530 = vector.extract_strided_slice %521 {offsets = [0, 128], sizes = [8, 128], strides = [1, 1]} : vector<8x384xf32> to vector<8x128xf32>
    %531 = vector.extract_strided_slice %520 {offsets = [0, 128], sizes = [8, 128], strides = [1, 1]} : vector<8x384xf32> to vector<8x128xf32>
    %532 = arith.addf %530, %531 : vector<8x128xf32>
    %533 = arith.negf %532 : vector<8x128xf32>
    %534 = math.exp %533 : vector<8x128xf32>
    %cst_180 = arith.constant 1.000000e+00 : f32
    %535 = vector.broadcast %cst_180 : f32 to vector<8x128xf32>
    %536 = arith.addf %535, %534 : vector<8x128xf32>
    %537 = arith.divf %535, %536 : vector<8x128xf32>
    %538 = vector.extract_strided_slice %521 {offsets = [0, 256], sizes = [8, 128], strides = [1, 1]} : vector<8x384xf32> to vector<8x128xf32>
    %539 = vector.extract_strided_slice %520 {offsets = [0, 256], sizes = [8, 128], strides = [1, 1]} : vector<8x384xf32> to vector<8x128xf32>
    %540 = arith.mulf %529, %539 : vector<8x128xf32>
    %541 = arith.addf %538, %540 : vector<8x128xf32>
    %542 = math.tanh %541 : vector<8x128xf32>
    %cst_181 = arith.constant 1.000000e+00 : f32
    %543 = vector.broadcast %cst_181 : f32 to vector<8x128xf32>
    %544 = arith.subf %543, %537 : vector<8x128xf32>
    %545 = arith.mulf %544, %542 : vector<8x128xf32>
    %546 = arith.mulf %537, %516 : vector<8x128xf32>
    %547 = arith.addf %545, %546 : vector<8x128xf32>
    %c112_182 = arith.constant 112 : index
    %c0_183 = arith.constant 0 : index
    %548 = vector.load %arg14[%c112_182, %c0_183] : memref<128x128xf32, #tpu.memory_space<vmem>>, vector<8x128xf32>
    tpu.vector_store %arg14[%c112_182, %c0_183], %547 {strides = array<i32>} : memref<128x128xf32, #tpu.memory_space<vmem>>, vector<8x128xf32>,
    %cst_184 = arith.constant dense<0.000000e+00> : vector<8x384xf32>
    %549 = tpu.matmul %547, %80, %cst_184 {dimension_numbers = #tpu.dot_dimension_numbers<[1], [0], [0], [1], [0, 0, 1, 1], [], []>} : vector<8x128xf32>, vector<128x384xf32>, vector<8x384xf32> -> vector<8x384xf32>
    %550 = vector.broadcast %82 : vector<1x384xf32> to vector<8x384xf32>
    %551 = arith.addf %549, %550 : vector<8x384xf32>
    %c120 = arith.constant 120 : index
    %c0_185 = arith.constant 0 : index
    %552 = vector.load %arg15[%c120, %c0_185] : memref<128x384xf32, #tpu.memory_space<vmem>>, vector<8x384xf32>
    %553 = vector.extract_strided_slice %552 {offsets = [0, 0], sizes = [8, 128], strides = [1, 1]} : vector<8x384xf32> to vector<8x128xf32>
    %554 = vector.extract_strided_slice %551 {offsets = [0, 0], sizes = [8, 128], strides = [1, 1]} : vector<8x384xf32> to vector<8x128xf32>
    %555 = arith.addf %553, %554 : vector<8x128xf32>
    %556 = arith.negf %555 : vector<8x128xf32>
    %557 = math.exp %556 : vector<8x128xf32>
    %cst_186 = arith.constant 1.000000e+00 : f32
    %558 = vector.broadcast %cst_186 : f32 to vector<8x128xf32>
    %559 = arith.addf %558, %557 : vector<8x128xf32>
    %560 = arith.divf %558, %559 : vector<8x128xf32>
    %561 = vector.extract_strided_slice %552 {offsets = [0, 128], sizes = [8, 128], strides = [1, 1]} : vector<8x384xf32> to vector<8x128xf32>
    %562 = vector.extract_strided_slice %551 {offsets = [0, 128], sizes = [8, 128], strides = [1, 1]} : vector<8x384xf32> to vector<8x128xf32>
    %563 = arith.addf %561, %562 : vector<8x128xf32>
    %564 = arith.negf %563 : vector<8x128xf32>
    %565 = math.exp %564 : vector<8x128xf32>
    %cst_187 = arith.constant 1.000000e+00 : f32
    %566 = vector.broadcast %cst_187 : f32 to vector<8x128xf32>
    %567 = arith.addf %566, %565 : vector<8x128xf32>
    %568 = arith.divf %566, %567 : vector<8x128xf32>
    %569 = vector.extract_strided_slice %552 {offsets = [0, 256], sizes = [8, 128], strides = [1, 1]} : vector<8x384xf32> to vector<8x128xf32>
    %570 = vector.extract_strided_slice %551 {offsets = [0, 256], sizes = [8, 128], strides = [1, 1]} : vector<8x384xf32> to vector<8x128xf32>
    %571 = arith.mulf %560, %570 : vector<8x128xf32>
    %572 = arith.addf %569, %571 : vector<8x128xf32>
    %573 = math.tanh %572 : vector<8x128xf32>
    %cst_188 = arith.constant 1.000000e+00 : f32
    %574 = vector.broadcast %cst_188 : f32 to vector<8x128xf32>
    %575 = arith.subf %574, %568 : vector<8x128xf32>
    %576 = arith.mulf %575, %573 : vector<8x128xf32>
    %577 = arith.mulf %568, %547 : vector<8x128xf32>
    %578 = arith.addf %576, %577 : vector<8x128xf32>
    %c120_189 = arith.constant 120 : index
    %c0_190 = arith.constant 0 : index
    %579 = vector.load %arg14[%c120_189, %c0_190] : memref<128x128xf32, #tpu.memory_space<vmem>>, vector<8x128xf32>
    tpu.vector_store %arg14[%c120_189, %c0_190], %578 {strides = array<i32>} : memref<128x128xf32, #tpu.memory_space<vmem>>, vector<8x128xf32>,
    %c0_191 = arith.constant 0 : index
    %c0_192 = arith.constant 0 : index
    %580 = vector.load %arg14[%c0_191, %c0_192] : memref<128x128xf32, #tpu.memory_space<vmem>>, vector<128x128xf32>
    %c1_193 = arith.constant 1 : index
    %c0_194 = arith.constant 0 : index
    %c0_195 = arith.constant 0 : index
    %581 = vector.load %arg6[%c1_193, %c0_194, %c0_195] : memref<2x128x384xf32, #tpu.memory_space<vmem>>, vector<1x128x384xf32>
    %582 = vector.shape_cast %581 : vector<1x128x384xf32> to vector<128x384xf32>
    %cst_196 = arith.constant dense<0.000000e+00> : vector<128x384xf32>
    %583 = tpu.matmul %580, %582, %cst_196 {dimension_numbers = #tpu.dot_dimension_numbers<[1], [0], [0], [1], [0, 0, 1, 1], [], []>} : vector<128x128xf32>, vector<128x384xf32>, vector<128x384xf32> -> vector<128x384xf32>
    %c1_197 = arith.constant 1 : index
    %c0_198 = arith.constant 0 : index
    %c0_199 = arith.constant 0 : index
    %584 = vector.load %arg7[%c1_197, %c0_198, %c0_199] : memref<2x1x384xf32, #tpu.memory_space<vmem>>, vector<1x1x384xf32>
    %585 = vector.shape_cast %584 : vector<1x1x384xf32> to vector<1x384xf32>
    %586 = vector.broadcast %585 : vector<1x384xf32> to vector<128x384xf32>
    %587 = arith.addf %583, %586 : vector<128x384xf32>
    %c0_200 = arith.constant 0 : index
    %c0_201 = arith.constant 0 : index
    %588 = vector.load %arg15[%c0_200, %c0_201] : memref<128x384xf32, #tpu.memory_space<vmem>>, vector<128x384xf32>
    tpu.vector_store %arg15[%c0_200, %c0_201], %587 {strides = array<i32>} : memref<128x384xf32, #tpu.memory_space<vmem>>, vector<128x384xf32>,
    %c1_202 = arith.constant 1 : index
    %c0_203 = arith.constant 0 : index
    %c0_204 = arith.constant 0 : index
    %589 = vector.load %arg8[%c1_202, %c0_203, %c0_204] : memref<2x128x384xf32, #tpu.memory_space<vmem>>, vector<1x128x384xf32>
    %590 = vector.shape_cast %589 : vector<1x128x384xf32> to vector<128x384xf32>
    %c1_205 = arith.constant 1 : index
    %c0_206 = arith.constant 0 : index
    %c0_207 = arith.constant 0 : index
    %591 = vector.load %arg9[%c1_205, %c0_206, %c0_207] : memref<2x1x384xf32, #tpu.memory_space<vmem>>, vector<1x1x384xf32>
    %592 = vector.shape_cast %591 : vector<1x1x384xf32> to vector<1x384xf32>
    %cst_208 = arith.constant 0.000000e+00 : f32
    %593 = vector.broadcast %cst_208 : f32 to vector<8x128xf32>
    %cst_209 = arith.constant dense<0.000000e+00> : vector<8x384xf32>
    %594 = tpu.matmul %593, %590, %cst_209 {dimension_numbers = #tpu.dot_dimension_numbers<[1], [0], [0], [1], [0, 0, 1, 1], [], []>} : vector<8x128xf32>, vector<128x384xf32>, vector<8x384xf32> -> vector<8x384xf32>
    %595 = vector.broadcast %592 : vector<1x384xf32> to vector<8x384xf32>
    %596 = arith.addf %594, %595 : vector<8x384xf32>
    %c0_210 = arith.constant 0 : index
    %c0_211 = arith.constant 0 : index
    %597 = vector.load %arg15[%c0_210, %c0_211] : memref<128x384xf32, #tpu.memory_space<vmem>>, vector<8x384xf32>
    %598 = vector.extract_strided_slice %597 {offsets = [0, 0], sizes = [8, 128], strides = [1, 1]} : vector<8x384xf32> to vector<8x128xf32>
    %599 = vector.extract_strided_slice %596 {offsets = [0, 0], sizes = [8, 128], strides = [1, 1]} : vector<8x384xf32> to vector<8x128xf32>
    %600 = arith.addf %598, %599 : vector<8x128xf32>
    %601 = arith.negf %600 : vector<8x128xf32>
    %602 = math.exp %601 : vector<8x128xf32>
    %cst_212 = arith.constant 1.000000e+00 : f32
    %603 = vector.broadcast %cst_212 : f32 to vector<8x128xf32>
    %604 = arith.addf %603, %602 : vector<8x128xf32>
    %605 = arith.divf %603, %604 : vector<8x128xf32>
    %606 = vector.extract_strided_slice %597 {offsets = [0, 128], sizes = [8, 128], strides = [1, 1]} : vector<8x384xf32> to vector<8x128xf32>
    %607 = vector.extract_strided_slice %596 {offsets = [0, 128], sizes = [8, 128], strides = [1, 1]} : vector<8x384xf32> to vector<8x128xf32>
    %608 = arith.addf %606, %607 : vector<8x128xf32>
    %609 = arith.negf %608 : vector<8x128xf32>
    %610 = math.exp %609 : vector<8x128xf32>
    %cst_213 = arith.constant 1.000000e+00 : f32
    %611 = vector.broadcast %cst_213 : f32 to vector<8x128xf32>
    %612 = arith.addf %611, %610 : vector<8x128xf32>
    %613 = arith.divf %611, %612 : vector<8x128xf32>
    %614 = vector.extract_strided_slice %597 {offsets = [0, 256], sizes = [8, 128], strides = [1, 1]} : vector<8x384xf32> to vector<8x128xf32>
    %615 = vector.extract_strided_slice %596 {offsets = [0, 256], sizes = [8, 128], strides = [1, 1]} : vector<8x384xf32> to vector<8x128xf32>
    %616 = arith.mulf %605, %615 : vector<8x128xf32>
    %617 = arith.addf %614, %616 : vector<8x128xf32>
    %618 = math.tanh %617 : vector<8x128xf32>
    %cst_214 = arith.constant 1.000000e+00 : f32
    %619 = vector.broadcast %cst_214 : f32 to vector<8x128xf32>
    %620 = arith.subf %619, %613 : vector<8x128xf32>
    %621 = arith.mulf %620, %618 : vector<8x128xf32>
    %622 = arith.mulf %613, %593 : vector<8x128xf32>
    %623 = arith.addf %621, %622 : vector<8x128xf32>
    %c0_215 = arith.constant 0 : index
    %c0_216 = arith.constant 0 : index
    %624 = vector.load %arg14[%c0_215, %c0_216] : memref<128x128xf32, #tpu.memory_space<vmem>>, vector<8x128xf32>
    tpu.vector_store %arg14[%c0_215, %c0_216], %623 {strides = array<i32>} : memref<128x128xf32, #tpu.memory_space<vmem>>, vector<8x128xf32>,
    %cst_217 = arith.constant dense<0.000000e+00> : vector<8x384xf32>
    %625 = tpu.matmul %623, %590, %cst_217 {dimension_numbers = #tpu.dot_dimension_numbers<[1], [0], [0], [1], [0, 0, 1, 1], [], []>} : vector<8x128xf32>, vector<128x384xf32>, vector<8x384xf32> -> vector<8x384xf32>
    %626 = vector.broadcast %592 : vector<1x384xf32> to vector<8x384xf32>
    %627 = arith.addf %625, %626 : vector<8x384xf32>
    %c8_218 = arith.constant 8 : index
    %c0_219 = arith.constant 0 : index
    %628 = vector.load %arg15[%c8_218, %c0_219] : memref<128x384xf32, #tpu.memory_space<vmem>>, vector<8x384xf32>
    %629 = vector.extract_strided_slice %628 {offsets = [0, 0], sizes = [8, 128], strides = [1, 1]} : vector<8x384xf32> to vector<8x128xf32>
    %630 = vector.extract_strided_slice %627 {offsets = [0, 0], sizes = [8, 128], strides = [1, 1]} : vector<8x384xf32> to vector<8x128xf32>
    %631 = arith.addf %629, %630 : vector<8x128xf32>
    %632 = arith.negf %631 : vector<8x128xf32>
    %633 = math.exp %632 : vector<8x128xf32>
    %cst_220 = arith.constant 1.000000e+00 : f32
    %634 = vector.broadcast %cst_220 : f32 to vector<8x128xf32>
    %635 = arith.addf %634, %633 : vector<8x128xf32>
    %636 = arith.divf %634, %635 : vector<8x128xf32>
    %637 = vector.extract_strided_slice %628 {offsets = [0, 128], sizes = [8, 128], strides = [1, 1]} : vector<8x384xf32> to vector<8x128xf32>
    %638 = vector.extract_strided_slice %627 {offsets = [0, 128], sizes = [8, 128], strides = [1, 1]} : vector<8x384xf32> to vector<8x128xf32>
    %639 = arith.addf %637, %638 : vector<8x128xf32>
    %640 = arith.negf %639 : vector<8x128xf32>
    %641 = math.exp %640 : vector<8x128xf32>
    %cst_221 = arith.constant 1.000000e+00 : f32
    %642 = vector.broadcast %cst_221 : f32 to vector<8x128xf32>
    %643 = arith.addf %642, %641 : vector<8x128xf32>
    %644 = arith.divf %642, %643 : vector<8x128xf32>
    %645 = vector.extract_strided_slice %628 {offsets = [0, 256], sizes = [8, 128], strides = [1, 1]} : vector<8x384xf32> to vector<8x128xf32>
    %646 = vector.extract_strided_slice %627 {offsets = [0, 256], sizes = [8, 128], strides = [1, 1]} : vector<8x384xf32> to vector<8x128xf32>
    %647 = arith.mulf %636, %646 : vector<8x128xf32>
    %648 = arith.addf %645, %647 : vector<8x128xf32>
    %649 = math.tanh %648 : vector<8x128xf32>
    %cst_222 = arith.constant 1.000000e+00 : f32
    %650 = vector.broadcast %cst_222 : f32 to vector<8x128xf32>
    %651 = arith.subf %650, %644 : vector<8x128xf32>
    %652 = arith.mulf %651, %649 : vector<8x128xf32>
    %653 = arith.mulf %644, %623 : vector<8x128xf32>
    %654 = arith.addf %652, %653 : vector<8x128xf32>
    %c8_223 = arith.constant 8 : index
    %c0_224 = arith.constant 0 : index
    %655 = vector.load %arg14[%c8_223, %c0_224] : memref<128x128xf32, #tpu.memory_space<vmem>>, vector<8x128xf32>
    tpu.vector_store %arg14[%c8_223, %c0_224], %654 {strides = array<i32>} : memref<128x128xf32, #tpu.memory_space<vmem>>, vector<8x128xf32>,
    %cst_225 = arith.constant dense<0.000000e+00> : vector<8x384xf32>
    %656 = tpu.matmul %654, %590, %cst_225 {dimension_numbers = #tpu.dot_dimension_numbers<[1], [0], [0], [1], [0, 0, 1, 1], [], []>} : vector<8x128xf32>, vector<128x384xf32>, vector<8x384xf32> -> vector<8x384xf32>
    %657 = vector.broadcast %592 : vector<1x384xf32> to vector<8x384xf32>
    %658 = arith.addf %656, %657 : vector<8x384xf32>
    %c16_226 = arith.constant 16 : index
    %c0_227 = arith.constant 0 : index
    %659 = vector.load %arg15[%c16_226, %c0_227] : memref<128x384xf32, #tpu.memory_space<vmem>>, vector<8x384xf32>
    %660 = vector.extract_strided_slice %659 {offsets = [0, 0], sizes = [8, 128], strides = [1, 1]} : vector<8x384xf32> to vector<8x128xf32>
    %661 = vector.extract_strided_slice %658 {offsets = [0, 0], sizes = [8, 128], strides = [1, 1]} : vector<8x384xf32> to vector<8x128xf32>
    %662 = arith.addf %660, %661 : vector<8x128xf32>
    %663 = arith.negf %662 : vector<8x128xf32>
    %664 = math.exp %663 : vector<8x128xf32>
    %cst_228 = arith.constant 1.000000e+00 : f32
    %665 = vector.broadcast %cst_228 : f32 to vector<8x128xf32>
    %666 = arith.addf %665, %664 : vector<8x128xf32>
    %667 = arith.divf %665, %666 : vector<8x128xf32>
    %668 = vector.extract_strided_slice %659 {offsets = [0, 128], sizes = [8, 128], strides = [1, 1]} : vector<8x384xf32> to vector<8x128xf32>
    %669 = vector.extract_strided_slice %658 {offsets = [0, 128], sizes = [8, 128], strides = [1, 1]} : vector<8x384xf32> to vector<8x128xf32>
    %670 = arith.addf %668, %669 : vector<8x128xf32>
    %671 = arith.negf %670 : vector<8x128xf32>
    %672 = math.exp %671 : vector<8x128xf32>
    %cst_229 = arith.constant 1.000000e+00 : f32
    %673 = vector.broadcast %cst_229 : f32 to vector<8x128xf32>
    %674 = arith.addf %673, %672 : vector<8x128xf32>
    %675 = arith.divf %673, %674 : vector<8x128xf32>
    %676 = vector.extract_strided_slice %659 {offsets = [0, 256], sizes = [8, 128], strides = [1, 1]} : vector<8x384xf32> to vector<8x128xf32>
    %677 = vector.extract_strided_slice %658 {offsets = [0, 256], sizes = [8, 128], strides = [1, 1]} : vector<8x384xf32> to vector<8x128xf32>
    %678 = arith.mulf %667, %677 : vector<8x128xf32>
    %679 = arith.addf %676, %678 : vector<8x128xf32>
    %680 = math.tanh %679 : vector<8x128xf32>
    %cst_230 = arith.constant 1.000000e+00 : f32
    %681 = vector.broadcast %cst_230 : f32 to vector<8x128xf32>
    %682 = arith.subf %681, %675 : vector<8x128xf32>
    %683 = arith.mulf %682, %680 : vector<8x128xf32>
    %684 = arith.mulf %675, %654 : vector<8x128xf32>
    %685 = arith.addf %683, %684 : vector<8x128xf32>
    %c16_231 = arith.constant 16 : index
    %c0_232 = arith.constant 0 : index
    %686 = vector.load %arg14[%c16_231, %c0_232] : memref<128x128xf32, #tpu.memory_space<vmem>>, vector<8x128xf32>
    tpu.vector_store %arg14[%c16_231, %c0_232], %685 {strides = array<i32>} : memref<128x128xf32, #tpu.memory_space<vmem>>, vector<8x128xf32>,
    %cst_233 = arith.constant dense<0.000000e+00> : vector<8x384xf32>
    %687 = tpu.matmul %685, %590, %cst_233 {dimension_numbers = #tpu.dot_dimension_numbers<[1], [0], [0], [1], [0, 0, 1, 1], [], []>} : vector<8x128xf32>, vector<128x384xf32>, vector<8x384xf32> -> vector<8x384xf32>
    %688 = vector.broadcast %592 : vector<1x384xf32> to vector<8x384xf32>
    %689 = arith.addf %687, %688 : vector<8x384xf32>
    %c24_234 = arith.constant 24 : index
    %c0_235 = arith.constant 0 : index
    %690 = vector.load %arg15[%c24_234, %c0_235] : memref<128x384xf32, #tpu.memory_space<vmem>>, vector<8x384xf32>
    %691 = vector.extract_strided_slice %690 {offsets = [0, 0], sizes = [8, 128], strides = [1, 1]} : vector<8x384xf32> to vector<8x128xf32>
    %692 = vector.extract_strided_slice %689 {offsets = [0, 0], sizes = [8, 128], strides = [1, 1]} : vector<8x384xf32> to vector<8x128xf32>
    %693 = arith.addf %691, %692 : vector<8x128xf32>
    %694 = arith.negf %693 : vector<8x128xf32>
    %695 = math.exp %694 : vector<8x128xf32>
    %cst_236 = arith.constant 1.000000e+00 : f32
    %696 = vector.broadcast %cst_236 : f32 to vector<8x128xf32>
    %697 = arith.addf %696, %695 : vector<8x128xf32>
    %698 = arith.divf %696, %697 : vector<8x128xf32>
    %699 = vector.extract_strided_slice %690 {offsets = [0, 128], sizes = [8, 128], strides = [1, 1]} : vector<8x384xf32> to vector<8x128xf32>
    %700 = vector.extract_strided_slice %689 {offsets = [0, 128], sizes = [8, 128], strides = [1, 1]} : vector<8x384xf32> to vector<8x128xf32>
    %701 = arith.addf %699, %700 : vector<8x128xf32>
    %702 = arith.negf %701 : vector<8x128xf32>
    %703 = math.exp %702 : vector<8x128xf32>
    %cst_237 = arith.constant 1.000000e+00 : f32
    %704 = vector.broadcast %cst_237 : f32 to vector<8x128xf32>
    %705 = arith.addf %704, %703 : vector<8x128xf32>
    %706 = arith.divf %704, %705 : vector<8x128xf32>
    %707 = vector.extract_strided_slice %690 {offsets = [0, 256], sizes = [8, 128], strides = [1, 1]} : vector<8x384xf32> to vector<8x128xf32>
    %708 = vector.extract_strided_slice %689 {offsets = [0, 256], sizes = [8, 128], strides = [1, 1]} : vector<8x384xf32> to vector<8x128xf32>
    %709 = arith.mulf %698, %708 : vector<8x128xf32>
    %710 = arith.addf %707, %709 : vector<8x128xf32>
    %711 = math.tanh %710 : vector<8x128xf32>
    %cst_238 = arith.constant 1.000000e+00 : f32
    %712 = vector.broadcast %cst_238 : f32 to vector<8x128xf32>
    %713 = arith.subf %712, %706 : vector<8x128xf32>
    %714 = arith.mulf %713, %711 : vector<8x128xf32>
    %715 = arith.mulf %706, %685 : vector<8x128xf32>
    %716 = arith.addf %714, %715 : vector<8x128xf32>
    %c24_239 = arith.constant 24 : index
    %c0_240 = arith.constant 0 : index
    %717 = vector.load %arg14[%c24_239, %c0_240] : memref<128x128xf32, #tpu.memory_space<vmem>>, vector<8x128xf32>
    tpu.vector_store %arg14[%c24_239, %c0_240], %716 {strides = array<i32>} : memref<128x128xf32, #tpu.memory_space<vmem>>, vector<8x128xf32>,
    %cst_241 = arith.constant dense<0.000000e+00> : vector<8x384xf32>
    %718 = tpu.matmul %716, %590, %cst_241 {dimension_numbers = #tpu.dot_dimension_numbers<[1], [0], [0], [1], [0, 0, 1, 1], [], []>} : vector<8x128xf32>, vector<128x384xf32>, vector<8x384xf32> -> vector<8x384xf32>
    %719 = vector.broadcast %592 : vector<1x384xf32> to vector<8x384xf32>
    %720 = arith.addf %718, %719 : vector<8x384xf32>
    %c32_242 = arith.constant 32 : index
    %c0_243 = arith.constant 0 : index
    %721 = vector.load %arg15[%c32_242, %c0_243] : memref<128x384xf32, #tpu.memory_space<vmem>>, vector<8x384xf32>
    %722 = vector.extract_strided_slice %721 {offsets = [0, 0], sizes = [8, 128], strides = [1, 1]} : vector<8x384xf32> to vector<8x128xf32>
    %723 = vector.extract_strided_slice %720 {offsets = [0, 0], sizes = [8, 128], strides = [1, 1]} : vector<8x384xf32> to vector<8x128xf32>
    %724 = arith.addf %722, %723 : vector<8x128xf32>
    %725 = arith.negf %724 : vector<8x128xf32>
    %726 = math.exp %725 : vector<8x128xf32>
    %cst_244 = arith.constant 1.000000e+00 : f32
    %727 = vector.broadcast %cst_244 : f32 to vector<8x128xf32>
    %728 = arith.addf %727, %726 : vector<8x128xf32>
    %729 = arith.divf %727, %728 : vector<8x128xf32>
    %730 = vector.extract_strided_slice %721 {offsets = [0, 128], sizes = [8, 128], strides = [1, 1]} : vector<8x384xf32> to vector<8x128xf32>
    %731 = vector.extract_strided_slice %720 {offsets = [0, 128], sizes = [8, 128], strides = [1, 1]} : vector<8x384xf32> to vector<8x128xf32>
    %732 = arith.addf %730, %731 : vector<8x128xf32>
    %733 = arith.negf %732 : vector<8x128xf32>
    %734 = math.exp %733 : vector<8x128xf32>
    %cst_245 = arith.constant 1.000000e+00 : f32
    %735 = vector.broadcast %cst_245 : f32 to vector<8x128xf32>
    %736 = arith.addf %735, %734 : vector<8x128xf32>
    %737 = arith.divf %735, %736 : vector<8x128xf32>
    %738 = vector.extract_strided_slice %721 {offsets = [0, 256], sizes = [8, 128], strides = [1, 1]} : vector<8x384xf32> to vector<8x128xf32>
    %739 = vector.extract_strided_slice %720 {offsets = [0, 256], sizes = [8, 128], strides = [1, 1]} : vector<8x384xf32> to vector<8x128xf32>
    %740 = arith.mulf %729, %739 : vector<8x128xf32>
    %741 = arith.addf %738, %740 : vector<8x128xf32>
    %742 = math.tanh %741 : vector<8x128xf32>
    %cst_246 = arith.constant 1.000000e+00 : f32
    %743 = vector.broadcast %cst_246 : f32 to vector<8x128xf32>
    %744 = arith.subf %743, %737 : vector<8x128xf32>
    %745 = arith.mulf %744, %742 : vector<8x128xf32>
    %746 = arith.mulf %737, %716 : vector<8x128xf32>
    %747 = arith.addf %745, %746 : vector<8x128xf32>
    %c32_247 = arith.constant 32 : index
    %c0_248 = arith.constant 0 : index
    %748 = vector.load %arg14[%c32_247, %c0_248] : memref<128x128xf32, #tpu.memory_space<vmem>>, vector<8x128xf32>
    tpu.vector_store %arg14[%c32_247, %c0_248], %747 {strides = array<i32>} : memref<128x128xf32, #tpu.memory_space<vmem>>, vector<8x128xf32>,
    %cst_249 = arith.constant dense<0.000000e+00> : vector<8x384xf32>
    %749 = tpu.matmul %747, %590, %cst_249 {dimension_numbers = #tpu.dot_dimension_numbers<[1], [0], [0], [1], [0, 0, 1, 1], [], []>} : vector<8x128xf32>, vector<128x384xf32>, vector<8x384xf32> -> vector<8x384xf32>
    %750 = vector.broadcast %592 : vector<1x384xf32> to vector<8x384xf32>
    %751 = arith.addf %749, %750 : vector<8x384xf32>
    %c40_250 = arith.constant 40 : index
    %c0_251 = arith.constant 0 : index
    %752 = vector.load %arg15[%c40_250, %c0_251] : memref<128x384xf32, #tpu.memory_space<vmem>>, vector<8x384xf32>
    %753 = vector.extract_strided_slice %752 {offsets = [0, 0], sizes = [8, 128], strides = [1, 1]} : vector<8x384xf32> to vector<8x128xf32>
    %754 = vector.extract_strided_slice %751 {offsets = [0, 0], sizes = [8, 128], strides = [1, 1]} : vector<8x384xf32> to vector<8x128xf32>
    %755 = arith.addf %753, %754 : vector<8x128xf32>
    %756 = arith.negf %755 : vector<8x128xf32>
    %757 = math.exp %756 : vector<8x128xf32>
    %cst_252 = arith.constant 1.000000e+00 : f32
    %758 = vector.broadcast %cst_252 : f32 to vector<8x128xf32>
    %759 = arith.addf %758, %757 : vector<8x128xf32>
    %760 = arith.divf %758, %759 : vector<8x128xf32>
    %761 = vector.extract_strided_slice %752 {offsets = [0, 128], sizes = [8, 128], strides = [1, 1]} : vector<8x384xf32> to vector<8x128xf32>
    %762 = vector.extract_strided_slice %751 {offsets = [0, 128], sizes = [8, 128], strides = [1, 1]} : vector<8x384xf32> to vector<8x128xf32>
    %763 = arith.addf %761, %762 : vector<8x128xf32>
    %764 = arith.negf %763 : vector<8x128xf32>
    %765 = math.exp %764 : vector<8x128xf32>
    %cst_253 = arith.constant 1.000000e+00 : f32
    %766 = vector.broadcast %cst_253 : f32 to vector<8x128xf32>
    %767 = arith.addf %766, %765 : vector<8x128xf32>
    %768 = arith.divf %766, %767 : vector<8x128xf32>
    %769 = vector.extract_strided_slice %752 {offsets = [0, 256], sizes = [8, 128], strides = [1, 1]} : vector<8x384xf32> to vector<8x128xf32>
    %770 = vector.extract_strided_slice %751 {offsets = [0, 256], sizes = [8, 128], strides = [1, 1]} : vector<8x384xf32> to vector<8x128xf32>
    %771 = arith.mulf %760, %770 : vector<8x128xf32>
    %772 = arith.addf %769, %771 : vector<8x128xf32>
    %773 = math.tanh %772 : vector<8x128xf32>
    %cst_254 = arith.constant 1.000000e+00 : f32
    %774 = vector.broadcast %cst_254 : f32 to vector<8x128xf32>
    %775 = arith.subf %774, %768 : vector<8x128xf32>
    %776 = arith.mulf %775, %773 : vector<8x128xf32>
    %777 = arith.mulf %768, %747 : vector<8x128xf32>
    %778 = arith.addf %776, %777 : vector<8x128xf32>
    %c40_255 = arith.constant 40 : index
    %c0_256 = arith.constant 0 : index
    %779 = vector.load %arg14[%c40_255, %c0_256] : memref<128x128xf32, #tpu.memory_space<vmem>>, vector<8x128xf32>
    tpu.vector_store %arg14[%c40_255, %c0_256], %778 {strides = array<i32>} : memref<128x128xf32, #tpu.memory_space<vmem>>, vector<8x128xf32>,
    %cst_257 = arith.constant dense<0.000000e+00> : vector<8x384xf32>
    %780 = tpu.matmul %778, %590, %cst_257 {dimension_numbers = #tpu.dot_dimension_numbers<[1], [0], [0], [1], [0, 0, 1, 1], [], []>} : vector<8x128xf32>, vector<128x384xf32>, vector<8x384xf32> -> vector<8x384xf32>
    %781 = vector.broadcast %592 : vector<1x384xf32> to vector<8x384xf32>
    %782 = arith.addf %780, %781 : vector<8x384xf32>
    %c48_258 = arith.constant 48 : index
    %c0_259 = arith.constant 0 : index
    %783 = vector.load %arg15[%c48_258, %c0_259] : memref<128x384xf32, #tpu.memory_space<vmem>>, vector<8x384xf32>
    %784 = vector.extract_strided_slice %783 {offsets = [0, 0], sizes = [8, 128], strides = [1, 1]} : vector<8x384xf32> to vector<8x128xf32>
    %785 = vector.extract_strided_slice %782 {offsets = [0, 0], sizes = [8, 128], strides = [1, 1]} : vector<8x384xf32> to vector<8x128xf32>
    %786 = arith.addf %784, %785 : vector<8x128xf32>
    %787 = arith.negf %786 : vector<8x128xf32>
    %788 = math.exp %787 : vector<8x128xf32>
    %cst_260 = arith.constant 1.000000e+00 : f32
    %789 = vector.broadcast %cst_260 : f32 to vector<8x128xf32>
    %790 = arith.addf %789, %788 : vector<8x128xf32>
    %791 = arith.divf %789, %790 : vector<8x128xf32>
    %792 = vector.extract_strided_slice %783 {offsets = [0, 128], sizes = [8, 128], strides = [1, 1]} : vector<8x384xf32> to vector<8x128xf32>
    %793 = vector.extract_strided_slice %782 {offsets = [0, 128], sizes = [8, 128], strides = [1, 1]} : vector<8x384xf32> to vector<8x128xf32>
    %794 = arith.addf %792, %793 : vector<8x128xf32>
    %795 = arith.negf %794 : vector<8x128xf32>
    %796 = math.exp %795 : vector<8x128xf32>
    %cst_261 = arith.constant 1.000000e+00 : f32
    %797 = vector.broadcast %cst_261 : f32 to vector<8x128xf32>
    %798 = arith.addf %797, %796 : vector<8x128xf32>
    %799 = arith.divf %797, %798 : vector<8x128xf32>
    %800 = vector.extract_strided_slice %783 {offsets = [0, 256], sizes = [8, 128], strides = [1, 1]} : vector<8x384xf32> to vector<8x128xf32>
    %801 = vector.extract_strided_slice %782 {offsets = [0, 256], sizes = [8, 128], strides = [1, 1]} : vector<8x384xf32> to vector<8x128xf32>
    %802 = arith.mulf %791, %801 : vector<8x128xf32>
    %803 = arith.addf %800, %802 : vector<8x128xf32>
    %804 = math.tanh %803 : vector<8x128xf32>
    %cst_262 = arith.constant 1.000000e+00 : f32
    %805 = vector.broadcast %cst_262 : f32 to vector<8x128xf32>
    %806 = arith.subf %805, %799 : vector<8x128xf32>
    %807 = arith.mulf %806, %804 : vector<8x128xf32>
    %808 = arith.mulf %799, %778 : vector<8x128xf32>
    %809 = arith.addf %807, %808 : vector<8x128xf32>
    %c48_263 = arith.constant 48 : index
    %c0_264 = arith.constant 0 : index
    %810 = vector.load %arg14[%c48_263, %c0_264] : memref<128x128xf32, #tpu.memory_space<vmem>>, vector<8x128xf32>
    tpu.vector_store %arg14[%c48_263, %c0_264], %809 {strides = array<i32>} : memref<128x128xf32, #tpu.memory_space<vmem>>, vector<8x128xf32>,
    %cst_265 = arith.constant dense<0.000000e+00> : vector<8x384xf32>
    %811 = tpu.matmul %809, %590, %cst_265 {dimension_numbers = #tpu.dot_dimension_numbers<[1], [0], [0], [1], [0, 0, 1, 1], [], []>} : vector<8x128xf32>, vector<128x384xf32>, vector<8x384xf32> -> vector<8x384xf32>
    %812 = vector.broadcast %592 : vector<1x384xf32> to vector<8x384xf32>
    %813 = arith.addf %811, %812 : vector<8x384xf32>
    %c56_266 = arith.constant 56 : index
    %c0_267 = arith.constant 0 : index
    %814 = vector.load %arg15[%c56_266, %c0_267] : memref<128x384xf32, #tpu.memory_space<vmem>>, vector<8x384xf32>
    %815 = vector.extract_strided_slice %814 {offsets = [0, 0], sizes = [8, 128], strides = [1, 1]} : vector<8x384xf32> to vector<8x128xf32>
    %816 = vector.extract_strided_slice %813 {offsets = [0, 0], sizes = [8, 128], strides = [1, 1]} : vector<8x384xf32> to vector<8x128xf32>
    %817 = arith.addf %815, %816 : vector<8x128xf32>
    %818 = arith.negf %817 : vector<8x128xf32>
    %819 = math.exp %818 : vector<8x128xf32>
    %cst_268 = arith.constant 1.000000e+00 : f32
    %820 = vector.broadcast %cst_268 : f32 to vector<8x128xf32>
    %821 = arith.addf %820, %819 : vector<8x128xf32>
    %822 = arith.divf %820, %821 : vector<8x128xf32>
    %823 = vector.extract_strided_slice %814 {offsets = [0, 128], sizes = [8, 128], strides = [1, 1]} : vector<8x384xf32> to vector<8x128xf32>
    %824 = vector.extract_strided_slice %813 {offsets = [0, 128], sizes = [8, 128], strides = [1, 1]} : vector<8x384xf32> to vector<8x128xf32>
    %825 = arith.addf %823, %824 : vector<8x128xf32>
    %826 = arith.negf %825 : vector<8x128xf32>
    %827 = math.exp %826 : vector<8x128xf32>
    %cst_269 = arith.constant 1.000000e+00 : f32
    %828 = vector.broadcast %cst_269 : f32 to vector<8x128xf32>
    %829 = arith.addf %828, %827 : vector<8x128xf32>
    %830 = arith.divf %828, %829 : vector<8x128xf32>
    %831 = vector.extract_strided_slice %814 {offsets = [0, 256], sizes = [8, 128], strides = [1, 1]} : vector<8x384xf32> to vector<8x128xf32>
    %832 = vector.extract_strided_slice %813 {offsets = [0, 256], sizes = [8, 128], strides = [1, 1]} : vector<8x384xf32> to vector<8x128xf32>
    %833 = arith.mulf %822, %832 : vector<8x128xf32>
    %834 = arith.addf %831, %833 : vector<8x128xf32>
    %835 = math.tanh %834 : vector<8x128xf32>
    %cst_270 = arith.constant 1.000000e+00 : f32
    %836 = vector.broadcast %cst_270 : f32 to vector<8x128xf32>
    %837 = arith.subf %836, %830 : vector<8x128xf32>
    %838 = arith.mulf %837, %835 : vector<8x128xf32>
    %839 = arith.mulf %830, %809 : vector<8x128xf32>
    %840 = arith.addf %838, %839 : vector<8x128xf32>
    %c56_271 = arith.constant 56 : index
    %c0_272 = arith.constant 0 : index
    %841 = vector.load %arg14[%c56_271, %c0_272] : memref<128x128xf32, #tpu.memory_space<vmem>>, vector<8x128xf32>
    tpu.vector_store %arg14[%c56_271, %c0_272], %840 {strides = array<i32>} : memref<128x128xf32, #tpu.memory_space<vmem>>, vector<8x128xf32>,
    %cst_273 = arith.constant dense<0.000000e+00> : vector<8x384xf32>
    %842 = tpu.matmul %840, %590, %cst_273 {dimension_numbers = #tpu.dot_dimension_numbers<[1], [0], [0], [1], [0, 0, 1, 1], [], []>} : vector<8x128xf32>, vector<128x384xf32>, vector<8x384xf32> -> vector<8x384xf32>
    %843 = vector.broadcast %592 : vector<1x384xf32> to vector<8x384xf32>
    %844 = arith.addf %842, %843 : vector<8x384xf32>
    %c64_274 = arith.constant 64 : index
    %c0_275 = arith.constant 0 : index
    %845 = vector.load %arg15[%c64_274, %c0_275] : memref<128x384xf32, #tpu.memory_space<vmem>>, vector<8x384xf32>
    %846 = vector.extract_strided_slice %845 {offsets = [0, 0], sizes = [8, 128], strides = [1, 1]} : vector<8x384xf32> to vector<8x128xf32>
    %847 = vector.extract_strided_slice %844 {offsets = [0, 0], sizes = [8, 128], strides = [1, 1]} : vector<8x384xf32> to vector<8x128xf32>
    %848 = arith.addf %846, %847 : vector<8x128xf32>
    %849 = arith.negf %848 : vector<8x128xf32>
    %850 = math.exp %849 : vector<8x128xf32>
    %cst_276 = arith.constant 1.000000e+00 : f32
    %851 = vector.broadcast %cst_276 : f32 to vector<8x128xf32>
    %852 = arith.addf %851, %850 : vector<8x128xf32>
    %853 = arith.divf %851, %852 : vector<8x128xf32>
    %854 = vector.extract_strided_slice %845 {offsets = [0, 128], sizes = [8, 128], strides = [1, 1]} : vector<8x384xf32> to vector<8x128xf32>
    %855 = vector.extract_strided_slice %844 {offsets = [0, 128], sizes = [8, 128], strides = [1, 1]} : vector<8x384xf32> to vector<8x128xf32>
    %856 = arith.addf %854, %855 : vector<8x128xf32>
    %857 = arith.negf %856 : vector<8x128xf32>
    %858 = math.exp %857 : vector<8x128xf32>
    %cst_277 = arith.constant 1.000000e+00 : f32
    %859 = vector.broadcast %cst_277 : f32 to vector<8x128xf32>
    %860 = arith.addf %859, %858 : vector<8x128xf32>
    %861 = arith.divf %859, %860 : vector<8x128xf32>
    %862 = vector.extract_strided_slice %845 {offsets = [0, 256], sizes = [8, 128], strides = [1, 1]} : vector<8x384xf32> to vector<8x128xf32>
    %863 = vector.extract_strided_slice %844 {offsets = [0, 256], sizes = [8, 128], strides = [1, 1]} : vector<8x384xf32> to vector<8x128xf32>
    %864 = arith.mulf %853, %863 : vector<8x128xf32>
    %865 = arith.addf %862, %864 : vector<8x128xf32>
    %866 = math.tanh %865 : vector<8x128xf32>
    %cst_278 = arith.constant 1.000000e+00 : f32
    %867 = vector.broadcast %cst_278 : f32 to vector<8x128xf32>
    %868 = arith.subf %867, %861 : vector<8x128xf32>
    %869 = arith.mulf %868, %866 : vector<8x128xf32>
    %870 = arith.mulf %861, %840 : vector<8x128xf32>
    %871 = arith.addf %869, %870 : vector<8x128xf32>
    %c64_279 = arith.constant 64 : index
    %c0_280 = arith.constant 0 : index
    %872 = vector.load %arg14[%c64_279, %c0_280] : memref<128x128xf32, #tpu.memory_space<vmem>>, vector<8x128xf32>
    tpu.vector_store %arg14[%c64_279, %c0_280], %871 {strides = array<i32>} : memref<128x128xf32, #tpu.memory_space<vmem>>, vector<8x128xf32>,
    %cst_281 = arith.constant dense<0.000000e+00> : vector<8x384xf32>
    %873 = tpu.matmul %871, %590, %cst_281 {dimension_numbers = #tpu.dot_dimension_numbers<[1], [0], [0], [1], [0, 0, 1, 1], [], []>} : vector<8x128xf32>, vector<128x384xf32>, vector<8x384xf32> -> vector<8x384xf32>
    %874 = vector.broadcast %592 : vector<1x384xf32> to vector<8x384xf32>
    %875 = arith.addf %873, %874 : vector<8x384xf32>
    %c72_282 = arith.constant 72 : index
    %c0_283 = arith.constant 0 : index
    %876 = vector.load %arg15[%c72_282, %c0_283] : memref<128x384xf32, #tpu.memory_space<vmem>>, vector<8x384xf32>
    %877 = vector.extract_strided_slice %876 {offsets = [0, 0], sizes = [8, 128], strides = [1, 1]} : vector<8x384xf32> to vector<8x128xf32>
    %878 = vector.extract_strided_slice %875 {offsets = [0, 0], sizes = [8, 128], strides = [1, 1]} : vector<8x384xf32> to vector<8x128xf32>
    %879 = arith.addf %877, %878 : vector<8x128xf32>
    %880 = arith.negf %879 : vector<8x128xf32>
    %881 = math.exp %880 : vector<8x128xf32>
    %cst_284 = arith.constant 1.000000e+00 : f32
    %882 = vector.broadcast %cst_284 : f32 to vector<8x128xf32>
    %883 = arith.addf %882, %881 : vector<8x128xf32>
    %884 = arith.divf %882, %883 : vector<8x128xf32>
    %885 = vector.extract_strided_slice %876 {offsets = [0, 128], sizes = [8, 128], strides = [1, 1]} : vector<8x384xf32> to vector<8x128xf32>
    %886 = vector.extract_strided_slice %875 {offsets = [0, 128], sizes = [8, 128], strides = [1, 1]} : vector<8x384xf32> to vector<8x128xf32>
    %887 = arith.addf %885, %886 : vector<8x128xf32>
    %888 = arith.negf %887 : vector<8x128xf32>
    %889 = math.exp %888 : vector<8x128xf32>
    %cst_285 = arith.constant 1.000000e+00 : f32
    %890 = vector.broadcast %cst_285 : f32 to vector<8x128xf32>
    %891 = arith.addf %890, %889 : vector<8x128xf32>
    %892 = arith.divf %890, %891 : vector<8x128xf32>
    %893 = vector.extract_strided_slice %876 {offsets = [0, 256], sizes = [8, 128], strides = [1, 1]} : vector<8x384xf32> to vector<8x128xf32>
    %894 = vector.extract_strided_slice %875 {offsets = [0, 256], sizes = [8, 128], strides = [1, 1]} : vector<8x384xf32> to vector<8x128xf32>
    %895 = arith.mulf %884, %894 : vector<8x128xf32>
    %896 = arith.addf %893, %895 : vector<8x128xf32>
    %897 = math.tanh %896 : vector<8x128xf32>
    %cst_286 = arith.constant 1.000000e+00 : f32
    %898 = vector.broadcast %cst_286 : f32 to vector<8x128xf32>
    %899 = arith.subf %898, %892 : vector<8x128xf32>
    %900 = arith.mulf %899, %897 : vector<8x128xf32>
    %901 = arith.mulf %892, %871 : vector<8x128xf32>
    %902 = arith.addf %900, %901 : vector<8x128xf32>
    %c72_287 = arith.constant 72 : index
    %c0_288 = arith.constant 0 : index
    %903 = vector.load %arg14[%c72_287, %c0_288] : memref<128x128xf32, #tpu.memory_space<vmem>>, vector<8x128xf32>
    tpu.vector_store %arg14[%c72_287, %c0_288], %902 {strides = array<i32>} : memref<128x128xf32, #tpu.memory_space<vmem>>, vector<8x128xf32>,
    %cst_289 = arith.constant dense<0.000000e+00> : vector<8x384xf32>
    %904 = tpu.matmul %902, %590, %cst_289 {dimension_numbers = #tpu.dot_dimension_numbers<[1], [0], [0], [1], [0, 0, 1, 1], [], []>} : vector<8x128xf32>, vector<128x384xf32>, vector<8x384xf32> -> vector<8x384xf32>
    %905 = vector.broadcast %592 : vector<1x384xf32> to vector<8x384xf32>
    %906 = arith.addf %904, %905 : vector<8x384xf32>
    %c80_290 = arith.constant 80 : index
    %c0_291 = arith.constant 0 : index
    %907 = vector.load %arg15[%c80_290, %c0_291] : memref<128x384xf32, #tpu.memory_space<vmem>>, vector<8x384xf32>
    %908 = vector.extract_strided_slice %907 {offsets = [0, 0], sizes = [8, 128], strides = [1, 1]} : vector<8x384xf32> to vector<8x128xf32>
    %909 = vector.extract_strided_slice %906 {offsets = [0, 0], sizes = [8, 128], strides = [1, 1]} : vector<8x384xf32> to vector<8x128xf32>
    %910 = arith.addf %908, %909 : vector<8x128xf32>
    %911 = arith.negf %910 : vector<8x128xf32>
    %912 = math.exp %911 : vector<8x128xf32>
    %cst_292 = arith.constant 1.000000e+00 : f32
    %913 = vector.broadcast %cst_292 : f32 to vector<8x128xf32>
    %914 = arith.addf %913, %912 : vector<8x128xf32>
    %915 = arith.divf %913, %914 : vector<8x128xf32>
    %916 = vector.extract_strided_slice %907 {offsets = [0, 128], sizes = [8, 128], strides = [1, 1]} : vector<8x384xf32> to vector<8x128xf32>
    %917 = vector.extract_strided_slice %906 {offsets = [0, 128], sizes = [8, 128], strides = [1, 1]} : vector<8x384xf32> to vector<8x128xf32>
    %918 = arith.addf %916, %917 : vector<8x128xf32>
    %919 = arith.negf %918 : vector<8x128xf32>
    %920 = math.exp %919 : vector<8x128xf32>
    %cst_293 = arith.constant 1.000000e+00 : f32
    %921 = vector.broadcast %cst_293 : f32 to vector<8x128xf32>
    %922 = arith.addf %921, %920 : vector<8x128xf32>
    %923 = arith.divf %921, %922 : vector<8x128xf32>
    %924 = vector.extract_strided_slice %907 {offsets = [0, 256], sizes = [8, 128], strides = [1, 1]} : vector<8x384xf32> to vector<8x128xf32>
    %925 = vector.extract_strided_slice %906 {offsets = [0, 256], sizes = [8, 128], strides = [1, 1]} : vector<8x384xf32> to vector<8x128xf32>
    %926 = arith.mulf %915, %925 : vector<8x128xf32>
    %927 = arith.addf %924, %926 : vector<8x128xf32>
    %928 = math.tanh %927 : vector<8x128xf32>
    %cst_294 = arith.constant 1.000000e+00 : f32
    %929 = vector.broadcast %cst_294 : f32 to vector<8x128xf32>
    %930 = arith.subf %929, %923 : vector<8x128xf32>
    %931 = arith.mulf %930, %928 : vector<8x128xf32>
    %932 = arith.mulf %923, %902 : vector<8x128xf32>
    %933 = arith.addf %931, %932 : vector<8x128xf32>
    %c80_295 = arith.constant 80 : index
    %c0_296 = arith.constant 0 : index
    %934 = vector.load %arg14[%c80_295, %c0_296] : memref<128x128xf32, #tpu.memory_space<vmem>>, vector<8x128xf32>
    tpu.vector_store %arg14[%c80_295, %c0_296], %933 {strides = array<i32>} : memref<128x128xf32, #tpu.memory_space<vmem>>, vector<8x128xf32>,
    %cst_297 = arith.constant dense<0.000000e+00> : vector<8x384xf32>
    %935 = tpu.matmul %933, %590, %cst_297 {dimension_numbers = #tpu.dot_dimension_numbers<[1], [0], [0], [1], [0, 0, 1, 1], [], []>} : vector<8x128xf32>, vector<128x384xf32>, vector<8x384xf32> -> vector<8x384xf32>
    %936 = vector.broadcast %592 : vector<1x384xf32> to vector<8x384xf32>
    %937 = arith.addf %935, %936 : vector<8x384xf32>
    %c88_298 = arith.constant 88 : index
    %c0_299 = arith.constant 0 : index
    %938 = vector.load %arg15[%c88_298, %c0_299] : memref<128x384xf32, #tpu.memory_space<vmem>>, vector<8x384xf32>
    %939 = vector.extract_strided_slice %938 {offsets = [0, 0], sizes = [8, 128], strides = [1, 1]} : vector<8x384xf32> to vector<8x128xf32>
    %940 = vector.extract_strided_slice %937 {offsets = [0, 0], sizes = [8, 128], strides = [1, 1]} : vector<8x384xf32> to vector<8x128xf32>
    %941 = arith.addf %939, %940 : vector<8x128xf32>
    %942 = arith.negf %941 : vector<8x128xf32>
    %943 = math.exp %942 : vector<8x128xf32>
    %cst_300 = arith.constant 1.000000e+00 : f32
    %944 = vector.broadcast %cst_300 : f32 to vector<8x128xf32>
    %945 = arith.addf %944, %943 : vector<8x128xf32>
    %946 = arith.divf %944, %945 : vector<8x128xf32>
    %947 = vector.extract_strided_slice %938 {offsets = [0, 128], sizes = [8, 128], strides = [1, 1]} : vector<8x384xf32> to vector<8x128xf32>
    %948 = vector.extract_strided_slice %937 {offsets = [0, 128], sizes = [8, 128], strides = [1, 1]} : vector<8x384xf32> to vector<8x128xf32>
    %949 = arith.addf %947, %948 : vector<8x128xf32>
    %950 = arith.negf %949 : vector<8x128xf32>
    %951 = math.exp %950 : vector<8x128xf32>
    %cst_301 = arith.constant 1.000000e+00 : f32
    %952 = vector.broadcast %cst_301 : f32 to vector<8x128xf32>
    %953 = arith.addf %952, %951 : vector<8x128xf32>
    %954 = arith.divf %952, %953 : vector<8x128xf32>
    %955 = vector.extract_strided_slice %938 {offsets = [0, 256], sizes = [8, 128], strides = [1, 1]} : vector<8x384xf32> to vector<8x128xf32>
    %956 = vector.extract_strided_slice %937 {offsets = [0, 256], sizes = [8, 128], strides = [1, 1]} : vector<8x384xf32> to vector<8x128xf32>
    %957 = arith.mulf %946, %956 : vector<8x128xf32>
    %958 = arith.addf %955, %957 : vector<8x128xf32>
    %959 = math.tanh %958 : vector<8x128xf32>
    %cst_302 = arith.constant 1.000000e+00 : f32
    %960 = vector.broadcast %cst_302 : f32 to vector<8x128xf32>
    %961 = arith.subf %960, %954 : vector<8x128xf32>
    %962 = arith.mulf %961, %959 : vector<8x128xf32>
    %963 = arith.mulf %954, %933 : vector<8x128xf32>
    %964 = arith.addf %962, %963 : vector<8x128xf32>
    %c88_303 = arith.constant 88 : index
    %c0_304 = arith.constant 0 : index
    %965 = vector.load %arg14[%c88_303, %c0_304] : memref<128x128xf32, #tpu.memory_space<vmem>>, vector<8x128xf32>
    tpu.vector_store %arg14[%c88_303, %c0_304], %964 {strides = array<i32>} : memref<128x128xf32, #tpu.memory_space<vmem>>, vector<8x128xf32>,
    %cst_305 = arith.constant dense<0.000000e+00> : vector<8x384xf32>
    %966 = tpu.matmul %964, %590, %cst_305 {dimension_numbers = #tpu.dot_dimension_numbers<[1], [0], [0], [1], [0, 0, 1, 1], [], []>} : vector<8x128xf32>, vector<128x384xf32>, vector<8x384xf32> -> vector<8x384xf32>
    %967 = vector.broadcast %592 : vector<1x384xf32> to vector<8x384xf32>
    %968 = arith.addf %966, %967 : vector<8x384xf32>
    %c96_306 = arith.constant 96 : index
    %c0_307 = arith.constant 0 : index
    %969 = vector.load %arg15[%c96_306, %c0_307] : memref<128x384xf32, #tpu.memory_space<vmem>>, vector<8x384xf32>
    %970 = vector.extract_strided_slice %969 {offsets = [0, 0], sizes = [8, 128], strides = [1, 1]} : vector<8x384xf32> to vector<8x128xf32>
    %971 = vector.extract_strided_slice %968 {offsets = [0, 0], sizes = [8, 128], strides = [1, 1]} : vector<8x384xf32> to vector<8x128xf32>
    %972 = arith.addf %970, %971 : vector<8x128xf32>
    %973 = arith.negf %972 : vector<8x128xf32>
    %974 = math.exp %973 : vector<8x128xf32>
    %cst_308 = arith.constant 1.000000e+00 : f32
    %975 = vector.broadcast %cst_308 : f32 to vector<8x128xf32>
    %976 = arith.addf %975, %974 : vector<8x128xf32>
    %977 = arith.divf %975, %976 : vector<8x128xf32>
    %978 = vector.extract_strided_slice %969 {offsets = [0, 128], sizes = [8, 128], strides = [1, 1]} : vector<8x384xf32> to vector<8x128xf32>
    %979 = vector.extract_strided_slice %968 {offsets = [0, 128], sizes = [8, 128], strides = [1, 1]} : vector<8x384xf32> to vector<8x128xf32>
    %980 = arith.addf %978, %979 : vector<8x128xf32>
    %981 = arith.negf %980 : vector<8x128xf32>
    %982 = math.exp %981 : vector<8x128xf32>
    %cst_309 = arith.constant 1.000000e+00 : f32
    %983 = vector.broadcast %cst_309 : f32 to vector<8x128xf32>
    %984 = arith.addf %983, %982 : vector<8x128xf32>
    %985 = arith.divf %983, %984 : vector<8x128xf32>
    %986 = vector.extract_strided_slice %969 {offsets = [0, 256], sizes = [8, 128], strides = [1, 1]} : vector<8x384xf32> to vector<8x128xf32>
    %987 = vector.extract_strided_slice %968 {offsets = [0, 256], sizes = [8, 128], strides = [1, 1]} : vector<8x384xf32> to vector<8x128xf32>
    %988 = arith.mulf %977, %987 : vector<8x128xf32>
    %989 = arith.addf %986, %988 : vector<8x128xf32>
    %990 = math.tanh %989 : vector<8x128xf32>
    %cst_310 = arith.constant 1.000000e+00 : f32
    %991 = vector.broadcast %cst_310 : f32 to vector<8x128xf32>
    %992 = arith.subf %991, %985 : vector<8x128xf32>
    %993 = arith.mulf %992, %990 : vector<8x128xf32>
    %994 = arith.mulf %985, %964 : vector<8x128xf32>
    %995 = arith.addf %993, %994 : vector<8x128xf32>
    %c96_311 = arith.constant 96 : index
    %c0_312 = arith.constant 0 : index
    %996 = vector.load %arg14[%c96_311, %c0_312] : memref<128x128xf32, #tpu.memory_space<vmem>>, vector<8x128xf32>
    tpu.vector_store %arg14[%c96_311, %c0_312], %995 {strides = array<i32>} : memref<128x128xf32, #tpu.memory_space<vmem>>, vector<8x128xf32>,
    %cst_313 = arith.constant dense<0.000000e+00> : vector<8x384xf32>
    %997 = tpu.matmul %995, %590, %cst_313 {dimension_numbers = #tpu.dot_dimension_numbers<[1], [0], [0], [1], [0, 0, 1, 1], [], []>} : vector<8x128xf32>, vector<128x384xf32>, vector<8x384xf32> -> vector<8x384xf32>
    %998 = vector.broadcast %592 : vector<1x384xf32> to vector<8x384xf32>
    %999 = arith.addf %997, %998 : vector<8x384xf32>
    %c104_314 = arith.constant 104 : index
    %c0_315 = arith.constant 0 : index
    %1000 = vector.load %arg15[%c104_314, %c0_315] : memref<128x384xf32, #tpu.memory_space<vmem>>, vector<8x384xf32>
    %1001 = vector.extract_strided_slice %1000 {offsets = [0, 0], sizes = [8, 128], strides = [1, 1]} : vector<8x384xf32> to vector<8x128xf32>
    %1002 = vector.extract_strided_slice %999 {offsets = [0, 0], sizes = [8, 128], strides = [1, 1]} : vector<8x384xf32> to vector<8x128xf32>
    %1003 = arith.addf %1001, %1002 : vector<8x128xf32>
    %1004 = arith.negf %1003 : vector<8x128xf32>
    %1005 = math.exp %1004 : vector<8x128xf32>
    %cst_316 = arith.constant 1.000000e+00 : f32
    %1006 = vector.broadcast %cst_316 : f32 to vector<8x128xf32>
    %1007 = arith.addf %1006, %1005 : vector<8x128xf32>
    %1008 = arith.divf %1006, %1007 : vector<8x128xf32>
    %1009 = vector.extract_strided_slice %1000 {offsets = [0, 128], sizes = [8, 128], strides = [1, 1]} : vector<8x384xf32> to vector<8x128xf32>
    %1010 = vector.extract_strided_slice %999 {offsets = [0, 128], sizes = [8, 128], strides = [1, 1]} : vector<8x384xf32> to vector<8x128xf32>
    %1011 = arith.addf %1009, %1010 : vector<8x128xf32>
    %1012 = arith.negf %1011 : vector<8x128xf32>
    %1013 = math.exp %1012 : vector<8x128xf32>
    %cst_317 = arith.constant 1.000000e+00 : f32
    %1014 = vector.broadcast %cst_317 : f32 to vector<8x128xf32>
    %1015 = arith.addf %1014, %1013 : vector<8x128xf32>
    %1016 = arith.divf %1014, %1015 : vector<8x128xf32>
    %1017 = vector.extract_strided_slice %1000 {offsets = [0, 256], sizes = [8, 128], strides = [1, 1]} : vector<8x384xf32> to vector<8x128xf32>
    %1018 = vector.extract_strided_slice %999 {offsets = [0, 256], sizes = [8, 128], strides = [1, 1]} : vector<8x384xf32> to vector<8x128xf32>
    %1019 = arith.mulf %1008, %1018 : vector<8x128xf32>
    %1020 = arith.addf %1017, %1019 : vector<8x128xf32>
    %1021 = math.tanh %1020 : vector<8x128xf32>
    %cst_318 = arith.constant 1.000000e+00 : f32
    %1022 = vector.broadcast %cst_318 : f32 to vector<8x128xf32>
    %1023 = arith.subf %1022, %1016 : vector<8x128xf32>
    %1024 = arith.mulf %1023, %1021 : vector<8x128xf32>
    %1025 = arith.mulf %1016, %995 : vector<8x128xf32>
    %1026 = arith.addf %1024, %1025 : vector<8x128xf32>
    %c104_319 = arith.constant 104 : index
    %c0_320 = arith.constant 0 : index
    %1027 = vector.load %arg14[%c104_319, %c0_320] : memref<128x128xf32, #tpu.memory_space<vmem>>, vector<8x128xf32>
    tpu.vector_store %arg14[%c104_319, %c0_320], %1026 {strides = array<i32>} : memref<128x128xf32, #tpu.memory_space<vmem>>, vector<8x128xf32>,
    %cst_321 = arith.constant dense<0.000000e+00> : vector<8x384xf32>
    %1028 = tpu.matmul %1026, %590, %cst_321 {dimension_numbers = #tpu.dot_dimension_numbers<[1], [0], [0], [1], [0, 0, 1, 1], [], []>} : vector<8x128xf32>, vector<128x384xf32>, vector<8x384xf32> -> vector<8x384xf32>
    %1029 = vector.broadcast %592 : vector<1x384xf32> to vector<8x384xf32>
    %1030 = arith.addf %1028, %1029 : vector<8x384xf32>
    %c112_322 = arith.constant 112 : index
    %c0_323 = arith.constant 0 : index
    %1031 = vector.load %arg15[%c112_322, %c0_323] : memref<128x384xf32, #tpu.memory_space<vmem>>, vector<8x384xf32>
    %1032 = vector.extract_strided_slice %1031 {offsets = [0, 0], sizes = [8, 128], strides = [1, 1]} : vector<8x384xf32> to vector<8x128xf32>
    %1033 = vector.extract_strided_slice %1030 {offsets = [0, 0], sizes = [8, 128], strides = [1, 1]} : vector<8x384xf32> to vector<8x128xf32>
    %1034 = arith.addf %1032, %1033 : vector<8x128xf32>
    %1035 = arith.negf %1034 : vector<8x128xf32>
    %1036 = math.exp %1035 : vector<8x128xf32>
    %cst_324 = arith.constant 1.000000e+00 : f32
    %1037 = vector.broadcast %cst_324 : f32 to vector<8x128xf32>
    %1038 = arith.addf %1037, %1036 : vector<8x128xf32>
    %1039 = arith.divf %1037, %1038 : vector<8x128xf32>
    %1040 = vector.extract_strided_slice %1031 {offsets = [0, 128], sizes = [8, 128], strides = [1, 1]} : vector<8x384xf32> to vector<8x128xf32>
    %1041 = vector.extract_strided_slice %1030 {offsets = [0, 128], sizes = [8, 128], strides = [1, 1]} : vector<8x384xf32> to vector<8x128xf32>
    %1042 = arith.addf %1040, %1041 : vector<8x128xf32>
    %1043 = arith.negf %1042 : vector<8x128xf32>
    %1044 = math.exp %1043 : vector<8x128xf32>
    %cst_325 = arith.constant 1.000000e+00 : f32
    %1045 = vector.broadcast %cst_325 : f32 to vector<8x128xf32>
    %1046 = arith.addf %1045, %1044 : vector<8x128xf32>
    %1047 = arith.divf %1045, %1046 : vector<8x128xf32>
    %1048 = vector.extract_strided_slice %1031 {offsets = [0, 256], sizes = [8, 128], strides = [1, 1]} : vector<8x384xf32> to vector<8x128xf32>
    %1049 = vector.extract_strided_slice %1030 {offsets = [0, 256], sizes = [8, 128], strides = [1, 1]} : vector<8x384xf32> to vector<8x128xf32>
    %1050 = arith.mulf %1039, %1049 : vector<8x128xf32>
    %1051 = arith.addf %1048, %1050 : vector<8x128xf32>
    %1052 = math.tanh %1051 : vector<8x128xf32>
    %cst_326 = arith.constant 1.000000e+00 : f32
    %1053 = vector.broadcast %cst_326 : f32 to vector<8x128xf32>
    %1054 = arith.subf %1053, %1047 : vector<8x128xf32>
    %1055 = arith.mulf %1054, %1052 : vector<8x128xf32>
    %1056 = arith.mulf %1047, %1026 : vector<8x128xf32>
    %1057 = arith.addf %1055, %1056 : vector<8x128xf32>
    %c112_327 = arith.constant 112 : index
    %c0_328 = arith.constant 0 : index
    %1058 = vector.load %arg14[%c112_327, %c0_328] : memref<128x128xf32, #tpu.memory_space<vmem>>, vector<8x128xf32>
    tpu.vector_store %arg14[%c112_327, %c0_328], %1057 {strides = array<i32>} : memref<128x128xf32, #tpu.memory_space<vmem>>, vector<8x128xf32>,
    %cst_329 = arith.constant dense<0.000000e+00> : vector<8x384xf32>
    %1059 = tpu.matmul %1057, %590, %cst_329 {dimension_numbers = #tpu.dot_dimension_numbers<[1], [0], [0], [1], [0, 0, 1, 1], [], []>} : vector<8x128xf32>, vector<128x384xf32>, vector<8x384xf32> -> vector<8x384xf32>
    %1060 = vector.broadcast %592 : vector<1x384xf32> to vector<8x384xf32>
    %1061 = arith.addf %1059, %1060 : vector<8x384xf32>
    %c120_330 = arith.constant 120 : index
    %c0_331 = arith.constant 0 : index
    %1062 = vector.load %arg15[%c120_330, %c0_331] : memref<128x384xf32, #tpu.memory_space<vmem>>, vector<8x384xf32>
    %1063 = vector.extract_strided_slice %1062 {offsets = [0, 0], sizes = [8, 128], strides = [1, 1]} : vector<8x384xf32> to vector<8x128xf32>
    %1064 = vector.extract_strided_slice %1061 {offsets = [0, 0], sizes = [8, 128], strides = [1, 1]} : vector<8x384xf32> to vector<8x128xf32>
    %1065 = arith.addf %1063, %1064 : vector<8x128xf32>
    %1066 = arith.negf %1065 : vector<8x128xf32>
    %1067 = math.exp %1066 : vector<8x128xf32>
    %cst_332 = arith.constant 1.000000e+00 : f32
    %1068 = vector.broadcast %cst_332 : f32 to vector<8x128xf32>
    %1069 = arith.addf %1068, %1067 : vector<8x128xf32>
    %1070 = arith.divf %1068, %1069 : vector<8x128xf32>
    %1071 = vector.extract_strided_slice %1062 {offsets = [0, 128], sizes = [8, 128], strides = [1, 1]} : vector<8x384xf32> to vector<8x128xf32>
    %1072 = vector.extract_strided_slice %1061 {offsets = [0, 128], sizes = [8, 128], strides = [1, 1]} : vector<8x384xf32> to vector<8x128xf32>
    %1073 = arith.addf %1071, %1072 : vector<8x128xf32>
    %1074 = arith.negf %1073 : vector<8x128xf32>
    %1075 = math.exp %1074 : vector<8x128xf32>
    %cst_333 = arith.constant 1.000000e+00 : f32
    %1076 = vector.broadcast %cst_333 : f32 to vector<8x128xf32>
    %1077 = arith.addf %1076, %1075 : vector<8x128xf32>
    %1078 = arith.divf %1076, %1077 : vector<8x128xf32>
    %1079 = vector.extract_strided_slice %1062 {offsets = [0, 256], sizes = [8, 128], strides = [1, 1]} : vector<8x384xf32> to vector<8x128xf32>
    %1080 = vector.extract_strided_slice %1061 {offsets = [0, 256], sizes = [8, 128], strides = [1, 1]} : vector<8x384xf32> to vector<8x128xf32>
    %1081 = arith.mulf %1070, %1080 : vector<8x128xf32>
    %1082 = arith.addf %1079, %1081 : vector<8x128xf32>
    %1083 = math.tanh %1082 : vector<8x128xf32>
    %cst_334 = arith.constant 1.000000e+00 : f32
    %1084 = vector.broadcast %cst_334 : f32 to vector<8x128xf32>
    %1085 = arith.subf %1084, %1078 : vector<8x128xf32>
    %1086 = arith.mulf %1085, %1083 : vector<8x128xf32>
    %1087 = arith.mulf %1078, %1057 : vector<8x128xf32>
    %1088 = arith.addf %1086, %1087 : vector<8x128xf32>
    %c120_335 = arith.constant 120 : index
    %c0_336 = arith.constant 0 : index
    %1089 = vector.load %arg14[%c120_335, %c0_336] : memref<128x128xf32, #tpu.memory_space<vmem>>, vector<8x128xf32>
    tpu.vector_store %arg14[%c120_335, %c0_336], %1088 {strides = array<i32>} : memref<128x128xf32, #tpu.memory_space<vmem>>, vector<8x128xf32>,
    %cst_337 = arith.constant 0.000000e+00 : f32
    %1090 = vector.broadcast %cst_337 : f32 to vector<8x128xf32>
    %c0_338 = arith.constant 0 : index
    %c0_339 = arith.constant 0 : index
    %1091 = vector.load %arg11[%c0_338, %c0_339] : memref<1x128xf32, #tpu.memory_space<vmem>>, vector<1x128xf32>
    %1092 = vector.broadcast %1091 : vector<1x128xf32> to vector<8x128xf32>
    %1093 = arith.addf %1090, %1092 : vector<8x128xf32>
    %c0_340 = arith.constant 0 : index
    %c0_341 = arith.constant 0 : index
    %1094 = vector.load %arg14[%c0_340, %c0_341] : memref<128x128xf32, #tpu.memory_space<vmem>>, vector<8x128xf32>
    %c0_342 = arith.constant 0 : index
    %c0_343 = arith.constant 0 : index
    %c0_344 = arith.constant 0 : index
    %1095 = vector.load %arg10[%c0_342, %c0_343, %c0_344] : memref<16x128x128xf32, #tpu.memory_space<vmem>>, vector<1x128x128xf32>
    %1096 = vector.shape_cast %1095 : vector<1x128x128xf32> to vector<128x128xf32>
    %cst_345 = arith.constant dense<0.000000e+00> : vector<8x128xf32>
    %1097 = tpu.matmul %1094, %1096, %cst_345 {dimension_numbers = #tpu.dot_dimension_numbers<[1], [0], [0], [1], [0, 0, 1, 1], [], []>} : vector<8x128xf32>, vector<128x128xf32>, vector<8x128xf32> -> vector<8x128xf32>
    %1098 = arith.addf %1093, %1097 : vector<8x128xf32>
    %c8_346 = arith.constant 8 : index
    %c0_347 = arith.constant 0 : index
    %1099 = vector.load %arg14[%c8_346, %c0_347] : memref<128x128xf32, #tpu.memory_space<vmem>>, vector<8x128xf32>
    %c1_348 = arith.constant 1 : index
    %c0_349 = arith.constant 0 : index
    %c0_350 = arith.constant 0 : index
    %1100 = vector.load %arg10[%c1_348, %c0_349, %c0_350] : memref<16x128x128xf32, #tpu.memory_space<vmem>>, vector<1x128x128xf32>
    %1101 = vector.shape_cast %1100 : vector<1x128x128xf32> to vector<128x128xf32>
    %cst_351 = arith.constant dense<0.000000e+00> : vector<8x128xf32>
    %1102 = tpu.matmul %1099, %1101, %cst_351 {dimension_numbers = #tpu.dot_dimension_numbers<[1], [0], [0], [1], [0, 0, 1, 1], [], []>} : vector<8x128xf32>, vector<128x128xf32>, vector<8x128xf32> -> vector<8x128xf32>
    %1103 = arith.addf %1098, %1102 : vector<8x128xf32>
    %c16_352 = arith.constant 16 : index
    %c0_353 = arith.constant 0 : index
    %1104 = vector.load %arg14[%c16_352, %c0_353] : memref<128x128xf32, #tpu.memory_space<vmem>>, vector<8x128xf32>
    %c2_354 = arith.constant 2 : index
    %c0_355 = arith.constant 0 : index
    %c0_356 = arith.constant 0 : index
    %1105 = vector.load %arg10[%c2_354, %c0_355, %c0_356] : memref<16x128x128xf32, #tpu.memory_space<vmem>>, vector<1x128x128xf32>
    %1106 = vector.shape_cast %1105 : vector<1x128x128xf32> to vector<128x128xf32>
    %cst_357 = arith.constant dense<0.000000e+00> : vector<8x128xf32>
    %1107 = tpu.matmul %1104, %1106, %cst_357 {dimension_numbers = #tpu.dot_dimension_numbers<[1], [0], [0], [1], [0, 0, 1, 1], [], []>} : vector<8x128xf32>, vector<128x128xf32>, vector<8x128xf32> -> vector<8x128xf32>
    %1108 = arith.addf %1103, %1107 : vector<8x128xf32>
    %c24_358 = arith.constant 24 : index
    %c0_359 = arith.constant 0 : index
    %1109 = vector.load %arg14[%c24_358, %c0_359] : memref<128x128xf32, #tpu.memory_space<vmem>>, vector<8x128xf32>
    %c3_360 = arith.constant 3 : index
    %c0_361 = arith.constant 0 : index
    %c0_362 = arith.constant 0 : index
    %1110 = vector.load %arg10[%c3_360, %c0_361, %c0_362] : memref<16x128x128xf32, #tpu.memory_space<vmem>>, vector<1x128x128xf32>
    %1111 = vector.shape_cast %1110 : vector<1x128x128xf32> to vector<128x128xf32>
    %cst_363 = arith.constant dense<0.000000e+00> : vector<8x128xf32>
    %1112 = tpu.matmul %1109, %1111, %cst_363 {dimension_numbers = #tpu.dot_dimension_numbers<[1], [0], [0], [1], [0, 0, 1, 1], [], []>} : vector<8x128xf32>, vector<128x128xf32>, vector<8x128xf32> -> vector<8x128xf32>
    %1113 = arith.addf %1108, %1112 : vector<8x128xf32>
    %c32_364 = arith.constant 32 : index
    %c0_365 = arith.constant 0 : index
    %1114 = vector.load %arg14[%c32_364, %c0_365] : memref<128x128xf32, #tpu.memory_space<vmem>>, vector<8x128xf32>
    %c4_366 = arith.constant 4 : index
    %c0_367 = arith.constant 0 : index
    %c0_368 = arith.constant 0 : index
    %1115 = vector.load %arg10[%c4_366, %c0_367, %c0_368] : memref<16x128x128xf32, #tpu.memory_space<vmem>>, vector<1x128x128xf32>
    %1116 = vector.shape_cast %1115 : vector<1x128x128xf32> to vector<128x128xf32>
    %cst_369 = arith.constant dense<0.000000e+00> : vector<8x128xf32>
    %1117 = tpu.matmul %1114, %1116, %cst_369 {dimension_numbers = #tpu.dot_dimension_numbers<[1], [0], [0], [1], [0, 0, 1, 1], [], []>} : vector<8x128xf32>, vector<128x128xf32>, vector<8x128xf32> -> vector<8x128xf32>
    %1118 = arith.addf %1113, %1117 : vector<8x128xf32>
    %c40_370 = arith.constant 40 : index
    %c0_371 = arith.constant 0 : index
    %1119 = vector.load %arg14[%c40_370, %c0_371] : memref<128x128xf32, #tpu.memory_space<vmem>>, vector<8x128xf32>
    %c5 = arith.constant 5 : index
    %c0_372 = arith.constant 0 : index
    %c0_373 = arith.constant 0 : index
    %1120 = vector.load %arg10[%c5, %c0_372, %c0_373] : memref<16x128x128xf32, #tpu.memory_space<vmem>>, vector<1x128x128xf32>
    %1121 = vector.shape_cast %1120 : vector<1x128x128xf32> to vector<128x128xf32>
    %cst_374 = arith.constant dense<0.000000e+00> : vector<8x128xf32>
    %1122 = tpu.matmul %1119, %1121, %cst_374 {dimension_numbers = #tpu.dot_dimension_numbers<[1], [0], [0], [1], [0, 0, 1, 1], [], []>} : vector<8x128xf32>, vector<128x128xf32>, vector<8x128xf32> -> vector<8x128xf32>
    %1123 = arith.addf %1118, %1122 : vector<8x128xf32>
    %c48_375 = arith.constant 48 : index
    %c0_376 = arith.constant 0 : index
    %1124 = vector.load %arg14[%c48_375, %c0_376] : memref<128x128xf32, #tpu.memory_space<vmem>>, vector<8x128xf32>
    %c6 = arith.constant 6 : index
    %c0_377 = arith.constant 0 : index
    %c0_378 = arith.constant 0 : index
    %1125 = vector.load %arg10[%c6, %c0_377, %c0_378] : memref<16x128x128xf32, #tpu.memory_space<vmem>>, vector<1x128x128xf32>
    %1126 = vector.shape_cast %1125 : vector<1x128x128xf32> to vector<128x128xf32>
    %cst_379 = arith.constant dense<0.000000e+00> : vector<8x128xf32>
    %1127 = tpu.matmul %1124, %1126, %cst_379 {dimension_numbers = #tpu.dot_dimension_numbers<[1], [0], [0], [1], [0, 0, 1, 1], [], []>} : vector<8x128xf32>, vector<128x128xf32>, vector<8x128xf32> -> vector<8x128xf32>
    %1128 = arith.addf %1123, %1127 : vector<8x128xf32>
    %c56_380 = arith.constant 56 : index
    %c0_381 = arith.constant 0 : index
    %1129 = vector.load %arg14[%c56_380, %c0_381] : memref<128x128xf32, #tpu.memory_space<vmem>>, vector<8x128xf32>
    %c7 = arith.constant 7 : index
    %c0_382 = arith.constant 0 : index
    %c0_383 = arith.constant 0 : index
    %1130 = vector.load %arg10[%c7, %c0_382, %c0_383] : memref<16x128x128xf32, #tpu.memory_space<vmem>>, vector<1x128x128xf32>
    %1131 = vector.shape_cast %1130 : vector<1x128x128xf32> to vector<128x128xf32>
    %cst_384 = arith.constant dense<0.000000e+00> : vector<8x128xf32>
    %1132 = tpu.matmul %1129, %1131, %cst_384 {dimension_numbers = #tpu.dot_dimension_numbers<[1], [0], [0], [1], [0, 0, 1, 1], [], []>} : vector<8x128xf32>, vector<128x128xf32>, vector<8x128xf32> -> vector<8x128xf32>
    %1133 = arith.addf %1128, %1132 : vector<8x128xf32>
    %c64_385 = arith.constant 64 : index
    %c0_386 = arith.constant 0 : index
    %1134 = vector.load %arg14[%c64_385, %c0_386] : memref<128x128xf32, #tpu.memory_space<vmem>>, vector<8x128xf32>
    %c8_387 = arith.constant 8 : index
    %c0_388 = arith.constant 0 : index
    %c0_389 = arith.constant 0 : index
    %1135 = vector.load %arg10[%c8_387, %c0_388, %c0_389] : memref<16x128x128xf32, #tpu.memory_space<vmem>>, vector<1x128x128xf32>
    %1136 = vector.shape_cast %1135 : vector<1x128x128xf32> to vector<128x128xf32>
    %cst_390 = arith.constant dense<0.000000e+00> : vector<8x128xf32>
    %1137 = tpu.matmul %1134, %1136, %cst_390 {dimension_numbers = #tpu.dot_dimension_numbers<[1], [0], [0], [1], [0, 0, 1, 1], [], []>} : vector<8x128xf32>, vector<128x128xf32>, vector<8x128xf32> -> vector<8x128xf32>
    %1138 = arith.addf %1133, %1137 : vector<8x128xf32>
    %c72_391 = arith.constant 72 : index
    %c0_392 = arith.constant 0 : index
    %1139 = vector.load %arg14[%c72_391, %c0_392] : memref<128x128xf32, #tpu.memory_space<vmem>>, vector<8x128xf32>
    %c9 = arith.constant 9 : index
    %c0_393 = arith.constant 0 : index
    %c0_394 = arith.constant 0 : index
    %1140 = vector.load %arg10[%c9, %c0_393, %c0_394] : memref<16x128x128xf32, #tpu.memory_space<vmem>>, vector<1x128x128xf32>
    %1141 = vector.shape_cast %1140 : vector<1x128x128xf32> to vector<128x128xf32>
    %cst_395 = arith.constant dense<0.000000e+00> : vector<8x128xf32>
    %1142 = tpu.matmul %1139, %1141, %cst_395 {dimension_numbers = #tpu.dot_dimension_numbers<[1], [0], [0], [1], [0, 0, 1, 1], [], []>} : vector<8x128xf32>, vector<128x128xf32>, vector<8x128xf32> -> vector<8x128xf32>
    %1143 = arith.addf %1138, %1142 : vector<8x128xf32>
    %c80_396 = arith.constant 80 : index
    %c0_397 = arith.constant 0 : index
    %1144 = vector.load %arg14[%c80_396, %c0_397] : memref<128x128xf32, #tpu.memory_space<vmem>>, vector<8x128xf32>
    %c10 = arith.constant 10 : index
    %c0_398 = arith.constant 0 : index
    %c0_399 = arith.constant 0 : index
    %1145 = vector.load %arg10[%c10, %c0_398, %c0_399] : memref<16x128x128xf32, #tpu.memory_space<vmem>>, vector<1x128x128xf32>
    %1146 = vector.shape_cast %1145 : vector<1x128x128xf32> to vector<128x128xf32>
    %cst_400 = arith.constant dense<0.000000e+00> : vector<8x128xf32>
    %1147 = tpu.matmul %1144, %1146, %cst_400 {dimension_numbers = #tpu.dot_dimension_numbers<[1], [0], [0], [1], [0, 0, 1, 1], [], []>} : vector<8x128xf32>, vector<128x128xf32>, vector<8x128xf32> -> vector<8x128xf32>
    %1148 = arith.addf %1143, %1147 : vector<8x128xf32>
    %c88_401 = arith.constant 88 : index
    %c0_402 = arith.constant 0 : index
    %1149 = vector.load %arg14[%c88_401, %c0_402] : memref<128x128xf32, #tpu.memory_space<vmem>>, vector<8x128xf32>
    %c11 = arith.constant 11 : index
    %c0_403 = arith.constant 0 : index
    %c0_404 = arith.constant 0 : index
    %1150 = vector.load %arg10[%c11, %c0_403, %c0_404] : memref<16x128x128xf32, #tpu.memory_space<vmem>>, vector<1x128x128xf32>
    %1151 = vector.shape_cast %1150 : vector<1x128x128xf32> to vector<128x128xf32>
    %cst_405 = arith.constant dense<0.000000e+00> : vector<8x128xf32>
    %1152 = tpu.matmul %1149, %1151, %cst_405 {dimension_numbers = #tpu.dot_dimension_numbers<[1], [0], [0], [1], [0, 0, 1, 1], [], []>} : vector<8x128xf32>, vector<128x128xf32>, vector<8x128xf32> -> vector<8x128xf32>
    %1153 = arith.addf %1148, %1152 : vector<8x128xf32>
    %c96_406 = arith.constant 96 : index
    %c0_407 = arith.constant 0 : index
    %1154 = vector.load %arg14[%c96_406, %c0_407] : memref<128x128xf32, #tpu.memory_space<vmem>>, vector<8x128xf32>
    %c12 = arith.constant 12 : index
    %c0_408 = arith.constant 0 : index
    %c0_409 = arith.constant 0 : index
    %1155 = vector.load %arg10[%c12, %c0_408, %c0_409] : memref<16x128x128xf32, #tpu.memory_space<vmem>>, vector<1x128x128xf32>
    %1156 = vector.shape_cast %1155 : vector<1x128x128xf32> to vector<128x128xf32>
    %cst_410 = arith.constant dense<0.000000e+00> : vector<8x128xf32>
    %1157 = tpu.matmul %1154, %1156, %cst_410 {dimension_numbers = #tpu.dot_dimension_numbers<[1], [0], [0], [1], [0, 0, 1, 1], [], []>} : vector<8x128xf32>, vector<128x128xf32>, vector<8x128xf32> -> vector<8x128xf32>
    %1158 = arith.addf %1153, %1157 : vector<8x128xf32>
    %c104_411 = arith.constant 104 : index
    %c0_412 = arith.constant 0 : index
    %1159 = vector.load %arg14[%c104_411, %c0_412] : memref<128x128xf32, #tpu.memory_space<vmem>>, vector<8x128xf32>
    %c13 = arith.constant 13 : index
    %c0_413 = arith.constant 0 : index
    %c0_414 = arith.constant 0 : index
    %1160 = vector.load %arg10[%c13, %c0_413, %c0_414] : memref<16x128x128xf32, #tpu.memory_space<vmem>>, vector<1x128x128xf32>
    %1161 = vector.shape_cast %1160 : vector<1x128x128xf32> to vector<128x128xf32>
    %cst_415 = arith.constant dense<0.000000e+00> : vector<8x128xf32>
    %1162 = tpu.matmul %1159, %1161, %cst_415 {dimension_numbers = #tpu.dot_dimension_numbers<[1], [0], [0], [1], [0, 0, 1, 1], [], []>} : vector<8x128xf32>, vector<128x128xf32>, vector<8x128xf32> -> vector<8x128xf32>
    %1163 = arith.addf %1158, %1162 : vector<8x128xf32>
    %c112_416 = arith.constant 112 : index
    %c0_417 = arith.constant 0 : index
    %1164 = vector.load %arg14[%c112_416, %c0_417] : memref<128x128xf32, #tpu.memory_space<vmem>>, vector<8x128xf32>
    %c14 = arith.constant 14 : index
    %c0_418 = arith.constant 0 : index
    %c0_419 = arith.constant 0 : index
    %1165 = vector.load %arg10[%c14, %c0_418, %c0_419] : memref<16x128x128xf32, #tpu.memory_space<vmem>>, vector<1x128x128xf32>
    %1166 = vector.shape_cast %1165 : vector<1x128x128xf32> to vector<128x128xf32>
    %cst_420 = arith.constant dense<0.000000e+00> : vector<8x128xf32>
    %1167 = tpu.matmul %1164, %1166, %cst_420 {dimension_numbers = #tpu.dot_dimension_numbers<[1], [0], [0], [1], [0, 0, 1, 1], [], []>} : vector<8x128xf32>, vector<128x128xf32>, vector<8x128xf32> -> vector<8x128xf32>
    %1168 = arith.addf %1163, %1167 : vector<8x128xf32>
    %c120_421 = arith.constant 120 : index
    %c0_422 = arith.constant 0 : index
    %1169 = vector.load %arg14[%c120_421, %c0_422] : memref<128x128xf32, #tpu.memory_space<vmem>>, vector<8x128xf32>
    %c15 = arith.constant 15 : index
    %c0_423 = arith.constant 0 : index
    %c0_424 = arith.constant 0 : index
    %1170 = vector.load %arg10[%c15, %c0_423, %c0_424] : memref<16x128x128xf32, #tpu.memory_space<vmem>>, vector<1x128x128xf32>
    %1171 = vector.shape_cast %1170 : vector<1x128x128xf32> to vector<128x128xf32>
    %cst_425 = arith.constant dense<0.000000e+00> : vector<8x128xf32>
    %1172 = tpu.matmul %1169, %1171, %cst_425 {dimension_numbers = #tpu.dot_dimension_numbers<[1], [0], [0], [1], [0, 0, 1, 1], [], []>} : vector<8x128xf32>, vector<128x128xf32>, vector<8x128xf32> -> vector<8x128xf32>
    %1173 = arith.addf %1168, %1172 : vector<8x128xf32>
    %cst_426 = arith.constant 0.000000e+00 : f32
    %1174 = vector.broadcast %cst_426 : f32 to vector<8x128xf32>
    %1175 = arith.maximumf %1173, %1174 : vector<8x128xf32>
    %c0_427 = arith.constant 0 : index
    %c0_428 = arith.constant 0 : index
    %1176 = vector.load %arg12[%c0_427, %c0_428] : memref<8x128xf32, #tpu.memory_space<vmem>>, vector<8x128xf32>
    tpu.vector_store %arg12[%c0_427, %c0_428], %1175 {strides = array<i32>} : memref<8x128xf32, #tpu.memory_space<vmem>>, vector<8x128xf32>,
    return
  }
}

</mosaic_0001>

<bundles_post_ra>
// kernel: coder_cnn_rnn_forward.1
= control target key start
LH: loop header
LB: loop body
LE: loop exit
PB: predicated region body
PF: predicated region fallthrough
CT: control target
= control target key end

     0   :  { %17 = vsyncpa [#allocation6], 0  ;;  %s10187_s0 = inlined_call_operand.vmem [shape: f32[128,3], index: 0, kind: input, shape index: {}]   ;;  %s10188_s1 = inlined_call_operand.vmem [shape: f32[3,128], index: 1, kind: input, shape index: {}]   ;;  %s10189_s2 = inlined_call_operand.vmem [shape: f32[5,128], index: 2, kind: input, shape index: {}]   ;;  %s10190_s3 = inlined_call_operand.vmem [shape: f32[1,128], index: 3, kind: input, shape index: {}]   ;;  %s10191_s4 = inlined_call_operand.hbm [shape: f32[1,5,128,128], index: 4, kind: input, shape index: {}]   ;;  %s10192_s5 = inlined_call_operand.vmem [shape: f32[1,1,128], index: 5, kind: input, shape index: {}]   ;;  %s10193_s6 = inlined_call_operand.hbm [shape: f32[2,128,384], index: 6, kind: input, shape index: {}]   ;;  %s10194_s7 = inlined_call_operand.vmem [shape: f32[2,1,384], index: 7, kind: input, shape index: {}]   ;;  %s10195_s8 = inlined_call_operand.hbm [shape: f32[2,128,384], index: 8, kind: input, shape index: {}]   ;;  %s10196_s9 = inlined_call_operand.vmem [shape: f32[2,1,384], index: 9, kind: input, shape index: {}]   ;;  %s10197_s10 = inlined_call_operand.hbm [shape: f32[16,128,128], index: 10, kind: input, shape index: {}]   ;;  %s10198_s11 = inlined_call_operand.vmem [shape: f32[1,128], index: 11, kind: input, shape index: {}]   ;;  %s10199_s12 = inlined_call_operand.vmem [shape: f32[8,128], index: 12, kind: output, shape index: {}]  }
   0x1   :  { %18 = vsyncpa [#allocation8], 0  ;;  %s47_s23 = sshll.u32 %s10193_s6, 4  ;;  %s48_s23 = int_to_ptr.hbm [resolvable:$true] %s47_s23 }
   0x2   :  { %19 = vsyncpa [#allocation11], 0  ;;  %s6793_s24 = smov [#allocation7]   ;;  %s32_s28 = sshll.u32 %s10191_s4, 4  ;;  %s33_s28 = int_to_ptr.hbm [resolvable:$true] %s32_s28 }
   0x3   :  { %s49_s25 = sshll.u32 %s6793_s24, 4  ;;  %s6794_s29 = smov 384   ;;  %s50_s25 = int_to_ptr.vmem [resolvable:$true] %s49_s25 }
   0x4   :  { %s6795_s30 = smov 24   ;;  %s6796_s13 = smov [#allocation5]  }
   0x5   :  { %55 = dma.hbm_to_vmem [thread:$0]  %s48_s23, 12288, %s50_s25, [#allocation8], %s6794_s29, %s6794_s29, %s6795_s30  }
   0x6   :  { %s34_s14 = sshll.u32 %s6796_s13, 4  ;;  %s6797_s15 = smov 128   ;;  %s35_s14 = int_to_ptr.vmem [resolvable:$true] %s34_s14 }
   0x7   :  { %s6798_s16 = smov 8   ;;  %s62_s18 = sshll.u32 %s10195_s8, 4  ;;  %s63_s18 = int_to_ptr.hbm [resolvable:$true] %s62_s18 }
   0x8   :  { %40 = dma.hbm_to_vmem [thread:$0]  %s33_s28, 10240, %s35_s14, [#allocation6], %s6797_s15, %s6797_s15, %s6798_s16  }
   0x9   :  { %s6799_s19 = smov [#allocation9]   ;;  %s77_s22 = sshll.u32 %s10197_s10, 4  ;;  %s78_s22 = int_to_ptr.hbm [resolvable:$true] %s77_s22 }
   0xa   :  { %s64_s20 = sshll.u32 %s6799_s19, 4  ;;  %s6800_s23 = smov [#allocation10]   ;;  %s65_s20 = int_to_ptr.vmem [resolvable:$true] %s64_s20 }
   0xb   :  { %70 = dma.hbm_to_vmem [thread:$0]  %s63_s18, 12288, %s65_s20, [#allocation8], %s6794_s29, %s6794_s29, %s6795_s30  }
   0xc   :  { %s79_s24 = sshll.u32 %s6800_s23, 4  ;;  %s80_s24 = int_to_ptr.vmem [resolvable:$true] %s79_s24 }
   0xd   :  { %85 = dma.hbm_to_vmem [thread:$0]  %s78_s22, 32768, %s80_s24, [#allocation11], %s6797_s15, %s6797_s15, %s6798_s16  }
   0xe   :  { %6787 = dma.done.wait [#allocation6], 10240  }
   0xf   :  { %6788 = vsyncadd [#allocation6], 4294957056 }
  0x10   :  { %6789 = dma.done.wait [#allocation8], 24576  }
  0x11   :  { %6790 = vsyncadd [#allocation8], 4294942720 }
  0x12   :  { %6791 = dma.done.wait [#allocation11], 32768  }
  0x13   :  { %6792 = vsyncadd [#allocation11], 4294934528  ;;  %vm190_vm0 = vcmask 1042432   ;;  %vm141_vm1 = vcmask 23552   ;;  %v140_v0 = vld [vmem:[%s10188_s1] sm:$0x7] }
  0x14   :  { %v124_v1 = vld [vmem:[%s10187_s0] sm:$0xff]  ;;  %6005 = vmatpush.msk.msra.mxu0 %vm190_vm0, %v140_v0  ;;  %v125_v2 = vld [vmem:[%s10187_s0 + $0x8] sm:$0xff]  ;;  %v126_v3 = vld [vmem:[%s10187_s0 + $0x10] sm:$0xff]  ;;  %v10200_v58 = vmov 0.0  }
  0x15   :  { %6006 = vmatmul.msk.f32.vlgmr.msra.gmra.mxu0 %vm141_vm1, %v124_v1  ;;  %v127_v4 = vld [vmem:[%s10187_s0 + $0x18] sm:$0xff]  ;;  %v128_v5 = vld [vmem:[%s10187_s0 + $0x20] sm:$0xff]  ;;  %v129_v6 = vld [vmem:[%s10187_s0 + $0x28] sm:$0xff] }
  0x16   :  { %v130_v7 = vld [vmem:[%s10187_s0 + $0x30] sm:$0xff]  ;;  %v131_v8 = vld [vmem:[%s10187_s0 + $0x38] sm:$0xff]  ;;  %v132_v9 = vld [vmem:[%s10187_s0 + $0x40] sm:$0xff] }
  0x17   :  { %v559_v10 = vld [vmem:[#allocation5 + $0x78] sm:$0xff]  ;;  %v133_v11 = vld [vmem:[%s10187_s0 + $0x48] sm:$0xff]  ;;  %v558_v12 = vld [vmem:[#allocation5 + $0x70] sm:$0xff] }
  0x18   :  { %643 = vmatpush.msra.mxu2 %v559_v10  ;;  %v557_v13 = vld [vmem:[#allocation5 + $0x68] sm:$0xff]  ;;  %v577_v14 = vld [vmem:[#allocation5 + $0xf8] sm:$0xff]  ;;  %v556_v15 = vld [vmem:[#allocation5 + $0x60] sm:$0xff] }
  0x19   :  { %578 = vmatpush.msra.mxu1 %v577_v14  ;;  %v555_v16 = vld [vmem:[#allocation5 + $0x58] sm:$0xff]  ;;  %v134_v17 = vld [vmem:[%s10187_s0 + $0x50] sm:$0xff]  ;;  %v575_v20 = vld [vmem:[#allocation5 + $0xe8] sm:$0xff] }
  0x1a   :  { %644 = vmatpush.msra.mxu2 %v558_v12  ;;  %v576_v18 = vld [vmem:[#allocation5 + $0xf0] sm:$0xff]  ;;  %v553_v21 = vld [vmem:[#allocation5 + $0x48] sm:$0xff]  ;;  %v574_v22 = vld [vmem:[#allocation5 + $0xe0] sm:$0xff] }
  0x1b   :  { %v554_v19 = vld [vmem:[#allocation5 + $0x50] sm:$0xff]  ;;  %579 = vmatpush.msra.mxu1 %v576_v18  ;;  %v552_v23 = vld [vmem:[#allocation5 + $0x40] sm:$0xff]  ;;  %v740_v24 = vld [vmem:[#allocation5 + $0x178] sm:$0xff] }
  0x1c   :  { %645 = vmatpush.msra.mxu2 %v557_v13  ;;  %v573_v25 = vld [vmem:[#allocation5 + $0xd8] sm:$0xff]  ;;  %741 = vmatpush.msra.mxu3 %v740_v24  ;;  %v572_v28 = vld [vmem:[#allocation5 + $0xd0] sm:$0xff]  ;;  %v571_v31 = vld [vmem:[#allocation5 + $0xc8] sm:$0xff] }
  0x1d   :  { %6007 = vmatmul.msk.f32.gmra.mxu0 %vm141_vm1, %v125_v2  ;;  %580 = vmatpush.msra.mxu1 %v575_v20  ;;  %v551_v26 = vld [vmem:[#allocation5 + $0x38] sm:$0xff]  ;;  %v550_v29 = vld [vmem:[#allocation5 + $0x30] sm:$0xff]  ;;  %v549_v32 = vld [vmem:[#allocation5 + $0x28] sm:$0xff] }
  0x1e   :  { %646 = vmatpush.msra.mxu2 %v556_v15  ;;  %v135_v27 = vld [vmem:[%s10187_s0 + $0x58] sm:$0xff]  ;;  %v739_v30 = vld [vmem:[#allocation5 + $0x170] sm:$0xff]  ;;  %v738_v33 = vld [vmem:[#allocation5 + $0x168] sm:$0xff] }
  0x1f   :  { %581 = vmatpush.msra.mxu1 %v574_v22  ;;  %742 = vmatpush.msra.mxu3 %v739_v30  ;;  %v570_v34 = vld [vmem:[#allocation5 + $0xc0] sm:$0xff]  ;;  %v569_v38 = vld [vmem:[#allocation5 + $0xb8] sm:$0xff]  ;;  %v568_v42 = vld [vmem:[#allocation5 + $0xb0] sm:$0xff] }
  0x20   :  { %647 = vmatpush.msra.mxu2 %v555_v16  ;;  %v548_v35 = vld [vmem:[#allocation5 + $0x20] sm:$0xff]  ;;  %v547_v39 = vld [vmem:[#allocation5 + $0x18] sm:$0xff]  ;;  %v546_v43 = vld [vmem:[#allocation5 + $0x10] sm:$0xff] }
  0x21   :  { %582 = vmatpush.msra.mxu1 %v573_v25  ;;  %743 = vmatpush.msra.mxu3 %v738_v33  ;;  %v737_v36 = vld [vmem:[#allocation5 + $0x160] sm:$0xff]  ;;  %v736_v40 = vld [vmem:[#allocation5 + $0x158] sm:$0xff]  ;;  %v735_v44 = vld [vmem:[#allocation5 + $0x150] sm:$0xff] }
  0x22   :  { %648 = vmatpush.msra.mxu2 %v554_v19  ;;  %v136_v37 = vld [vmem:[%s10187_s0 + $0x60] sm:$0xff]  ;;  %v854_v41 = vld [vmem:[#allocation5 + $0x1f8] sm:$0xff]  ;;  %v853_v45 = vld [vmem:[#allocation5 + $0x1f0] sm:$0xff] }
  0x23   :  { %583 = vmatpush.msra.mxu1 %v572_v28  ;;  %744 = vmatpush.msra.mxu3 %v737_v36  ;;  %v567_v46 = vld [vmem:[#allocation5 + $0xa8] sm:$0xff]  ;;  %v566_v50 = vld [vmem:[#allocation5 + $0xa0] sm:$0xff]  ;;  %v565_v55 = vld [vmem:[#allocation5 + $0x98] sm:$0xff] }
  0x24   :  { %649 = vmatpush.msra.mxu2 %v553_v21  ;;  %855 = vmatpush.msrb.mxu0 %v854_v41  ;;  %v545_v47 = vld [vmem:[#allocation5 + $0x8] sm:$0xff]  ;;  %v544_v51 = vld [vmem:[#allocation5] sm:$0xff]  ;;  %v732_v56 = vld [vmem:[#allocation5 + $0x138] sm:$0xff] }
  0x25   :  { %6008 = vmatmul.msk.f32.gmra.mxu0 %vm141_vm1, %v126_v3  ;;  %584 = vmatpush.msra.mxu1 %v571_v31  ;;  %v734_v48 = vld [vmem:[#allocation5 + $0x148] sm:$0xff]  ;;  %v733_v52 = vld [vmem:[#allocation5 + $0x140] sm:$0xff]  ;;  %v850_v57 = vld [vmem:[#allocation5 + $0x1d8] sm:$0xff] }
  0x26   :  { %650 = vmatpush.msra.mxu2 %v552_v23  ;;  %745 = vmatpush.msra.mxu3 %v736_v40  ;;  %v852_v49 = vld [vmem:[#allocation5 + $0x1e8] sm:$0xff]  ;;  %v851_v54 = vld [vmem:[#allocation5 + $0x1e0] sm:$0xff]  ;;  %v564_v59 = vld [vmem:[#allocation5 + $0x90] sm:$0xff] }
  0x27   :  { %585 = vmatpush.msra.mxu1 %v570_v34  ;;  %856 = vmatpush.msrb.mxu0 %v853_v45  ;;  %v137_v53 = vld [vmem:[%s10187_s0 + $0x68] sm:$0xff]  ;;  %v731_v60 = vld [vmem:[#allocation5 + $0x130] sm:$0xff]  ;;  %v562_v1 = vld [vmem:[#allocation5 + $0x80] sm:$0xff] }
  0x28   :  { %651 = vmatpush.msra.mxu2 %v551_v26  ;;  %746 = vmatpush.msra.mxu3 %v735_v44  ;;  %v849_v61 = vld [vmem:[#allocation5 + $0x1d0] sm:$0xff]  ;;  %v563_v62 = vld [vmem:[#allocation5 + $0x88] sm:$0xff]  ;;  %v729_v2 = vld [vmem:[#allocation5 + $0x120] sm:$0xff] }
  0x29   :  { %586 = vmatpush.msra.mxu1 %v569_v38  ;;  %857 = vmatpush.msrb.mxu0 %v852_v49  ;;  %v730_v63 = vld [vmem:[#allocation5 + $0x128] sm:$0xff]  ;;  %v847_v3 = vld [vmem:[#allocation5 + $0x1c0] sm:$0xff]  ;;  %v842_v14 = vld [vmem:[#allocation5 + $0x198] sm:$0xff] }
  0x2a   :  { %652 = vmatpush.msra.mxu2 %v550_v29  ;;  %747 = vmatpush.msra.mxu3 %v734_v48  ;;  %v848_v0 = vld [vmem:[#allocation5 + $0x1c8] sm:$0xff]  ;;  %v725_v12 = vld [vmem:[#allocation5 + $0x100] sm:$0xff]  ;;  %v968_v15 = vld [vmem:[#allocation5 + $0x278] sm:$0xff] }
  0x2b   :  { %587 = vmatpush.msra.mxu1 %v568_v42  ;;  %858 = vmatpush.msrb.mxu0 %v851_v54  ;;  %v844_v10 = vld [vmem:[#allocation5 + $0x1a8] sm:$0xff]  ;;  %v843_v13 = vld [vmem:[#allocation5 + $0x1a0] sm:$0xff]  ;;  %v841_v16 = vld [vmem:[#allocation5 + $0x190] sm:$0xff] }
  0x2c   :  { %653 = vmatpush.msra.mxu2 %v549_v32  ;;  %748 = vmatpush.msra.mxu3 %v733_v52  ;;  %v275_v19 = vld [vmem:[%s10189_s2] sm:$0x1f]  ;;  %v967_v23 = vld [vmem:[#allocation5 + $0x270] sm:$0xff]  ;;  %v966_v31 = vld [vmem:[#allocation5 + $0x268] sm:$0xff] }
  0x2d   :  { %6009 = vmatmul.msk.f32.gmra.mxu0 %vm141_vm1, %v127_v4  ;;  %588 = vmatpush.msra.mxu1 %v567_v46  ;;  %v138_v4 = vld [vmem:[%s10187_s0 + $0x70] sm:$0xff]  ;;  %v839_v20 = vld [vmem:[#allocation5 + $0x180] sm:$0xff]  ;;  %v6952_v21 = vperm.slane %v275_v19, 0  ;;  %v6954_v22 = vperm.slane %v275_v19, 1  ;;  %v6958_v26 = vperm.slane %v275_v19, 2  ;;  %v6960_v28 = vperm.slane %v275_v19, 3 }
  0x2e   :  { %654 = vmatpush.msra.mxu2 %v548_v35  ;;  %749 = vmatpush.msra.mxu3 %v732_v56  ;;  %v6964_v33 = vperm.slane %v275_v19, 4  ;;  %v965_v42 = vld [vmem:[#allocation5 + $0x260] sm:$0xff] }
  0x2f   :  { %589 = vmatpush.msra.mxu1 %v566_v50  ;;  %859 = vmatpush.msrb.mxu0 %v850_v57  ;;  %v293_v24 = vmul.f32 0.0, %v6952_v21  ;;  %v327_v25 = vmul.f32 0.0, %v6954_v22 }
  0x30   :  { %655 = vmatpush.msra.mxu2 %v547_v39  ;;  %750 = vmatpush.msra.mxu3 %v731_v60  ;;  %v6971_v39 = vld [vmem:[%s10190_s3] ss:$0 sm:$0xff] }
  0x31   :  { %590 = vmatpush.msra.mxu1 %v565_v55  ;;  %860 = vmatpush.msrb.mxu0 %v849_v61  ;;  %v343_v29 = vadd.f32 %v327_v25, %v293_v24  ;;  %v964_v55 = vld [vmem:[#allocation5 + $0x258] sm:$0xff] }
  0x32   :  { %656 = vmatpush.msra.mxu2 %v546_v43  ;;  %751 = vmatpush.msra.mxu3 %v730_v63 }
  0x33   :  { %591 = vmatpush.msra.mxu1 %v564_v59  ;;  %861 = vmatpush.msrb.mxu0 %v848_v0 }
  0x34   :  { %657 = vmatpush.msra.mxu2 %v545_v47  ;;  %752 = vmatpush.msra.mxu3 %v729_v2 }
  0x35   :  { %6010 = vmatmul.msk.f32.gmra.mxu0 %vm141_vm1, %v128_v5  ;;  %592 = vmatpush.msra.mxu1 %v563_v62  ;;  %v728_v5 = vld [vmem:[#allocation5 + $0x118] sm:$0xff] }
  0x36   :  { %658 = vmatpush.msra.mxu2 %v544_v51  ;;  %862 = vmatpush.msrb.mxu0 %v847_v3 }
  0x37   :  { %659 = vmatmul.f32.vlgmr.msra.gmra.mxu2 %v10200_v58  ;;  %593 = vmatpush.msra.mxu1 %v562_v1 }
  0x38   :  { %594 = vmatmul.f32.vlgmr.msra.gmra.mxu1 %v10200_v58  ;;  %753 = vmatpush.msra.mxu3 %v728_v5  ;;  %v963_v5 = vld [vmem:[#allocation5 + $0x250] sm:$0xff] }
  0x39   :  { %969 = vmatpush.msrb.mxu1 %v968_v15 }
  0x3b   :  { %970 = vmatpush.msrb.mxu1 %v967_v23 }
  0x3d   :  { %6011 = vmatmul.msk.f32.gmra.mxu0 %vm141_vm1, %v129_v6  ;;  %v846_v6 = vld [vmem:[#allocation5 + $0x1b8] sm:$0xff]  ;;  %971 = vmatpush.msrb.mxu1 %v966_v31 }
  0x3e   :  { %863 = vmatpush.msrb.mxu0 %v846_v6 }
  0x3f   :  { %662 = vmatmul.f32.gmra.mxu2 %v10200_v58  ;;  %972 = vmatpush.msrb.mxu1 %v965_v42 }
  0x41   :  { %973 = vmatpush.msrb.mxu1 %v964_v55 }
  0x43   :  { %974 = vmatpush.msrb.mxu1 %v963_v5 }
  0x45   :  { %6012 = vmatmul.msk.f32.gmra.mxu0 %vm141_vm1, %v130_v7  ;;  %v727_v7 = vld [vmem:[#allocation5 + $0x110] sm:$0xff] }
  0x46   :  { %754 = vmatpush.msra.mxu3 %v727_v7 }
  0x4d   :  { %6013 = vmatmul.msk.f32.gmra.mxu0 %vm141_vm1, %v131_v8  ;;  %v845_v8 = vld [vmem:[#allocation5 + $0x1b0] sm:$0xff] }
  0x4e   :  { %864 = vmatpush.msrb.mxu0 %v845_v8 }
  0x50   :  { %865 = vmatpush.msrb.mxu0 %v844_v10 }
  0x52   :  { %866 = vmatpush.msrb.mxu0 %v843_v13 }
  0x54   :  { %867 = vmatpush.msrb.mxu0 %v842_v14 }
  0x55   :  { %6014 = vmatmul.msk.f32.gmra.mxu0 %vm141_vm1, %v132_v9  ;;  %v726_v9 = vld [vmem:[#allocation5 + $0x108] sm:$0xff] }
  0x56   :  { %755 = vmatpush.msra.mxu3 %v726_v9  ;;  %868 = vmatpush.msrb.mxu0 %v841_v16 }
  0x58   :  { %756 = vmatpush.msra.mxu3 %v725_v12 }
  0x5d   :  { %6015 = vmatmul.msk.f32.gmra.mxu0 %vm141_vm1, %v133_v11  ;;  %v139_v11 = vld [vmem:[%s10187_s0 + $0x78] sm:$0xff] }
  0x65   :  { %6016 = vmatmul.msk.f32.gmra.mxu0 %vm141_vm1, %v134_v17  ;;  %v840_v17 = vld [vmem:[#allocation5 + $0x188] sm:$0xff] }
  0x66   :  { %869 = vmatpush.msrb.mxu0 %v840_v17 }
  0x68   :  { %870 = vmatpush.msrb.mxu0 %v839_v20 }
  0x6d   :  { %6017 = vmatmul.msk.f32.gmra.mxu0 %vm141_vm1, %v135_v27 }
  0x75   :  { %6018 = vmatmul.msk.f32.gmra.mxu0 %vm141_vm1, %v136_v37 }
  0x7d   :  { %6019 = vmatmul.msk.f32.gmra.mxu0 %vm141_vm1, %v137_v53 }
  0x85   :  { %6020 = vmatmul.msk.f32.gmra.mxu0 %vm141_vm1, %v138_v4 }
  0x8d   :  { %6021 = vmatmul.msk.f32.gmra.mxu0 %vm141_vm1, %v139_v11 }
  0x92   :  { %v211_v18 = vpop.f32.mrf.mxu0 }
  0x93   :  { %v361_v30 = vmul.f32 %v6958_v26, %v211_v18  ;;  %v328_v36 = vmul.f32 %v6954_v22, %v211_v18  ;;  %v295_v52 = vmul.f32 %v6952_v21, %v211_v18  ;;  %v962_v18 = vld [vmem:[#allocation5 + $0x248] sm:$0xff] }
  0x94   :  { %975 = vmatpush.msrb.mxu1 %v962_v18 }
  0x95   :  { %v377_v34 = vadd.f32 %v361_v30, %v343_v29  ;;  %v344_v43 = vadd.f32 %v328_v36, %v293_v24  ;;  %v961_v36 = vld [vmem:[#allocation5 + $0x240] sm:$0xff] }
  0x96   :  { %976 = vmatpush.msrb.mxu1 %v961_v36 }
  0x9a   :  { %v214_v27 = vpop.f32.mrf.mxu0 }
  0x9b   :  { %v395_v32 = vmul.f32 %v6960_v28, %v214_v27  ;;  %v362_v40 = vmul.f32 %v6958_v26, %v214_v27  ;;  %v329_v49 = vmul.f32 %v6954_v22, %v214_v27  ;;  %v296_v2 = vmul.f32 %v6952_v21, %v214_v27 }
  0x9d   :  { %v411_v37 = vadd.f32 %v395_v32, %v377_v34  ;;  %v378_v46 = vadd.f32 %v362_v40, %v344_v43  ;;  %v345_v56 = vadd.f32 %v329_v49, %v295_v52 }
  0xa2   :  { %v217_v35 = vpop.f32.mrf.mxu0 }
  0xa3   :  { %v444_v38 = vmul.f32 %v6964_v33, %v217_v35  ;;  %v396_v44 = vmul.f32 %v6960_v28, %v217_v35  ;;  %v363_v53 = vmul.f32 %v6958_v26, %v217_v35  ;;  %v330_v63 = vmul.f32 %v6954_v22, %v217_v35 }
  0xa4   :  { %v297_v15 = vmul.f32 %v6952_v21, %v217_v35 }
  0xa5   :  { %v460_v41 = vadd.f32 %v444_v38, %v411_v37  ;;  %v412_v51 = vadd.f32 %v396_v44, %v378_v46  ;;  %v379_v60 = vadd.f32 %v363_v53, %v345_v56  ;;  %v346_v6 = vadd.f32 %v330_v63, %v296_v2 }
  0xa7   :  { %v480_v45 = vadd.f32 %v6971_v39, %v460_v41 }
  0xa9   :  { %v496_v48 = vmax.f32 %v480_v45, 0.0 }
  0xaa   :  { %v220_v47 = vpop.f32.mrf.mxu0 }
  0xab   :  { %v445_v50 = vmul.f32 %v6964_v33, %v220_v47  ;;  %597 = vmatmul.f32.gmra.mxu1 %v496_v48  ;;  %665 = vmatmul.f32.gmra.mxu2 %v496_v48  ;;  %v397_v57 = vmul.f32 %v6960_v28, %v220_v47  ;;  %v364_v3 = vmul.f32 %v6958_v26, %v220_v47 }
  0xac   :  { %757 = vmatmul.f32.vlgmr.msra.gmra.mxu3 %v496_v48  ;;  %v331_v12 = vmul.f32 %v6954_v22, %v220_v47  ;;  %v298_v32 = vmul.f32 %v6952_v21, %v220_v47 }
  0xad   :  { %v461_v54 = vadd.f32 %v445_v50, %v412_v51  ;;  %v413_v0 = vadd.f32 %v397_v57, %v379_v60  ;;  %v380_v9 = vadd.f32 %v364_v3, %v346_v6  ;;  %v960_v50 = vld [vmem:[#allocation5 + $0x238] sm:$0xff] }
  0xae   :  { %v347_v19 = vadd.f32 %v331_v12, %v297_v15  ;;  %977 = vmatpush.msrb.mxu1 %v960_v50 }
  0xaf   :  { %v481_v59 = vadd.f32 %v6971_v39, %v461_v54 }
  0xb1   :  { %v497_v62 = vmax.f32 %v481_v59, 0.0 }
  0xb2   :  { %v6982_v61 = vpop.f32.mrf.mxu0 }
  0xb3   :  { %v446_v1 = vmul.f32 %v6964_v33, %v6982_v61  ;;  %600 = vmatmul.f32.gmra.mxu1 %v497_v62  ;;  %668 = vmatmul.f32.gmra.mxu2 %v497_v62  ;;  %v398_v7 = vmul.f32 %v6960_v28, %v6982_v61  ;;  %v365_v16 = vmul.f32 %v6958_v26, %v6982_v61 }
  0xb4   :  { %760 = vmatmul.f32.gmra.mxu3 %v497_v62  ;;  %871 = vmatmul.f32.vlgmr.msrb.gmra.mxu0 %v497_v62  ;;  %v332_v29 = vmul.f32 %v6954_v22, %v6982_v61  ;;  %v299_v47 = vmul.f32 %v6952_v21, %v6982_v61 }
  0xb5   :  { %v462_v4 = vadd.f32 %v446_v1, %v413_v0  ;;  %v414_v13 = vadd.f32 %v398_v7, %v380_v9  ;;  %v381_v24 = vadd.f32 %v365_v16, %v347_v19  ;;  %v959_v0 = vld [vmem:[#allocation5 + $0x230] sm:$0xff] }
  0xb6   :  { %v348_v37 = vadd.f32 %v332_v29, %v298_v32  ;;  %978 = vmatpush.msrb.mxu1 %v959_v0  ;;  %v957_v29 = vld [vmem:[#allocation5 + $0x220] sm:$0xff] }
  0xb7   :  { %v482_v8 = vadd.f32 %v6971_v39, %v462_v4 }
  0xb9   :  { %v6994_v11 = vmax.f32 %v482_v8, 0.0 }
  0xba   :  { %v6992_v10 = vpop.f32.mrf.mxu0 }
  0xbb   :  { %v447_v14 = vmul.f32 %v6964_v33, %v6992_v10  ;;  %603 = vmatmul.f32.gmra.mxu1 %v6994_v11  ;;  %671 = vmatmul.f32.gmra.mxu2 %v6994_v11  ;;  %v399_v20 = vmul.f32 %v6960_v28, %v6992_v10  ;;  %v366_v34 = vmul.f32 %v6958_v26, %v6992_v10 }
  0xbc   :  { %763 = vmatmul.f32.gmra.mxu3 %v6994_v11  ;;  %874 = vmatmul.f32.gmra.mxu0 %v6994_v11  ;;  %v333_v44 = vmul.f32 %v6954_v22, %v6992_v10  ;;  %v300_v61 = vmul.f32 %v6952_v21, %v6992_v10  ;;  %v958_v10 = vld [vmem:[#allocation5 + $0x228] sm:$0xff] }
  0xbd   :  { %v463_v17 = vadd.f32 %v447_v14, %v414_v13  ;;  %v415_v30 = vadd.f32 %v399_v20, %v381_v24  ;;  %v382_v41 = vadd.f32 %v366_v34, %v348_v37  ;;  %979 = vmatpush.msrb.mxu1 %v958_v10 }
  0xbe   :  { %v349_v51 = vadd.f32 %v333_v44, %v299_v47 }
  0xbf   :  { %v483_v23 = vadd.f32 %v6971_v39, %v463_v17  ;;  %980 = vmatpush.msrb.mxu1 %v957_v29 }
  0xc1   :  { %v7011_v27 = vmax.f32 %v483_v23, 0.0 }
  0xc2   :  { %v7009_v25 = vpop.f32.mrf.mxu0 }
  0xc3   :  { %v448_v31 = vmul.f32 %v6964_v33, %v7009_v25  ;;  %606 = vmatmul.f32.gmra.mxu1 %v7011_v27  ;;  %674 = vmatmul.f32.gmra.mxu2 %v7011_v27  ;;  %v400_v38 = vmul.f32 %v6960_v28, %v7009_v25  ;;  %v367_v48 = vmul.f32 %v6958_v26, %v7009_v25 }
  0xc4   :  { %766 = vmatmul.f32.gmra.mxu3 %v7011_v27  ;;  %877 = vmatmul.f32.gmra.mxu0 %v7011_v27  ;;  %v334_v57 = vmul.f32 %v6954_v22, %v7009_v25  ;;  %v301_v12 = vmul.f32 %v6952_v21, %v7009_v25 }
  0xc5   :  { %v464_v35 = vadd.f32 %v448_v31, %v415_v30  ;;  %v416_v45 = vadd.f32 %v400_v38, %v382_v41  ;;  %v383_v54 = vadd.f32 %v367_v48, %v349_v51  ;;  %v956_v51 = vld [vmem:[#allocation5 + $0x218] sm:$0xff] }
  0xc6   :  { %v350_v1 = vadd.f32 %v334_v57, %v300_v61  ;;  %981 = vmatpush.msrb.mxu1 %v956_v51 }
  0xc7   :  { %v484_v40 = vadd.f32 %v6971_v39, %v464_v35 }
  0xc9   :  { %v7029_v43 = vmax.f32 %v484_v40, 0.0 }
  0xca   :  { %v7027_v42 = vpop.f32.mrf.mxu0 }
  0xcb   :  { %v449_v46 = vmul.f32 %v6964_v33, %v7027_v42  ;;  %609 = vmatmul.f32.gmra.mxu1 %v7029_v43  ;;  %677 = vmatmul.f32.gmra.mxu2 %v7029_v43  ;;  %v401_v52 = vmul.f32 %v6960_v28, %v7027_v42  ;;  %v368_v62 = vmul.f32 %v6958_v26, %v7027_v42 }
  0xcc   :  { %769 = vmatmul.f32.gmra.mxu3 %v7029_v43  ;;  %880 = vmatmul.f32.gmra.mxu0 %v7029_v43  ;;  %v335_v7 = vmul.f32 %v6954_v22, %v7027_v42  ;;  %v302_v30 = vmul.f32 %v6952_v21, %v7027_v42 }
  0xcd   :  { %v465_v49 = vadd.f32 %v449_v46, %v416_v45  ;;  %v417_v59 = vadd.f32 %v401_v52, %v383_v54  ;;  %v384_v4 = vadd.f32 %v368_v62, %v350_v1  ;;  %v955_v62 = vld [vmem:[#allocation5 + $0x210] sm:$0xff] }
  0xce   :  { %v351_v15 = vadd.f32 %v335_v7, %v301_v12  ;;  %982 = vmatpush.msrb.mxu1 %v955_v62 }
  0xcf   :  { %v485_v53 = vadd.f32 %v6971_v39, %v465_v49 }
  0xd1   :  { %v7048_v56 = vmax.f32 %v485_v53, 0.0 }
  0xd2   :  { %v7046_v55 = vpop.f32.mrf.mxu0 }
  0xd3   :  { %v450_v60 = vmul.f32 %v6964_v33, %v7046_v55  ;;  %612 = vmatmul.f32.gmra.mxu1 %v7048_v56  ;;  %680 = vmatmul.f32.gmra.mxu2 %v7048_v56  ;;  %v402_v2 = vmul.f32 %v6960_v28, %v7046_v55  ;;  %v369_v13 = vmul.f32 %v6958_v26, %v7046_v55 }
  0xd4   :  { %772 = vmatmul.f32.gmra.mxu3 %v7048_v56  ;;  %883 = vmatmul.f32.gmra.mxu0 %v7048_v56  ;;  %v336_v23 = vmul.f32 %v6954_v22, %v7046_v55  ;;  %v303_v45 = vmul.f32 %v6952_v21, %v7046_v55 }
  0xd5   :  { %v466_v63 = vadd.f32 %v450_v60, %v417_v59  ;;  %v418_v8 = vadd.f32 %v402_v2, %v384_v4  ;;  %v385_v18 = vadd.f32 %v369_v13, %v351_v15  ;;  %v953_v15 = vld [vmem:[#allocation5 + $0x200] sm:$0xff] }
  0xd6   :  { %v352_v34 = vadd.f32 %v336_v23, %v302_v30 }
  0xd7   :  { %v486_v3 = vadd.f32 %v6971_v39, %v466_v63 }
  0xd9   :  { %v7065_v6 = vmax.f32 %v486_v3, 0.0 }
  0xda   :  { %v238_v5 = vpop.f32.mrf.mxu0 }
  0xdb   :  { %v451_v9 = vmul.f32 %v6964_v33, %v238_v5  ;;  %615 = vmatmul.f32.gmra.mxu1 %v7065_v6  ;;  %683 = vmatmul.f32.gmra.mxu2 %v7065_v6  ;;  %v403_v16 = vmul.f32 %v6960_v28, %v238_v5  ;;  %v370_v31 = vmul.f32 %v6958_v26, %v238_v5 }
  0xdc   :  { %775 = vmatmul.f32.gmra.mxu3 %v7065_v6  ;;  %886 = vmatmul.f32.gmra.mxu0 %v7065_v6  ;;  %v337_v41 = vmul.f32 %v6954_v22, %v238_v5  ;;  %v304_v60 = vmul.f32 %v6952_v21, %v238_v5 }
  0xdd   :  { %v467_v14 = vadd.f32 %v451_v9, %v418_v8  ;;  %v419_v24 = vadd.f32 %v403_v16, %v385_v18  ;;  %v386_v37 = vadd.f32 %v370_v31, %v352_v34 }
  0xde   :  { %v353_v48 = vadd.f32 %v337_v41, %v303_v45 }
  0xdf   :  { %v487_v17 = vadd.f32 %v6971_v39, %v467_v14  ;;  %v954_v14 = vld [vmem:[#allocation5 + $0x208] sm:$0xff] }
  0xe0   :  { %983 = vmatpush.msrb.mxu1 %v954_v14  ;;  %v1129_v14 = vld [vmem:[#allocation7 + $0x158] sm:$0xff] }
  0xe1   :  { %v7080_v20 = vmax.f32 %v487_v17, 0.0 }
  0xe2   :  { %v241_v19 = vpop.f32.mrf.mxu0  ;;  %984 = vmatpush.msrb.mxu1 %v953_v15 }
  0xe3   :  { %v452_v25 = vmul.f32 %v6964_v33, %v241_v19  ;;  %618 = vmatmul.f32.gmra.mxu1 %v7080_v20  ;;  %686 = vmatmul.f32.gmra.mxu2 %v7080_v20  ;;  %v404_v35 = vmul.f32 %v6960_v28, %v241_v19  ;;  %v371_v46 = vmul.f32 %v6958_v26, %v241_v19 }
  0xe4   :  { %778 = vmatmul.f32.gmra.mxu3 %v7080_v20  ;;  %889 = vmatmul.f32.gmra.mxu0 %v7080_v20  ;;  %v338_v57 = vmul.f32 %v6954_v22, %v241_v19  ;;  %v305_v10 = vmul.f32 %v6952_v21, %v241_v19 }
  0xe5   :  { %v468_v32 = vadd.f32 %v452_v25, %v419_v24  ;;  %v420_v44 = vadd.f32 %v404_v35, %v386_v37  ;;  %v387_v52 = vadd.f32 %v371_v46, %v353_v48 }
  0xe6   :  { %v354_v0 = vadd.f32 %v338_v57, %v304_v60 }
  0xe7   :  { %v488_v36 = vadd.f32 %v6971_v39, %v468_v32 }
  0xe9   :  { %v7096_v40 = vmax.f32 %v488_v36, 0.0 }
  0xea   :  { %v7094_v38 = vpop.f32.mrf.mxu0 }
  0xeb   :  { %v453_v42 = vmul.f32 %v6964_v33, %v7094_v38  ;;  %621 = vmatmul.f32.gmra.mxu1 %v7096_v40  ;;  %689 = vmatmul.f32.gmra.mxu2 %v7096_v40  ;;  %v405_v49 = vmul.f32 %v6960_v28, %v7094_v38  ;;  %v372_v61 = vmul.f32 %v6958_v26, %v7094_v38 }
  0xec   :  { %781 = vmatmul.f32.gmra.mxu3 %v7096_v40  ;;  %892 = vmatmul.f32.gmra.mxu0 %v7096_v40  ;;  %v339_v5 = vmul.f32 %v6954_v22, %v7094_v38  ;;  %v306_v31 = vmul.f32 %v6952_v21, %v7094_v38 }
  0xed   :  { %v469_v47 = vadd.f32 %v453_v42, %v420_v44  ;;  %v421_v59 = vadd.f32 %v405_v49, %v387_v52  ;;  %v388_v3 = vadd.f32 %v372_v61, %v354_v0 }
  0xee   :  { %v355_v16 = vadd.f32 %v339_v5, %v305_v10 }
  0xef   :  { %v489_v50 = vadd.f32 %v6971_v39, %v469_v47 }
  0xf1   :  { %v7111_v54 = vmax.f32 %v489_v50, 0.0 }
  0xf2   :  { %v247_v53 = vpop.f32.mrf.mxu0 }
  0xf3   :  { %v454_v55 = vmul.f32 %v6964_v33, %v247_v53  ;;  %624 = vmatmul.f32.gmra.mxu1 %v7111_v54  ;;  %692 = vmatmul.f32.gmra.mxu2 %v7111_v54  ;;  %v406_v1 = vmul.f32 %v6960_v28, %v247_v53  ;;  %v373_v12 = vmul.f32 %v6958_v26, %v247_v53 }
  0xf4   :  { %784 = vmatmul.f32.gmra.mxu3 %v7111_v54  ;;  %895 = vmatmul.f32.gmra.mxu0 %v7111_v54  ;;  %v340_v25 = vmul.f32 %v6954_v22, %v247_v53  ;;  %v307_v44 = vmul.f32 %v6952_v21, %v247_v53 }
  0xf5   :  { %v470_v63 = vadd.f32 %v454_v55, %v421_v59  ;;  %v422_v8 = vadd.f32 %v406_v1, %v388_v3  ;;  %v389_v23 = vadd.f32 %v373_v12, %v355_v16  ;;  %v458_v59 = vmul.f32 0.0, %v6964_v33  ;;  %v1132_v12 = vld [vmem:[#allocation7 + $0x170] sm:$0xff]  ;;  %v1126_v16 = vld [vmem:[#allocation7 + $0x140] sm:$0xff] }
  0xf6   :  { %v356_v37 = vadd.f32 %v340_v25, %v306_v31  ;;  %1207 = vmatpush.msrb.mxu3 %v1132_v12  ;;  %v1110_v25 = vld [vmem:[#allocation7 + $0xc0] sm:$0xff]  ;;  %v1097_v12 = vld [vmem:[#allocation7 + $0x58] sm:$0xff] }
  0xf7   :  { %v490_v2 = vadd.f32 %v6971_v39, %v470_v63 }
  0xf8   :  { %1208 = vmatpush.msrb.mxu3 %v1129_v14  ;;  %v1093_v14 = vld [vmem:[#allocation7 + $0x38] sm:$0xff] }
  0xf9   :  { %v7124_v7 = vmax.f32 %v490_v2, 0.0  ;;  %v1131_v2 = vld [vmem:[#allocation7 + $0x168] sm:$0xff] }
  0xfa   :  { %v250_v4 = vpop.f32.mrf.mxu0  ;;  %1142 = vmatpush.msrb.mxu2 %v1131_v2  ;;  %1209 = vmatpush.msrb.mxu3 %v1126_v16  ;;  %v1103_v2 = vld [vmem:[#allocation7 + $0x88] sm:$0xff] }
  0xfb   :  { %v455_v9 = vmul.f32 %v6964_v33, %v250_v4  ;;  %627 = vmatmul.f32.gmra.mxu1 %v7124_v7  ;;  %695 = vmatmul.f32.gmra.mxu2 %v7124_v7  ;;  %v407_v17 = vmul.f32 %v6960_v28, %v250_v4  ;;  %v374_v32 = vmul.f32 %v6958_v26, %v250_v4 }
  0xfc   :  { %787 = vmatmul.f32.gmra.mxu3 %v7124_v7  ;;  %898 = vmatmul.f32.gmra.mxu0 %v7124_v7  ;;  %v341_v35 = vmul.f32 %v6954_v22, %v250_v4  ;;  %v308_v55 = vmul.f32 %v6952_v21, %v250_v4  ;;  %v1128_v4 = vld [vmem:[#allocation7 + $0x150] sm:$0xff] }
  0xfd   :  { %v471_v13 = vadd.f32 %v455_v9, %v422_v8  ;;  %v423_v29 = vadd.f32 %v407_v17, %v389_v23  ;;  %v390_v45 = vadd.f32 %v374_v32, %v356_v37  ;;  %1143 = vmatpush.msrb.mxu2 %v1128_v4  ;;  %v1125_v9 = vld [vmem:[#allocation7 + $0x138] sm:$0xff]  ;;  %v1116_v17 = vld [vmem:[#allocation7 + $0xf0] sm:$0xff] }
  0xfe   :  { %v357_v47 = vadd.f32 %v341_v35, %v307_v44  ;;  %v1113_v23 = vld [vmem:[#allocation7 + $0xd8] sm:$0xff]  ;;  %v1104_v32 = vld [vmem:[#allocation7 + $0x90] sm:$0xff]  ;;  %v1130_v44 = vld [vmem:[#allocation7 + $0x160] sm:$0xff] }
  0xff   :  { %v491_v18 = vadd.f32 %v6971_v39, %v471_v13  ;;  %1144 = vmatpush.msrb.mxu2 %v1125_v9  ;;  %v1122_v13 = vld [vmem:[#allocation7 + $0x120] sm:$0xff]  ;;  %v1101_v35 = vld [vmem:[#allocation7 + $0x78] sm:$0xff]  ;;  %v1100_v4 = vld [vmem:[#allocation7 + $0x70] sm:$0xff] }
 0x100   :  { %v1133_v37 = vld [vmem:[#allocation7 + $0x178] sm:$0xff] }
 0x101   :  { %v7137_v24 = vmax.f32 %v491_v18, 0.0  ;;  %1145 = vmatpush.msrb.mxu2 %v1122_v13  ;;  %v1123_v18 = vld [vmem:[#allocation7 + $0x128] sm:$0xff]  ;;  %1272 = vmatpush.msra.mxu0 %v1133_v37  ;;  %v7256_v13 = vld [vmem:[#allocation9 + $0x90] sm:$0xff]  ;;  %v7281_v37 = vld [vmem:[#allocation9 + $0x18] sm:$0xff] }
 0x102   :  { %v253_v19 = vpop.f32.mrf.mxu0  ;;  %1210 = vmatpush.msrb.mxu3 %v1123_v18  ;;  %v7262_v18 = vld [vmem:[#allocation9 + $0x78] sm:$0xff] }
 0x103   :  { %v456_v30 = vmul.f32 %v6964_v33, %v253_v19  ;;  %630 = vmatmul.f32.gmra.mxu1 %v7137_v24  ;;  %698 = vmatmul.f32.gmra.mxu2 %v7137_v24  ;;  %v408_v36 = vmul.f32 %v6960_v28, %v253_v19  ;;  %v375_v42 = vmul.f32 %v6958_v26, %v253_v19 }
 0x104   :  { %790 = vmatmul.f32.gmra.mxu3 %v7137_v24  ;;  %901 = vmatmul.f32.gmra.mxu0 %v7137_v24  ;;  %v342_v52 = vmul.f32 %v6954_v22, %v253_v19  ;;  %v410_v22 = vmul.f32 0.0, %v6960_v28 }
 0x105   :  { %v472_v34 = vadd.f32 %v456_v30, %v423_v29  ;;  %v424_v49 = vadd.f32 %v408_v36, %v390_v45  ;;  %v391_v51 = vadd.f32 %v375_v42, %v357_v47  ;;  %v1107_v30 = vld [vmem:[#allocation7 + $0xa8] sm:$0xff]  ;;  %1273 = vmatpush.msra.mxu0 %v1130_v44  ;;  %v1124_v42 = vld [vmem:[#allocation7 + $0x130] sm:$0xff]  ;;  %v1121_v47 = vld [vmem:[#allocation7 + $0x118] sm:$0xff] }
 0x106   :  { %v358_v62 = vadd.f32 %v342_v52, %v308_v55  ;;  %v7215_v45 = vld [vmem:[#allocation9 + $0x168] sm:$0xff]  ;;  %v7226_v52 = vld [vmem:[#allocation9 + $0x120] sm:$0xff] }
 0x107   :  { %v492_v41 = vadd.f32 %v6971_v39, %v472_v34  ;;  %1441 = vmatpush.msra.mxu1 %v7215_v45  ;;  %v1102_v55 = vld [vmem:[#allocation7 + $0x80] sm:$0xff] }
 0x108   :  { %v7287_v44 = vld [vmem:[#allocation9] sm:$0xff] }
 0x109   :  { %v7153_v38 = vmax.f32 %v492_v41, 0.0  ;;  %v1098_v41 = vld [vmem:[#allocation7 + $0x60] sm:$0xff] }
 0x10a   :  { %v256_v46 = vpop.f32.mrf.mxu0 }
 0x10b   :  { %v409_v48 = vmul.f32 %v6960_v28, %v256_v46  ;;  %v457_v50 = vmul.f32 %v6964_v33, %v256_v46  ;;  %633 = vmatmul.f32.gmra.mxu1 %v7153_v38  ;;  %701 = vmatmul.f32.gmra.mxu2 %v7153_v38  ;;  %v376_v60 = vmul.f32 %v6958_v26, %v256_v46  ;;  %v7179_v28 = vpop.f32.mrf.mxu1  ;;  %v1105_v46 = vld [vmem:[#allocation7 + $0x98] sm:$0xff] }
 0x10c   :  { %793 = vmatmul.f32.gmra.mxu3 %v7153_v38  ;;  %904 = vmatmul.f32.gmra.mxu0 %v7153_v38 }
 0x10d   :  { %v473_v53 = vadd.f32 %v457_v50, %v424_v49  ;;  %v425_v57 = vadd.f32 %v409_v48, %v391_v51  ;;  %v392_v1 = vadd.f32 %v376_v60, %v358_v62  ;;  %v7220_v48 = vld [vmem:[#allocation9 + $0x150] sm:$0xff]  ;;  %v1118_v49 = vld [vmem:[#allocation7 + $0x100] sm:$0xff]  ;;  %v7223_v50 = vld [vmem:[#allocation9 + $0x138] sm:$0xff] }
 0x10e   :  { %1442 = vmatpush.msra.mxu1 %v7220_v48  ;;  %v1115_v51 = vld [vmem:[#allocation7 + $0xe8] sm:$0xff]  ;;  %v7235_v60 = vld [vmem:[#allocation9 + $0xf0] sm:$0xff] }
 0x10f   :  { %v493_v61 = vadd.f32 %v6971_v39, %v473_v53  ;;  %v474_v0 = vadd.f32 %v458_v59, %v425_v57  ;;  %v426_v26 = vadd.f32 %v410_v22, %v392_v1  ;;  %v1112_v53 = vld [vmem:[#allocation7 + $0xd0] sm:$0xff]  ;;  %v7230_v57 = vld [vmem:[#allocation9 + $0x108] sm:$0xff]  ;;  %v1106_v1 = vld [vmem:[#allocation7 + $0xa0] sm:$0xff] }
 0x110   :  { %1443 = vmatpush.msra.mxu1 %v7223_v50  ;;  %v7242_v22 = vld [vmem:[#allocation9 + $0xd8] sm:$0xff] }
 0x111   :  { %v7166_v63 = vmax.f32 %v493_v61, 0.0  ;;  %v494_v21 = vadd.f32 %v6971_v39, %v474_v0  ;;  %v475_v3 = vadd.f32 %v458_v59, %v426_v26  ;;  %v7237_v61 = vpop.f32.mrf.mxu2  ;;  %v1092_v0 = vld [vmem:[#allocation7 + $0x30] sm:$0xff] }
 0x112   :  { %1444 = vmatpush.msra.mxu1 %v7226_v52 }
 0x113   :  { %636 = vmatmul.f32.gmra.mxu1 %v7166_v63  ;;  %704 = vmatmul.f32.gmra.mxu2 %v7166_v63  ;;  %v7174_v33 = vmax.f32 %v494_v21, 0.0  ;;  %v495_v5 = vadd.f32 %v6971_v39, %v475_v3  ;;  %v7245_v21 = vld [vmem:[#allocation9 + $0xc0] sm:$0xff]  ;;  %v1099_v3 = vld [vmem:[#allocation7 + $0x68] sm:$0xff] }
 0x114   :  { %796 = vmatmul.f32.gmra.mxu3 %v7166_v63  ;;  %907 = vmatmul.f32.gmra.mxu0 %v7166_v63 }
 0x115   :  { %v7182_v8 = vmax.f32 %v495_v5, 0.0  ;;  %1445 = vmatpush.msra.mxu1 %v7230_v57  ;;  %v7251_v5 = vld [vmem:[#allocation9 + $0xa8] sm:$0xff] }
 0x117   :  { %1446 = vmatpush.msra.mxu1 %v7235_v60 }
 0x119   :  { %1447 = vmatpush.msra.mxu1 %v7242_v22  ;;  %v7259_v16 = vpop.f32.mrf.mxu2 }
 0x11b   :  { %639 = vmatmul.f32.gmra.mxu1 %v7174_v33 }
 0x11c   :  { %799 = vmatmul.f32.gmra.mxu3 %v7174_v33  ;;  %910 = vmatmul.f32.gmra.mxu0 %v7174_v33 }
 0x11d   :  { %1448 = vmatpush.msra.mxu1 %v7245_v21 }
 0x11f   :  { %1449 = vmatpush.msra.mxu1 %v7251_v5 }
 0x121   :  { %1450 = vmatpush.msra.mxu1 %v7256_v13 }
 0x123   :  { %985 = vmatmul.f32.vlgmr.msrb.gmra.mxu1 %v6994_v11  ;;  %v1119_v11 = vld [vmem:[#allocation7 + $0x108] sm:$0xff] }
 0x124   :  { %802 = vmatmul.f32.gmra.mxu3 %v7182_v8  ;;  %913 = vmatmul.f32.gmra.mxu0 %v7182_v8 }
 0x125   :  { %1146 = vmatpush.msrb.mxu2 %v1119_v11  ;;  %v1094_v11 = vld [vmem:[#allocation7 + $0x40] sm:$0xff]  ;;  %1451 = vmatpush.msra.mxu1 %v7262_v18 }
 0x127   :  { %1147 = vmatpush.msrb.mxu2 %v1116_v17  ;;  %v1089_v17 = vld [vmem:[#allocation7 + $0x18] sm:$0xff] }
 0x128   :  { %v7187_v10 = vpop.f32.mrf.mxu1 }
 0x129   :  { %1148 = vmatpush.msrb.mxu2 %v1113_v23  ;;  %v1090_v23 = vld [vmem:[#allocation7 + $0x20] sm:$0xff] }
 0x12b   :  { %988 = vmatmul.f32.gmra.mxu1 %v7011_v27  ;;  %1149 = vmatpush.msrb.mxu2 %v1110_v25  ;;  %v1091_v25 = vld [vmem:[#allocation7 + $0x28] sm:$0xff] }
 0x12c   :  { %916 = vmatmul.f32.gmra.mxu0 %v10200_v58 }
 0x12d   :  { %1150 = vmatpush.msrb.mxu2 %v1107_v30  ;;  %v1086_v30 = vld [vmem:[#allocation7] sm:$0xff] }
 0x12f   :  { %1151 = vmatpush.msrb.mxu2 %v1104_v32  ;;  %v7239_v62 = vpop.f32.mrf.mxu3  ;;  %v1088_v32 = vld [vmem:[#allocation7 + $0x10] sm:$0xff] }
 0x130   :  { %v7191_v39 = vpop.f32.mrf.mxu1 }
 0x131   :  { %1152 = vmatpush.msrb.mxu2 %v1101_v35  ;;  %v7248_v26 = vpop.f32.mrf.mxu0 }
 0x133   :  { %991 = vmatmul.f32.gmra.mxu1 %v7029_v43  ;;  %v1120_v43 = vld [vmem:[#allocation7 + $0x110] sm:$0xff]  ;;  %1153 = vmatpush.msrb.mxu2 %v1098_v41  ;;  %v7285_v41 = vpop.f32.mrf.mxu2 }
 0x134   :  { %1211 = vmatpush.msrb.mxu3 %v1120_v43 }
 0x137   :  { %v7264_v43 = vpop.f32.mrf.mxu3 }
 0x138   :  { %v7194_v15 = vpop.f32.mrf.mxu1 }
 0x13b   :  { %994 = vmatmul.f32.gmra.mxu1 %v7048_v56  ;;  %v1117_v56 = vld [vmem:[#allocation7 + $0xf8] sm:$0xff] }
 0x13c   :  { %1212 = vmatpush.msrb.mxu3 %v1117_v56  ;;  %v7266_v56 = vld [vmem:[#allocation9 + $0x60] sm:$0xff] }
 0x13d   :  { %1452 = vmatpush.msra.mxu1 %v7266_v56 }
 0x140   :  { %v7197_v27 = vpop.f32.mrf.mxu1 }
 0x143   :  { %997 = vmatmul.f32.gmra.mxu1 %v7065_v6  ;;  %v1114_v6 = vld [vmem:[#allocation7 + $0xe0] sm:$0xff] }
 0x144   :  { %1213 = vmatpush.msrb.mxu3 %v1114_v6  ;;  %v1087_v6 = vld [vmem:[#allocation7 + $0x8] sm:$0xff] }
 0x148   :  { %v7200_v19 = vpop.f32.mrf.mxu1 }
 0x14b   :  { %1000 = vmatmul.f32.gmra.mxu1 %v7080_v20  ;;  %v1111_v20 = vld [vmem:[#allocation7 + $0xc8] sm:$0xff] }
 0x14c   :  { %1214 = vmatpush.msrb.mxu3 %v1111_v20  ;;  %v7272_v20 = vpop.f32.mrf.mxu0 }
 0x150   :  { %v7203_v29 = vpop.f32.mrf.mxu1 }
 0x153   :  { %1003 = vmatmul.f32.gmra.mxu1 %v7096_v40  ;;  %v1108_v40 = vld [vmem:[#allocation7 + $0xb0] sm:$0xff] }
 0x154   :  { %1215 = vmatpush.msrb.mxu3 %v1108_v40  ;;  %v7277_v40 = vld [vmem:[#allocation9 + $0x30] sm:$0xff] }
 0x156   :  { %1216 = vmatpush.msrb.mxu3 %v1105_v46  ;;  %v7302_v46 = vld [vmem:[#allocation9 + $0x170] sm:$0xff] }
 0x158   :  { %v7206_v31 = vpop.f32.mrf.mxu1  ;;  %1217 = vmatpush.msrb.mxu3 %v1102_v55  ;;  %v7323_v55 = vld [vmem:[#allocation9 + $0x158] sm:$0xff] }
 0x15a   :  { %1218 = vmatpush.msrb.mxu3 %v1099_v3 }
 0x15b   :  { %1006 = vmatmul.f32.gmra.mxu1 %v7111_v54  ;;  %v1127_v54 = vld [vmem:[#allocation7 + $0x148] sm:$0xff] }
 0x15c   :  { %1274 = vmatpush.msra.mxu0 %v1127_v54  ;;  %v7290_v54 = vpop.f32.mrf.mxu3 }
 0x15e   :  { %1275 = vmatpush.msra.mxu0 %v1124_v42 }
 0x160   :  { %v7209_v34 = vpop.f32.mrf.mxu1  ;;  %1276 = vmatpush.msra.mxu0 %v1121_v47  ;;  %v7309_v47 = vpop.f32.mrf.mxu2 }
 0x162   :  { %1277 = vmatpush.msra.mxu0 %v1118_v49 }
 0x163   :  { %1009 = vmatmul.f32.gmra.mxu1 %v7124_v7 }
 0x164   :  { %1278 = vmatpush.msra.mxu0 %v1115_v51  ;;  %v661_v51 = vadd.f32 %v7237_v61, %v7179_v28  ;;  %v7336_v61 = vld [vmem:[%s10192_s5] ss:$0 sm:$0xff] }
 0x166   :  { %1279 = vmatpush.msra.mxu0 %v1112_v53  ;;  %v806_v53 = vadd.f32 %v7239_v62, %v661_v51 }
 0x168   :  { %v7212_v36 = vpop.f32.mrf.mxu1  ;;  %v920_v28 = vadd.f32 %v7248_v26, %v806_v53  ;;  %v670_v53 = vadd.f32 %v7309_v47, %v7194_v15 }
 0x16b   :  { %1012 = vmatmul.f32.gmra.mxu1 %v7137_v24  ;;  %v1095_v24 = vld [vmem:[#allocation7 + $0x48] sm:$0xff] }
 0x16c   :  { %1154 = vmatpush.msrb.mxu2 %v1095_v24  ;;  %v7312_v24 = vpop.f32.mrf.mxu3 }
 0x16e   :  { %1155 = vmatpush.msrb.mxu2 %v1092_v0  ;;  %v664_v0 = vadd.f32 %v7259_v16, %v7187_v10 }
 0x170   :  { %v7218_v7 = vpop.f32.mrf.mxu1  ;;  %1156 = vmatpush.msrb.mxu2 %v1089_v17  ;;  %v807_v26 = vadd.f32 %v7264_v43, %v664_v0  ;;  %v667_v17 = vadd.f32 %v7285_v41, %v7191_v39 }
 0x172   :  { %1157 = vmatpush.msrb.mxu2 %v1086_v30  ;;  %v808_v43 = vadd.f32 %v7290_v54, %v667_v17 }
 0x173   :  { %1015 = vmatmul.f32.gmra.mxu1 %v7153_v38  ;;  %v1109_v38 = vld [vmem:[#allocation7 + $0xb8] sm:$0xff] }
 0x174   :  { %1280 = vmatpush.msra.mxu0 %v1109_v38  ;;  %1461 = vmatpush.msra.mxu2 %v7302_v46  ;;  %v7345_v3 = vpop.f32.mrf.mxu3 }
 0x176   :  { %1281 = vmatpush.msra.mxu0 %v1106_v1  ;;  %1462 = vmatpush.msra.mxu2 %v7323_v55  ;;  %v7342_v1 = vpop.f32.mrf.mxu2 }
 0x178   :  { %v7232_v59 = vpop.f32.mrf.mxu1  ;;  %1282 = vmatpush.msra.mxu0 %v1103_v2 }
 0x17a   :  { %1283 = vmatpush.msra.mxu0 %v1100_v4 }
 0x17b   :  { %1018 = vmatmul.f32.gmra.mxu1 %v7166_v63  ;;  %v1096_v63 = vld [vmem:[#allocation7 + $0x50] sm:$0xff] }
 0x17c   :  { %1219 = vmatpush.msrb.mxu3 %v1096_v63  ;;  %1284 = vmatpush.msra.mxu0 %v1097_v12  ;;  %v7351_v63 = vld [vmem:[#allocation9 + $0x140] sm:$0xff]  ;;  %v7353_v12 = vld [vmem:[#allocation9 + $0x178] sm:$0xff] }
 0x17d   :  { %1463 = vmatpush.msra.mxu2 %v7351_v63 }
 0x17e   :  { %1220 = vmatpush.msrb.mxu3 %v1093_v14  ;;  %1285 = vmatpush.msra.mxu0 %v1094_v11  ;;  %v921_v11 = vadd.f32 %v7272_v20, %v807_v26  ;;  %v773_v20 = vpop.f32.mrf.mxu3 }
 0x180   :  { %v7253_v9 = vpop.f32.mrf.mxu1  ;;  %1221 = vmatpush.msrb.mxu3 %v1090_v23  ;;  %1286 = vmatpush.msra.mxu0 %v1091_v25  ;;  %v675_v25 = vpop.f32.mrf.mxu2 }
 0x182   :  { %1222 = vmatpush.msrb.mxu3 %v1087_v6  ;;  %1287 = vmatpush.msra.mxu0 %v1088_v32  ;;  %v7371_v6 = vld [vmem:[#allocation9 + $0x128] sm:$0xff]  ;;  %v7373_v32 = vld [vmem:[#allocation9 + $0x160] sm:$0xff] }
 0x183   :  { %1021 = vmatmul.f32.gmra.mxu1 %v7174_v33  ;;  %v7270_v33 = vld [vmem:[#allocation9 + $0x48] sm:$0xff]  ;;  %1464 = vmatpush.msra.mxu2 %v7371_v6 }
 0x184   :  { %1453 = vmatpush.msra.mxu1 %v7270_v33  ;;  %1885 = vmatpush.msrb.mxu0 %v7215_v45 }
 0x185   :  { %1481 = vmatpush.msra.mxu3 %v7353_v12 }
 0x186   :  { %1886 = vmatpush.msrb.mxu0 %v7220_v48  ;;  %1454 = vmatpush.msra.mxu1 %v7277_v40  ;;  %v776_v26 = vpop.f32.mrf.mxu3 }
 0x187   :  { %1482 = vmatpush.msra.mxu3 %v7373_v32 }
 0x188   :  { %v7274_v35 = vpop.f32.mrf.mxu1  ;;  %1887 = vmatpush.msrb.mxu0 %v7223_v50  ;;  %1455 = vmatpush.msra.mxu1 %v7281_v37  ;;  %v678_v15 = vpop.f32.mrf.mxu2 }
 0x18a   :  { %1888 = vmatpush.msrb.mxu0 %v7226_v52  ;;  %1456 = vmatpush.msra.mxu1 %v7287_v44 }
 0x18b   :  { %1024 = vmatmul.f32.gmra.mxu1 %v7182_v8  ;;  %v7299_v8 = vpop.f32.mrf.mxu0 }
 0x18c   :  { %1552 = vmatpush.msrb.mxu1 %v7215_v45  ;;  %1889 = vmatpush.msrb.mxu0 %v7230_v57  ;;  %v922_v41 = vadd.f32 %v7299_v8, %v808_v43  ;;  %v7387_v8 = vld [vmem:[#allocation9 + $0x110] sm:$0xff]  ;;  %v676_v43 = vadd.f32 %v675_v25, %v7200_v19 }
 0x18d   :  { %1465 = vmatpush.msra.mxu2 %v7387_v8 }
 0x18e   :  { %1890 = vmatpush.msrb.mxu0 %v7235_v60  ;;  %1553 = vmatpush.msrb.mxu1 %v7220_v48 }
 0x190   :  { %v7294_v42 = vpop.f32.mrf.mxu1  ;;  %1891 = vmatpush.msrb.mxu0 %v7242_v22  ;;  %1554 = vmatpush.msrb.mxu1 %v7223_v50 }
 0x192   :  { %1892 = vmatpush.msrb.mxu0 %v7245_v21  ;;  %1555 = vmatpush.msrb.mxu1 %v7226_v52 }
 0x193   :  { %1027 = vmatmul.f32.gmra.mxu1 %v10200_v58  ;;  %v7326_v38 = vpop.f32.mrf.mxu0 }
 0x194   :  { %1893 = vmatpush.msrb.mxu0 %v7251_v5  ;;  %1556 = vmatpush.msrb.mxu1 %v7230_v57 }
 0x196   :  { %1894 = vmatpush.msrb.mxu0 %v7256_v13  ;;  %1557 = vmatpush.msrb.mxu1 %v7235_v60 }
 0x198   :  { %v7314_v49 = vpop.f32.mrf.mxu1  ;;  %1895 = vmatpush.msrb.mxu0 %v7262_v18  ;;  %1558 = vmatpush.msrb.mxu1 %v7242_v22 }
 0x19a   :  { %1896 = vmatpush.msrb.mxu0 %v7266_v56  ;;  %1559 = vmatpush.msrb.mxu1 %v7245_v21 }
 0x19b   :  { %1030 = vmatmul.f32.gmra.mxu1 %v10200_v58  ;;  %v7360_v14 = vpop.f32.mrf.mxu0 }
 0x19c   :  { %1897 = vmatpush.msrb.mxu0 %v7270_v33  ;;  %1560 = vmatpush.msrb.mxu1 %v7251_v5 }
 0x19e   :  { %1898 = vmatpush.msrb.mxu0 %v7277_v40  ;;  %1561 = vmatpush.msrb.mxu1 %v7256_v13 }
 0x1a0   :  { %v986_v62 = vpop.f32.mrf.mxu1  ;;  %1899 = vmatpush.msrb.mxu0 %v7281_v37  ;;  %1562 = vmatpush.msrb.mxu1 %v7262_v18 }
 0x1a1   :  { %v1034_v2 = vadd.f32 %v986_v62, %v920_v28  ;;  %v809_v62 = vadd.f32 %v7312_v24, %v670_v53 }
 0x1a2   :  { %1900 = vmatpush.msrb.mxu0 %v7287_v44  ;;  %1563 = vmatpush.msrb.mxu1 %v7266_v56 }
 0x1a3   :  { %v1054_v4 = vadd.f32 %v7336_v61, %v1034_v2  ;;  %1457 = vmatmul.f32.vlgmr.msra.gmra.mxu1 %v10200_v58  ;;  %v887_v54 = vpop.f32.mrf.mxu0  ;;  %v7389_v2 = vld [vmem:[#allocation9 + $0x148] sm:$0xff]  ;;  %v923_v24 = vadd.f32 %v7326_v38, %v809_v62  ;;  %v7406_v38 = vld [vmem:[#allocation9 + $0x130] sm:$0xff] }
 0x1a4   :  { %1564 = vmatpush.msrb.mxu1 %v7270_v33  ;;  %1483 = vmatpush.msra.mxu3 %v7389_v2 }
 0x1a5   :  { %v1070_v10 = vmax.f32 %v1054_v4, 0.0 }
 0x1a6   :  { %1565 = vmatpush.msrb.mxu1 %v7277_v40  ;;  %1484 = vmatpush.msra.mxu3 %v7406_v38 }
 0x1a7   :  { %1158 = vmatmul.f32.vlgmr.msrb.gmra.mxu2 %v1070_v10  ;;  %1223 = vmatmul.f32.vlgmr.msrb.gmra.mxu3 %v1070_v10 }
 0x1a8   :  { %1288 = vmatmul.f32.vlgmr.msra.gmra.mxu0 %v1070_v10  ;;  %v989_v16 = vpop.f32.mrf.mxu1  ;;  %1566 = vmatpush.msrb.mxu1 %v7281_v37  ;;  %v673_v10 = vadd.f32 %v7342_v1, %v7197_v27  ;;  %v779_v1 = vpop.f32.mrf.mxu3 }
 0x1a9   :  { %v1035_v23 = vadd.f32 %v989_v16, %v921_v11  ;;  %2016 = vmatpush.msra.mxu0 %v7302_v46 }
 0x1aa   :  { %1567 = vmatpush.msrb.mxu1 %v7287_v44  ;;  %v810_v17 = vadd.f32 %v7345_v3, %v673_v10 }
 0x1ab   :  { %v1055_v30 = vadd.f32 %v7336_v61, %v1035_v23  ;;  %2017 = vmatpush.msra.mxu0 %v7323_v55  ;;  %v890_v16 = vpop.f32.mrf.mxu0 }
 0x1ac   :  { %1663 = vmatpush.msra.mxu1 %v7215_v45  ;;  %v7404_v45 = vld [vmem:[#allocation9 + $0xf8] sm:$0xff]  ;;  %v924_v27 = vadd.f32 %v7360_v14, %v810_v17 }
 0x1ad   :  { %v1071_v39 = vmax.f32 %v1055_v30, 0.0  ;;  %2018 = vmatpush.msra.mxu0 %v7351_v63  ;;  %1466 = vmatpush.msra.mxu2 %v7404_v45 }
 0x1ae   :  { %1664 = vmatpush.msra.mxu1 %v7220_v48 }
 0x1af   :  { %1161 = vmatmul.f32.gmra.mxu2 %v1071_v39  ;;  %1226 = vmatmul.f32.gmra.mxu3 %v1071_v39 }
 0x1b0   :  { %1291 = vmatmul.f32.gmra.mxu0 %v1071_v39  ;;  %v992_v51 = vpop.f32.mrf.mxu1  ;;  %1665 = vmatpush.msra.mxu1 %v7223_v50  ;;  %v681_v50 = vpop.f32.mrf.mxu2  ;;  %v811_v39 = vadd.f32 %v773_v20, %v676_v43 }
 0x1b1   :  { %v1036_v28 = vadd.f32 %v992_v51, %v922_v41  ;;  %2019 = vmatpush.msra.mxu0 %v7371_v6  ;;  %v7417_v41 = vld [vmem:[#allocation9 + $0xe0] sm:$0xff]  ;;  %v7419_v51 = vld [vmem:[#allocation9 + $0x118] sm:$0xff] }
 0x1b2   :  { %1666 = vmatpush.msra.mxu1 %v7226_v52  ;;  %1467 = vmatpush.msra.mxu2 %v7417_v41  ;;  %v925_v19 = vadd.f32 %v887_v54, %v811_v39 }
 0x1b3   :  { %v1056_v0 = vadd.f32 %v7336_v61, %v1036_v28  ;;  %2020 = vmatpush.msra.mxu0 %v7387_v8  ;;  %v893_v14 = vpop.f32.mrf.mxu0  ;;  %1485 = vmatpush.msra.mxu3 %v7419_v51  ;;  %v782_v28 = vpop.f32.mrf.mxu3 }
 0x1b4   :  { %1667 = vmatpush.msra.mxu1 %v7230_v57 }
 0x1b5   :  { %v1072_v47 = vmax.f32 %v1056_v0, 0.0  ;;  %2021 = vmatpush.msra.mxu0 %v7404_v45 }
 0x1b6   :  { %1668 = vmatpush.msra.mxu1 %v7235_v60  ;;  %v679_v60 = vadd.f32 %v678_v15, %v7203_v29  ;;  %v682_v15 = vadd.f32 %v681_v50, %v7206_v31 }
 0x1b7   :  { %1164 = vmatmul.f32.gmra.mxu2 %v1072_v47  ;;  %1229 = vmatmul.f32.gmra.mxu3 %v1072_v47 }
 0x1b8   :  { %1294 = vmatmul.f32.gmra.mxu0 %v1072_v47  ;;  %v995_v4 = vpop.f32.mrf.mxu1  ;;  %1669 = vmatpush.msra.mxu1 %v7242_v22  ;;  %v684_v25 = vpop.f32.mrf.mxu2  ;;  %v812_v62 = vadd.f32 %v776_v26, %v679_v60  ;;  %v7429_v22 = vld [vmem:[#allocation9 + $0xc8] sm:$0xff]  ;;  %v7431_v47 = vld [vmem:[#allocation9 + $0x100] sm:$0xff] }
 0x1b9   :  { %v1037_v11 = vadd.f32 %v995_v4, %v923_v24  ;;  %2022 = vmatpush.msra.mxu0 %v7417_v41  ;;  %1468 = vmatpush.msra.mxu2 %v7429_v22  ;;  %v813_v4 = vadd.f32 %v779_v1, %v682_v15  ;;  %v7453_v1 = vld [vmem:[#allocation9 + $0x98] sm:$0xff] }
 0x1ba   :  { %1670 = vmatpush.msra.mxu1 %v7245_v21  ;;  %1486 = vmatpush.msra.mxu3 %v7431_v47  ;;  %v926_v21 = vadd.f32 %v890_v16, %v812_v62 }
 0x1bb   :  { %v1057_v23 = vadd.f32 %v7336_v61, %v1037_v11  ;;  %2023 = vmatpush.msra.mxu0 %v7429_v22  ;;  %v896_v29 = vpop.f32.mrf.mxu0  ;;  %v7443_v11 = vld [vmem:[#allocation9 + $0xe8] sm:$0xff]  ;;  %v785_v16 = vpop.f32.mrf.mxu3  ;;  %v927_v31 = vadd.f32 %v893_v14, %v813_v4 }
 0x1bc   :  { %1671 = vmatpush.msra.mxu1 %v7251_v5  ;;  %1487 = vmatpush.msra.mxu3 %v7443_v11 }
 0x1bd   :  { %v1073_v48 = vmax.f32 %v1057_v23, 0.0  ;;  %v685_v23 = vadd.f32 %v684_v25, %v7209_v34 }
 0x1be   :  { %1672 = vmatpush.msra.mxu1 %v7256_v13  ;;  %v7441_v13 = vld [vmem:[#allocation9 + $0xb0] sm:$0xff] }
 0x1bf   :  { %1167 = vmatmul.f32.gmra.mxu2 %v1073_v48  ;;  %1232 = vmatmul.f32.gmra.mxu3 %v1073_v48 }
 0x1c0   :  { %1297 = vmatmul.f32.gmra.mxu0 %v1073_v48  ;;  %v998_v3 = vpop.f32.mrf.mxu1  ;;  %1673 = vmatpush.msra.mxu1 %v7262_v18  ;;  %v687_v24 = vpop.f32.mrf.mxu2 }
 0x1c1   :  { %v1038_v30 = vadd.f32 %v998_v3, %v924_v27  ;;  %1469 = vmatpush.msra.mxu2 %v7441_v13  ;;  %2024 = vmatpush.msra.mxu0 %v7441_v13  ;;  %v814_v27 = vadd.f32 %v782_v28, %v685_v23 }
 0x1c2   :  { %1674 = vmatpush.msra.mxu1 %v7266_v56 }
 0x1c3   :  { %v1058_v52 = vadd.f32 %v7336_v61, %v1038_v30  ;;  %v899_v18 = vpop.f32.mrf.mxu0  ;;  %1470 = vmatpush.msra.mxu2 %v7453_v1  ;;  %2025 = vmatpush.msra.mxu0 %v7453_v1  ;;  %v788_v34 = vpop.f32.mrf.mxu3  ;;  %v688_v30 = vadd.f32 %v687_v24, %v7212_v36 }
 0x1c4   :  { %1675 = vmatpush.msra.mxu1 %v7270_v33  ;;  %v7455_v33 = vld [vmem:[#allocation9 + $0xd0] sm:$0xff] }
 0x1c5   :  { %v1074_v53 = vmax.f32 %v1058_v52, 0.0  ;;  %1488 = vmatpush.msra.mxu3 %v7455_v33  ;;  %v815_v14 = vadd.f32 %v785_v16, %v688_v30  ;;  %v7492_v30 = vld [vmem:[#allocation9 + $0x70] sm:$0xff] }
 0x1c6   :  { %1676 = vmatpush.msra.mxu1 %v7277_v40  ;;  %v928_v40 = vadd.f32 %v896_v29, %v814_v27  ;;  %v7472_v29 = vld [vmem:[#allocation9 + $0x68] sm:$0xff] }
 0x1c7   :  { %1170 = vmatmul.f32.gmra.mxu2 %v1074_v53  ;;  %1235 = vmatmul.f32.gmra.mxu3 %v1074_v53  ;;  %v929_v25 = vadd.f32 %v899_v18, %v815_v14  ;;  %v7481_v18 = vld [vmem:[#allocation9 + $0x50] sm:$0xff] }
 0x1c8   :  { %1300 = vmatmul.f32.gmra.mxu0 %v1074_v53  ;;  %v1001_v57 = vpop.f32.mrf.mxu1  ;;  %1677 = vmatpush.msra.mxu1 %v7281_v37  ;;  %v690_v3 = vpop.f32.mrf.mxu2 }
 0x1c9   :  { %v1039_v20 = vadd.f32 %v1001_v57, %v925_v19  ;;  %v7463_v19 = vld [vmem:[#allocation9 + $0x80] sm:$0xff]  ;;  %v7465_v57 = vld [vmem:[#allocation9 + $0xb8] sm:$0xff]  ;;  %v691_v28 = vadd.f32 %v690_v3, %v7218_v7 }
 0x1ca   :  { %1678 = vmatpush.msra.mxu1 %v7287_v44  ;;  %1471 = vmatpush.msra.mxu2 %v7463_v19 }
 0x1cb   :  { %v1059_v0 = vadd.f32 %v7336_v61, %v1039_v20  ;;  %v902_v52 = vpop.f32.mrf.mxu0  ;;  %1489 = vmatpush.msra.mxu3 %v7465_v57  ;;  %2026 = vmatpush.msra.mxu0 %v7463_v19  ;;  %v791_v36 = vpop.f32.mrf.mxu3 }
 0x1cc   :  { %1472 = vmatpush.msra.mxu2 %v7472_v29 }
 0x1cd   :  { %v1075_v54 = vmax.f32 %v1059_v0, 0.0  ;;  %v816_v0 = vadd.f32 %v788_v34, %v691_v28  ;;  %2027 = vmatpush.msra.mxu0 %v7472_v29 }
 0x1ce   :  { %1473 = vmatpush.msra.mxu2 %v7481_v18 }
 0x1cf   :  { %1173 = vmatmul.f32.gmra.mxu2 %v1075_v54  ;;  %1238 = vmatmul.f32.gmra.mxu3 %v1075_v54 }
 0x1d0   :  { %1303 = vmatmul.f32.gmra.mxu0 %v1075_v54  ;;  %v1004_v5 = vpop.f32.mrf.mxu1  ;;  %v693_v60 = vpop.f32.mrf.mxu2 }
 0x1d1   :  { %v1040_v26 = vadd.f32 %v1004_v5, %v926_v21  ;;  %v7474_v21 = vld [vmem:[#allocation9 + $0xa0] sm:$0xff]  ;;  %v694_v24 = vadd.f32 %v693_v60, %v7232_v59  ;;  %2028 = vmatpush.msra.mxu0 %v7481_v18 }
 0x1d2   :  { %1490 = vmatpush.msra.mxu3 %v7474_v21  ;;  %v7499_v60 = vld [vmem:[#allocation9 + $0x20] sm:$0xff] }
 0x1d3   :  { %v1060_v10 = vadd.f32 %v7336_v61, %v1040_v26  ;;  %v905_v5 = vpop.f32.mrf.mxu0  ;;  %v930_v26 = vadd.f32 %v902_v52, %v816_v0  ;;  %v794_v16 = vpop.f32.mrf.mxu3  ;;  %v7509_v0 = vld [vmem:[#allocation9 + $0x28] sm:$0xff] }
 0x1d5   :  { %v1076_v17 = vmax.f32 %v1060_v10, 0.0 }
 0x1d7   :  { %1176 = vmatmul.f32.gmra.mxu2 %v1076_v17  ;;  %1241 = vmatmul.f32.gmra.mxu3 %v1076_v17 }
 0x1d8   :  { %1306 = vmatmul.f32.gmra.mxu0 %v1076_v17  ;;  %v1007_v56 = vpop.f32.mrf.mxu1  ;;  %v696_v4 = vpop.f32.mrf.mxu2  ;;  %v817_v17 = vadd.f32 %v791_v36, %v694_v24 }
 0x1d9   :  { %v1041_v48 = vadd.f32 %v1007_v56, %v927_v31  ;;  %v7483_v56 = vld [vmem:[#allocation9 + $0x88] sm:$0xff] }
 0x1da   :  { %1491 = vmatpush.msra.mxu3 %v7483_v56  ;;  %v931_v27 = vadd.f32 %v905_v5, %v817_v17 }
 0x1db   :  { %v1061_v50 = vadd.f32 %v7336_v61, %v1041_v48  ;;  %v908_v48 = vpop.f32.mrf.mxu0 }
 0x1dc   :  { %1492 = vmatpush.msra.mxu3 %v7492_v30 }
 0x1dd   :  { %v1077_v43 = vmax.f32 %v1061_v50, 0.0  ;;  %v697_v50 = vadd.f32 %v696_v4, %v7253_v9 }
 0x1df   :  { %1179 = vmatmul.f32.gmra.mxu2 %v1077_v43  ;;  %1244 = vmatmul.f32.gmra.mxu3 %v1077_v43  ;;  %v818_v34 = vadd.f32 %v794_v16, %v697_v50 }
 0x1e0   :  { %1309 = vmatmul.f32.gmra.mxu0 %v1077_v43  ;;  %v1010_v37 = vpop.f32.mrf.mxu1  ;;  %v699_v43 = vpop.f32.mrf.mxu2 }
 0x1e1   :  { %v1042_v39 = vadd.f32 %v1010_v37, %v928_v40  ;;  %v7490_v37 = vld [vmem:[#allocation9 + $0x38] sm:$0xff]  ;;  %v932_v14 = vadd.f32 %v908_v48, %v818_v34  ;;  %v700_v36 = vadd.f32 %v699_v43, %v7274_v35  ;;  %v7512_v35 = vld [vmem:[#allocation9 + $0x8] sm:$0xff] }
 0x1e2   :  { %1474 = vmatpush.msra.mxu2 %v7490_v37  ;;  %2029 = vmatpush.msra.mxu0 %v7490_v37 }
 0x1e3   :  { %v1062_v53 = vadd.f32 %v7336_v61, %v1042_v39  ;;  %v797_v39 = vpop.f32.mrf.mxu3  ;;  %v911_v9 = vpop.f32.mrf.mxu0 }
 0x1e4   :  { %1475 = vmatpush.msra.mxu2 %v7499_v60  ;;  %2030 = vmatpush.msra.mxu0 %v7499_v60  ;;  %v819_v28 = vadd.f32 %v797_v39, %v700_v36 }
 0x1e5   :  { %v1078_v44 = vmax.f32 %v1062_v53, 0.0 }
 0x1e6   :  { %1476 = vmatpush.msra.mxu2 %v7512_v35  ;;  %2031 = vmatpush.msra.mxu0 %v7512_v35 }
 0x1e7   :  { %1182 = vmatmul.f32.gmra.mxu2 %v1078_v44  ;;  %1247 = vmatmul.f32.gmra.mxu3 %v1078_v44 }
 0x1e8   :  { %1312 = vmatmul.f32.gmra.mxu0 %v1078_v44  ;;  %v1013_v20 = vpop.f32.mrf.mxu1  ;;  %v7497_v44 = vld [vmem:[#allocation9 + $0x58] sm:$0xff]  ;;  %1572 = vmatpush.msrb.mxu2 %v7302_v46 }
 0x1e9   :  { %v1043_v62 = vadd.f32 %v1013_v20, %v929_v25  ;;  %v7501_v25 = vld [vmem:[#allocation9 + $0x40] sm:$0xff]  ;;  %1493 = vmatpush.msra.mxu3 %v7497_v44 }
 0x1ea   :  { %1573 = vmatpush.msrb.mxu2 %v7323_v55 }
 0x1eb   :  { %v1063_v54 = vadd.f32 %v7336_v61, %v1043_v62  ;;  %1494 = vmatpush.msra.mxu3 %v7501_v25  ;;  %v914_v16 = vpop.f32.mrf.mxu0 }
 0x1ec   :  { %1574 = vmatpush.msrb.mxu2 %v7351_v63 }
 0x1ed   :  { %v1079_v15 = vmax.f32 %v1063_v54, 0.0  ;;  %v702_v54 = vpop.f32.mrf.mxu2  ;;  %1495 = vmatpush.msra.mxu3 %v7509_v0 }
 0x1ee   :  { %v703_v4 = vadd.f32 %v702_v54, %v7294_v42  ;;  %1575 = vmatpush.msrb.mxu2 %v7371_v6 }
 0x1ef   :  { %1185 = vmatmul.f32.gmra.mxu2 %v1079_v15  ;;  %1250 = vmatmul.f32.gmra.mxu3 %v1079_v15 }
 0x1f0   :  { %1315 = vmatmul.f32.gmra.mxu0 %v1079_v15  ;;  %v1016_v7 = vpop.f32.mrf.mxu1  ;;  %v800_v15 = vpop.f32.mrf.mxu3  ;;  %1576 = vmatpush.msrb.mxu2 %v7387_v8 }
 0x1f1   :  { %v1044_v10 = vadd.f32 %v1016_v7, %v930_v26  ;;  %v7514_v26 = vld [vmem:[#allocation9 + $0x10] sm:$0xff]  ;;  %v933_v7 = vadd.f32 %v911_v9, %v819_v28  ;;  %v820_v17 = vadd.f32 %v800_v15, %v703_v4 }
 0x1f2   :  { %1496 = vmatpush.msra.mxu3 %v7514_v26  ;;  %1577 = vmatpush.msrb.mxu2 %v7404_v45 }
 0x1f3   :  { %v1064_v31 = vadd.f32 %v7336_v61, %v1044_v10  ;;  %v934_v48 = vadd.f32 %v914_v16, %v820_v17 }
 0x1f4   :  { %1592 = vmatpush.msrb.mxu3 %v7353_v12  ;;  %1578 = vmatpush.msrb.mxu2 %v7417_v41 }
 0x1f5   :  { %v1080_v23 = vmax.f32 %v1064_v31, 0.0  ;;  %v705_v42 = vpop.f32.mrf.mxu2 }
 0x1f6   :  { %1593 = vmatpush.msrb.mxu3 %v7373_v32  ;;  %v706_v50 = vadd.f32 %v705_v42, %v7314_v49  ;;  %1579 = vmatpush.msrb.mxu2 %v7429_v22 }
 0x1f7   :  { %1188 = vmatmul.f32.gmra.mxu2 %v1080_v23  ;;  %1253 = vmatmul.f32.gmra.mxu3 %v1080_v23 }
 0x1f8   :  { %1318 = vmatmul.f32.gmra.mxu0 %v1080_v23  ;;  %v1019_v59 = vpop.f32.mrf.mxu1  ;;  %1594 = vmatpush.msrb.mxu3 %v7389_v2 }
 0x1f9   :  { %v1045_v3 = vadd.f32 %v1019_v59, %v931_v27  ;;  %v803_v27 = vpop.f32.mrf.mxu3  ;;  %1580 = vmatpush.msrb.mxu2 %v7441_v13 }
 0x1fa   :  { %1595 = vmatpush.msrb.mxu3 %v7406_v38  ;;  %v821_v43 = vadd.f32 %v803_v27, %v706_v50 }
 0x1fb   :  { %v1065_v40 = vadd.f32 %v7336_v61, %v1045_v3  ;;  %1581 = vmatpush.msrb.mxu2 %v7453_v1 }
 0x1fc   :  { %1596 = vmatpush.msrb.mxu3 %v7419_v51 }
 0x1fd   :  { %v1081_v52 = vmax.f32 %v1065_v40, 0.0  ;;  %v917_v40 = vpop.f32.mrf.mxu0  ;;  %1582 = vmatpush.msrb.mxu2 %v7463_v19 }
 0x1fe   :  { %1597 = vmatpush.msrb.mxu3 %v7431_v47 }
 0x1ff   :  { %1191 = vmatmul.f32.gmra.mxu2 %v1081_v52  ;;  %1256 = vmatmul.f32.gmra.mxu3 %v1081_v52 }
 0x200   :  { %1321 = vmatmul.f32.gmra.mxu0 %v1081_v52  ;;  %v1022_v53 = vpop.f32.mrf.mxu1  ;;  %v935_v52 = vadd.f32 %v917_v40, %v821_v43  ;;  %1598 = vmatpush.msrb.mxu3 %v7443_v11  ;;  %v1433_v43 = vld [vmem:[%s10196_s9] sm:$0x7] }
 0x201   :  { %v1046_v20 = vadd.f32 %v1022_v53, %v932_v14  ;;  %1583 = vmatpush.msrb.mxu2 %v7472_v29  ;;  %v1134_v40 = vld [vmem:[%s10194_s7] sm:$0x7] }
 0x202   :  { %1599 = vmatpush.msrb.mxu3 %v7455_v33 }
 0x203   :  { %v1066_v62 = vadd.f32 %v7336_v61, %v1046_v20  ;;  %1584 = vmatpush.msrb.mxu2 %v7481_v18 }
 0x204   :  { %1600 = vmatpush.msrb.mxu3 %v7465_v57 }
 0x205   :  { %v1082_v5 = vmax.f32 %v1066_v62, 0.0  ;;  %1585 = vmatpush.msrb.mxu2 %v7490_v37 }
 0x206   :  { %1601 = vmatpush.msrb.mxu3 %v7474_v21 }
 0x207   :  { %1194 = vmatmul.f32.gmra.mxu2 %v1082_v5  ;;  %1259 = vmatmul.f32.gmra.mxu3 %v1082_v5 }
 0x208   :  { %1324 = vmatmul.f32.gmra.mxu0 %v1082_v5  ;;  %v1025_v24 = vpop.f32.mrf.mxu1  ;;  %1602 = vmatpush.msrb.mxu3 %v7483_v56 }
 0x209   :  { %v1047_v10 = vadd.f32 %v1025_v24, %v933_v7  ;;  %1586 = vmatpush.msrb.mxu2 %v7499_v60 }
 0x20a   :  { %1603 = vmatpush.msrb.mxu3 %v7492_v30 }
 0x20b   :  { %v1067_v31 = vadd.f32 %v7336_v61, %v1047_v10  ;;  %1587 = vmatpush.msrb.mxu2 %v7512_v35 }
 0x20c   :  { %1604 = vmatpush.msrb.mxu3 %v7497_v44 }
 0x20d   :  { %v1083_v23 = vmax.f32 %v1067_v31, 0.0 }
 0x20e   :  { %1605 = vmatpush.msrb.mxu3 %v7501_v25 }
 0x20f   :  { %1197 = vmatmul.f32.gmra.mxu2 %v1083_v23  ;;  %1262 = vmatmul.f32.gmra.mxu3 %v1083_v23 }
 0x210   :  { %1327 = vmatmul.f32.gmra.mxu0 %v1083_v23  ;;  %v1028_v59 = vpop.f32.mrf.mxu1  ;;  %1606 = vmatpush.msrb.mxu3 %v7509_v0 }
 0x211   :  { %v1048_v3 = vadd.f32 %v1028_v59, %v934_v48 }
 0x212   :  { %1607 = vmatpush.msrb.mxu3 %v7514_v26 }
 0x213   :  { %v1068_v34 = vadd.f32 %v7336_v61, %v1048_v3 }
 0x215   :  { %v1084_v39 = vmax.f32 %v1068_v34, 0.0 }
 0x217   :  { %1200 = vmatmul.f32.gmra.mxu2 %v1084_v39  ;;  %1265 = vmatmul.f32.gmra.mxu3 %v1084_v39 }
 0x218   :  { %1330 = vmatmul.f32.gmra.mxu0 %v1084_v39  ;;  %v1031_v49 = vpop.f32.mrf.mxu1  ;;  %v7642_v39 = vperm.slane %v1134_v40, 0 }
 0x219   :  { %v1049_v14 = vadd.f32 %v1031_v49, %v935_v52  ;;  %v7644_v52 = vperm.slane %v1433_v43, 0 }
 0x21a   :  { %10358 = vst [vmem:[#allocation34_spill] sm:$0xff] %v7642_v39 }
 0x21b   :  { %v1069_v9 = vadd.f32 %v7336_v61, %v1049_v14  ;;  %10359 = vst [vmem:[#allocation35_spill] sm:$0xff] %v7644_v52 }
 0x21d   :  { %v1085_v53 = vmax.f32 %v1069_v9, 0.0 }
 0x21f   :  { %1203 = vmatmul.f32.gmra.mxu2 %v1085_v53  ;;  %1268 = vmatmul.f32.gmra.mxu3 %v1085_v53 }
 0x220   :  { %1333 = vmatmul.f32.gmra.mxu0 %v1085_v53  ;;  %v1458_v49 = vpop.f32.mrf.mxu1 }
 0x221   :  { %v1459_v53 = vadd.f32 %v1458_v49, %v7644_v52 }
 0x227   :  { %1477 = vmatmul.f32.vlgmr.msra.gmra.mxu2 %v10200_v58  ;;  %1497 = vmatmul.f32.vlgmr.msra.gmra.mxu3 %v10200_v58 }
 0x228   :  { %1683 = vmatpush.msra.mxu2 %v7302_v46  ;;  %1703 = vmatpush.msra.mxu3 %v7353_v12 }
 0x22a   :  { %v7555_v61 = vpop.f32.mrf.mxu2  ;;  %v7557_v36 = vpop.f32.mrf.mxu3  ;;  %1684 = vmatpush.msra.mxu2 %v7323_v55  ;;  %1704 = vmatpush.msra.mxu3 %v7373_v32 }
 0x22b   :  { %v1160_v9 = vadd.f32 %v7555_v61, %v7642_v39 }
 0x22c   :  { %1685 = vmatpush.msra.mxu2 %v7351_v63  ;;  %1705 = vmatpush.msra.mxu3 %v7389_v2 }
 0x22e   :  { %1686 = vmatpush.msra.mxu2 %v7371_v6  ;;  %1706 = vmatpush.msra.mxu3 %v7406_v38 }
 0x230   :  { %1687 = vmatpush.msra.mxu2 %v7387_v8  ;;  %1707 = vmatpush.msra.mxu3 %v7419_v51 }
 0x232   :  { %v7569_v20 = vpop.f32.mrf.mxu2  ;;  %v7571_v28 = vpop.f32.mrf.mxu3  ;;  %1688 = vmatpush.msra.mxu2 %v7404_v45  ;;  %1708 = vmatpush.msra.mxu3 %v7431_v47 }
 0x234   :  { %1689 = vmatpush.msra.mxu2 %v7417_v41  ;;  %1709 = vmatpush.msra.mxu3 %v7443_v11 }
 0x236   :  { %1690 = vmatpush.msra.mxu2 %v7429_v22  ;;  %1710 = vmatpush.msra.mxu3 %v7455_v33 }
 0x238   :  { %1691 = vmatpush.msra.mxu2 %v7441_v13  ;;  %1711 = vmatpush.msra.mxu3 %v7465_v57 }
 0x23a   :  { %v7581_v62 = vpop.f32.mrf.mxu2  ;;  %v7583_v54 = vpop.f32.mrf.mxu3  ;;  %1692 = vmatpush.msra.mxu2 %v7453_v1  ;;  %1712 = vmatpush.msra.mxu3 %v7474_v21 }
 0x23b   :  { %10339 = vst [vmem:[#allocation15_spill] sm:$0xff] %v7581_v62 }
 0x23c   :  { %10340 = vst [vmem:[#allocation16_spill] sm:$0xff] %v7583_v54  ;;  %1693 = vmatpush.msra.mxu2 %v7463_v19  ;;  %1713 = vmatpush.msra.mxu3 %v7483_v56 }
 0x23e   :  { %1694 = vmatpush.msra.mxu2 %v7472_v29  ;;  %1714 = vmatpush.msra.mxu3 %v7492_v30 }
 0x240   :  { %1695 = vmatpush.msra.mxu2 %v7481_v18  ;;  %1715 = vmatpush.msra.mxu3 %v7497_v44 }
 0x242   :  { %v7593_v5 = vpop.f32.mrf.mxu2  ;;  %v7595_v15 = vpop.f32.mrf.mxu3  ;;  %1696 = vmatpush.msra.mxu2 %v7490_v37  ;;  %1716 = vmatpush.msra.mxu3 %v7501_v25 }
 0x243   :  { %10341 = vst [vmem:[#allocation17_spill] sm:$0xff] %v7593_v5 }
 0x244   :  { %10342 = vst [vmem:[#allocation18_spill] sm:$0xff] %v7595_v15  ;;  %1697 = vmatpush.msra.mxu2 %v7499_v60  ;;  %1717 = vmatpush.msra.mxu3 %v7509_v0 }
 0x246   :  { %1698 = vmatpush.msra.mxu2 %v7512_v35  ;;  %1718 = vmatpush.msra.mxu3 %v7514_v26 }
 0x24a   :  { %v7605_v7 = vpop.f32.mrf.mxu2  ;;  %v7607_v24 = vpop.f32.mrf.mxu3 }
 0x24b   :  { %10343 = vst [vmem:[#allocation19_spill] sm:$0xff] %v7605_v7 }
 0x24c   :  { %10344 = vst [vmem:[#allocation20_spill] sm:$0xff] %v7607_v24 }
 0x252   :  { %v7610_v4 = vpop.f32.mrf.mxu2  ;;  %v7612_v10 = vpop.f32.mrf.mxu3 }
 0x253   :  { %10345 = vst [vmem:[#allocation21_spill] sm:$0xff] %v7610_v4 }
 0x254   :  { %10346 = vst [vmem:[#allocation22_spill] sm:$0xff] %v7612_v10 }
 0x25a   :  { %v7614_v16 = vpop.f32.mrf.mxu2  ;;  %v7616_v17 = vpop.f32.mrf.mxu3 }
 0x25b   :  { %10347 = vst [vmem:[#allocation23_spill] sm:$0xff] %v7614_v16 }
 0x25c   :  { %10348 = vst [vmem:[#allocation24_spill] sm:$0xff] %v7616_v17 }
 0x262   :  { %v7618_v31 = vpop.f32.mrf.mxu2  ;;  %v7620_v23 = vpop.f32.mrf.mxu3 }
 0x263   :  { %10349 = vst [vmem:[#allocation25_spill] sm:$0xff] %v7618_v31 }
 0x264   :  { %10350 = vst [vmem:[#allocation26_spill] sm:$0xff] %v7620_v23 }
 0x26a   :  { %v7622_v42 = vpop.f32.mrf.mxu2  ;;  %v7624_v48 = vpop.f32.mrf.mxu3 }
 0x26b   :  { %10351 = vst [vmem:[#allocation27_spill] sm:$0xff] %v7622_v42 }
 0x26c   :  { %10352 = vst [vmem:[#allocation28_spill] sm:$0xff] %v7624_v48 }
 0x272   :  { %v7626_v27 = vpop.f32.mrf.mxu2  ;;  %v7628_v59 = vpop.f32.mrf.mxu3 }
 0x273   :  { %10353 = vst [vmem:[#allocation29_spill] sm:$0xff] %v7626_v27 }
 0x274   :  { %10354 = vst [vmem:[#allocation30_spill] sm:$0xff] %v7628_v59 }
 0x27a   :  { %v7630_v50 = vpop.f32.mrf.mxu2  ;;  %v7632_v3 = vpop.f32.mrf.mxu3 }
 0x27b   :  { %10355 = vst [vmem:[#allocation31_spill] sm:$0xff] %v7630_v50 }
 0x27c   :  { %10356 = vst [vmem:[#allocation32_spill] sm:$0xff] %v7632_v3  ;;  %v1504_v3 = vadd.f32 %v1459_v53, %v1160_v9  ;;  %v7667_v9 = vperm.slane %v1433_v43, 1 }
 0x27e   :  { %v6022_v50 = vmul.f32 -1.442695, %v1504_v3  ;;  %10369 = vst [vmem:[#allocation45_spill] sm:$0xff] %v7667_v9 }
 0x280   :  { %6100 = vpow2.f32 %v6022_v50 }
 0x282   :  { %v7637_v34 = vpop.f32.mrf.mxu2  ;;  %v7646_v14 = vpop.f32.mrf.mxu3 }
 0x283   :  { %10357 = vst [vmem:[#allocation33_spill] sm:$0xff] %v7637_v34 }
 0x284   :  { %10360 = vst [vmem:[#allocation36_spill] sm:$0xff] %v7646_v14 }
 0x286   :  { %v6101_v48 = vpop.eup %6100 }
 0x287   :  { %v1508_v14 = vadd.f32 1.0, %v6101_v48 }
 0x289   :  { %6102 = vrcp.f32 %v1508_v14  ;;  %v1520_v4 = vand.u32 2147483648, %v1508_v14  ;;  %vm1514_vm3 = vweird.f32 %v1508_v14  ;;  %v1518_v24 = vand.u32 2147483647, %v1508_v14 }
 0x28a   :  { %v7651_v58 = vpop.f32.mrf.mxu2  ;;  %v7653_v34 = vpop.f32.mrf.mxu3 }
 0x28b   :  { %10361 = vst [vmem:[#allocation37_spill] sm:$0xff] %v7651_v58  ;;  %v7665_v58 = vperm.slane %v1134_v40, 1  ;;  %vm1519_vm5 = vcmp.eq.f32.partialorder %v1518_v24, 8.507059e+37 }
 0x28c   :  { %10362 = vst [vmem:[#allocation38_spill] sm:$0xff] %v7653_v34 }
 0x28d   :  { %10368 = vst [vmem:[#allocation44_spill] sm:$0xff] %v7665_v58  ;;  %v1225_v50 = vadd.f32 %v7557_v36, %v7665_v58 }
 0x28f   :  { %v6103_v49 = vpop.eup %6102 }
 0x290   :  { %v1510_v53 = vmul.f32 %v6103_v49, %v1508_v14  ;;  %vm1515_vm2 = vweird.f32 %v6103_v49 }
 0x291   :  { %vm1516_vm4 = vmor %vm1514_vm3, %vm1515_vm2 }
 0x292   :  { %v7655_v27 = vpop.f32.mrf.mxu2  ;;  %v7657_v59 = vpop.f32.mrf.mxu3 }
 0x293   :  { %10363 = vst [vmem:[#allocation39_spill] sm:$0xff] %v7655_v27 }
 0x294   :  { %10364 = vst [vmem:[#allocation40_spill] sm:$0xff] %v7657_v59 }
 0x29a   :  { %v7659_v42 = vpop.f32.mrf.mxu2  ;;  %v7663_v61 = vpop.f32.mrf.mxu3 }
 0x29b   :  { %10365 = vst [vmem:[#allocation41_spill] sm:$0xff] %v7659_v42  ;;  %v1511_v42 = vsub.f32 1.0, %v1510_v53  ;;  %v7677_v53 = vperm.slane %v1134_v40, 2 }
 0x29c   :  { %10367 = vst [vmem:[#allocation43_spill] sm:$0xff] %v7663_v61  ;;  %v7674_v61 = vperm.slane %v1433_v43, 2 }
 0x29d   :  { %10372 = vst [vmem:[#allocation48_spill] sm:$0xff] %v7677_v53 }
 0x29e   :  { %10371 = vst [vmem:[#allocation47_spill] sm:$0xff] %v7674_v61 }
 0x2a2   :  { %v7661_v23 = vpop.f32.mrf.mxu2  ;;  %v7672_v59 = vpop.f32.mrf.mxu3 }
 0x2a3   :  { %10366 = vst [vmem:[#allocation42_spill] sm:$0xff] %v7661_v23  ;;  %v1512_v23 = vmul.f32 %v6103_v49, %v1511_v42  ;;  %v1289_v42 = vpop.f32.mrf.mxu0 }
 0x2a4   :  { %10370 = vst [vmem:[#allocation46_spill] sm:$0xff] %v7672_v59 }
 0x2a5   :  { %v1513_v31 = vadd.f32 %v6103_v49, %v1512_v23 }
 0x2aa   :  { %v1478_v3 = vpop.f32.mrf.mxu2  ;;  %v1498_v16 = vpop.f32.mrf.mxu3 }
 0x2ab   :  { %v1479_v27 = vadd.f32 %v1478_v3, %v7667_v9  ;;  %v1499_v36 = vadd.f32 %v1498_v16, %v7674_v61  ;;  %v1517_v3 = vsel %vm1516_vm4, %v6103_v49, %v1513_v31 }
 0x2ad   :  { %v1524_v48 = vadd.f32 %v1479_v27, %v1225_v50  ;;  %v1521_v27 = vor.u32 1.1754944e-38, %v1520_v4  ;;  %v1290_v50 = vadd.f32 %v1289_v42, %v7677_v53  ;;  %v7750_v42 = vld [vmem:[#allocation9 + $0x30] sm:$0xff] }
 0x2ae   :  { %10374 = vst [vmem:[#allocation50_spill] sm:$0xff] %v7750_v42 }
 0x2af   :  { %v6023_v34 = vmul.f32 -1.442695, %v1524_v48  ;;  %v1522_v43 = vsel %vm1519_vm5, %v1521_v27, %v1517_v3 }
 0x2b1   :  { %6104 = vpow2.f32 %v6023_v34  ;;  %v1544_v34 = vmul.f32 %v1522_v43, %v1499_v36  ;;  %v7755_v43 = vld [vmem:[#allocation9 + $0x18] sm:$0xff] }
 0x2b2   :  { %10375 = vst [vmem:[#allocation51_spill] sm:$0xff] %v7755_v43 }
 0x2b3   :  { %v1545_v59 = vadd.f32 %v1544_v34, %v1290_v50  ;;  %v7760_v34 = vld [vmem:[#allocation9] sm:$0xff]  ;;  %v1163_v50 = vadd.f32 %v7569_v20, %v7642_v39 }
 0x2b4   :  { %10376 = vst [vmem:[#allocation52_spill] sm:$0xff] %v7760_v34 }
 0x2b7   :  { %v6105_v17 = vpop.eup %6104 }
 0x2b8   :  { %v1528_v10 = vadd.f32 1.0, %v6105_v17 }
 0x2ba   :  { %6106 = vrcp.f32 %v1528_v10  ;;  %v1540_v7 = vand.u32 2147483648, %v1528_v10  ;;  %v1538_v15 = vand.u32 2147483647, %v1528_v10  ;;  %vm1534_vm7 = vweird.f32 %v1528_v10 }
 0x2bb   :  { %6108 = vtanh.f32 %v1545_v59  ;;  %v7685_v59 = vld [vmem:[#allocation9 + $0x168] sm:$0xff] }
 0x2bc   :  { %v1541_v4 = vor.u32 1.1754944e-38, %v1540_v7  ;;  %vm1539_vm9 = vcmp.eq.f32.partialorder %v1538_v15, 8.507059e+37  ;;  %v7690_v15 = vld [vmem:[#allocation9 + $0x150] sm:$0xff]  ;;  %v7695_v7 = vld [vmem:[#allocation9 + $0x138] sm:$0xff] }
 0x2c0   :  { %v6107_v23 = vpop.eup %6106 }
 0x2c1   :  { %v1530_v48 = vmul.f32 %v6107_v23, %v1528_v10  ;;  %vm1535_vm6 = vweird.f32 %v6107_v23  ;;  %v6109_v49 = vpop.eup %6108  ;;  %v7700_v10 = vld [vmem:[#allocation9 + $0x120] sm:$0xff] }
 0x2c2   :  { %vm1536_vm8 = vmor %vm1534_vm7, %vm1535_vm6 }
 0x2c3   :  { %v1531_v17 = vsub.f32 1.0, %v1530_v48 }
 0x2c5   :  { %v1532_v14 = vmul.f32 %v6107_v23, %v1531_v17 }
 0x2c7   :  { %v1533_v16 = vadd.f32 %v6107_v23, %v1532_v14 }
 0x2c9   :  { %v1537_v31 = vsel %vm1536_vm8, %v6107_v23, %v1533_v16 }
 0x2ca   :  { %v1542_v24 = vsel %vm1539_vm9, %v1541_v4, %v1537_v31  ;;  %v1228_v4 = vadd.f32 %v7571_v28, %v7665_v58  ;;  %v1292_v58 = vpop.f32.mrf.mxu0 }
 0x2cb   :  { %v1547_v40 = vsub.f32 1.0, %v1542_v24  ;;  %v1549_v3 = vmul.f32 0.0, %v1542_v24 }
 0x2cd   :  { %v1548_v36 = vmul.f32 %v6109_v49, %v1547_v40 }
 0x2cf   :  { %v7680_v27 = vadd.f32 %v1549_v3, %v1548_v36 }
 0x2d1   :  { %10373 = vst [vmem:[#allocation49_spill] sm:$0xff] %v7680_v27  ;;  %1568 = vmatmul.f32.vlgmr.msrb.gmra.mxu1 %v7680_v27  ;;  %1588 = vmatmul.f32.vlgmr.msrb.gmra.mxu2 %v7680_v27 }
 0x2d2   :  { %1608 = vmatmul.f32.vlgmr.msrb.gmra.mxu3 %v7680_v27  ;;  %1774 = vmatpush.msrb.mxu1 %v7685_v59 }
 0x2d3   :  { %1794 = vmatpush.msrb.mxu2 %v7302_v46  ;;  %1814 = vmatpush.msrb.mxu3 %v7353_v12  ;;  %v7705_v46 = vld [vmem:[#allocation9 + $0x108] sm:$0xff]  ;;  %v7720_v12 = vld [vmem:[#allocation9 + $0xc0] sm:$0xff] }
 0x2d4   :  { %1775 = vmatpush.msrb.mxu1 %v7690_v15 }
 0x2d5   :  { %1795 = vmatpush.msrb.mxu2 %v7323_v55  ;;  %1815 = vmatpush.msrb.mxu3 %v7373_v32  ;;  %v7710_v55 = vld [vmem:[#allocation9 + $0xf0] sm:$0xff] }
 0x2d6   :  { %1776 = vmatpush.msrb.mxu1 %v7695_v7  ;;  %v7730_v32 = vld [vmem:[#allocation9 + $0x90] sm:$0xff] }
 0x2d7   :  { %1796 = vmatpush.msrb.mxu2 %v7351_v63  ;;  %1816 = vmatpush.msrb.mxu3 %v7389_v2  ;;  %v7715_v63 = vld [vmem:[#allocation9 + $0xd8] sm:$0xff]  ;;  %v7740_v2 = vld [vmem:[#allocation9 + $0x60] sm:$0xff] }
 0x2d8   :  { %1777 = vmatpush.msrb.mxu1 %v7700_v10 }
 0x2d9   :  { %1797 = vmatpush.msrb.mxu2 %v7371_v6  ;;  %1817 = vmatpush.msrb.mxu3 %v7406_v38  ;;  %v7725_v6 = vld [vmem:[#allocation9 + $0xa8] sm:$0xff] }
 0x2da   :  { %1778 = vmatpush.msrb.mxu1 %v7705_v46 }
 0x2db   :  { %1798 = vmatpush.msrb.mxu2 %v7387_v8  ;;  %1818 = vmatpush.msrb.mxu3 %v7419_v51  ;;  %v7735_v8 = vld [vmem:[#allocation9 + $0x78] sm:$0xff] }
 0x2dc   :  { %1779 = vmatpush.msrb.mxu1 %v7710_v55 }
 0x2dd   :  { %1799 = vmatpush.msrb.mxu2 %v7404_v45  ;;  %1819 = vmatpush.msrb.mxu3 %v7431_v47  ;;  %v7745_v45 = vld [vmem:[#allocation9 + $0x48] sm:$0xff] }
 0x2de   :  { %1780 = vmatpush.msrb.mxu1 %v7715_v63 }
 0x2df   :  { %1800 = vmatpush.msrb.mxu2 %v7417_v41  ;;  %1820 = vmatpush.msrb.mxu3 %v7443_v11 }
 0x2e0   :  { %1781 = vmatpush.msrb.mxu1 %v7720_v12 }
 0x2e1   :  { %1801 = vmatpush.msrb.mxu2 %v7429_v22  ;;  %1821 = vmatpush.msrb.mxu3 %v7455_v33 }
 0x2e2   :  { %1782 = vmatpush.msrb.mxu1 %v7725_v6 }
 0x2e3   :  { %1802 = vmatpush.msrb.mxu2 %v7441_v13  ;;  %1822 = vmatpush.msrb.mxu3 %v7465_v57 }
 0x2e4   :  { %1783 = vmatpush.msrb.mxu1 %v7730_v32 }
 0x2e5   :  { %1803 = vmatpush.msrb.mxu2 %v7453_v1  ;;  %1823 = vmatpush.msrb.mxu3 %v7474_v21 }
 0x2e6   :  { %1784 = vmatpush.msrb.mxu1 %v7735_v8 }
 0x2e7   :  { %1804 = vmatpush.msrb.mxu2 %v7463_v19  ;;  %1824 = vmatpush.msrb.mxu3 %v7483_v56 }
 0x2e8   :  { %1785 = vmatpush.msrb.mxu1 %v7740_v2 }
 0x2e9   :  { %1805 = vmatpush.msrb.mxu2 %v7472_v29  ;;  %1825 = vmatpush.msrb.mxu3 %v7492_v30 }
 0x2ea   :  { %1786 = vmatpush.msrb.mxu1 %v7745_v45 }
 0x2eb   :  { %1806 = vmatpush.msrb.mxu2 %v7481_v18  ;;  %1826 = vmatpush.msrb.mxu3 %v7497_v44 }
 0x2ec   :  { %1787 = vmatpush.msrb.mxu1 %v7750_v42 }
 0x2ed   :  { %1807 = vmatpush.msrb.mxu2 %v7490_v37  ;;  %1827 = vmatpush.msrb.mxu3 %v7501_v25 }
 0x2ee   :  { %1788 = vmatpush.msrb.mxu1 %v7755_v43 }
 0x2ef   :  { %1808 = vmatpush.msrb.mxu2 %v7499_v60  ;;  %1828 = vmatpush.msrb.mxu3 %v7509_v0 }
 0x2f0   :  { %1789 = vmatpush.msrb.mxu1 %v7760_v34 }
 0x2f1   :  { %1809 = vmatpush.msrb.mxu2 %v7512_v35  ;;  %1829 = vmatpush.msrb.mxu3 %v7514_v26 }
 0x34e   :  { %v1569_v23 = vpop.f32.mrf.mxu1 }
 0x34f   :  { %v1570_v48 = vadd.f32 %v1569_v23, %v7644_v52 }
 0x351   :  { %v1615_v17 = vadd.f32 %v1570_v48, %v1163_v50 }
 0x353   :  { %v6024_v14 = vmul.f32 -1.442695, %v1615_v17 }
 0x354   :  { %v1589_v16 = vpop.f32.mrf.mxu2 }
 0x355   :  { %6110 = vpow2.f32 %v6024_v14  ;;  %v1590_v31 = vadd.f32 %v1589_v16, %v7667_v9  ;;  %v1609_v14 = vpop.f32.mrf.mxu3 }
 0x357   :  { %v1635_v24 = vadd.f32 %v1590_v31, %v1228_v4 }
 0x359   :  { %v6025_v40 = vmul.f32 -1.442695, %v1635_v24 }
 0x35b   :  { %v6111_v49 = vpop.eup %6110  ;;  %6112 = vpow2.f32 %v6025_v40  ;;  %v1610_v40 = vadd.f32 %v1609_v14, %v7674_v61 }
 0x35c   :  { %v1619_v36 = vadd.f32 1.0, %v6111_v49 }
 0x35e   :  { %6114 = vrcp.f32 %v1619_v36  ;;  %v1631_v48 = vand.u32 2147483648, %v1619_v36  ;;  %v1629_v54 = vand.u32 2147483647, %v1619_v36  ;;  %vm1625_vm11 = vweird.f32 %v1619_v36 }
 0x360   :  { %v1632_v31 = vor.u32 1.1754944e-38, %v1631_v48  ;;  %vm1630_vm13 = vcmp.eq.f32.partialorder %v1629_v54, 8.507059e+37 }
 0x361   :  { %v6113_v3 = vpop.eup %6112 }
 0x362   :  { %v1639_v5 = vadd.f32 1.0, %v6113_v3  ;;  %v1293_v3 = vadd.f32 %v1292_v58, %v7677_v53 }
 0x364   :  { %v6115_v20 = vpop.eup %6114  ;;  %6116 = vrcp.f32 %v1639_v5  ;;  %v1649_v62 = vand.u32 2147483647, %v1639_v5  ;;  %vm1645_vm15 = vweird.f32 %v1639_v5 }
 0x365   :  { %v1621_v23 = vmul.f32 %v6115_v20, %v1619_v36  ;;  %vm1626_vm10 = vweird.f32 %v6115_v20 }
 0x366   :  { %vm1627_vm12 = vmor %vm1625_vm11, %vm1626_vm10  ;;  %vm1650_vm1 = vcmp.eq.f32.partialorder %v1649_v62, 8.507059e+37  ;;  %v7786_v62 = vld [vmem:[#allocation9 + $0x158] sm:$0xff] }
 0x367   :  { %v1622_v50 = vsub.f32 1.0, %v1621_v23 }
 0x369   :  { %v1623_v17 = vmul.f32 %v6115_v20, %v1622_v50  ;;  %v1651_v50 = vand.u32 2147483648, %v1639_v5 }
 0x36a   :  { %v6117_v28 = vpop.eup %6116 }
 0x36b   :  { %v1641_v16 = vmul.f32 %v6117_v28, %v1639_v5  ;;  %v1624_v4 = vadd.f32 %v6115_v20, %v1623_v17  ;;  %vm1646_vm14 = vweird.f32 %v6117_v28  ;;  %v1652_v36 = vor.u32 1.1754944e-38, %v1651_v50  ;;  %v7779_v5 = vld [vmem:[#allocation9 + $0x170] sm:$0xff] }
 0x36c   :  { %vm1647_vm0 = vmor %vm1645_vm15, %vm1646_vm14 }
 0x36d   :  { %v1642_v24 = vsub.f32 1.0, %v1641_v16  ;;  %v1628_v49 = vsel %vm1627_vm12, %v6115_v20, %v1624_v4  ;;  %v7805_v4 = vld [vmem:[#allocation9 + $0x110] sm:$0xff] }
 0x36e   :  { %v1633_v23 = vsel %vm1630_vm13, %v1632_v31, %v1628_v49  ;;  %v7810_v31 = vld [vmem:[#allocation9 + $0xf8] sm:$0xff] }
 0x36f   :  { %v1643_v9 = vmul.f32 %v6117_v28, %v1642_v24  ;;  %v1655_v52 = vmul.f32 %v1633_v23, %v1610_v40  ;;  %v10384_v24 = vld [vmem:[#allocation45_spill] sm:$0xff] }
 0x371   :  { %v1644_v39 = vadd.f32 %v6117_v28, %v1643_v9  ;;  %v1656_v34 = vadd.f32 %v1655_v52, %v1293_v3  ;;  %v7789_v52 = vld [vmem:[#allocation9 + $0x160] sm:$0xff] }
 0x372   :  { %v7793_v9 = vld [vmem:[#allocation9 + $0x140] sm:$0xff] }
 0x373   :  { %v1648_v17 = vsel %vm1647_vm0, %v6117_v28, %v1644_v39  ;;  %6118 = vtanh.f32 %v1656_v34  ;;  %v7782_v39 = vld [vmem:[#allocation9 + $0x178] sm:$0xff]  ;;  %v7796_v34 = vld [vmem:[#allocation9 + $0x148] sm:$0xff] }
 0x374   :  { %v1653_v48 = vsel %vm1650_vm1, %v1652_v36, %v1648_v17  ;;  %v7800_v28 = vld [vmem:[#allocation9 + $0x128] sm:$0xff] }
 0x375   :  { %v1658_v14 = vsub.f32 1.0, %v1653_v48  ;;  %v1660_v58 = vmul.f32 %v1653_v48, %v7680_v27 }
 0x379   :  { %v6119_v20 = vpop.eup %6118 }
 0x37a   :  { %v1659_v54 = vmul.f32 %v6119_v20, %v1658_v14 }
 0x37c   :  { %v7774_v16 = vadd.f32 %v1660_v58, %v1659_v54 }
 0x37e   :  { %10377 = vst [vmem:[#allocation53_spill] sm:$0xff] %v7774_v16  ;;  %1679 = vmatmul.f32.vlgmr.msra.gmra.mxu1 %v7774_v16  ;;  %1699 = vmatmul.f32.vlgmr.msra.gmra.mxu2 %v7774_v16 }
 0x37f   :  { %1719 = vmatmul.f32.vlgmr.msra.gmra.mxu3 %v7774_v16  ;;  %1905 = vmatpush.msra.mxu1 %v7779_v5 }
 0x380   :  { %1925 = vmatpush.msra.mxu2 %v7782_v39  ;;  %1996 = vmatpush.msra.mxu3 %v7685_v59 }
 0x381   :  { %1906 = vmatpush.msra.mxu1 %v7786_v62 }
 0x382   :  { %1926 = vmatpush.msra.mxu2 %v7789_v52  ;;  %1997 = vmatpush.msra.mxu3 %v7690_v15 }
 0x383   :  { %1907 = vmatpush.msra.mxu1 %v7793_v9 }
 0x384   :  { %1927 = vmatpush.msra.mxu2 %v7796_v34  ;;  %1998 = vmatpush.msra.mxu3 %v7695_v7 }
 0x385   :  { %1908 = vmatpush.msra.mxu1 %v7800_v28 }
 0x386   :  { %1928 = vmatpush.msra.mxu2 %v7406_v38  ;;  %1999 = vmatpush.msra.mxu3 %v7700_v10  ;;  %v10378_v38 = vld [vmem:[#allocation52_spill] sm:$0xff] }
 0x387   :  { %1909 = vmatpush.msra.mxu1 %v7805_v4 }
 0x388   :  { %1929 = vmatpush.msra.mxu2 %v7419_v51  ;;  %2000 = vmatpush.msra.mxu3 %v7705_v46  ;;  %v10379_v51 = vld [vmem:[#allocation34_spill] sm:$0xff] }
 0x389   :  { %1910 = vmatpush.msra.mxu1 %v7810_v31 }
 0x38a   :  { %1930 = vmatpush.msra.mxu2 %v7431_v47  ;;  %2001 = vmatpush.msra.mxu3 %v7710_v55 }
 0x38b   :  { %1911 = vmatpush.msra.mxu1 %v7417_v41 }
 0x38c   :  { %1931 = vmatpush.msra.mxu2 %v7443_v11  ;;  %2002 = vmatpush.msra.mxu3 %v7715_v63 }
 0x38d   :  { %1912 = vmatpush.msra.mxu1 %v7429_v22  ;;  %v10380_v22 = vld [vmem:[#allocation15_spill] sm:$0xff] }
 0x38e   :  { %1932 = vmatpush.msra.mxu2 %v7455_v33  ;;  %2003 = vmatpush.msra.mxu3 %v7720_v12  ;;  %v1166_v47 = vadd.f32 %v10380_v22, %v10379_v51 }
 0x38f   :  { %1913 = vmatpush.msra.mxu1 %v7441_v13  ;;  %v10381_v13 = vld [vmem:[#allocation35_spill] sm:$0xff] }
 0x390   :  { %1933 = vmatpush.msra.mxu2 %v7465_v57  ;;  %2004 = vmatpush.msra.mxu3 %v7725_v6  ;;  %v10382_v57 = vld [vmem:[#allocation44_spill] sm:$0xff] }
 0x391   :  { %1914 = vmatpush.msra.mxu1 %v7453_v1 }
 0x392   :  { %1934 = vmatpush.msra.mxu2 %v7474_v21  ;;  %2005 = vmatpush.msra.mxu3 %v7730_v32 }
 0x393   :  { %1915 = vmatpush.msra.mxu1 %v7463_v19 }
 0x394   :  { %1935 = vmatpush.msra.mxu2 %v7483_v56  ;;  %2006 = vmatpush.msra.mxu3 %v7735_v8 }
 0x395   :  { %1916 = vmatpush.msra.mxu1 %v7472_v29  ;;  %v10383_v29 = vld [vmem:[#allocation16_spill] sm:$0xff] }
 0x396   :  { %1936 = vmatpush.msra.mxu2 %v7492_v30  ;;  %2007 = vmatpush.msra.mxu3 %v7740_v2  ;;  %v1231_v21 = vadd.f32 %v10383_v29, %v10382_v57 }
 0x397   :  { %1917 = vmatpush.msra.mxu1 %v7481_v18 }
 0x398   :  { %1937 = vmatpush.msra.mxu2 %v7497_v44  ;;  %2008 = vmatpush.msra.mxu3 %v7745_v45 }
 0x399   :  { %1918 = vmatpush.msra.mxu1 %v7490_v37 }
 0x39a   :  { %1938 = vmatpush.msra.mxu2 %v7501_v25  ;;  %2009 = vmatpush.msra.mxu3 %v7750_v42 }
 0x39b   :  { %1919 = vmatpush.msra.mxu1 %v7499_v60 }
 0x39c   :  { %1939 = vmatpush.msra.mxu2 %v7509_v0  ;;  %2010 = vmatpush.msra.mxu3 %v7755_v43 }
 0x39d   :  { %1920 = vmatpush.msra.mxu1 %v7512_v35 }
 0x39e   :  { %1940 = vmatpush.msra.mxu2 %v7514_v26  ;;  %2011 = vmatpush.msra.mxu3 %v10378_v38 }
 0x3fb   :  { %v1680_v41 = vpop.f32.mrf.mxu1 }
 0x3fc   :  { %v1681_v11 = vadd.f32 %v1680_v41, %v10381_v13 }
 0x3fe   :  { %v1726_v1 = vadd.f32 %v1681_v11, %v1166_v47  ;;  %v1295_v11 = vpop.f32.mrf.mxu0 }
 0x400   :  { %v6026_v33 = vmul.f32 -1.442695, %v1726_v1 }
 0x401   :  { %v1700_v19 = vpop.f32.mrf.mxu2 }
 0x402   :  { %6120 = vpow2.f32 %v6026_v33  ;;  %v1701_v40 = vadd.f32 %v1700_v19, %v10384_v24  ;;  %v1720_v47 = vpop.f32.mrf.mxu3 }
 0x404   :  { %v1746_v49 = vadd.f32 %v1701_v40, %v1231_v21  ;;  %v1721_v21 = vadd.f32 %v1720_v47, %v7674_v61 }
 0x406   :  { %v6027_v3 = vmul.f32 -1.442695, %v1746_v49  ;;  %v1296_v49 = vadd.f32 %v1295_v11, %v7677_v53 }
 0x408   :  { %v6121_v23 = vpop.eup %6120  ;;  %6122 = vpow2.f32 %v6027_v3 }
 0x409   :  { %v1730_v50 = vadd.f32 1.0, %v6121_v23 }
 0x40b   :  { %6124 = vrcp.f32 %v1730_v50  ;;  %v1742_v54 = vand.u32 2147483648, %v1730_v50  ;;  %v1740_v41 = vand.u32 2147483647, %v1730_v50  ;;  %vm1736_vm3 = vweird.f32 %v1730_v50 }
 0x40d   :  { %v1743_v19 = vor.u32 1.1754944e-38, %v1742_v54  ;;  %vm1741_vm5 = vcmp.eq.f32.partialorder %v1740_v41, 8.507059e+37 }
 0x40e   :  { %v6123_v36 = vpop.eup %6122 }
 0x40f   :  { %v1750_v17 = vadd.f32 1.0, %v6123_v36 }
 0x411   :  { %v6125_v48 = vpop.eup %6124  ;;  %6126 = vrcp.f32 %v1750_v17  ;;  %v1762_v36 = vand.u32 2147483648, %v1750_v17  ;;  %vm1756_vm7 = vweird.f32 %v1750_v17 }
 0x412   :  { %v1732_v14 = vmul.f32 %v6125_v48, %v1730_v50  ;;  %vm1737_vm2 = vweird.f32 %v6125_v48 }
 0x413   :  { %vm1738_vm4 = vmor %vm1736_vm3, %vm1737_vm2  ;;  %v1763_v50 = vor.u32 1.1754944e-38, %v1762_v36  ;;  %v7918_v36 = vld [vmem:[#allocation9 + $0x68] sm:$0xff] }
 0x414   :  { %v1733_v20 = vsub.f32 1.0, %v1732_v14 }
 0x416   :  { %v1734_v58 = vmul.f32 %v6125_v48, %v1733_v20  ;;  %v1760_v20 = vand.u32 2147483647, %v1750_v17 }
 0x417   :  { %v6127_v22 = vpop.eup %6126 }
 0x418   :  { %v1752_v1 = vmul.f32 %v6127_v22, %v1750_v17  ;;  %v1735_v33 = vadd.f32 %v6125_v48, %v1734_v58  ;;  %vm1757_vm6 = vweird.f32 %v6127_v22  ;;  %vm1761_vm9 = vcmp.eq.f32.partialorder %v1760_v20, 8.507059e+37  ;;  %v7878_v17 = vld [vmem:[#allocation9 + $0x100] sm:$0xff] }
 0x419   :  { %vm1758_vm8 = vmor %vm1756_vm7, %vm1757_vm6 }
 0x41a   :  { %v1753_v29 = vsub.f32 1.0, %v1752_v1  ;;  %v1739_v40 = vsel %vm1738_vm4, %v6125_v48, %v1735_v33  ;;  %v7887_v33 = vld [vmem:[#allocation9 + $0xe0] sm:$0xff] }
 0x41b   :  { %v1744_v3 = vsel %vm1741_vm5, %v1743_v19, %v1739_v40  ;;  %v7890_v19 = vld [vmem:[#allocation9 + $0xd0] sm:$0xff] }
 0x41c   :  { %v1754_v23 = vmul.f32 %v6127_v22, %v1753_v29  ;;  %v1766_v14 = vmul.f32 %v1744_v3, %v1721_v21  ;;  %v7894_v29 = vld [vmem:[#allocation9 + $0xc8] sm:$0xff]  ;;  %v7897_v21 = vld [vmem:[#allocation9 + $0xb8] sm:$0xff]  ;;  %v7901_v40 = vld [vmem:[#allocation9 + $0xb0] sm:$0xff] }
 0x41d   :  { %v7908_v3 = vld [vmem:[#allocation9 + $0x98] sm:$0xff] }
 0x41e   :  { %v1755_v27 = vadd.f32 %v6127_v22, %v1754_v23  ;;  %v1767_v24 = vadd.f32 %v1766_v14, %v1296_v49  ;;  %v7904_v49 = vld [vmem:[#allocation9 + $0xa0] sm:$0xff] }
 0x41f   :  { %v7913_v23 = vld [vmem:[#allocation9 + $0x80] sm:$0xff] }
 0x420   :  { %v1759_v58 = vsel %vm1758_vm8, %v6127_v22, %v1755_v27  ;;  %6128 = vtanh.f32 %v1767_v24  ;;  %v7868_v27 = vld [vmem:[#allocation9 + $0x130] sm:$0xff]  ;;  %v7873_v24 = vld [vmem:[#allocation9 + $0x118] sm:$0xff]  ;;  %v7883_v22 = vld [vmem:[#allocation9 + $0xe8] sm:$0xff] }
 0x421   :  { %v1764_v54 = vsel %vm1761_vm9, %v1763_v50, %v1759_v58 }
 0x422   :  { %v1769_v47 = vsub.f32 1.0, %v1764_v54  ;;  %v1771_v11 = vmul.f32 %v1764_v54, %v7774_v16 }
 0x426   :  { %v6129_v48 = vpop.eup %6128 }
 0x427   :  { %v1770_v41 = vmul.f32 %v6129_v48, %v1769_v47 }
 0x429   :  { %v7854_v1 = vadd.f32 %v1771_v11, %v1770_v41 }
 0x42b   :  { %10385 = vst [vmem:[#allocation15_spill] sm:$0xff] %v7854_v1  ;;  %1790 = vmatmul.f32.vlgmr.msrb.gmra.mxu1 %v7854_v1  ;;  %1810 = vmatmul.f32.vlgmr.msrb.gmra.mxu2 %v7854_v1 }
 0x42c   :  { %1830 = vmatmul.f32.vlgmr.msrb.gmra.mxu3 %v7854_v1  ;;  %2036 = vmatpush.msrb.mxu1 %v7782_v39 }
 0x42d   :  { %2107 = vmatpush.msrb.mxu2 %v7685_v59  ;;  %2127 = vmatpush.msrb.mxu3 %v7779_v5 }
 0x42e   :  { %2037 = vmatpush.msrb.mxu1 %v7789_v52 }
 0x42f   :  { %2108 = vmatpush.msrb.mxu2 %v7690_v15  ;;  %2128 = vmatpush.msrb.mxu3 %v7786_v62 }
 0x430   :  { %2038 = vmatpush.msrb.mxu1 %v7796_v34 }
 0x431   :  { %2109 = vmatpush.msrb.mxu2 %v7695_v7  ;;  %2129 = vmatpush.msrb.mxu3 %v7793_v9 }
 0x432   :  { %2039 = vmatpush.msrb.mxu1 %v7868_v27 }
 0x433   :  { %2110 = vmatpush.msrb.mxu2 %v7700_v10  ;;  %2130 = vmatpush.msrb.mxu3 %v7800_v28 }
 0x434   :  { %2040 = vmatpush.msrb.mxu1 %v7873_v24 }
 0x435   :  { %2111 = vmatpush.msrb.mxu2 %v7705_v46  ;;  %2131 = vmatpush.msrb.mxu3 %v7805_v4 }
 0x436   :  { %2041 = vmatpush.msrb.mxu1 %v7878_v17 }
 0x437   :  { %2112 = vmatpush.msrb.mxu2 %v7710_v55  ;;  %2132 = vmatpush.msrb.mxu3 %v7810_v31 }
 0x438   :  { %2042 = vmatpush.msrb.mxu1 %v7883_v22 }
 0x439   :  { %2113 = vmatpush.msrb.mxu2 %v7715_v63  ;;  %2133 = vmatpush.msrb.mxu3 %v7887_v33 }
 0x43a   :  { %2043 = vmatpush.msrb.mxu1 %v7890_v19 }
 0x43b   :  { %2114 = vmatpush.msrb.mxu2 %v7720_v12  ;;  %2134 = vmatpush.msrb.mxu3 %v7894_v29 }
 0x43c   :  { %2044 = vmatpush.msrb.mxu1 %v7897_v21 }
 0x43d   :  { %2115 = vmatpush.msrb.mxu2 %v7725_v6  ;;  %2135 = vmatpush.msrb.mxu3 %v7901_v40 }
 0x43e   :  { %2045 = vmatpush.msrb.mxu1 %v7904_v49 }
 0x43f   :  { %2116 = vmatpush.msrb.mxu2 %v7730_v32  ;;  %2136 = vmatpush.msrb.mxu3 %v7908_v3 }
 0x440   :  { %2046 = vmatpush.msrb.mxu1 %v7483_v56 }
 0x441   :  { %2117 = vmatpush.msrb.mxu2 %v7735_v8  ;;  %2137 = vmatpush.msrb.mxu3 %v7913_v23 }
 0x442   :  { %2047 = vmatpush.msrb.mxu1 %v7492_v30 }
 0x443   :  { %2118 = vmatpush.msrb.mxu2 %v7740_v2  ;;  %2138 = vmatpush.msrb.mxu3 %v7918_v36 }
 0x444   :  { %2048 = vmatpush.msrb.mxu1 %v7497_v44 }
 0x445   :  { %2119 = vmatpush.msrb.mxu2 %v7745_v45  ;;  %2139 = vmatpush.msrb.mxu3 %v7481_v18  ;;  %v10386_v18 = vld [vmem:[#allocation17_spill] sm:$0xff] }
 0x446   :  { %2049 = vmatpush.msrb.mxu1 %v7501_v25  ;;  %v1169_v30 = vadd.f32 %v10386_v18, %v10379_v51 }
 0x447   :  { %2120 = vmatpush.msrb.mxu2 %v7750_v42  ;;  %2140 = vmatpush.msrb.mxu3 %v7490_v37 }
 0x448   :  { %2050 = vmatpush.msrb.mxu1 %v7509_v0  ;;  %v10387_v0 = vld [vmem:[#allocation18_spill] sm:$0xff] }
 0x449   :  { %2121 = vmatpush.msrb.mxu2 %v7755_v43  ;;  %2141 = vmatpush.msrb.mxu3 %v7499_v60  ;;  %v1234_v20 = vadd.f32 %v10387_v0, %v10382_v57  ;;  %v10388_v60 = vld [vmem:[#allocation45_spill] sm:$0xff]  ;;  %v1298_v0 = vpop.f32.mrf.mxu0 }
 0x44a   :  { %2051 = vmatpush.msrb.mxu1 %v7514_v26 }
 0x44b   :  { %2122 = vmatpush.msrb.mxu2 %v10378_v38  ;;  %2142 = vmatpush.msrb.mxu3 %v7512_v35 }
 0x4a8   :  { %v1791_v56 = vpop.f32.mrf.mxu1 }
 0x4a9   :  { %v1792_v44 = vadd.f32 %v1791_v56, %v10381_v13 }
 0x4ab   :  { %v1837_v25 = vadd.f32 %v1792_v44, %v1169_v30 }
 0x4ad   :  { %v6028_v37 = vmul.f32 -1.442695, %v1837_v25 }
 0x4ae   :  { %v1811_v14 = vpop.f32.mrf.mxu2 }
 0x4af   :  { %6130 = vpow2.f32 %v6028_v37  ;;  %v1812_v50 = vadd.f32 %v1811_v14, %v10388_v60  ;;  %v1831_v37 = vpop.f32.mrf.mxu3 }
 0x4b1   :  { %v1857_v26 = vadd.f32 %v1812_v50, %v1234_v20 }
 0x4b3   :  { %v6029_v58 = vmul.f32 -1.442695, %v1857_v26 }
 0x4b5   :  { %v6131_v54 = vpop.eup %6130  ;;  %6132 = vpow2.f32 %v6029_v58  ;;  %v1832_v58 = vadd.f32 %v1831_v37, %v7674_v61 }
 0x4b6   :  { %v1841_v35 = vadd.f32 1.0, %v6131_v54 }
 0x4b8   :  { %6134 = vrcp.f32 %v1841_v35  ;;  %v1853_v18 = vand.u32 2147483648, %v1841_v35  ;;  %v1851_v44 = vand.u32 2147483647, %v1841_v35  ;;  %vm1847_vm11 = vweird.f32 %v1841_v35 }
 0x4ba   :  { %v1854_v50 = vor.u32 1.1754944e-38, %v1853_v18  ;;  %vm1852_vm13 = vcmp.eq.f32.partialorder %v1851_v44, 8.507059e+37 }
 0x4bb   :  { %v6133_v47 = vpop.eup %6132 }
 0x4bc   :  { %v1861_v48 = vadd.f32 1.0, %v6133_v47  ;;  %v1299_v47 = vadd.f32 %v1298_v0, %v7677_v53 }
 0x4be   :  { %v6135_v41 = vpop.eup %6134  ;;  %6136 = vrcp.f32 %v1861_v48  ;;  %v1871_v13 = vand.u32 2147483647, %v1861_v48  ;;  %vm1867_vm15 = vweird.f32 %v1861_v48 }
 0x4bf   :  { %v1843_v11 = vmul.f32 %v6135_v41, %v1841_v35  ;;  %vm1848_vm10 = vweird.f32 %v6135_v41 }
 0x4c0   :  { %vm1849_vm12 = vmor %vm1847_vm11, %vm1848_vm10  ;;  %vm1872_vm1 = vcmp.eq.f32.partialorder %v1871_v13, 8.507059e+37  ;;  %v7981_v13 = vld [vmem:[#allocation9 + $0x88] sm:$0xff] }
 0x4c1   :  { %v1844_v56 = vsub.f32 1.0, %v1843_v11 }
 0x4c3   :  { %v1845_v30 = vmul.f32 %v6135_v41, %v1844_v56  ;;  %v1873_v56 = vand.u32 2147483648, %v1861_v48 }
 0x4c4   :  { %v6137_v25 = vpop.eup %6136 }
 0x4c5   :  { %v1863_v14 = vmul.f32 %v6137_v25, %v1861_v48  ;;  %v1846_v20 = vadd.f32 %v6135_v41, %v1845_v30  ;;  %vm1868_vm14 = vweird.f32 %v6137_v25  ;;  %v1874_v35 = vor.u32 1.1754944e-38, %v1873_v56  ;;  %v7995_v48 = vld [vmem:[#allocation9 + $0x50] sm:$0xff] }
 0x4c6   :  { %vm1869_vm0 = vmor %vm1867_vm15, %vm1868_vm14 }
 0x4c7   :  { %v1864_v26 = vsub.f32 1.0, %v1863_v14  ;;  %v1850_v54 = vsel %vm1849_vm12, %v6135_v41, %v1846_v20  ;;  %v8000_v20 = vld [vmem:[#allocation9 + $0x40] sm:$0xff] }
 0x4c8   :  { %v1855_v11 = vsel %vm1852_vm13, %v1854_v50, %v1850_v54  ;;  %10392 = vst [vmem:[#allocation54_spill] sm:$0xff] %v8000_v20  ;;  %v8004_v50 = vld [vmem:[#allocation9 + $0x38] sm:$0xff]  ;;  %v8014_v54 = vld [vmem:[#allocation9 + $0x10] sm:$0xff] }
 0x4c9   :  { %v1865_v16 = vmul.f32 %v6137_v25, %v1864_v26  ;;  %v1877_v60 = vmul.f32 %v1855_v11, %v1832_v58  ;;  %10393 = vst [vmem:[#allocation55_spill] sm:$0xff] %v8004_v50  ;;  %v8007_v26 = vld [vmem:[#allocation9 + $0x28] sm:$0xff]  ;;  %v8011_v58 = vld [vmem:[#allocation9 + $0x20] sm:$0xff] }
 0x4ca   :  { %10394 = vst [vmem:[#allocation56_spill] sm:$0xff] %v8007_v26 }
 0x4cb   :  { %v1866_v57 = vadd.f32 %v6137_v25, %v1865_v16  ;;  %v1878_v51 = vadd.f32 %v1877_v60, %v1299_v47  ;;  %v7956_v16 = vpop.f32.mrf.mxu0  ;;  %v7991_v60 = vld [vmem:[#allocation9 + $0x58] sm:$0xff]  ;;  %10395 = vst [vmem:[#allocation57_spill] sm:$0xff] %v8011_v58  ;;  %v8018_v47 = vld [vmem:[#allocation9 + $0x8] sm:$0xff] }
 0x4cc   :  { %10396 = vst [vmem:[#allocation58_spill] sm:$0xff] %v8014_v54 }
 0x4cd   :  { %v1870_v30 = vsel %vm1869_vm0, %v6137_v25, %v1866_v57  ;;  %6138 = vtanh.f32 %v1878_v51  ;;  %v7986_v57 = vld [vmem:[#allocation9 + $0x70] sm:$0xff]  ;;  %10397 = vst [vmem:[#allocation59_spill] sm:$0xff] %v8018_v47 }
 0x4ce   :  { %v1875_v18 = vsel %vm1872_vm1, %v1874_v35, %v1870_v30 }
 0x4cf   :  { %v1880_v37 = vsub.f32 1.0, %v1875_v18  ;;  %v1882_v0 = vmul.f32 %v1875_v18, %v7854_v1 }
 0x4d3   :  { %v6139_v41 = vpop.eup %6138  ;;  %v7973_v51 = vpop.f32.mrf.mxu0 }
 0x4d4   :  { %v1881_v44 = vmul.f32 %v6139_v41, %v1880_v37  ;;  %10390 = vst [vmem:[#allocation17_spill] sm:$0xff] %v7973_v51  ;;  %v10407_v51 = vld [vmem:[#allocation34_spill] sm:$0xff] }
 0x4d6   :  { %v7942_v14 = vadd.f32 %v1882_v0, %v1881_v44 }
 0x4d8   :  { %10389 = vst [vmem:[#allocation16_spill] sm:$0xff] %v7942_v14  ;;  %1901 = vmatmul.f32.vlgmr.msrb.gmra.mxu0 %v7942_v14  ;;  %1921 = vmatmul.f32.vlgmr.msra.gmra.mxu1 %v7942_v14 }
 0x4d9   :  { %1941 = vmatmul.f32.vlgmr.msra.gmra.mxu2 %v7942_v14  ;;  %2147 = vmatpush.msrb.mxu0 %v7782_v39 }
 0x4da   :  { %2218 = vmatpush.msra.mxu1 %v7685_v59  ;;  %2238 = vmatpush.msra.mxu2 %v7779_v5 }
 0x4db   :  { %2148 = vmatpush.msrb.mxu0 %v7789_v52  ;;  %v7998_v25 = vpop.f32.mrf.mxu0 }
 0x4dc   :  { %2219 = vmatpush.msra.mxu1 %v7690_v15  ;;  %2239 = vmatpush.msra.mxu2 %v7786_v62  ;;  %10391 = vst [vmem:[#allocation18_spill] sm:$0xff] %v7998_v25 }
 0x4dd   :  { %2149 = vmatpush.msrb.mxu0 %v7796_v34 }
 0x4de   :  { %2220 = vmatpush.msra.mxu1 %v7695_v7  ;;  %2240 = vmatpush.msra.mxu2 %v7793_v9 }
 0x4df   :  { %2150 = vmatpush.msrb.mxu0 %v7868_v27 }
 0x4e0   :  { %2221 = vmatpush.msra.mxu1 %v7700_v10  ;;  %2241 = vmatpush.msra.mxu2 %v7800_v28 }
 0x4e1   :  { %2151 = vmatpush.msrb.mxu0 %v7873_v24 }
 0x4e2   :  { %2222 = vmatpush.msra.mxu1 %v7705_v46  ;;  %2242 = vmatpush.msra.mxu2 %v7805_v4 }
 0x4e3   :  { %2152 = vmatpush.msrb.mxu0 %v7878_v17  ;;  %v8021_v11 = vpop.f32.mrf.mxu0 }
 0x4e4   :  { %2223 = vmatpush.msra.mxu1 %v7710_v55  ;;  %2243 = vmatpush.msra.mxu2 %v7810_v31  ;;  %10398 = vst [vmem:[#allocation60_spill] sm:$0xff] %v8021_v11  ;;  %v10408_v11 = vld [vmem:[#allocation19_spill] sm:$0xff] }
 0x4e5   :  { %2153 = vmatpush.msrb.mxu0 %v7883_v22 }
 0x4e6   :  { %2224 = vmatpush.msra.mxu1 %v7715_v63  ;;  %2244 = vmatpush.msra.mxu2 %v7887_v33 }
 0x4e7   :  { %2154 = vmatpush.msrb.mxu0 %v7890_v19 }
 0x4e8   :  { %2225 = vmatpush.msra.mxu1 %v7720_v12  ;;  %2245 = vmatpush.msra.mxu2 %v7894_v29 }
 0x4e9   :  { %2155 = vmatpush.msrb.mxu0 %v7897_v21 }
 0x4ea   :  { %2226 = vmatpush.msra.mxu1 %v7725_v6  ;;  %2246 = vmatpush.msra.mxu2 %v7901_v40 }
 0x4eb   :  { %2156 = vmatpush.msrb.mxu0 %v7904_v49  ;;  %v8023_v56 = vpop.f32.mrf.mxu0 }
 0x4ec   :  { %2227 = vmatpush.msra.mxu1 %v7730_v32  ;;  %2247 = vmatpush.msra.mxu2 %v7908_v3  ;;  %10399 = vst [vmem:[#allocation61_spill] sm:$0xff] %v8023_v56  ;;  %v10409_v56 = vld [vmem:[#allocation44_spill] sm:$0xff] }
 0x4ed   :  { %2157 = vmatpush.msrb.mxu0 %v7981_v13 }
 0x4ee   :  { %2228 = vmatpush.msra.mxu1 %v7735_v8  ;;  %2248 = vmatpush.msra.mxu2 %v7913_v23 }
 0x4ef   :  { %2158 = vmatpush.msrb.mxu0 %v7986_v57 }
 0x4f0   :  { %2229 = vmatpush.msra.mxu1 %v7740_v2  ;;  %2249 = vmatpush.msra.mxu2 %v7918_v36 }
 0x4f1   :  { %2159 = vmatpush.msrb.mxu0 %v7991_v60 }
 0x4f2   :  { %2230 = vmatpush.msra.mxu1 %v7745_v45  ;;  %2250 = vmatpush.msra.mxu2 %v7995_v48 }
 0x4f3   :  { %2160 = vmatpush.msrb.mxu0 %v8000_v20  ;;  %v8025_v35 = vpop.f32.mrf.mxu0 }
 0x4f4   :  { %2231 = vmatpush.msra.mxu1 %v7750_v42  ;;  %2251 = vmatpush.msra.mxu2 %v8004_v50  ;;  %10400 = vst [vmem:[#allocation62_spill] sm:$0xff] %v8025_v35 }
 0x4f5   :  { %2161 = vmatpush.msrb.mxu0 %v8007_v26 }
 0x4f6   :  { %2232 = vmatpush.msra.mxu1 %v7755_v43  ;;  %2252 = vmatpush.msra.mxu2 %v8011_v58  ;;  %v10412_v58 = vld [vmem:[#allocation45_spill] sm:$0xff] }
 0x4f7   :  { %2162 = vmatpush.msrb.mxu0 %v8014_v54  ;;  %v10411_v54 = vld [vmem:[#allocation35_spill] sm:$0xff] }
 0x4f8   :  { %2233 = vmatpush.msra.mxu1 %v10378_v38  ;;  %2253 = vmatpush.msra.mxu2 %v8018_v47  ;;  %v1172_v47 = vadd.f32 %v10408_v11, %v10407_v51  ;;  %v10410_v38 = vld [vmem:[#allocation20_spill] sm:$0xff] }
 0x4f9   :  { %v1237_v35 = vadd.f32 %v10410_v38, %v10409_v56 }
 0x4fb   :  { %v8027_v30 = vpop.f32.mrf.mxu0 }
 0x4fc   :  { %10401 = vst [vmem:[#allocation63_spill] sm:$0xff] %v8027_v30 }
 0x503   :  { %v8029_v18 = vpop.f32.mrf.mxu0 }
 0x504   :  { %10402 = vst [vmem:[#allocation64_spill] sm:$0xff] %v8029_v18 }
 0x50b   :  { %v8031_v37 = vpop.f32.mrf.mxu0 }
 0x50c   :  { %10403 = vst [vmem:[#allocation65_spill] sm:$0xff] %v8031_v37 }
 0x513   :  { %v8033_v41 = vpop.f32.mrf.mxu0 }
 0x514   :  { %10404 = vst [vmem:[#allocation66_spill] sm:$0xff] %v8033_v41 }
 0x51b   :  { %v8035_v44 = vpop.f32.mrf.mxu0 }
 0x51c   :  { %10405 = vst [vmem:[#allocation67_spill] sm:$0xff] %v8035_v44 }
 0x523   :  { %v8037_v0 = vpop.f32.mrf.mxu0 }
 0x524   :  { %10406 = vst [vmem:[#allocation68_spill] sm:$0xff] %v8037_v0 }
 0x555   :  { %v1902_v1 = vpop.f32.mrf.mxu0  ;;  %v1922_v25 = vpop.f32.mrf.mxu1 }
 0x556   :  { %v1903_v30 = vadd.f32 %v1902_v1, %v10411_v54  ;;  %v1923_v18 = vadd.f32 %v1922_v25, %v10412_v58 }
 0x558   :  { %v1948_v43 = vadd.f32 %v1903_v30, %v1172_v47  ;;  %v1968_v37 = vadd.f32 %v1923_v18, %v1237_v35 }
 0x55a   :  { %v6030_v26 = vmul.f32 -1.442695, %v1948_v43  ;;  %v6031_v41 = vmul.f32 -1.442695, %v1968_v37 }
 0x55c   :  { %6140 = vpow2.f32 %v6030_v26  ;;  %v1942_v35 = vpop.f32.mrf.mxu2 }
 0x55d   :  { %6142 = vpow2.f32 %v6031_v41  ;;  %v1943_v18 = vadd.f32 %v1942_v35, %v7674_v61 }
 0x562   :  { %v6141_v44 = vpop.eup %6140 }
 0x563   :  { %v6143_v0 = vpop.eup %6142  ;;  %v1952_v50 = vadd.f32 1.0, %v6141_v44 }
 0x564   :  { %v1972_v42 = vadd.f32 1.0, %v6143_v0 }
 0x565   :  { %6144 = vrcp.f32 %v1952_v50  ;;  %v1964_v54 = vand.u32 2147483648, %v1952_v50  ;;  %v1962_v47 = vand.u32 2147483647, %v1952_v50  ;;  %vm1958_vm3 = vweird.f32 %v1952_v50 }
 0x566   :  { %6146 = vrcp.f32 %v1972_v42  ;;  %v1984_v0 = vand.u32 2147483648, %v1972_v42  ;;  %vm1978_vm7 = vweird.f32 %v1972_v42 }
 0x567   :  { %v1965_v30 = vor.u32 1.1754944e-38, %v1964_v54  ;;  %vm1963_vm5 = vcmp.eq.f32.partialorder %v1962_v47, 8.507059e+37 }
 0x56b   :  { %v6145_v11 = vpop.eup %6144 }
 0x56c   :  { %v6147_v51 = vpop.eup %6146  ;;  %v1954_v20 = vmul.f32 %v6145_v11, %v1952_v50  ;;  %vm1959_vm2 = vweird.f32 %v6145_v11  ;;  %v1985_v50 = vor.u32 1.1754944e-38, %v1984_v0 }
 0x56d   :  { %v1974_v38 = vmul.f32 %v6147_v51, %v1972_v42  ;;  %vm1960_vm4 = vmor %vm1958_vm3, %vm1959_vm2  ;;  %vm1979_vm6 = vweird.f32 %v6147_v51 }
 0x56e   :  { %v1955_v56 = vsub.f32 1.0, %v1954_v20  ;;  %v1302_v20 = vadd.f32 %v7956_v16, %v7677_v53  ;;  %vm1980_vm8 = vmor %vm1978_vm7, %vm1979_vm6 }
 0x56f   :  { %v1975_v1 = vsub.f32 1.0, %v1974_v38  ;;  %v1982_v38 = vand.u32 2147483647, %v1972_v42 }
 0x570   :  { %v1956_v25 = vmul.f32 %v6145_v11, %v1955_v56 }
 0x571   :  { %v1976_v43 = vmul.f32 %v6147_v51, %v1975_v1  ;;  %vm1983_vm9 = vcmp.eq.f32.partialorder %v1982_v38, 8.507059e+37 }
 0x572   :  { %v1957_v26 = vadd.f32 %v6145_v11, %v1956_v25 }
 0x573   :  { %v1977_v44 = vadd.f32 %v6147_v51, %v1976_v43 }
 0x574   :  { %v1961_v37 = vsel %vm1960_vm4, %v6145_v11, %v1957_v26 }
 0x575   :  { %v1966_v41 = vsel %vm1963_vm5, %v1965_v30, %v1961_v37  ;;  %v1981_v25 = vsel %vm1980_vm8, %v6147_v51, %v1977_v44  ;;  %v10426_v37 = vld [vmem:[#allocation21_spill] sm:$0xff]  ;;  %v10427_v44 = vld [vmem:[#allocation35_spill] sm:$0xff] }
 0x576   :  { %v1988_v56 = vmul.f32 %v1966_v41, %v1943_v18  ;;  %v1986_v54 = vsel %vm1983_vm9, %v1985_v50, %v1981_v25  ;;  %v10425_v18 = vld [vmem:[#allocation34_spill] sm:$0xff] }
 0x577   :  { %v1991_v35 = vsub.f32 1.0, %v1986_v54  ;;  %v1993_v26 = vmul.f32 %v1986_v54, %v7942_v14  ;;  %v1175_v41 = vadd.f32 %v10426_v37, %v10425_v18 }
 0x578   :  { %v1989_v1 = vadd.f32 %v1988_v56, %v1302_v20 }
 0x57a   :  { %6148 = vtanh.f32 %v1989_v1 }
 0x580   :  { %v6149_v11 = vpop.eup %6148 }
 0x581   :  { %v1992_v47 = vmul.f32 %v6149_v11, %v1991_v35 }
 0x583   :  { %v8049_v43 = vadd.f32 %v1993_v26, %v1992_v47 }
 0x585   :  { %10413 = vst [vmem:[#allocation19_spill] sm:$0xff] %v8049_v43  ;;  %2012 = vmatmul.f32.vlgmr.msra.gmra.mxu3 %v8049_v43  ;;  %2032 = vmatmul.f32.vlgmr.msra.gmra.mxu0 %v8049_v43 }
 0x586   :  { %2052 = vmatmul.f32.vlgmr.msrb.gmra.mxu1 %v8049_v43  ;;  %2258 = vmatpush.msra.mxu3 %v7782_v39 }
 0x587   :  { %2329 = vmatpush.msra.mxu0 %v7685_v59  ;;  %2349 = vmatpush.msrb.mxu1 %v7779_v5  ;;  %v10414_v59 = vld [vmem:[#allocation54_spill] sm:$0xff] }
 0x588   :  { %2259 = vmatpush.msra.mxu3 %v7789_v52 }
 0x589   :  { %2330 = vmatpush.msra.mxu0 %v7690_v15  ;;  %2350 = vmatpush.msrb.mxu1 %v7786_v62  ;;  %v10415_v15 = vld [vmem:[#allocation50_spill] sm:$0xff] }
 0x58a   :  { %2260 = vmatpush.msra.mxu3 %v7796_v34 }
 0x58b   :  { %2331 = vmatpush.msra.mxu0 %v7695_v7  ;;  %2351 = vmatpush.msrb.mxu1 %v7793_v9  ;;  %v10416_v7 = vld [vmem:[#allocation55_spill] sm:$0xff] }
 0x58c   :  { %2261 = vmatpush.msra.mxu3 %v7868_v27 }
 0x58d   :  { %2332 = vmatpush.msra.mxu0 %v7700_v10  ;;  %2352 = vmatpush.msrb.mxu1 %v7800_v28  ;;  %v10417_v10 = vld [vmem:[#allocation56_spill] sm:$0xff] }
 0x58e   :  { %2262 = vmatpush.msra.mxu3 %v7873_v24 }
 0x58f   :  { %2333 = vmatpush.msra.mxu0 %v7705_v46  ;;  %2353 = vmatpush.msrb.mxu1 %v7805_v4  ;;  %v10418_v46 = vld [vmem:[#allocation51_spill] sm:$0xff] }
 0x590   :  { %2263 = vmatpush.msra.mxu3 %v7878_v17 }
 0x591   :  { %2334 = vmatpush.msra.mxu0 %v7710_v55  ;;  %2354 = vmatpush.msrb.mxu1 %v7810_v31  ;;  %v10419_v55 = vld [vmem:[#allocation57_spill] sm:$0xff] }
 0x592   :  { %2264 = vmatpush.msra.mxu3 %v7883_v22 }
 0x593   :  { %2335 = vmatpush.msra.mxu0 %v7715_v63  ;;  %2355 = vmatpush.msrb.mxu1 %v7887_v33  ;;  %v10420_v63 = vld [vmem:[#allocation58_spill] sm:$0xff] }
 0x594   :  { %2265 = vmatpush.msra.mxu3 %v7890_v19 }
 0x595   :  { %2336 = vmatpush.msra.mxu0 %v7720_v12  ;;  %2356 = vmatpush.msrb.mxu1 %v7894_v29  ;;  %v10421_v12 = vld [vmem:[#allocation52_spill] sm:$0xff] }
 0x596   :  { %2266 = vmatpush.msra.mxu3 %v7897_v21 }
 0x597   :  { %2337 = vmatpush.msra.mxu0 %v7725_v6  ;;  %2357 = vmatpush.msrb.mxu1 %v7901_v40  ;;  %v10422_v6 = vld [vmem:[#allocation59_spill] sm:$0xff] }
 0x598   :  { %2267 = vmatpush.msra.mxu3 %v7904_v49 }
 0x599   :  { %2338 = vmatpush.msra.mxu0 %v7730_v32  ;;  %2358 = vmatpush.msrb.mxu1 %v7908_v3 }
 0x59a   :  { %2268 = vmatpush.msra.mxu3 %v7981_v13 }
 0x59b   :  { %2339 = vmatpush.msra.mxu0 %v7735_v8  ;;  %2359 = vmatpush.msrb.mxu1 %v7913_v23  ;;  %v10423_v8 = vld [vmem:[#allocation44_spill] sm:$0xff] }
 0x59c   :  { %2269 = vmatpush.msra.mxu3 %v7986_v57 }
 0x59d   :  { %2340 = vmatpush.msra.mxu0 %v7740_v2  ;;  %2360 = vmatpush.msrb.mxu1 %v7918_v36  ;;  %v10424_v2 = vld [vmem:[#allocation22_spill] sm:$0xff] }
 0x59e   :  { %2270 = vmatpush.msra.mxu3 %v7991_v60 }
 0x59f   :  { %2341 = vmatpush.msra.mxu0 %v7745_v45  ;;  %2361 = vmatpush.msrb.mxu1 %v7995_v48  ;;  %v1240_v45 = vadd.f32 %v10424_v2, %v10423_v8 }
 0x5a0   :  { %2271 = vmatpush.msra.mxu3 %v10414_v59 }
 0x5a1   :  { %2342 = vmatpush.msra.mxu0 %v10415_v15  ;;  %2362 = vmatpush.msrb.mxu1 %v10416_v7 }
 0x5a2   :  { %2272 = vmatpush.msra.mxu3 %v10417_v10 }
 0x5a3   :  { %2343 = vmatpush.msra.mxu0 %v10418_v46  ;;  %2363 = vmatpush.msrb.mxu1 %v10419_v55 }
 0x5a4   :  { %2273 = vmatpush.msra.mxu3 %v10420_v63 }
 0x5a5   :  { %2344 = vmatpush.msra.mxu0 %v10421_v12  ;;  %2364 = vmatpush.msrb.mxu1 %v10422_v6 }
 0x602   :  { %v2033_v32 = vpop.f32.mrf.mxu0 }
 0x603   :  { %v2034_v42 = vadd.f32 %v2033_v32, %v10412_v58 }
 0x605   :  { %v2079_v16 = vadd.f32 %v2034_v42, %v1240_v45  ;;  %v2053_v45 = vpop.f32.mrf.mxu1 }
 0x607   :  { %v6033_v51 = vmul.f32 -1.442695, %v2079_v16 }
 0x608   :  { %v2013_v30 = vpop.f32.mrf.mxu3 }
 0x609   :  { %6150 = vpow2.f32 %v6033_v51  ;;  %v2014_v20 = vadd.f32 %v2013_v30, %v10427_v44  ;;  %v2054_v51 = vadd.f32 %v2053_v45, %v7674_v61  ;;  %v8178_v45 = vld [vmem:[#allocation9 + $0x48] sm:$0xff] }
 0x60b   :  { %v2059_v0 = vadd.f32 %v2014_v20, %v1175_v41  ;;  %v10428_v20 = vld [vmem:[#allocation17_spill] sm:$0xff] }
 0x60d   :  { %v6032_v56 = vmul.f32 -1.442695, %v2059_v0  ;;  %v1305_v0 = vadd.f32 %v10428_v20, %v7677_v53 }
 0x60f   :  { %v6151_v38 = vpop.eup %6150  ;;  %6152 = vpow2.f32 %v6032_v56 }
 0x610   :  { %v2083_v1 = vadd.f32 1.0, %v6151_v38 }
 0x612   :  { %6154 = vrcp.f32 %v2083_v1  ;;  %v2095_v56 = vand.u32 2147483648, %v2083_v1  ;;  %vm2089_vm15 = vweird.f32 %v2083_v1 }
 0x615   :  { %v6153_v25 = vpop.eup %6152 }
 0x616   :  { %v2063_v50 = vadd.f32 1.0, %v6153_v25  ;;  %v2093_v25 = vand.u32 2147483647, %v2083_v1 }
 0x618   :  { %6156 = vrcp.f32 %v2063_v50  ;;  %v6155_v54 = vpop.eup %6154  ;;  %v2075_v46 = vand.u32 2147483648, %v2063_v50  ;;  %v2073_v32 = vand.u32 2147483647, %v2063_v50  ;;  %vm2069_vm11 = vweird.f32 %v2063_v50 }
 0x619   :  { %v2085_v35 = vmul.f32 %v6155_v54, %v2083_v1  ;;  %vm2090_vm14 = vweird.f32 %v6155_v54  ;;  %vm2094_vm1 = vcmp.eq.f32.partialorder %v2093_v25, 8.507059e+37  ;;  %v8118_v1 = vld [vmem:[#allocation9 + $0x168] sm:$0xff] }
 0x61a   :  { %v2076_v16 = vor.u32 1.1754944e-38, %v2075_v46  ;;  %vm2074_vm13 = vcmp.eq.f32.partialorder %v2073_v32, 8.507059e+37  ;;  %vm2091_vm0 = vmor %vm2089_vm15, %vm2090_vm14 }
 0x61b   :  { %v2086_v26 = vsub.f32 1.0, %v2085_v35 }
 0x61d   :  { %v2087_v2 = vmul.f32 %v6155_v54, %v2086_v26 }
 0x61e   :  { %v6157_v11 = vpop.eup %6156 }
 0x61f   :  { %v2065_v47 = vmul.f32 %v6157_v11, %v2063_v50  ;;  %vm2070_vm10 = vweird.f32 %v6157_v11  ;;  %v2088_v37 = vadd.f32 %v6155_v54, %v2087_v2  ;;  %v2096_v50 = vor.u32 1.1754944e-38, %v2095_v56  ;;  %v8128_v2 = vld [vmem:[#allocation9 + $0x138] sm:$0xff] }
 0x620   :  { %vm2071_vm12 = vmor %vm2069_vm11, %vm2070_vm10 }
 0x621   :  { %v2066_v15 = vsub.f32 1.0, %v2065_v47  ;;  %v2092_v47 = vsel %vm2091_vm0, %v6155_v54, %v2088_v37  ;;  %v8123_v54 = vld [vmem:[#allocation9 + $0x150] sm:$0xff] }
 0x622   :  { %v2097_v26 = vsel %vm2094_vm1, %v2096_v50, %v2092_v47 }
 0x623   :  { %v2067_v12 = vmul.f32 %v6157_v11, %v2066_v15  ;;  %v2102_v15 = vsub.f32 1.0, %v2097_v26  ;;  %v2104_v46 = vmul.f32 %v2097_v26, %v8049_v43 }
 0x625   :  { %v2068_v42 = vadd.f32 %v6157_v11, %v2067_v12 }
 0x627   :  { %v2072_v30 = vsel %vm2071_vm12, %v6157_v11, %v2068_v42  ;;  %v8183_v42 = vld [vmem:[#allocation9 + $0x30] sm:$0xff] }
 0x628   :  { %v2077_v41 = vsel %vm2074_vm13, %v2076_v16, %v2072_v30  ;;  %10430 = vst [vmem:[#allocation54_spill] sm:$0xff] %v8183_v42  ;;  %v8188_v16 = vld [vmem:[#allocation9 + $0x18] sm:$0xff] }
 0x629   :  { %v2099_v38 = vmul.f32 %v2077_v41, %v2054_v51  ;;  %10431 = vst [vmem:[#allocation50_spill] sm:$0xff] %v8188_v16  ;;  %v8193_v51 = vld [vmem:[#allocation9] sm:$0xff] }
 0x62a   :  { %10432 = vst [vmem:[#allocation55_spill] sm:$0xff] %v8193_v51  ;;  %v10433_v41 = vld [vmem:[#allocation23_spill] sm:$0xff] }
 0x62b   :  { %v2100_v35 = vadd.f32 %v2099_v38, %v1305_v0  ;;  %v1178_v20 = vadd.f32 %v10433_v41, %v10425_v18  ;;  %v10434_v0 = vld [vmem:[#allocation24_spill] sm:$0xff] }
 0x62c   :  { %v1243_v56 = vadd.f32 %v10434_v0, %v10423_v8 }
 0x62d   :  { %6158 = vtanh.f32 %v2100_v35 }
 0x633   :  { %v6159_v11 = vpop.eup %6158 }
 0x634   :  { %v2103_v12 = vmul.f32 %v6159_v11, %v2102_v15 }
 0x636   :  { %v8112_v32 = vadd.f32 %v2104_v46, %v2103_v12 }
 0x638   :  { %10429 = vst [vmem:[#allocation20_spill] sm:$0xff] %v8112_v32  ;;  %2123 = vmatmul.f32.vlgmr.msrb.gmra.mxu2 %v8112_v32  ;;  %2143 = vmatmul.f32.vlgmr.msrb.gmra.mxu3 %v8112_v32 }
 0x639   :  { %2163 = vmatmul.f32.vlgmr.msrb.gmra.mxu0 %v8112_v32  ;;  %2369 = vmatpush.msrb.mxu2 %v7782_v39  ;;  %v8133_v39 = vld [vmem:[#allocation9 + $0x120] sm:$0xff] }
 0x63a   :  { %2440 = vmatpush.msrb.mxu3 %v8118_v1  ;;  %2460 = vmatpush.msrb.mxu0 %v7779_v5  ;;  %v8138_v5 = vld [vmem:[#allocation9 + $0x108] sm:$0xff] }
 0x63b   :  { %2370 = vmatpush.msrb.mxu2 %v7789_v52  ;;  %v8148_v52 = vld [vmem:[#allocation9 + $0xd8] sm:$0xff] }
 0x63c   :  { %2441 = vmatpush.msrb.mxu3 %v8123_v54  ;;  %2461 = vmatpush.msrb.mxu0 %v7786_v62  ;;  %v8143_v62 = vld [vmem:[#allocation9 + $0xf0] sm:$0xff] }
 0x63d   :  { %2371 = vmatpush.msrb.mxu2 %v7796_v34  ;;  %v8158_v34 = vld [vmem:[#allocation9 + $0xa8] sm:$0xff] }
 0x63e   :  { %2442 = vmatpush.msrb.mxu3 %v8128_v2  ;;  %2462 = vmatpush.msrb.mxu0 %v7793_v9  ;;  %v8153_v9 = vld [vmem:[#allocation9 + $0xc0] sm:$0xff] }
 0x63f   :  { %2372 = vmatpush.msrb.mxu2 %v7868_v27 }
 0x640   :  { %2443 = vmatpush.msrb.mxu3 %v8133_v39  ;;  %2463 = vmatpush.msrb.mxu0 %v7800_v28  ;;  %v8163_v28 = vld [vmem:[#allocation9 + $0x90] sm:$0xff] }
 0x641   :  { %2373 = vmatpush.msrb.mxu2 %v7873_v24 }
 0x642   :  { %2444 = vmatpush.msrb.mxu3 %v8138_v5  ;;  %2464 = vmatpush.msrb.mxu0 %v7805_v4  ;;  %v8168_v4 = vld [vmem:[#allocation9 + $0x78] sm:$0xff] }
 0x643   :  { %2374 = vmatpush.msrb.mxu2 %v7878_v17 }
 0x644   :  { %2445 = vmatpush.msrb.mxu3 %v8143_v62  ;;  %2465 = vmatpush.msrb.mxu0 %v7810_v31  ;;  %v8173_v31 = vld [vmem:[#allocation9 + $0x60] sm:$0xff] }
 0x645   :  { %2375 = vmatpush.msrb.mxu2 %v7883_v22 }
 0x646   :  { %2446 = vmatpush.msrb.mxu3 %v8148_v52  ;;  %2466 = vmatpush.msrb.mxu0 %v7887_v33 }
 0x647   :  { %2376 = vmatpush.msrb.mxu2 %v7890_v19 }
 0x648   :  { %2447 = vmatpush.msrb.mxu3 %v8153_v9  ;;  %2467 = vmatpush.msrb.mxu0 %v7894_v29 }
 0x649   :  { %2377 = vmatpush.msrb.mxu2 %v7897_v21 }
 0x64a   :  { %2448 = vmatpush.msrb.mxu3 %v8158_v34  ;;  %2468 = vmatpush.msrb.mxu0 %v7901_v40 }
 0x64b   :  { %2378 = vmatpush.msrb.mxu2 %v7904_v49 }
 0x64c   :  { %2449 = vmatpush.msrb.mxu3 %v8163_v28  ;;  %2469 = vmatpush.msrb.mxu0 %v7908_v3 }
 0x64d   :  { %2379 = vmatpush.msrb.mxu2 %v7981_v13 }
 0x64e   :  { %2450 = vmatpush.msrb.mxu3 %v8168_v4  ;;  %2470 = vmatpush.msrb.mxu0 %v7913_v23 }
 0x64f   :  { %2380 = vmatpush.msrb.mxu2 %v7986_v57 }
 0x650   :  { %2451 = vmatpush.msrb.mxu3 %v8173_v31  ;;  %2471 = vmatpush.msrb.mxu0 %v7918_v36 }
 0x651   :  { %2381 = vmatpush.msrb.mxu2 %v7991_v60 }
 0x652   :  { %2452 = vmatpush.msrb.mxu3 %v8178_v45  ;;  %2472 = vmatpush.msrb.mxu0 %v7995_v48 }
 0x653   :  { %2382 = vmatpush.msrb.mxu2 %v10414_v59 }
 0x654   :  { %2453 = vmatpush.msrb.mxu3 %v8183_v42  ;;  %2473 = vmatpush.msrb.mxu0 %v10416_v7 }
 0x655   :  { %2383 = vmatpush.msrb.mxu2 %v10417_v10 }
 0x656   :  { %2454 = vmatpush.msrb.mxu3 %v8188_v16  ;;  %2474 = vmatpush.msrb.mxu0 %v10419_v55 }
 0x657   :  { %2384 = vmatpush.msrb.mxu2 %v10420_v63 }
 0x658   :  { %2455 = vmatpush.msrb.mxu3 %v8193_v51  ;;  %2475 = vmatpush.msrb.mxu0 %v10422_v6 }
 0x6bb   :  { %v2124_v30 = vpop.f32.mrf.mxu2  ;;  %v2144_v37 = vpop.f32.mrf.mxu3 }
 0x6bc   :  { %v2125_v38 = vadd.f32 %v2124_v30, %v10427_v44  ;;  %v2145_v25 = vadd.f32 %v2144_v37, %v10412_v58 }
 0x6be   :  { %v2170_v35 = vadd.f32 %v2125_v38, %v1178_v20  ;;  %v2190_v47 = vadd.f32 %v2145_v25, %v1243_v56  ;;  %v2164_v56 = vpop.f32.mrf.mxu0 }
 0x6c0   :  { %v6034_v50 = vmul.f32 -1.442695, %v2170_v35  ;;  %v6035_v26 = vmul.f32 -1.442695, %v2190_v47  ;;  %v2165_v47 = vadd.f32 %v2164_v56, %v7674_v61 }
 0x6c2   :  { %6160 = vpow2.f32 %v6034_v50 }
 0x6c3   :  { %6162 = vpow2.f32 %v6035_v26 }
 0x6c8   :  { %v6161_v15 = vpop.eup %6160 }
 0x6c9   :  { %v6163_v11 = vpop.eup %6162  ;;  %v2174_v46 = vadd.f32 1.0, %v6161_v15 }
 0x6ca   :  { %v2194_v12 = vadd.f32 1.0, %v6163_v11 }
 0x6cb   :  { %6164 = vrcp.f32 %v2174_v46  ;;  %v2186_v30 = vand.u32 2147483648, %v2174_v46  ;;  %v2184_v20 = vand.u32 2147483647, %v2174_v46  ;;  %vm2180_vm3 = vweird.f32 %v2174_v46 }
 0x6cc   :  { %6166 = vrcp.f32 %v2194_v12  ;;  %vm2200_vm7 = vweird.f32 %v2194_v12  ;;  %v2204_v58 = vand.u32 2147483647, %v2194_v12 }
 0x6cd   :  { %v2187_v35 = vor.u32 1.1754944e-38, %v2186_v30  ;;  %vm2185_vm5 = vcmp.eq.f32.partialorder %v2184_v20, 8.507059e+37 }
 0x6ce   :  { %vm2205_vm9 = vcmp.eq.f32.partialorder %v2204_v58, 8.507059e+37  ;;  %v8216_v58 = vld [vmem:[#allocation9 + $0x170] sm:$0xff] }
 0x6d1   :  { %v6165_v41 = vpop.eup %6164 }
 0x6d2   :  { %v6167_v43 = vpop.eup %6166  ;;  %v2176_v14 = vmul.f32 %v6165_v41, %v2174_v46  ;;  %vm2181_vm2 = vweird.f32 %v6165_v41 }
 0x6d3   :  { %v2196_v0 = vmul.f32 %v6167_v43, %v2194_v12  ;;  %vm2182_vm4 = vmor %vm2180_vm3, %vm2181_vm2  ;;  %vm2201_vm6 = vweird.f32 %v6167_v43 }
 0x6d4   :  { %v2177_v8 = vsub.f32 1.0, %v2176_v14  ;;  %v10435_v14 = vld [vmem:[#allocation18_spill] sm:$0xff]  ;;  %vm2202_vm8 = vmor %vm2200_vm7, %vm2201_vm6 }
 0x6d5   :  { %v2197_v44 = vsub.f32 1.0, %v2196_v0  ;;  %v1308_v11 = vadd.f32 %v10435_v14, %v7677_v53 }
 0x6d6   :  { %v2178_v37 = vmul.f32 %v6165_v41, %v2177_v8  ;;  %v2206_v8 = vand.u32 2147483648, %v2194_v12  ;;  %v8212_v12 = vld [vmem:[#allocation9 + $0x178] sm:$0xff] }
 0x6d7   :  { %v2198_v38 = vmul.f32 %v6167_v43, %v2197_v44 }
 0x6d8   :  { %v2179_v25 = vadd.f32 %v6165_v41, %v2178_v37  ;;  %v2207_v46 = vor.u32 1.1754944e-38, %v2206_v8 }
 0x6d9   :  { %v2199_v15 = vadd.f32 %v6167_v43, %v2198_v38 }
 0x6da   :  { %v2183_v50 = vsel %vm2182_vm4, %v6165_v41, %v2179_v25  ;;  %v8226_v25 = vld [vmem:[#allocation9 + $0x148] sm:$0xff] }
 0x6db   :  { %v2188_v26 = vsel %vm2185_vm5, %v2187_v35, %v2183_v50  ;;  %v2203_v44 = vsel %vm2202_vm8, %v6167_v43, %v2199_v15  ;;  %v8219_v43 = vld [vmem:[#allocation9 + $0x160] sm:$0xff]  ;;  %v8240_v50 = vld [vmem:[#allocation9 + $0x110] sm:$0xff] }
 0x6dc   :  { %v2210_v0 = vmul.f32 %v2188_v26, %v2165_v47  ;;  %v2208_v30 = vsel %vm2205_vm9, %v2207_v46, %v2203_v44  ;;  %v8230_v35 = vld [vmem:[#allocation9 + $0x140] sm:$0xff]  ;;  %v8235_v47 = vld [vmem:[#allocation9 + $0x128] sm:$0xff]  ;;  %v8245_v26 = vld [vmem:[#allocation9 + $0xf8] sm:$0xff] }
 0x6dd   :  { %v2213_v37 = vsub.f32 1.0, %v2208_v30  ;;  %v2215_v56 = vmul.f32 %v2208_v30, %v8112_v32 }
 0x6de   :  { %v2211_v18 = vadd.f32 %v2210_v0, %v1308_v11 }
 0x6e0   :  { %6168 = vtanh.f32 %v2211_v18  ;;  %v8223_v18 = vld [vmem:[#allocation9 + $0x158] sm:$0xff] }
 0x6e6   :  { %v6169_v41 = vpop.eup %6168 }
 0x6e7   :  { %v2214_v20 = vmul.f32 %v6169_v41, %v2213_v37 }
 0x6e9   :  { %v8207_v38 = vadd.f32 %v2215_v56, %v2214_v20 }
 0x6eb   :  { %10436 = vst [vmem:[#allocation56_spill] sm:$0xff] %v8207_v38  ;;  %2234 = vmatmul.f32.vlgmr.msra.gmra.mxu1 %v8207_v38  ;;  %2254 = vmatmul.f32.vlgmr.msra.gmra.mxu2 %v8207_v38 }
 0x6ec   :  { %2274 = vmatmul.f32.vlgmr.msra.gmra.mxu3 %v8207_v38  ;;  %2480 = vmatpush.msra.mxu1 %v8212_v12 }
 0x6ed   :  { %2551 = vmatpush.msra.mxu2 %v8118_v1  ;;  %2571 = vmatpush.msra.mxu3 %v8216_v58 }
 0x6ee   :  { %2481 = vmatpush.msra.mxu1 %v8219_v43 }
 0x6ef   :  { %2552 = vmatpush.msra.mxu2 %v8123_v54  ;;  %2572 = vmatpush.msra.mxu3 %v8223_v18 }
 0x6f0   :  { %2482 = vmatpush.msra.mxu1 %v8226_v25 }
 0x6f1   :  { %2553 = vmatpush.msra.mxu2 %v8128_v2  ;;  %2573 = vmatpush.msra.mxu3 %v8230_v35 }
 0x6f2   :  { %2483 = vmatpush.msra.mxu1 %v7868_v27 }
 0x6f3   :  { %2554 = vmatpush.msra.mxu2 %v8133_v39  ;;  %2574 = vmatpush.msra.mxu3 %v8235_v47 }
 0x6f4   :  { %2484 = vmatpush.msra.mxu1 %v7873_v24  ;;  %v10437_v24 = vld [vmem:[#allocation34_spill] sm:$0xff] }
 0x6f5   :  { %2555 = vmatpush.msra.mxu2 %v8138_v5  ;;  %2575 = vmatpush.msra.mxu3 %v8240_v50 }
 0x6f6   :  { %2485 = vmatpush.msra.mxu1 %v7878_v17  ;;  %v10438_v17 = vld [vmem:[#allocation25_spill] sm:$0xff] }
 0x6f7   :  { %2556 = vmatpush.msra.mxu2 %v8143_v62  ;;  %2576 = vmatpush.msra.mxu3 %v8245_v26 }
 0x6f8   :  { %2486 = vmatpush.msra.mxu1 %v7883_v22  ;;  %v1181_v22 = vadd.f32 %v10438_v17, %v10437_v24 }
 0x6f9   :  { %2557 = vmatpush.msra.mxu2 %v8148_v52  ;;  %2577 = vmatpush.msra.mxu3 %v7887_v33  ;;  %v10439_v33 = vld [vmem:[#allocation35_spill] sm:$0xff] }
 0x6fa   :  { %2487 = vmatpush.msra.mxu1 %v7890_v19 }
 0x6fb   :  { %2558 = vmatpush.msra.mxu2 %v8153_v9  ;;  %2578 = vmatpush.msra.mxu3 %v7894_v29 }
 0x6fc   :  { %2488 = vmatpush.msra.mxu1 %v7897_v21 }
 0x6fd   :  { %2559 = vmatpush.msra.mxu2 %v8158_v34  ;;  %2579 = vmatpush.msra.mxu3 %v7901_v40 }
 0x6fe   :  { %2489 = vmatpush.msra.mxu1 %v7904_v49  ;;  %v10440_v49 = vld [vmem:[#allocation44_spill] sm:$0xff] }
 0x6ff   :  { %2560 = vmatpush.msra.mxu2 %v8163_v28  ;;  %2580 = vmatpush.msra.mxu3 %v7908_v3  ;;  %v10441_v3 = vld [vmem:[#allocation26_spill] sm:$0xff] }
 0x700   :  { %2490 = vmatpush.msra.mxu1 %v7981_v13 }
 0x701   :  { %2561 = vmatpush.msra.mxu2 %v8168_v4  ;;  %2581 = vmatpush.msra.mxu3 %v7913_v23  ;;  %v1246_v23 = vadd.f32 %v10441_v3, %v10440_v49 }
 0x702   :  { %2491 = vmatpush.msra.mxu1 %v7986_v57 }
 0x703   :  { %2562 = vmatpush.msra.mxu2 %v8173_v31  ;;  %2582 = vmatpush.msra.mxu3 %v7918_v36  ;;  %v10442_v36 = vld [vmem:[#allocation45_spill] sm:$0xff] }
 0x704   :  { %2492 = vmatpush.msra.mxu1 %v7991_v60 }
 0x705   :  { %2563 = vmatpush.msra.mxu2 %v8178_v45  ;;  %2583 = vmatpush.msra.mxu3 %v7995_v48 }
 0x706   :  { %2493 = vmatpush.msra.mxu1 %v10414_v59 }
 0x707   :  { %2564 = vmatpush.msra.mxu2 %v8183_v42  ;;  %2584 = vmatpush.msra.mxu3 %v10416_v7 }
 0x708   :  { %2494 = vmatpush.msra.mxu1 %v10417_v10 }
 0x709   :  { %2565 = vmatpush.msra.mxu2 %v8188_v16  ;;  %2585 = vmatpush.msra.mxu3 %v10419_v55 }
 0x70a   :  { %2495 = vmatpush.msra.mxu1 %v10420_v63 }
 0x70b   :  { %2566 = vmatpush.msra.mxu2 %v8193_v51  ;;  %2586 = vmatpush.msra.mxu3 %v10422_v6 }
 0x768   :  { %v2235_v27 = vpop.f32.mrf.mxu1 }
 0x769   :  { %v2236_v19 = vadd.f32 %v2235_v27, %v10439_v33 }
 0x76b   :  { %v2281_v29 = vadd.f32 %v2236_v19, %v1181_v22 }
 0x76d   :  { %v6036_v21 = vmul.f32 -1.442695, %v2281_v29 }
 0x76e   :  { %v2255_v40 = vpop.f32.mrf.mxu2 }
 0x76f   :  { %6170 = vpow2.f32 %v6036_v21  ;;  %v2256_v15 = vadd.f32 %v2255_v40, %v10442_v36  ;;  %v2275_v22 = vpop.f32.mrf.mxu3 }
 0x770   :  { %v2276_v3 = vadd.f32 %v2275_v22, %v7674_v61 }
 0x771   :  { %v2301_v14 = vadd.f32 %v2256_v15, %v1246_v23  ;;  %v10443_v15 = vld [vmem:[#allocation60_spill] sm:$0xff] }
 0x773   :  { %v6037_v11 = vmul.f32 -1.442695, %v2301_v14  ;;  %v1311_v14 = vadd.f32 %v10443_v15, %v7677_v53  ;;  %v8328_v15 = vld [vmem:[#allocation9 + $0xc8] sm:$0xff] }
 0x775   :  { %v6171_v0 = vpop.eup %6170  ;;  %6172 = vpow2.f32 %v6037_v11 }
 0x776   :  { %v2285_v8 = vadd.f32 1.0, %v6171_v0 }
 0x778   :  { %6174 = vrcp.f32 %v2285_v8  ;;  %v2297_v20 = vand.u32 2147483648, %v2285_v8  ;;  %v2295_v27 = vand.u32 2147483647, %v2285_v8  ;;  %vm2291_vm11 = vweird.f32 %v2285_v8 }
 0x77a   :  { %v2298_v21 = vor.u32 1.1754944e-38, %v2297_v20  ;;  %vm2296_vm13 = vcmp.eq.f32.partialorder %v2295_v27, 8.507059e+37 }
 0x77b   :  { %v6173_v44 = vpop.eup %6172 }
 0x77c   :  { %v2305_v46 = vadd.f32 1.0, %v6173_v44 }
 0x77e   :  { %v6175_v30 = vpop.eup %6174  ;;  %6176 = vrcp.f32 %v2305_v46  ;;  %v2317_v44 = vand.u32 2147483648, %v2305_v46  ;;  %vm2311_vm15 = vweird.f32 %v2305_v46 }
 0x77f   :  { %v2287_v37 = vmul.f32 %v6175_v30, %v2285_v8  ;;  %vm2292_vm10 = vweird.f32 %v6175_v30 }
 0x780   :  { %vm2293_vm12 = vmor %vm2291_vm11, %vm2292_vm10  ;;  %v2318_v8 = vor.u32 1.1754944e-38, %v2317_v44  ;;  %v8342_v44 = vld [vmem:[#allocation9 + $0x98] sm:$0xff] }
 0x781   :  { %v2288_v41 = vsub.f32 1.0, %v2287_v37 }
 0x783   :  { %v2289_v56 = vmul.f32 %v6175_v30, %v2288_v41  ;;  %v2315_v41 = vand.u32 2147483647, %v2305_v46 }
 0x784   :  { %v6177_v17 = vpop.eup %6176 }
 0x785   :  { %v2307_v19 = vmul.f32 %v6177_v17, %v2305_v46  ;;  %v2290_v29 = vadd.f32 %v6175_v30, %v2289_v56  ;;  %vm2312_vm14 = vweird.f32 %v6177_v17  ;;  %vm2316_vm1 = vcmp.eq.f32.partialorder %v2315_v41, 8.507059e+37  ;;  %v8307_v46 = vld [vmem:[#allocation9 + $0x118] sm:$0xff]  ;;  %v8352_v41 = vld [vmem:[#allocation9 + $0x68] sm:$0xff] }
 0x786   :  { %vm2313_vm0 = vmor %vm2311_vm15, %vm2312_vm14 }
 0x787   :  { %v2308_v40 = vsub.f32 1.0, %v2307_v19  ;;  %v2294_v23 = vsel %vm2293_vm12, %v6175_v30, %v2290_v29 }
 0x788   :  { %v2299_v11 = vsel %vm2296_vm13, %v2298_v21, %v2294_v23  ;;  %v8324_v23 = vld [vmem:[#allocation9 + $0xd0] sm:$0xff] }
 0x789   :  { %v2309_v0 = vmul.f32 %v6177_v17, %v2308_v40  ;;  %v2321_v37 = vmul.f32 %v2299_v11, %v2276_v3  ;;  %v8317_v40 = vld [vmem:[#allocation9 + $0xe8] sm:$0xff]  ;;  %v8321_v3 = vld [vmem:[#allocation9 + $0xe0] sm:$0xff]  ;;  %v8335_v11 = vld [vmem:[#allocation9 + $0xb0] sm:$0xff] }
 0x78b   :  { %v2310_v32 = vadd.f32 %v6177_v17, %v2309_v0  ;;  %v2322_v56 = vadd.f32 %v2321_v37, %v1311_v14  ;;  %v8331_v14 = vld [vmem:[#allocation9 + $0xb8] sm:$0xff]  ;;  %v8338_v0 = vld [vmem:[#allocation9 + $0xa0] sm:$0xff] }
 0x78c   :  { %v8347_v37 = vld [vmem:[#allocation9 + $0x80] sm:$0xff] }
 0x78d   :  { %v2314_v20 = vsel %vm2313_vm0, %v6177_v17, %v2310_v32  ;;  %6178 = vtanh.f32 %v2322_v56  ;;  %v8302_v32 = vld [vmem:[#allocation9 + $0x130] sm:$0xff]  ;;  %v8312_v17 = vld [vmem:[#allocation9 + $0x100] sm:$0xff] }
 0x78e   :  { %v2319_v22 = vsel %vm2316_vm1, %v2318_v8, %v2314_v20 }
 0x78f   :  { %v2324_v30 = vsub.f32 1.0, %v2319_v22  ;;  %v2326_v29 = vmul.f32 %v2319_v22, %v8207_v38 }
 0x793   :  { %v6179_v27 = vpop.eup %6178 }
 0x794   :  { %v2325_v19 = vmul.f32 %v6179_v27, %v2324_v30 }
 0x796   :  { %v8288_v21 = vadd.f32 %v2326_v29, %v2325_v19 }
 0x798   :  { %10444 = vst [vmem:[#allocation51_spill] sm:$0xff] %v8288_v21  ;;  %2345 = vmatmul.f32.vlgmr.msra.gmra.mxu0 %v8288_v21  ;;  %2365 = vmatmul.f32.vlgmr.msrb.gmra.mxu1 %v8288_v21 }
 0x799   :  { %2385 = vmatmul.f32.vlgmr.msrb.gmra.mxu2 %v8288_v21  ;;  %2591 = vmatpush.msra.mxu0 %v8212_v12 }
 0x79a   :  { %2662 = vmatpush.msrb.mxu1 %v8118_v1  ;;  %2682 = vmatpush.msrb.mxu2 %v8216_v58 }
 0x79b   :  { %2592 = vmatpush.msra.mxu0 %v8219_v43 }
 0x79c   :  { %2663 = vmatpush.msrb.mxu1 %v8123_v54  ;;  %2683 = vmatpush.msrb.mxu2 %v8223_v18 }
 0x79d   :  { %2593 = vmatpush.msra.mxu0 %v8226_v25 }
 0x79e   :  { %2664 = vmatpush.msrb.mxu1 %v8128_v2  ;;  %2684 = vmatpush.msrb.mxu2 %v8230_v35 }
 0x79f   :  { %2594 = vmatpush.msra.mxu0 %v8302_v32 }
 0x7a0   :  { %2665 = vmatpush.msrb.mxu1 %v8133_v39  ;;  %2685 = vmatpush.msrb.mxu2 %v8235_v47 }
 0x7a1   :  { %2595 = vmatpush.msra.mxu0 %v8307_v46 }
 0x7a2   :  { %2666 = vmatpush.msrb.mxu1 %v8138_v5  ;;  %2686 = vmatpush.msrb.mxu2 %v8240_v50 }
 0x7a3   :  { %2596 = vmatpush.msra.mxu0 %v8312_v17 }
 0x7a4   :  { %2667 = vmatpush.msrb.mxu1 %v8143_v62  ;;  %2687 = vmatpush.msrb.mxu2 %v8245_v26 }
 0x7a5   :  { %2597 = vmatpush.msra.mxu0 %v8317_v40 }
 0x7a6   :  { %2668 = vmatpush.msrb.mxu1 %v8148_v52  ;;  %2688 = vmatpush.msrb.mxu2 %v8321_v3 }
 0x7a7   :  { %2598 = vmatpush.msra.mxu0 %v8324_v23 }
 0x7a8   :  { %2669 = vmatpush.msrb.mxu1 %v8153_v9  ;;  %2689 = vmatpush.msrb.mxu2 %v8328_v15 }
 0x7a9   :  { %2599 = vmatpush.msra.mxu0 %v8331_v14 }
 0x7aa   :  { %2670 = vmatpush.msrb.mxu1 %v8158_v34  ;;  %2690 = vmatpush.msrb.mxu2 %v8335_v11 }
 0x7ab   :  { %2600 = vmatpush.msra.mxu0 %v8338_v0 }
 0x7ac   :  { %2671 = vmatpush.msrb.mxu1 %v8163_v28  ;;  %2691 = vmatpush.msrb.mxu2 %v8342_v44 }
 0x7ad   :  { %2601 = vmatpush.msra.mxu0 %v7981_v13 }
 0x7ae   :  { %2672 = vmatpush.msrb.mxu1 %v8168_v4  ;;  %2692 = vmatpush.msrb.mxu2 %v8347_v37 }
 0x7af   :  { %2602 = vmatpush.msra.mxu0 %v7986_v57 }
 0x7b0   :  { %2673 = vmatpush.msrb.mxu1 %v8173_v31  ;;  %2693 = vmatpush.msrb.mxu2 %v8352_v41 }
 0x7b1   :  { %2603 = vmatpush.msra.mxu0 %v7991_v60  ;;  %v10445_v60 = vld [vmem:[#allocation27_spill] sm:$0xff] }
 0x7b2   :  { %2674 = vmatpush.msrb.mxu1 %v8178_v45  ;;  %2694 = vmatpush.msrb.mxu2 %v7995_v48  ;;  %v1184_v48 = vadd.f32 %v10445_v60, %v10437_v24 }
 0x7b3   :  { %2604 = vmatpush.msra.mxu0 %v10414_v59  ;;  %v10446_v59 = vld [vmem:[#allocation28_spill] sm:$0xff] }
 0x7b4   :  { %2675 = vmatpush.msrb.mxu1 %v8183_v42  ;;  %2695 = vmatpush.msrb.mxu2 %v10416_v7  ;;  %v1249_v7 = vadd.f32 %v10446_v59, %v10440_v49 }
 0x7b5   :  { %2605 = vmatpush.msra.mxu0 %v10417_v10 }
 0x7b6   :  { %2676 = vmatpush.msrb.mxu1 %v8188_v16  ;;  %2696 = vmatpush.msrb.mxu2 %v10419_v55 }
 0x7b7   :  { %2606 = vmatpush.msra.mxu0 %v10420_v63 }
 0x7b8   :  { %2677 = vmatpush.msrb.mxu1 %v8193_v51  ;;  %2697 = vmatpush.msrb.mxu2 %v10422_v6 }
 0x815   :  { %v2346_v13 = vpop.f32.mrf.mxu0  ;;  %v2366_v57 = vpop.f32.mrf.mxu1 }
 0x816   :  { %v2347_v10 = vadd.f32 %v2346_v13, %v10439_v33  ;;  %v2367_v56 = vadd.f32 %v2366_v57, %v10442_v36 }
 0x818   :  { %v2392_v8 = vadd.f32 %v2347_v10, %v1184_v48  ;;  %v2412_v55 = vadd.f32 %v2367_v56, %v1249_v7 }
 0x81a   :  { %v6038_v20 = vmul.f32 -1.442695, %v2392_v8  ;;  %v6039_v63 = vmul.f32 -1.442695, %v2412_v55 }
 0x81c   :  { %6180 = vpow2.f32 %v6038_v20  ;;  %v2386_v10 = vpop.f32.mrf.mxu2 }
 0x81d   :  { %6182 = vpow2.f32 %v6039_v63  ;;  %v2387_v55 = vadd.f32 %v2386_v10, %v7674_v61 }
 0x822   :  { %v6181_v22 = vpop.eup %6180 }
 0x823   :  { %v6183_v6 = vpop.eup %6182  ;;  %v2396_v30 = vadd.f32 1.0, %v6181_v22 }
 0x824   :  { %v2416_v27 = vadd.f32 1.0, %v6183_v6  ;;  %v10447_v6 = vld [vmem:[#allocation61_spill] sm:$0xff] }
 0x825   :  { %6184 = vrcp.f32 %v2396_v30  ;;  %v2408_v33 = vand.u32 2147483648, %v2396_v30  ;;  %v2406_v48 = vand.u32 2147483647, %v2396_v30  ;;  %vm2402_vm3 = vweird.f32 %v2396_v30 }
 0x826   :  { %6186 = vrcp.f32 %v2416_v27  ;;  %vm2422_vm7 = vweird.f32 %v2416_v27  ;;  %v2426_v24 = vand.u32 2147483647, %v2416_v27 }
 0x827   :  { %v2409_v8 = vor.u32 1.1754944e-38, %v2408_v33  ;;  %vm2407_vm5 = vcmp.eq.f32.partialorder %v2406_v48, 8.507059e+37 }
 0x828   :  { %vm2427_vm9 = vcmp.eq.f32.partialorder %v2426_v24, 8.507059e+37  ;;  %v8412_v24 = vld [vmem:[#allocation9 + $0x88] sm:$0xff] }
 0x82b   :  { %v6185_v19 = vpop.eup %6184 }
 0x82c   :  { %v6187_v29 = vpop.eup %6186  ;;  %v2398_v60 = vmul.f32 %v6185_v19, %v2396_v30  ;;  %vm2403_vm2 = vweird.f32 %v6185_v19 }
 0x82d   :  { %v2418_v59 = vmul.f32 %v6187_v29, %v2416_v27  ;;  %vm2404_vm4 = vmor %vm2402_vm3, %vm2403_vm2  ;;  %vm2423_vm6 = vweird.f32 %v6187_v29 }
 0x82e   :  { %v2399_v38 = vsub.f32 1.0, %v2398_v60  ;;  %v1314_v60 = vadd.f32 %v10447_v6, %v7677_v53  ;;  %vm2424_vm8 = vmor %vm2422_vm7, %vm2423_vm6  ;;  %v8443_v6 = vld [vmem:[#allocation9 + $0x10] sm:$0xff] }
 0x82f   :  { %v2419_v13 = vsub.f32 1.0, %v2418_v59  ;;  %v2428_v59 = vand.u32 2147483648, %v2416_v27  ;;  %v8417_v27 = vld [vmem:[#allocation9 + $0x70] sm:$0xff]  ;;  %10452 = vst [vmem:[#allocation22_spill] sm:$0xff] %v8443_v6 }
 0x830   :  { %v2400_v57 = vmul.f32 %v6185_v19, %v2399_v38 }
 0x831   :  { %v2420_v7 = vmul.f32 %v6187_v29, %v2419_v13  ;;  %v2429_v30 = vor.u32 1.1754944e-38, %v2428_v59 }
 0x832   :  { %v2401_v56 = vadd.f32 %v6185_v19, %v2400_v57 }
 0x833   :  { %v2421_v22 = vadd.f32 %v6187_v29, %v2420_v7 }
 0x834   :  { %v2405_v20 = vsel %vm2404_vm4, %v6185_v19, %v2401_v56 }
 0x835   :  { %v2410_v63 = vsel %vm2407_vm5, %v2409_v8, %v2405_v20  ;;  %v2425_v57 = vsel %vm2424_vm8, %v6187_v29, %v2421_v22  ;;  %v8422_v29 = vld [vmem:[#allocation9 + $0x58] sm:$0xff]  ;;  %v8426_v8 = vld [vmem:[#allocation9 + $0x50] sm:$0xff]  ;;  %v8440_v22 = vld [vmem:[#allocation9 + $0x20] sm:$0xff] }
 0x836   :  { %v2432_v38 = vmul.f32 %v2410_v63, %v2387_v55  ;;  %v2430_v33 = vsel %vm2427_vm9, %v2429_v30, %v2425_v57  ;;  %v8429_v55 = vld [vmem:[#allocation9 + $0x40] sm:$0xff]  ;;  %v8433_v20 = vld [vmem:[#allocation9 + $0x38] sm:$0xff]  ;;  %v8436_v63 = vld [vmem:[#allocation9 + $0x28] sm:$0xff]  ;;  %10451 = vst [vmem:[#allocation59_spill] sm:$0xff] %v8440_v22 }
 0x837   :  { %v2435_v10 = vsub.f32 1.0, %v2430_v33  ;;  %v2437_v56 = vmul.f32 %v2430_v33, %v8288_v21  ;;  %10449 = vst [vmem:[#allocation58_spill] sm:$0xff] %v8433_v20  ;;  %v10457_v21 = vld [vmem:[#allocation35_spill] sm:$0xff] }
 0x838   :  { %v2433_v13 = vadd.f32 %v2432_v38, %v1314_v60  ;;  %10450 = vst [vmem:[#allocation52_spill] sm:$0xff] %v8436_v63  ;;  %v8447_v60 = vld [vmem:[#allocation9 + $0x8] sm:$0xff]  ;;  %v10454_v38 = vld [vmem:[#allocation30_spill] sm:$0xff] }
 0x839   :  { %10453 = vst [vmem:[#allocation21_spill] sm:$0xff] %v8447_v60 }
 0x83a   :  { %6188 = vtanh.f32 %v2433_v13  ;;  %v1252_v13 = vadd.f32 %v10454_v38, %v10440_v49 }
 0x840   :  { %v6189_v19 = vpop.eup %6188 }
 0x841   :  { %v2436_v48 = vmul.f32 %v6189_v19, %v2435_v10  ;;  %v10455_v19 = vld [vmem:[#allocation34_spill] sm:$0xff] }
 0x843   :  { %v8377_v7 = vadd.f32 %v2437_v56, %v2436_v48  ;;  %v10456_v48 = vld [vmem:[#allocation29_spill] sm:$0xff] }
 0x844   :  { %v1187_v56 = vadd.f32 %v10456_v48, %v10455_v19 }
 0x845   :  { %10448 = vst [vmem:[#allocation57_spill] sm:$0xff] %v8377_v7  ;;  %2456 = vmatmul.f32.vlgmr.msrb.gmra.mxu3 %v8377_v7  ;;  %2476 = vmatmul.f32.vlgmr.msrb.gmra.mxu0 %v8377_v7 }
 0x846   :  { %2496 = vmatmul.f32.vlgmr.msra.gmra.mxu1 %v8377_v7  ;;  %2702 = vmatpush.msrb.mxu3 %v8212_v12 }
 0x847   :  { %2773 = vmatpush.msrb.mxu0 %v8118_v1  ;;  %2793 = vmatpush.msra.mxu1 %v8216_v58 }
 0x848   :  { %2703 = vmatpush.msrb.mxu3 %v8219_v43 }
 0x849   :  { %2774 = vmatpush.msrb.mxu0 %v8123_v54  ;;  %2794 = vmatpush.msra.mxu1 %v8223_v18 }
 0x84a   :  { %2704 = vmatpush.msrb.mxu3 %v8226_v25 }
 0x84b   :  { %2775 = vmatpush.msrb.mxu0 %v8128_v2  ;;  %2795 = vmatpush.msra.mxu1 %v8230_v35 }
 0x84c   :  { %2705 = vmatpush.msrb.mxu3 %v8302_v32 }
 0x84d   :  { %2776 = vmatpush.msrb.mxu0 %v8133_v39  ;;  %2796 = vmatpush.msra.mxu1 %v8235_v47 }
 0x84e   :  { %2706 = vmatpush.msrb.mxu3 %v8307_v46 }
 0x84f   :  { %2777 = vmatpush.msrb.mxu0 %v8138_v5  ;;  %2797 = vmatpush.msra.mxu1 %v8240_v50 }
 0x850   :  { %2707 = vmatpush.msrb.mxu3 %v8312_v17 }
 0x851   :  { %2778 = vmatpush.msrb.mxu0 %v8143_v62  ;;  %2798 = vmatpush.msra.mxu1 %v8245_v26 }
 0x852   :  { %2708 = vmatpush.msrb.mxu3 %v8317_v40 }
 0x853   :  { %2779 = vmatpush.msrb.mxu0 %v8148_v52  ;;  %2799 = vmatpush.msra.mxu1 %v8321_v3 }
 0x854   :  { %2709 = vmatpush.msrb.mxu3 %v8324_v23 }
 0x855   :  { %2780 = vmatpush.msrb.mxu0 %v8153_v9  ;;  %2800 = vmatpush.msra.mxu1 %v8328_v15 }
 0x856   :  { %2710 = vmatpush.msrb.mxu3 %v8331_v14 }
 0x857   :  { %2781 = vmatpush.msrb.mxu0 %v8158_v34  ;;  %2801 = vmatpush.msra.mxu1 %v8335_v11 }
 0x858   :  { %2711 = vmatpush.msrb.mxu3 %v8338_v0 }
 0x859   :  { %2782 = vmatpush.msrb.mxu0 %v8163_v28  ;;  %2802 = vmatpush.msra.mxu1 %v8342_v44 }
 0x85a   :  { %2712 = vmatpush.msrb.mxu3 %v8412_v24 }
 0x85b   :  { %2783 = vmatpush.msrb.mxu0 %v8168_v4  ;;  %2803 = vmatpush.msra.mxu1 %v8347_v37 }
 0x85c   :  { %2713 = vmatpush.msrb.mxu3 %v8417_v27 }
 0x85d   :  { %2784 = vmatpush.msrb.mxu0 %v8173_v31  ;;  %2804 = vmatpush.msra.mxu1 %v8352_v41 }
 0x85e   :  { %2714 = vmatpush.msrb.mxu3 %v8422_v29 }
 0x85f   :  { %2785 = vmatpush.msrb.mxu0 %v8178_v45  ;;  %2805 = vmatpush.msra.mxu1 %v8426_v8 }
 0x860   :  { %2715 = vmatpush.msrb.mxu3 %v8429_v55 }
 0x861   :  { %2786 = vmatpush.msrb.mxu0 %v8183_v42  ;;  %2806 = vmatpush.msra.mxu1 %v8433_v20 }
 0x862   :  { %2716 = vmatpush.msrb.mxu3 %v8436_v63 }
 0x863   :  { %2787 = vmatpush.msrb.mxu0 %v8188_v16  ;;  %2807 = vmatpush.msra.mxu1 %v8440_v22 }
 0x864   :  { %2717 = vmatpush.msrb.mxu3 %v8443_v6 }
 0x865   :  { %2788 = vmatpush.msrb.mxu0 %v8193_v51  ;;  %2808 = vmatpush.msra.mxu1 %v8447_v60 }
 0x8c2   :  { %v2477_v59 = vpop.f32.mrf.mxu0 }
 0x8c3   :  { %v2478_v57 = vadd.f32 %v2477_v59, %v10442_v36 }
 0x8c5   :  { %v2523_v30 = vadd.f32 %v2478_v57, %v1252_v13 }
 0x8c7   :  { %v6041_v33 = vmul.f32 -1.442695, %v2523_v30 }
 0x8c8   :  { %v2457_v10 = vpop.f32.mrf.mxu3 }
 0x8c9   :  { %6190 = vpow2.f32 %v6041_v33  ;;  %v2458_v6 = vadd.f32 %v2457_v10, %v10457_v21 }
 0x8cb   :  { %v2503_v51 = vadd.f32 %v2458_v6, %v1187_v56  ;;  %v2497_v6 = vpop.f32.mrf.mxu1 }
 0x8cd   :  { %v6040_v22 = vmul.f32 -1.442695, %v2503_v51 }
 0x8cf   :  { %v6191_v16 = vpop.eup %6190  ;;  %6192 = vpow2.f32 %v6040_v22  ;;  %v2498_v22 = vadd.f32 %v2497_v6, %v7674_v61 }
 0x8d0   :  { %v2527_v60 = vadd.f32 1.0, %v6191_v16 }
 0x8d2   :  { %6194 = vrcp.f32 %v2527_v60  ;;  %v2539_v19 = vand.u32 2147483648, %v2527_v60  ;;  %vm2533_vm15 = vweird.f32 %v2527_v60  ;;  %v2537_v42 = vand.u32 2147483647, %v2527_v60 }
 0x8d4   :  { %vm2538_vm1 = vcmp.eq.f32.partialorder %v2537_v42, 8.507059e+37  ;;  %v10470_v42 = vld [vmem:[#allocation44_spill] sm:$0xff] }
 0x8d5   :  { %v6193_v63 = vpop.eup %6192 }
 0x8d6   :  { %v2507_v20 = vadd.f32 1.0, %v6193_v63 }
 0x8d8   :  { %6196 = vrcp.f32 %v2507_v20  ;;  %v6195_v38 = vpop.eup %6194  ;;  %v2519_v49 = vand.u32 2147483648, %v2507_v20  ;;  %v2517_v33 = vand.u32 2147483647, %v2507_v20  ;;  %vm2513_vm11 = vweird.f32 %v2507_v20 }
 0x8d9   :  { %v2529_v59 = vmul.f32 %v6195_v38, %v2527_v60  ;;  %vm2534_vm14 = vweird.f32 %v6195_v38 }
 0x8da   :  { %v2520_v16 = vor.u32 1.1754944e-38, %v2519_v49  ;;  %vm2518_vm13 = vcmp.eq.f32.partialorder %v2517_v33, 8.507059e+37  ;;  %vm2535_vm0 = vmor %vm2533_vm15, %vm2534_vm14 }
 0x8db   :  { %v2530_v30 = vsub.f32 1.0, %v2529_v59  ;;  %v10458_v59 = vld [vmem:[#allocation62_spill] sm:$0xff] }
 0x8dd   :  { %v2531_v10 = vmul.f32 %v6195_v38, %v2530_v30 }
 0x8de   :  { %v6197_v13 = vpop.eup %6196 }
 0x8df   :  { %v2509_v57 = vmul.f32 %v6197_v13, %v2507_v20  ;;  %vm2514_vm10 = vweird.f32 %v6197_v13  ;;  %v2532_v56 = vadd.f32 %v6195_v38, %v2531_v10  ;;  %v2540_v20 = vor.u32 1.1754944e-38, %v2539_v19  ;;  %v10472_v19 = vld [vmem:[#allocation35_spill] sm:$0xff] }
 0x8e0   :  { %vm2515_vm12 = vmor %vm2513_vm11, %vm2514_vm10 }
 0x8e1   :  { %v2510_v36 = vsub.f32 1.0, %v2509_v57  ;;  %v1317_v57 = vadd.f32 %v10458_v59, %v7677_v53 }
 0x8e3   :  { %v2511_v48 = vmul.f32 %v6197_v13, %v2510_v36 }
 0x8e5   :  { %v2512_v51 = vadd.f32 %v6197_v13, %v2511_v48  ;;  %v2536_v48 = vsel %vm2535_vm0, %v6195_v38, %v2532_v56 }
 0x8e6   :  { %v2541_v49 = vsel %vm2538_vm1, %v2540_v20, %v2536_v48 }
 0x8e7   :  { %v2516_v63 = vsel %vm2515_vm12, %v6197_v13, %v2512_v51  ;;  %v2546_v6 = vsub.f32 1.0, %v2541_v49  ;;  %v2548_v33 = vmul.f32 %v2541_v49, %v8377_v7 }
 0x8e8   :  { %v2521_v21 = vsel %vm2518_vm13, %v2520_v16, %v2516_v63  ;;  %v10473_v16 = vld [vmem:[#allocation45_spill] sm:$0xff] }
 0x8e9   :  { %v2543_v36 = vmul.f32 %v2521_v21, %v2498_v22  ;;  %v10471_v21 = vld [vmem:[#allocation32_spill] sm:$0xff] }
 0x8ea   :  { %v1255_v60 = vadd.f32 %v10471_v21, %v10470_v42 }
 0x8eb   :  { %v2544_v30 = vadd.f32 %v2543_v36, %v1317_v57 }
 0x8ed   :  { %6198 = vtanh.f32 %v2544_v30 }
 0x8f3   :  { %v6199_v13 = vpop.eup %6198 }
 0x8f4   :  { %v2547_v10 = vmul.f32 %v6199_v13, %v2546_v6 }
 0x8f6   :  { %v8460_v51 = vadd.f32 %v2548_v33, %v2547_v10 }
 0x8f8   :  { %10459 = vst [vmem:[#allocation17_spill] sm:$0xff] %v8460_v51  ;;  %2567 = vmatmul.f32.vlgmr.msra.gmra.mxu2 %v8460_v51  ;;  %2587 = vmatmul.f32.vlgmr.msra.gmra.mxu3 %v8460_v51 }
 0x8f9   :  { %2607 = vmatmul.f32.vlgmr.msra.gmra.mxu0 %v8460_v51  ;;  %2813 = vmatpush.msra.mxu2 %v8212_v12 }
 0x8fa   :  { %2884 = vmatpush.msra.mxu3 %v8118_v1  ;;  %2904 = vmatpush.msra.mxu0 %v8216_v58  ;;  %v10460_v1 = vld [vmem:[#allocation54_spill] sm:$0xff] }
 0x8fb   :  { %2814 = vmatpush.msra.mxu2 %v8219_v43 }
 0x8fc   :  { %2885 = vmatpush.msra.mxu3 %v8123_v54  ;;  %2905 = vmatpush.msra.mxu0 %v8223_v18  ;;  %v10461_v54 = vld [vmem:[#allocation58_spill] sm:$0xff] }
 0x8fd   :  { %2815 = vmatpush.msra.mxu2 %v8226_v25 }
 0x8fe   :  { %2886 = vmatpush.msra.mxu3 %v8128_v2  ;;  %2906 = vmatpush.msra.mxu0 %v8230_v35  ;;  %v10462_v2 = vld [vmem:[#allocation52_spill] sm:$0xff] }
 0x8ff   :  { %2816 = vmatpush.msra.mxu2 %v8302_v32 }
 0x900   :  { %2887 = vmatpush.msra.mxu3 %v8133_v39  ;;  %2907 = vmatpush.msra.mxu0 %v8235_v47  ;;  %v10463_v39 = vld [vmem:[#allocation50_spill] sm:$0xff] }
 0x901   :  { %2817 = vmatpush.msra.mxu2 %v8307_v46 }
 0x902   :  { %2888 = vmatpush.msra.mxu3 %v8138_v5  ;;  %2908 = vmatpush.msra.mxu0 %v8240_v50  ;;  %v10464_v5 = vld [vmem:[#allocation59_spill] sm:$0xff] }
 0x903   :  { %2818 = vmatpush.msra.mxu2 %v8312_v17 }
 0x904   :  { %2889 = vmatpush.msra.mxu3 %v8143_v62  ;;  %2909 = vmatpush.msra.mxu0 %v8245_v26  ;;  %v10465_v62 = vld [vmem:[#allocation22_spill] sm:$0xff] }
 0x905   :  { %2819 = vmatpush.msra.mxu2 %v8317_v40 }
 0x906   :  { %2890 = vmatpush.msra.mxu3 %v8148_v52  ;;  %2910 = vmatpush.msra.mxu0 %v8321_v3  ;;  %v10466_v52 = vld [vmem:[#allocation55_spill] sm:$0xff] }
 0x907   :  { %2820 = vmatpush.msra.mxu2 %v8324_v23 }
 0x908   :  { %2891 = vmatpush.msra.mxu3 %v8153_v9  ;;  %2911 = vmatpush.msra.mxu0 %v8328_v15  ;;  %v10467_v9 = vld [vmem:[#allocation21_spill] sm:$0xff] }
 0x909   :  { %2821 = vmatpush.msra.mxu2 %v8331_v14 }
 0x90a   :  { %2892 = vmatpush.msra.mxu3 %v8158_v34  ;;  %2912 = vmatpush.msra.mxu0 %v8335_v11 }
 0x90b   :  { %2822 = vmatpush.msra.mxu2 %v8338_v0 }
 0x90c   :  { %2893 = vmatpush.msra.mxu3 %v8163_v28  ;;  %2913 = vmatpush.msra.mxu0 %v8342_v44 }
 0x90d   :  { %2823 = vmatpush.msra.mxu2 %v8412_v24 }
 0x90e   :  { %2894 = vmatpush.msra.mxu3 %v8168_v4  ;;  %2914 = vmatpush.msra.mxu0 %v8347_v37  ;;  %v10468_v4 = vld [vmem:[#allocation34_spill] sm:$0xff] }
 0x90f   :  { %2824 = vmatpush.msra.mxu2 %v8417_v27 }
 0x910   :  { %2895 = vmatpush.msra.mxu3 %v8173_v31  ;;  %2915 = vmatpush.msra.mxu0 %v8352_v41  ;;  %v10469_v31 = vld [vmem:[#allocation31_spill] sm:$0xff] }
 0x911   :  { %2825 = vmatpush.msra.mxu2 %v8422_v29 }
 0x912   :  { %2896 = vmatpush.msra.mxu3 %v8178_v45  ;;  %2916 = vmatpush.msra.mxu0 %v8426_v8  ;;  %v1190_v45 = vadd.f32 %v10469_v31, %v10468_v4 }
 0x913   :  { %2826 = vmatpush.msra.mxu2 %v8429_v55 }
 0x914   :  { %2897 = vmatpush.msra.mxu3 %v10460_v1  ;;  %2917 = vmatpush.msra.mxu0 %v10461_v54 }
 0x915   :  { %2827 = vmatpush.msra.mxu2 %v10462_v2 }
 0x916   :  { %2898 = vmatpush.msra.mxu3 %v10463_v39  ;;  %2918 = vmatpush.msra.mxu0 %v10464_v5 }
 0x917   :  { %2828 = vmatpush.msra.mxu2 %v10465_v62 }
 0x918   :  { %2899 = vmatpush.msra.mxu3 %v10466_v52  ;;  %2919 = vmatpush.msra.mxu0 %v10467_v9 }
 0x97b   :  { %v2568_v34 = vpop.f32.mrf.mxu2  ;;  %v2588_v28 = vpop.f32.mrf.mxu3 }
 0x97c   :  { %v2569_v38 = vadd.f32 %v2568_v34, %v10472_v19  ;;  %v2589_v22 = vadd.f32 %v2588_v28, %v10473_v16  ;;  %v2608_v28 = vpop.f32.mrf.mxu0 }
 0x97e   :  { %v2614_v63 = vadd.f32 %v2569_v38, %v1190_v45  ;;  %v2634_v56 = vadd.f32 %v2589_v22, %v1255_v60  ;;  %v2609_v60 = vadd.f32 %v2608_v28, %v7674_v61  ;;  %v8539_v28 = vld [vmem:[#allocation9 + $0x138] sm:$0xff] }
 0x980   :  { %v6042_v59 = vmul.f32 -1.442695, %v2614_v63  ;;  %v6043_v57 = vmul.f32 -1.442695, %v2634_v56  ;;  %v10474_v56 = vld [vmem:[#allocation63_spill] sm:$0xff] }
 0x982   :  { %6200 = vpow2.f32 %v6042_v59  ;;  %v1320_v59 = vadd.f32 %v10474_v56, %v7677_v53 }
 0x983   :  { %6202 = vpow2.f32 %v6043_v57 }
 0x988   :  { %v6201_v36 = vpop.eup %6200 }
 0x989   :  { %v6203_v30 = vpop.eup %6202  ;;  %v2618_v48 = vadd.f32 1.0, %v6201_v36 }
 0x98a   :  { %v2638_v20 = vadd.f32 1.0, %v6203_v30 }
 0x98b   :  { %6204 = vrcp.f32 %v2618_v48  ;;  %v2630_v1 = vand.u32 2147483648, %v2618_v48  ;;  %v2628_v34 = vand.u32 2147483647, %v2618_v48  ;;  %vm2624_vm3 = vweird.f32 %v2618_v48 }
 0x98c   :  { %6206 = vrcp.f32 %v2638_v20  ;;  %v2650_v36 = vand.u32 2147483648, %v2638_v20  ;;  %vm2644_vm7 = vweird.f32 %v2638_v20  ;;  %v2648_v30 = vand.u32 2147483647, %v2638_v20 }
 0x98d   :  { %v2631_v21 = vor.u32 1.1754944e-38, %v2630_v1  ;;  %vm2629_vm5 = vcmp.eq.f32.partialorder %v2628_v34, 8.507059e+37 }
 0x98e   :  { %vm2649_vm9 = vcmp.eq.f32.partialorder %v2648_v30, 8.507059e+37  ;;  %v10476_v30 = vld [vmem:[#allocation36_spill] sm:$0xff] }
 0x991   :  { %v6205_v49 = vpop.eup %6204 }
 0x992   :  { %v6207_v6 = vpop.eup %6206  ;;  %v2620_v13 = vmul.f32 %v6205_v49, %v2618_v48  ;;  %vm2625_vm2 = vweird.f32 %v6205_v49  ;;  %v2651_v48 = vor.u32 1.1754944e-38, %v2650_v36 }
 0x993   :  { %v2640_v33 = vmul.f32 %v6207_v6, %v2638_v20  ;;  %vm2626_vm4 = vmor %vm2624_vm3, %vm2625_vm2  ;;  %vm2645_vm6 = vweird.f32 %v6207_v6  ;;  %v8529_v20 = vld [vmem:[#allocation9 + $0x168] sm:$0xff] }
 0x994   :  { %v2621_v10 = vsub.f32 1.0, %v2620_v13  ;;  %vm2646_vm8 = vmor %vm2644_vm7, %vm2645_vm6 }
 0x995   :  { %v2641_v39 = vsub.f32 1.0, %v2640_v33 }
 0x996   :  { %v2622_v52 = vmul.f32 %v6205_v49, %v2621_v10 }
 0x997   :  { %v2642_v31 = vmul.f32 %v6207_v6, %v2641_v39 }
 0x998   :  { %v2623_v45 = vadd.f32 %v6205_v49, %v2622_v52 }
 0x999   :  { %v2643_v63 = vadd.f32 %v6207_v6, %v2642_v31  ;;  %v8589_v31 = vld [vmem:[#allocation9 + $0x48] sm:$0xff] }
 0x99a   :  { %v2627_v38 = vsel %vm2626_vm4, %v6205_v49, %v2623_v45  ;;  %v8594_v45 = vld [vmem:[#allocation9 + $0x30] sm:$0xff] }
 0x99b   :  { %v2632_v22 = vsel %vm2629_vm5, %v2631_v21, %v2627_v38  ;;  %v2647_v33 = vsel %vm2646_vm8, %v6207_v6, %v2643_v63  ;;  %v8534_v6 = vld [vmem:[#allocation9 + $0x150] sm:$0xff]  ;;  %v8599_v21 = vld [vmem:[#allocation9 + $0x18] sm:$0xff] }
 0x99c   :  { %v2654_v57 = vmul.f32 %v2632_v22, %v2609_v60  ;;  %v2652_v10 = vsel %vm2649_vm9, %v2651_v48, %v2647_v33  ;;  %v8604_v60 = vld [vmem:[#allocation9] sm:$0xff]  ;;  %v10475_v22 = vld [vmem:[#allocation33_spill] sm:$0xff] }
 0x99d   :  { %v2657_v1 = vsub.f32 1.0, %v2652_v10  ;;  %v2659_v52 = vmul.f32 %v2652_v10, %v8460_v51  ;;  %v1193_v63 = vadd.f32 %v10475_v22, %v10468_v4 }
 0x99e   :  { %v2655_v13 = vadd.f32 %v2654_v57, %v1320_v59 }
 0x9a0   :  { %6208 = vtanh.f32 %v2655_v13  ;;  %v1258_v13 = vadd.f32 %v10476_v30, %v10470_v42 }
 0x9a6   :  { %v6209_v49 = vpop.eup %6208 }
 0x9a7   :  { %v2658_v39 = vmul.f32 %v6209_v49, %v2657_v1 }
 0x9a9   :  { %v8523_v34 = vadd.f32 %v2659_v52, %v2658_v39 }
 0x9ab   :  { %2678 = vmatmul.f32.vlgmr.msrb.gmra.mxu1 %v8523_v34  ;;  %2698 = vmatmul.f32.vlgmr.msrb.gmra.mxu2 %v8523_v34 }
 0x9ac   :  { %2718 = vmatmul.f32.vlgmr.msrb.gmra.mxu3 %v8523_v34  ;;  %2924 = vmatpush.msrb.mxu1 %v8212_v12  ;;  %v8544_v12 = vld [vmem:[#allocation9 + $0x120] sm:$0xff] }
 0x9ad   :  { %2995 = vmatpush.msrb.mxu2 %v8529_v20  ;;  %3015 = vmatpush.msrb.mxu3 %v8216_v58  ;;  %v8549_v58 = vld [vmem:[#allocation9 + $0x108] sm:$0xff] }
 0x9ae   :  { %2925 = vmatpush.msrb.mxu1 %v8219_v43  ;;  %v8554_v43 = vld [vmem:[#allocation9 + $0xf0] sm:$0xff] }
 0x9af   :  { %2996 = vmatpush.msrb.mxu2 %v8534_v6  ;;  %3016 = vmatpush.msrb.mxu3 %v8223_v18  ;;  %v8559_v18 = vld [vmem:[#allocation9 + $0xd8] sm:$0xff] }
 0x9b0   :  { %2926 = vmatpush.msrb.mxu1 %v8226_v25  ;;  %v8564_v25 = vld [vmem:[#allocation9 + $0xc0] sm:$0xff] }
 0x9b1   :  { %2997 = vmatpush.msrb.mxu2 %v8539_v28  ;;  %3017 = vmatpush.msrb.mxu3 %v8230_v35  ;;  %v8569_v35 = vld [vmem:[#allocation9 + $0xa8] sm:$0xff] }
 0x9b2   :  { %2927 = vmatpush.msrb.mxu1 %v8302_v32 }
 0x9b3   :  { %2998 = vmatpush.msrb.mxu2 %v8544_v12  ;;  %3018 = vmatpush.msrb.mxu3 %v8235_v47  ;;  %v8574_v47 = vld [vmem:[#allocation9 + $0x90] sm:$0xff] }
 0x9b4   :  { %2928 = vmatpush.msrb.mxu1 %v8307_v46 }
 0x9b5   :  { %2999 = vmatpush.msrb.mxu2 %v8549_v58  ;;  %3019 = vmatpush.msrb.mxu3 %v8240_v50  ;;  %v8579_v50 = vld [vmem:[#allocation9 + $0x78] sm:$0xff] }
 0x9b6   :  { %2929 = vmatpush.msrb.mxu1 %v8312_v17 }
 0x9b7   :  { %3000 = vmatpush.msrb.mxu2 %v8554_v43  ;;  %3020 = vmatpush.msrb.mxu3 %v8245_v26  ;;  %v8584_v26 = vld [vmem:[#allocation9 + $0x60] sm:$0xff] }
 0x9b8   :  { %2930 = vmatpush.msrb.mxu1 %v8317_v40 }
 0x9b9   :  { %3001 = vmatpush.msrb.mxu2 %v8559_v18  ;;  %3021 = vmatpush.msrb.mxu3 %v8321_v3 }
 0x9ba   :  { %2931 = vmatpush.msrb.mxu1 %v8324_v23 }
 0x9bb   :  { %3002 = vmatpush.msrb.mxu2 %v8564_v25  ;;  %3022 = vmatpush.msrb.mxu3 %v8328_v15 }
 0x9bc   :  { %2932 = vmatpush.msrb.mxu1 %v8331_v14 }
 0x9bd   :  { %3003 = vmatpush.msrb.mxu2 %v8569_v35  ;;  %3023 = vmatpush.msrb.mxu3 %v8335_v11 }
 0x9be   :  { %2933 = vmatpush.msrb.mxu1 %v8338_v0 }
 0x9bf   :  { %3004 = vmatpush.msrb.mxu2 %v8574_v47  ;;  %3024 = vmatpush.msrb.mxu3 %v8342_v44 }
 0x9c0   :  { %2934 = vmatpush.msrb.mxu1 %v8412_v24 }
 0x9c1   :  { %3005 = vmatpush.msrb.mxu2 %v8579_v50  ;;  %3025 = vmatpush.msrb.mxu3 %v8347_v37 }
 0x9c2   :  { %2935 = vmatpush.msrb.mxu1 %v8417_v27 }
 0x9c3   :  { %3006 = vmatpush.msrb.mxu2 %v8584_v26  ;;  %3026 = vmatpush.msrb.mxu3 %v8352_v41 }
 0x9c4   :  { %2936 = vmatpush.msrb.mxu1 %v8422_v29 }
 0x9c5   :  { %3007 = vmatpush.msrb.mxu2 %v8589_v31  ;;  %3027 = vmatpush.msrb.mxu3 %v8426_v8 }
 0x9c6   :  { %2937 = vmatpush.msrb.mxu1 %v8429_v55 }
 0x9c7   :  { %3008 = vmatpush.msrb.mxu2 %v8594_v45  ;;  %3028 = vmatpush.msrb.mxu3 %v10461_v54 }
 0x9c8   :  { %2938 = vmatpush.msrb.mxu1 %v10462_v2 }
 0x9c9   :  { %3009 = vmatpush.msrb.mxu2 %v8599_v21  ;;  %3029 = vmatpush.msrb.mxu3 %v10464_v5 }
 0x9ca   :  { %2939 = vmatpush.msrb.mxu1 %v10465_v62 }
 0x9cb   :  { %3010 = vmatpush.msrb.mxu2 %v8604_v60  ;;  %3030 = vmatpush.msrb.mxu3 %v10467_v9 }
 0xa28   :  { %v2679_v38 = vpop.f32.mrf.mxu1 }
 0xa29   :  { %v2680_v56 = vadd.f32 %v2679_v38, %v10472_v19 }
 0xa2b   :  { %v2725_v59 = vadd.f32 %v2680_v56, %v1193_v63 }
 0xa2d   :  { %v6044_v57 = vmul.f32 -1.442695, %v2725_v59 }
 0xa2e   :  { %v2699_v36 = vpop.f32.mrf.mxu2 }
 0xa2f   :  { %6210 = vpow2.f32 %v6044_v57  ;;  %v2700_v33 = vadd.f32 %v2699_v36, %v10473_v16  ;;  %v2719_v57 = vpop.f32.mrf.mxu3 }
 0xa31   :  { %v2745_v48 = vadd.f32 %v2700_v33, %v1258_v13 }
 0xa33   :  { %v6045_v10 = vmul.f32 -1.442695, %v2745_v48  ;;  %v2720_v48 = vadd.f32 %v2719_v57, %v7674_v61 }
 0xa35   :  { %v6211_v1 = vpop.eup %6210  ;;  %6212 = vpow2.f32 %v6045_v10 }
 0xa36   :  { %v2729_v49 = vadd.f32 1.0, %v6211_v1  ;;  %v10477_v1 = vld [vmem:[#allocation64_spill] sm:$0xff] }
 0xa38   :  { %6214 = vrcp.f32 %v2729_v49  ;;  %v2741_v56 = vand.u32 2147483648, %v2729_v49  ;;  %v2739_v51 = vand.u32 2147483647, %v2729_v49  ;;  %vm2735_vm11 = vweird.f32 %v2729_v49 }
 0xa3a   :  { %v2742_v13 = vor.u32 1.1754944e-38, %v2741_v56  ;;  %vm2740_vm13 = vcmp.eq.f32.partialorder %v2739_v51, 8.507059e+37 }
 0xa3b   :  { %v6213_v39 = vpop.eup %6212 }
 0xa3c   :  { %v2749_v52 = vadd.f32 1.0, %v6213_v39  ;;  %v1323_v39 = vadd.f32 %v10477_v1, %v7677_v53 }
 0xa3e   :  { %v6215_v22 = vpop.eup %6214  ;;  %6216 = vrcp.f32 %v2749_v52  ;;  %v2759_v42 = vand.u32 2147483647, %v2749_v52  ;;  %vm2755_vm15 = vweird.f32 %v2749_v52 }
 0xa3f   :  { %v2731_v38 = vmul.f32 %v6215_v22, %v2729_v49  ;;  %vm2736_vm10 = vweird.f32 %v6215_v22 }
 0xa40   :  { %vm2737_vm12 = vmor %vm2735_vm11, %vm2736_vm10  ;;  %vm2760_vm1 = vcmp.eq.f32.partialorder %v2759_v42, 8.507059e+37  ;;  %v8627_v42 = vld [vmem:[#allocation9 + $0x160] sm:$0xff] }
 0xa41   :  { %v2732_v63 = vsub.f32 1.0, %v2731_v38 }
 0xa43   :  { %v2733_v59 = vmul.f32 %v6215_v22, %v2732_v63  ;;  %v2761_v63 = vand.u32 2147483648, %v2749_v52 }
 0xa44   :  { %v6217_v30 = vpop.eup %6216 }
 0xa45   :  { %v2751_v7 = vmul.f32 %v6217_v30, %v2749_v52  ;;  %v2734_v36 = vadd.f32 %v6215_v22, %v2733_v59  ;;  %vm2756_vm14 = vweird.f32 %v6217_v30  ;;  %v2762_v56 = vor.u32 1.1754944e-38, %v2761_v63  ;;  %v8631_v52 = vld [vmem:[#allocation9 + $0x148] sm:$0xff] }
 0xa46   :  { %vm2757_vm0 = vmor %vm2755_vm15, %vm2756_vm14 }
 0xa47   :  { %v2752_v33 = vsub.f32 1.0, %v2751_v7  ;;  %v2738_v10 = vsel %vm2737_vm12, %v6215_v22, %v2734_v36 }
 0xa48   :  { %v2743_v38 = vsel %vm2740_vm13, %v2742_v13, %v2738_v10 }
 0xa49   :  { %v2753_v16 = vmul.f32 %v6217_v30, %v2752_v33  ;;  %v2765_v19 = vmul.f32 %v2743_v38, %v2720_v48  ;;  %v6540_v33 = vld [vmem:[#allocation9 + $0xf8] sm:$0xff] }
 0xa4b   :  { %v2754_v4 = vadd.f32 %v6217_v30, %v2753_v16  ;;  %v2766_v59 = vadd.f32 %v2765_v19, %v1323_v39  ;;  %v8623_v19 = vld [vmem:[#allocation9 + $0x178] sm:$0xff] }
 0xa4c   :  { %v6535_v16 = vld [vmem:[#allocation9 + $0x158] sm:$0xff] }
 0xa4d   :  { %v2758_v49 = vsel %vm2757_vm0, %v6217_v30, %v2754_v4  ;;  %6218 = vtanh.f32 %v2766_v59  ;;  %v6533_v4 = vld [vmem:[#allocation9 + $0x170] sm:$0xff]  ;;  %v6537_v30 = vld [vmem:[#allocation9 + $0x140] sm:$0xff] }
 0xa4e   :  { %v2763_v7 = vsel %vm2760_vm1, %v2762_v56, %v2758_v49  ;;  %v10484_v59 = vld [vmem:[#allocation65_spill] sm:$0xff] }
 0xa4f   :  { %v2768_v22 = vsub.f32 1.0, %v2763_v7  ;;  %v2770_v36 = vmul.f32 %v2763_v7, %v8523_v34  ;;  %v1326_v49 = vadd.f32 %v10484_v59, %v7677_v53 }
 0xa53   :  { %v6219_v51 = vpop.eup %6218 }
 0xa54   :  { %v2769_v57 = vmul.f32 %v6219_v51, %v2768_v22 }
 0xa56   :  { %v8618_v13 = vadd.f32 %v2770_v36, %v2769_v57 }
 0xa58   :  { %2789 = vmatmul.f32.vlgmr.msrb.gmra.mxu0 %v8618_v13  ;;  %2809 = vmatmul.f32.vlgmr.msra.gmra.mxu1 %v8618_v13 }
 0xa59   :  { %2829 = vmatmul.f32.vlgmr.msra.gmra.mxu2 %v8618_v13  ;;  %3035 = vmatpush.msrb.mxu0 %v8623_v19 }
 0xa5a   :  { %3106 = vmatpush.msra.mxu1 %v8529_v20  ;;  %3126 = vmatpush.msra.mxu2 %v6533_v4  ;;  %v6538_v20 = vld [vmem:[#allocation9 + $0x128] sm:$0xff] }
 0xa5b   :  { %3036 = vmatpush.msrb.mxu0 %v8627_v42 }
 0xa5c   :  { %3107 = vmatpush.msra.mxu1 %v8534_v6  ;;  %3127 = vmatpush.msra.mxu2 %v6535_v16  ;;  %v6539_v6 = vld [vmem:[#allocation9 + $0x110] sm:$0xff] }
 0xa5d   :  { %3037 = vmatpush.msrb.mxu0 %v8631_v52 }
 0xa5e   :  { %3108 = vmatpush.msra.mxu1 %v8539_v28  ;;  %3128 = vmatpush.msra.mxu2 %v6537_v30 }
 0xa5f   :  { %3038 = vmatpush.msrb.mxu0 %v8302_v32 }
 0xa60   :  { %3109 = vmatpush.msra.mxu1 %v8544_v12  ;;  %3129 = vmatpush.msra.mxu2 %v6538_v20 }
 0xa61   :  { %3039 = vmatpush.msrb.mxu0 %v8307_v46 }
 0xa62   :  { %3110 = vmatpush.msra.mxu1 %v8549_v58  ;;  %3130 = vmatpush.msra.mxu2 %v6539_v6 }
 0xa63   :  { %3040 = vmatpush.msrb.mxu0 %v8312_v17  ;;  %v10478_v17 = vld [vmem:[#allocation34_spill] sm:$0xff] }
 0xa64   :  { %3111 = vmatpush.msra.mxu1 %v8554_v43  ;;  %3131 = vmatpush.msra.mxu2 %v6540_v33 }
 0xa65   :  { %3041 = vmatpush.msrb.mxu0 %v8317_v40  ;;  %v10479_v40 = vld [vmem:[#allocation37_spill] sm:$0xff] }
 0xa66   :  { %3112 = vmatpush.msra.mxu1 %v8559_v18  ;;  %3132 = vmatpush.msra.mxu2 %v8321_v3  ;;  %v1196_v3 = vadd.f32 %v10479_v40, %v10478_v17  ;;  %v6543_v40 = vld [vmem:[#allocation9 + $0x100] sm:$0xff] }
 0xa67   :  { %3042 = vmatpush.msrb.mxu0 %v8324_v23  ;;  %v10480_v23 = vld [vmem:[#allocation44_spill] sm:$0xff] }
 0xa68   :  { %3113 = vmatpush.msra.mxu1 %v8564_v25  ;;  %3133 = vmatpush.msra.mxu2 %v8328_v15  ;;  %v10481_v15 = vld [vmem:[#allocation38_spill] sm:$0xff] }
 0xa69   :  { %3043 = vmatpush.msrb.mxu0 %v8331_v14  ;;  %v1261_v14 = vadd.f32 %v10481_v15, %v10480_v23  ;;  %v6545_v15 = vld [vmem:[#allocation9 + $0xd0] sm:$0xff] }
 0xa6a   :  { %3114 = vmatpush.msra.mxu1 %v8569_v35  ;;  %3134 = vmatpush.msra.mxu2 %v8335_v11  ;;  %v10482_v11 = vld [vmem:[#allocation35_spill] sm:$0xff] }
 0xa6b   :  { %3044 = vmatpush.msrb.mxu0 %v8338_v0 }
 0xa6c   :  { %3115 = vmatpush.msra.mxu1 %v8574_v47  ;;  %3135 = vmatpush.msra.mxu2 %v8342_v44  ;;  %v10483_v44 = vld [vmem:[#allocation45_spill] sm:$0xff] }
 0xa6d   :  { %3045 = vmatpush.msrb.mxu0 %v8412_v24 }
 0xa6e   :  { %3116 = vmatpush.msra.mxu1 %v8579_v50  ;;  %3136 = vmatpush.msra.mxu2 %v8347_v37 }
 0xa6f   :  { %3046 = vmatpush.msrb.mxu0 %v8417_v27 }
 0xa70   :  { %3117 = vmatpush.msra.mxu1 %v8584_v26  ;;  %3137 = vmatpush.msra.mxu2 %v8352_v41 }
 0xa71   :  { %3047 = vmatpush.msrb.mxu0 %v8422_v29 }
 0xa72   :  { %3118 = vmatpush.msra.mxu1 %v8589_v31  ;;  %3138 = vmatpush.msra.mxu2 %v8426_v8 }
 0xa73   :  { %3048 = vmatpush.msrb.mxu0 %v8429_v55 }
 0xa74   :  { %3119 = vmatpush.msra.mxu1 %v8594_v45  ;;  %3139 = vmatpush.msra.mxu2 %v10461_v54 }
 0xa75   :  { %3049 = vmatpush.msrb.mxu0 %v10462_v2 }
 0xa76   :  { %3120 = vmatpush.msra.mxu1 %v8599_v21  ;;  %3140 = vmatpush.msra.mxu2 %v10464_v5 }
 0xa77   :  { %3050 = vmatpush.msrb.mxu0 %v10465_v62 }
 0xa78   :  { %3121 = vmatpush.msra.mxu1 %v8604_v60  ;;  %3141 = vmatpush.msra.mxu2 %v10467_v9 }
 0xad5   :  { %v2790_v32 = vpop.f32.mrf.mxu0  ;;  %v2810_v46 = vpop.f32.mrf.mxu1 }
 0xad6   :  { %v2791_v0 = vadd.f32 %v2790_v32, %v10482_v11  ;;  %v2811_v37 = vadd.f32 %v2810_v46, %v10483_v44  ;;  %v6541_v32 = vld [vmem:[#allocation9 + $0x130] sm:$0xff]  ;;  %v6542_v46 = vld [vmem:[#allocation9 + $0x118] sm:$0xff] }
 0xad8   :  { %v2836_v41 = vadd.f32 %v2791_v0, %v1196_v3  ;;  %v2856_v8 = vadd.f32 %v2811_v37, %v1261_v14  ;;  %v6544_v3 = vld [vmem:[#allocation9 + $0xe8] sm:$0xff]  ;;  %v6546_v14 = vld [vmem:[#allocation9 + $0xb8] sm:$0xff]  ;;  %v6547_v0 = vld [vmem:[#allocation9 + $0xa0] sm:$0xff] }
 0xada   :  { %v6046_v54 = vmul.f32 -1.442695, %v2836_v41  ;;  %v6047_v5 = vmul.f32 -1.442695, %v2856_v8  ;;  %v3276_v8 = vld [vmem:[#allocation7 + $0x2d0] sm:$0xff] }
 0xadc   :  { %6220 = vpow2.f32 %v6046_v54  ;;  %v2830_v60 = vpop.f32.mrf.mxu2  ;;  %v3270_v54 = vld [vmem:[#allocation7 + $0x2a0] sm:$0xff] }
 0xadd   :  { %6222 = vpow2.f32 %v6047_v5  ;;  %v2831_v1 = vadd.f32 %v2830_v60, %v7674_v61 }
 0xae2   :  { %v6221_v28 = vpop.eup %6220 }
 0xae3   :  { %v6223_v9 = vpop.eup %6222  ;;  %v2840_v12 = vadd.f32 1.0, %v6221_v28  ;;  %v3267_v28 = vld [vmem:[#allocation7 + $0x288] sm:$0xff] }
 0xae4   :  { %v2860_v58 = vadd.f32 1.0, %v6223_v9 }
 0xae5   :  { %6224 = vrcp.f32 %v2840_v12  ;;  %v2852_v26 = vand.u32 2147483648, %v2840_v12  ;;  %v2850_v45 = vand.u32 2147483647, %v2840_v12  ;;  %vm2846_vm3 = vweird.f32 %v2840_v12 }
 0xae6   :  { %6226 = vrcp.f32 %v2860_v58  ;;  %v2872_v56 = vand.u32 2147483648, %v2860_v58  ;;  %vm2866_vm7 = vweird.f32 %v2860_v58  ;;  %v2870_v22 = vand.u32 2147483647, %v2860_v58 }
 0xae7   :  { %v2853_v10 = vor.u32 1.1754944e-38, %v2852_v26  ;;  %vm2851_vm5 = vcmp.eq.f32.partialorder %v2850_v45, 8.507059e+37  ;;  %v3249_v26 = vld [vmem:[#allocation7 + $0x1f8] sm:$0xff]  ;;  %v3246_v45 = vld [vmem:[#allocation7 + $0x1e0] sm:$0xff] }
 0xae8   :  { %v2873_v36 = vor.u32 1.1754944e-38, %v2872_v56  ;;  %vm2871_vm9 = vcmp.eq.f32.partialorder %v2870_v22, 8.507059e+37 }
 0xaeb   :  { %v6225_v43 = vpop.eup %6224 }
 0xaec   :  { %v6227_v18 = vpop.eup %6226  ;;  %v2842_v25 = vmul.f32 %v6225_v43, %v2840_v12  ;;  %vm2847_vm2 = vweird.f32 %v6225_v43  ;;  %v3264_v12 = vld [vmem:[#allocation7 + $0x270] sm:$0xff] }
 0xaed   :  { %v2862_v35 = vmul.f32 %v6227_v18, %v2860_v58  ;;  %vm2848_vm4 = vmor %vm2846_vm3, %vm2847_vm2  ;;  %vm2867_vm6 = vweird.f32 %v6227_v18 }
 0xaee   :  { %v2843_v47 = vsub.f32 1.0, %v2842_v25  ;;  %vm2868_vm8 = vmor %vm2866_vm7, %vm2867_vm6 }
 0xaef   :  { %v2863_v50 = vsub.f32 1.0, %v2862_v35  ;;  %v3255_v35 = vld [vmem:[#allocation7 + $0x228] sm:$0xff] }
 0xaf0   :  { %v2844_v31 = vmul.f32 %v6225_v43, %v2843_v47 }
 0xaf1   :  { %v2864_v21 = vmul.f32 %v6227_v18, %v2863_v50  ;;  %v3252_v50 = vld [vmem:[#allocation7 + $0x210] sm:$0xff] }
 0xaf2   :  { %v2845_v48 = vadd.f32 %v6225_v43, %v2844_v31 }
 0xaf3   :  { %v2865_v63 = vadd.f32 %v6227_v18, %v2864_v21 }
 0xaf4   :  { %v2849_v39 = vsel %vm2848_vm4, %v6225_v43, %v2845_v48  ;;  %v3261_v43 = vld [vmem:[#allocation7 + $0x258] sm:$0xff]  ;;  %v3243_v48 = vld [vmem:[#allocation7 + $0x1c8] sm:$0xff] }
 0xaf5   :  { %v2854_v38 = vsel %vm2851_vm5, %v2853_v10, %v2849_v39  ;;  %v2869_v57 = vsel %vm2868_vm8, %v6227_v18, %v2865_v63  ;;  %v3258_v18 = vld [vmem:[#allocation7 + $0x240] sm:$0xff]  ;;  %v3240_v10 = vld [vmem:[#allocation7 + $0x1b0] sm:$0xff] }
 0xaf6   :  { %v2876_v7 = vmul.f32 %v2854_v38, %v2831_v1  ;;  %v2874_v4 = vsel %vm2871_vm9, %v2873_v36, %v2869_v57  ;;  %v3237_v1 = vld [vmem:[#allocation7 + $0x198] sm:$0xff]  ;;  %v3234_v38 = vld [vmem:[#allocation7 + $0x180] sm:$0xff] }
 0xaf7   :  { %v2879_v16 = vsub.f32 1.0, %v2874_v4  ;;  %v2881_v6 = vmul.f32 %v2874_v4, %v8618_v13 }
 0xaf8   :  { %v2877_v51 = vadd.f32 %v2876_v7, %v1326_v49 }
 0xafa   :  { %6228 = vtanh.f32 %v2877_v51 }
 0xb00   :  { %v6229_v30 = vpop.eup %6228 }
 0xb01   :  { %v2880_v20 = vmul.f32 %v6229_v30, %v2879_v16 }
 0xb03   :  { %v8681_v33 = vadd.f32 %v2881_v6, %v2880_v20 }
 0xb05   :  { %2900 = vmatmul.f32.vlgmr.msra.gmra.mxu3 %v8681_v33  ;;  %2920 = vmatmul.f32.vlgmr.msra.gmra.mxu0 %v8681_v33 }
 0xb06   :  { %2940 = vmatmul.f32.vlgmr.msrb.gmra.mxu1 %v8681_v33  ;;  %3146 = vmatpush.msra.mxu3 %v8623_v19  ;;  %v3279_v19 = vld [vmem:[#allocation7 + $0x2e8] sm:$0xff] }
 0xb07   :  { %3291 = vmatpush.msra.mxu0 %v3279_v19 }
 0xb08   :  { %3147 = vmatpush.msra.mxu3 %v8627_v42 }
 0xb09   :  { %3292 = vmatpush.msra.mxu0 %v3276_v8 }
 0xb0a   :  { %3148 = vmatpush.msra.mxu3 %v8631_v52  ;;  %v10485_v52 = vld [vmem:[#allocation40_spill] sm:$0xff] }
 0xb0b   :  { %v1264_v37 = vadd.f32 %v10485_v52, %v10480_v23 }
 0xb0c   :  { %3149 = vmatpush.msra.mxu3 %v6541_v32 }
 0xb0e   :  { %3150 = vmatpush.msra.mxu3 %v6542_v46  ;;  %v10487_v46 = vld [vmem:[#allocation66_spill] sm:$0xff] }
 0xb10   :  { %3151 = vmatpush.msra.mxu3 %v6543_v40  ;;  %v1329_v40 = vadd.f32 %v10487_v46, %v7677_v53  ;;  %v8757_v46 = vld [vmem:[#allocation9 + $0x210] sm:$0xff] }
 0xb12   :  { %3152 = vmatpush.msra.mxu3 %v6544_v3 }
 0xb14   :  { %3153 = vmatpush.msra.mxu3 %v6545_v15 }
 0xb16   :  { %3154 = vmatpush.msra.mxu3 %v6546_v14 }
 0xb18   :  { %3155 = vmatpush.msra.mxu3 %v6547_v0 }
 0xb1a   :  { %3156 = vmatpush.msra.mxu3 %v8412_v24 }
 0xb1c   :  { %3157 = vmatpush.msra.mxu3 %v8417_v27  ;;  %v3273_v27 = vld [vmem:[#allocation7 + $0x2b8] sm:$0xff] }
 0xb1d   :  { %3293 = vmatpush.msra.mxu0 %v3273_v27 }
 0xb1e   :  { %3158 = vmatpush.msra.mxu3 %v8422_v29 }
 0xb1f   :  { %3294 = vmatpush.msra.mxu0 %v3270_v54  ;;  %v10489_v54 = vld [vmem:[#allocation53_spill] sm:$0xff] }
 0xb20   :  { %3159 = vmatpush.msra.mxu3 %v8429_v55 }
 0xb21   :  { %3295 = vmatpush.msra.mxu0 %v3267_v28  ;;  %v10494_v28 = vld [vmem:[#allocation56_spill] sm:$0xff] }
 0xb22   :  { %3160 = vmatpush.msra.mxu3 %v10462_v2  ;;  %v10486_v2 = vld [vmem:[#allocation39_spill] sm:$0xff] }
 0xb23   :  { %3296 = vmatpush.msra.mxu0 %v3264_v12  ;;  %v10496_v12 = vld [vmem:[#allocation57_spill] sm:$0xff] }
 0xb24   :  { %3161 = vmatpush.msra.mxu3 %v10465_v62  ;;  %v1199_v62 = vadd.f32 %v10486_v2, %v10478_v17  ;;  %v10491_v2 = vld [vmem:[#allocation16_spill] sm:$0xff] }
 0xb25   :  { %3297 = vmatpush.msra.mxu0 %v3261_v43  ;;  %v8724_v43 = vld [vmem:[#allocation9 + $0x2e8] sm:$0xff] }
 0xb27   :  { %3298 = vmatpush.msra.mxu0 %v3258_v18  ;;  %v8727_v18 = vld [vmem:[#allocation9 + $0x2d0] sm:$0xff] }
 0xb29   :  { %3299 = vmatpush.msra.mxu0 %v3255_v35  ;;  %v8733_v35 = vld [vmem:[#allocation9 + $0x2a0] sm:$0xff] }
 0xb2b   :  { %3300 = vmatpush.msra.mxu0 %v3252_v50  ;;  %v3281_v50 = vld [vmem:[#allocation7 + $0x2f8] sm:$0xff] }
 0xb2d   :  { %3301 = vmatpush.msra.mxu0 %v3249_v26  ;;  %v8736_v26 = vld [vmem:[#allocation9 + $0x288] sm:$0xff] }
 0xb2f   :  { %3302 = vmatpush.msra.mxu0 %v3246_v45  ;;  %v3278_v45 = vld [vmem:[#allocation7 + $0x2e0] sm:$0xff] }
 0xb31   :  { %3303 = vmatpush.msra.mxu0 %v3243_v48  ;;  %v3275_v48 = vld [vmem:[#allocation7 + $0x2c8] sm:$0xff] }
 0xb33   :  { %3304 = vmatpush.msra.mxu0 %v3240_v10  ;;  %v8742_v10 = vld [vmem:[#allocation9 + $0x258] sm:$0xff] }
 0xb35   :  { %3305 = vmatpush.msra.mxu0 %v3237_v1  ;;  %v3271_v1 = vld [vmem:[#allocation7 + $0x2a8] sm:$0xff] }
 0xb37   :  { %3306 = vmatpush.msra.mxu0 %v3234_v38  ;;  %v8745_v38 = vld [vmem:[#allocation9 + $0x240] sm:$0xff] }
 0xb82   :  { %v2921_v42 = vpop.f32.mrf.mxu0 }
 0xb83   :  { %v2922_v41 = vadd.f32 %v2921_v42, %v10483_v44  ;;  %v2941_v36 = vpop.f32.mrf.mxu1 }
 0xb84   :  { %v2942_v30 = vadd.f32 %v2941_v36, %v7674_v61  ;;  %v3268_v36 = vld [vmem:[#allocation7 + $0x290] sm:$0xff] }
 0xb85   :  { %v2967_v24 = vadd.f32 %v2922_v41, %v1264_v37 }
 0xb87   :  { %v6049_v29 = vmul.f32 -1.442695, %v2967_v24 }
 0xb88   :  { %v2901_v55 = vpop.f32.mrf.mxu3 }
 0xb89   :  { %6230 = vpow2.f32 %v6049_v29  ;;  %v2902_v5 = vadd.f32 %v2901_v55, %v10482_v11  ;;  %v10488_v29 = vld [vmem:[#allocation49_spill] sm:$0xff]  ;;  %v10490_v55 = vld [vmem:[#allocation15_spill] sm:$0xff] }
 0xb8b   :  { %v2947_v9 = vadd.f32 %v2902_v5, %v1199_v62  ;;  %v10492_v62 = vld [vmem:[#allocation19_spill] sm:$0xff]  ;;  %v10493_v5 = vld [vmem:[#allocation20_spill] sm:$0xff] }
 0xb8d   :  { %v6048_v58 = vmul.f32 -1.442695, %v2947_v9  ;;  %v10495_v9 = vld [vmem:[#allocation51_spill] sm:$0xff] }
 0xb8f   :  { %v6231_v25 = vpop.eup %6230  ;;  %6232 = vpow2.f32 %v6048_v58  ;;  %v10497_v58 = vld [vmem:[#allocation17_spill] sm:$0xff] }
 0xb90   :  { %v2971_v47 = vadd.f32 1.0, %v6231_v25  ;;  %v8730_v25 = vld [vmem:[#allocation9 + $0x2b8] sm:$0xff] }
 0xb92   :  { %6234 = vrcp.f32 %v2971_v47  ;;  %v2983_v3 = vand.u32 2147483648, %v2971_v47  ;;  %vm2977_vm15 = vweird.f32 %v2971_v47  ;;  %v2981_v14 = vand.u32 2147483647, %v2971_v47 }
 0xb94   :  { %v2984_v42 = vor.u32 1.1754944e-38, %v2983_v3  ;;  %vm2982_vm1 = vcmp.eq.f32.partialorder %v2981_v14, 8.507059e+37  ;;  %v3263_v14 = vld [vmem:[#allocation7 + $0x268] sm:$0xff] }
 0xb95   :  { %v6233_v31 = vpop.eup %6232 }
 0xb96   :  { %v2951_v21 = vadd.f32 1.0, %v6233_v31  ;;  %v3277_v31 = vld [vmem:[#allocation7 + $0x2d8] sm:$0xff] }
 0xb98   :  { %6236 = vrcp.f32 %v2951_v21  ;;  %v6235_v60 = vpop.eup %6234  ;;  %v2963_v7 = vand.u32 2147483648, %v2951_v21  ;;  %v2961_v51 = vand.u32 2147483647, %v2951_v21  ;;  %vm2957_vm11 = vweird.f32 %v2951_v21 }
 0xb99   :  { %v2973_v39 = vmul.f32 %v6235_v60, %v2971_v47  ;;  %vm2978_vm14 = vweird.f32 %v6235_v60  ;;  %v3280_v47 = vld [vmem:[#allocation7 + $0x2f0] sm:$0xff] }
 0xb9a   :  { %v2964_v16 = vor.u32 1.1754944e-38, %v2963_v7  ;;  %vm2962_vm13 = vcmp.eq.f32.partialorder %v2961_v51, 8.507059e+37  ;;  %vm2979_vm0 = vmor %vm2977_vm15, %vm2978_vm14  ;;  %3356 = vmatpush.msrb.mxu1 %v3280_v47  ;;  %v10499_v7 = vld [vmem:[#allocation43_spill] sm:$0xff] }
 0xb9b   :  { %v2974_v49 = vsub.f32 1.0, %v2973_v39  ;;  %v3272_v39 = vld [vmem:[#allocation7 + $0x2b0] sm:$0xff]  ;;  %v3254_v47 = vld [vmem:[#allocation7 + $0x220] sm:$0xff] }
 0xb9c   :  { %3357 = vmatpush.msrb.mxu1 %v3277_v31 }
 0xb9d   :  { %v2975_v57 = vmul.f32 %v6235_v60, %v2974_v49  ;;  %v10498_v49 = vld [vmem:[#allocation41_spill] sm:$0xff] }
 0xb9e   :  { %v6237_v63 = vpop.eup %6236 }
 0xb9f   :  { %v2953_v59 = vmul.f32 %v6237_v63, %v2951_v21  ;;  %vm2958_vm10 = vweird.f32 %v6237_v63  ;;  %v2976_v6 = vadd.f32 %v6235_v60, %v2975_v57  ;;  %v8739_v21 = vld [vmem:[#allocation9 + $0x270] sm:$0xff] }
 0xba0   :  { %vm2959_vm12 = vmor %vm2957_vm11, %vm2958_vm10 }
 0xba1   :  { %v2954_v56 = vsub.f32 1.0, %v2953_v59  ;;  %v2980_v19 = vsel %vm2979_vm0, %v6235_v60, %v2976_v6  ;;  %v3274_v60 = vld [vmem:[#allocation7 + $0x2c0] sm:$0xff]  ;;  %v3265_v6 = vld [vmem:[#allocation7 + $0x278] sm:$0xff] }
 0xba2   :  { %v2985_v52 = vsel %vm2982_vm1, %v2984_v42, %v2980_v19  ;;  %3358 = vmatpush.msrb.mxu1 %v3274_v60  ;;  %v3259_v19 = vld [vmem:[#allocation7 + $0x248] sm:$0xff]  ;;  %v3260_v42 = vld [vmem:[#allocation7 + $0x250] sm:$0xff] }
 0xba3   :  { %v2955_v22 = vmul.f32 %v6237_v63, %v2954_v56  ;;  %v2990_v37 = vsub.f32 1.0, %v2985_v52  ;;  %v2992_v8 = vmul.f32 %v2985_v52, %v8681_v33  ;;  %v1202_v56 = vadd.f32 %v10498_v49, %v10478_v17  ;;  %v8763_v52 = vld [vmem:[#allocation9 + $0x1e0] sm:$0xff]  ;;  %v3251_v60 = vld [vmem:[#allocation7 + $0x208] sm:$0xff] }
 0xba4   :  { %3359 = vmatpush.msrb.mxu1 %v3271_v1  ;;  %v8774_v49 = vld [vmem:[#allocation9 + $0x180] sm:$0xff] }
 0xba5   :  { %v2956_v4 = vadd.f32 %v6237_v63, %v2955_v22  ;;  %v1267_v22 = vadd.f32 %v10499_v7, %v10480_v23  ;;  %10500 = vst [vmem:[#allocation23_spill] sm:$0xff] %v8774_v49  ;;  %v8779_v7 = vld [vmem:[#allocation9 + $0x2f0] sm:$0xff] }
 0xba6   :  { %3360 = vmatpush.msrb.mxu1 %v3268_v36  ;;  %v3241_v36 = vld [vmem:[#allocation7 + $0x1b8] sm:$0xff] }
 0xba7   :  { %v2960_v20 = vsel %vm2959_vm12, %v6237_v63, %v2956_v4  ;;  %v3269_v4 = vld [vmem:[#allocation7 + $0x298] sm:$0xff] }
 0xba8   :  { %v2965_v32 = vsel %vm2962_vm13, %v2964_v16, %v2960_v20  ;;  %v8754_v16 = vld [vmem:[#allocation9 + $0x228] sm:$0xff]  ;;  %3361 = vmatpush.msrb.mxu1 %v3265_v6  ;;  %v3238_v6 = vld [vmem:[#allocation7 + $0x1a0] sm:$0xff] }
 0xba9   :  { %v2987_v15 = vmul.f32 %v2965_v32, %v2942_v30  ;;  %v3266_v32 = vld [vmem:[#allocation7 + $0x280] sm:$0xff] }
 0xbab   :  { %v2988_v0 = vadd.f32 %v2987_v15, %v1329_v40  ;;  %v3262_v15 = vld [vmem:[#allocation7 + $0x260] sm:$0xff] }
 0xbac   :  { %3362 = vmatpush.msrb.mxu1 %v3262_v15  ;;  %v8790_v15 = vld [vmem:[#allocation9 + $0x2a8] sm:$0xff] }
 0xbad   :  { %6238 = vtanh.f32 %v2988_v0  ;;  %v8760_v0 = vld [vmem:[#allocation9 + $0x1f8] sm:$0xff] }
 0xbae   :  { %3363 = vmatpush.msrb.mxu1 %v3259_v19  ;;  %v3235_v19 = vld [vmem:[#allocation7 + $0x188] sm:$0xff] }
 0xbb3   :  { %v6239_v41 = vpop.eup %6238 }
 0xbb4   :  { %v2991_v24 = vmul.f32 %v6239_v41, %v2990_v37  ;;  %v3256_v37 = vld [vmem:[#allocation7 + $0x230] sm:$0xff]  ;;  %v3257_v41 = vld [vmem:[#allocation7 + $0x238] sm:$0xff] }
 0xbb5   :  { %3364 = vmatpush.msrb.mxu1 %v3256_v37 }
 0xbb6   :  { %v8705_v27 = vadd.f32 %v2992_v8, %v2991_v24  ;;  %v8766_v8 = vld [vmem:[#allocation9 + $0x1c8] sm:$0xff]  ;;  %v3253_v24 = vld [vmem:[#allocation7 + $0x218] sm:$0xff] }
 0xbb7   :  { %3365 = vmatpush.msrb.mxu1 %v3253_v24 }
 0xbb8   :  { %3011 = vmatmul.f32.vlgmr.msrb.gmra.mxu2 %v8705_v27  ;;  %3031 = vmatmul.f32.vlgmr.msrb.gmra.mxu3 %v8705_v27 }
 0xbb9   :  { %3051 = vmatmul.f32.vlgmr.msrb.gmra.mxu0 %v8705_v27  ;;  %3592 = vmatpush.msrb.mxu3 %v8724_v43 }
 0xbba   :  { %3421 = vmatpush.msrb.mxu2 %v3281_v50  ;;  %v8769_v50 = vld [vmem:[#allocation9 + $0x1b0] sm:$0xff]  ;;  %3723 = vmatpush.msrb.mxu0 %v8779_v7 }
 0xbbb   :  { %3593 = vmatpush.msrb.mxu3 %v8727_v18 }
 0xbbc   :  { %3422 = vmatpush.msrb.mxu2 %v3278_v45  ;;  %v3250_v45 = vld [vmem:[#allocation7 + $0x200] sm:$0xff] }
 0xbbd   :  { %3594 = vmatpush.msrb.mxu3 %v8730_v25  ;;  %3366 = vmatpush.msrb.mxu1 %v3250_v45 }
 0xbbe   :  { %3423 = vmatpush.msrb.mxu2 %v3275_v48  ;;  %v8772_v48 = vld [vmem:[#allocation9 + $0x198] sm:$0xff] }
 0xbbf   :  { %3595 = vmatpush.msrb.mxu3 %v8733_v35 }
 0xbc0   :  { %3424 = vmatpush.msrb.mxu2 %v3272_v39 }
 0xbc1   :  { %3307 = vmatmul.f32.vlgmr.msra.gmra.mxu0 %v10488_v29  ;;  %3596 = vmatpush.msrb.mxu3 %v8736_v26 }
 0xbc2   :  { %3425 = vmatpush.msrb.mxu2 %v3269_v4  ;;  %v3242_v4 = vld [vmem:[#allocation7 + $0x1c0] sm:$0xff] }
 0xbc3   :  { %3597 = vmatpush.msrb.mxu3 %v8739_v21 }
 0xbc4   :  { %3426 = vmatpush.msrb.mxu2 %v3266_v32  ;;  %v3239_v32 = vld [vmem:[#allocation7 + $0x1a8] sm:$0xff] }
 0xbc5   :  { %3598 = vmatpush.msrb.mxu3 %v8742_v10 }
 0xbc6   :  { %3427 = vmatpush.msrb.mxu2 %v3263_v14 }
 0xbc7   :  { %3599 = vmatpush.msrb.mxu3 %v8745_v38 }
 0xbc8   :  { %3428 = vmatpush.msrb.mxu2 %v3260_v42  ;;  %v3236_v42 = vld [vmem:[#allocation7 + $0x190] sm:$0xff] }
 0xbc9   :  { %3310 = vmatmul.f32.gmra.mxu0 %v10489_v54  ;;  %3600 = vmatpush.msrb.mxu3 %v8754_v16 }
 0xbca   :  { %3429 = vmatpush.msrb.mxu2 %v3257_v41  ;;  %v8794_v41 = vld [vmem:[#allocation9 + $0x290] sm:$0xff] }
 0xbcb   :  { %3601 = vmatpush.msrb.mxu3 %v8757_v46 }
 0xbcc   :  { %3430 = vmatpush.msrb.mxu2 %v3254_v47 }
 0xbcd   :  { %3602 = vmatpush.msrb.mxu3 %v8760_v0 }
 0xbce   :  { %3431 = vmatpush.msrb.mxu2 %v3251_v60  ;;  %v8797_v60 = vld [vmem:[#allocation9 + $0x278] sm:$0xff] }
 0xbcf   :  { %3603 = vmatpush.msrb.mxu3 %v8763_v52 }
 0xbd1   :  { %3313 = vmatmul.f32.gmra.mxu0 %v10490_v55  ;;  %3604 = vmatpush.msrb.mxu3 %v8766_v8 }
 0xbd3   :  { %3605 = vmatpush.msrb.mxu3 %v8769_v50 }
 0xbd5   :  { %3606 = vmatpush.msrb.mxu3 %v8772_v48 }
 0xbd7   :  { %3607 = vmatpush.msrb.mxu3 %v8774_v49 }
 0xbd9   :  { %3316 = vmatmul.f32.gmra.mxu0 %v10491_v2 }
 0xbe1   :  { %3319 = vmatmul.f32.gmra.mxu0 %v10492_v62 }
 0xbe9   :  { %3322 = vmatmul.f32.gmra.mxu0 %v10493_v5 }
 0xbf1   :  { %3325 = vmatmul.f32.gmra.mxu0 %v10494_v28 }
 0xbf9   :  { %3328 = vmatmul.f32.gmra.mxu0 %v10495_v9 }
 0xc01   :  { %3331 = vmatmul.f32.gmra.mxu0 %v10496_v12 }
 0xc09   :  { %3334 = vmatmul.f32.gmra.mxu0 %v10497_v58 }
 0xc11   :  { %3337 = vmatmul.f32.gmra.mxu0 %v8523_v34 }
 0xc19   :  { %3340 = vmatmul.f32.gmra.mxu0 %v8618_v13 }
 0xc21   :  { %3343 = vmatmul.f32.gmra.mxu0 %v8681_v33 }
 0xc29   :  { %3346 = vmatmul.f32.gmra.mxu0 %v8705_v27 }
 0xc3b   :  { %v3012_v63 = vpop.f32.mrf.mxu2  ;;  %v3032_v59 = vpop.f32.mrf.mxu3 }
 0xc3c   :  { %v3013_v51 = vadd.f32 %v3012_v63, %v10482_v11  ;;  %v3033_v57 = vadd.f32 %v3032_v59, %v10483_v44  ;;  %v3247_v63 = vld [vmem:[#allocation7 + $0x1e8] sm:$0xff]  ;;  %v3248_v59 = vld [vmem:[#allocation7 + $0x1f0] sm:$0xff] }
 0xc3d   :  { %3367 = vmatpush.msrb.mxu1 %v3247_v63  ;;  %3432 = vmatpush.msrb.mxu2 %v3248_v59  ;;  %v8938_v44 = vld [vmem:[#allocation9 + $0x190] sm:$0xff] }
 0xc3e   :  { %v3058_v30 = vadd.f32 %v3013_v51, %v1202_v56  ;;  %v3078_v20 = vadd.f32 %v3033_v57, %v1267_v22  ;;  %v3244_v22 = vld [vmem:[#allocation7 + $0x1d0] sm:$0xff]  ;;  %v3245_v51 = vld [vmem:[#allocation7 + $0x1d8] sm:$0xff]  ;;  %10504 = vst [vmem:[#allocation18_spill] sm:$0xff] %v8938_v44 }
 0xc3f   :  { %3368 = vmatpush.msrb.mxu1 %v3244_v22  ;;  %3433 = vmatpush.msrb.mxu2 %v3245_v51  ;;  %v8784_v57 = vld [vmem:[#allocation9 + $0x2d8] sm:$0xff]  ;;  %v8800_v22 = vld [vmem:[#allocation9 + $0x260] sm:$0xff] }
 0xc40   :  { %v6050_v40 = vmul.f32 -1.442695, %v3058_v30  ;;  %v6051_v3 = vmul.f32 -1.442695, %v3078_v20  ;;  %3724 = vmatpush.msrb.mxu0 %v8784_v57  ;;  %v8787_v30 = vld [vmem:[#allocation9 + $0x2c0] sm:$0xff] }
 0xc41   :  { %3369 = vmatpush.msrb.mxu1 %v3241_v36  ;;  %3434 = vmatpush.msrb.mxu2 %v3242_v4 }
 0xc42   :  { %6240 = vpow2.f32 %v6050_v40  ;;  %3725 = vmatpush.msrb.mxu0 %v8787_v30 }
 0xc43   :  { %6242 = vpow2.f32 %v6051_v3  ;;  %3370 = vmatpush.msrb.mxu1 %v3238_v6  ;;  %3435 = vmatpush.msrb.mxu2 %v3239_v32  ;;  %v8804_v6 = vld [vmem:[#allocation9 + $0x248] sm:$0xff] }
 0xc44   :  { %3726 = vmatpush.msrb.mxu0 %v8790_v15 }
 0xc45   :  { %3371 = vmatpush.msrb.mxu1 %v3235_v19  ;;  %3436 = vmatpush.msrb.mxu2 %v3236_v42 }
 0xc46   :  { %3727 = vmatpush.msrb.mxu0 %v8794_v41 }
 0xc48   :  { %v6241_v31 = vpop.eup %6240  ;;  %3728 = vmatpush.msrb.mxu0 %v8797_v60 }
 0xc49   :  { %v6243_v1 = vpop.eup %6242  ;;  %v3062_v39 = vadd.f32 1.0, %v6241_v31 }
 0xc4a   :  { %v8776_v56 = vadd.f32 1.0, %v6243_v1  ;;  %v3052_v1 = vpop.f32.mrf.mxu0  ;;  %3729 = vmatpush.msrb.mxu0 %v8800_v22 }
 0xc4b   :  { %6244 = vrcp.f32 %v3062_v39  ;;  %v3074_v24 = vand.u32 2147483648, %v3062_v39  ;;  %v3072_v45 = vand.u32 2147483647, %v3062_v39  ;;  %vm3068_vm3 = vweird.f32 %v3062_v39 }
 0xc4c   :  { %6246 = vrcp.f32 %v8776_v56  ;;  %v3053_v36 = vadd.f32 %v3052_v1, %v7674_v61  ;;  %3730 = vmatpush.msrb.mxu0 %v8804_v6  ;;  %v3094_v42 = vand.u32 2147483648, %v8776_v56  ;;  %vm3088_vm7 = vweird.f32 %v8776_v56  ;;  %v8818_v1 = vld [vmem:[#allocation9 + $0x200] sm:$0xff]  ;;  %v8934_v61 = vld [vmem:[#allocation9 + $0x1a8] sm:$0xff] }
 0xc4d   :  { %v3075_v51 = vor.u32 1.1754944e-38, %v3074_v24  ;;  %vm3073_vm5 = vcmp.eq.f32.partialorder %v3072_v45, 8.507059e+37 }
 0xc4e   :  { %v3095_v45 = vor.u32 1.1754944e-38, %v3094_v42  ;;  %v8846_v42 = vld [vmem:[#allocation9 + $0x2e0] sm:$0xff] }
 0xc51   :  { %v6245_v20 = vpop.eup %6244 }
 0xc52   :  { %v6247_v40 = vpop.eup %6246  ;;  %v3064_v3 = vmul.f32 %v6245_v20, %v3062_v39  ;;  %vm3069_vm2 = vweird.f32 %v6245_v20 }
 0xc53   :  { %v3084_v14 = vmul.f32 %v6247_v40, %v8776_v56  ;;  %vm3070_vm4 = vmor %vm3068_vm3, %vm3069_vm2  ;;  %vm3089_vm6 = vweird.f32 %v6247_v40 }
 0xc54   :  { %v3065_v37 = vsub.f32 1.0, %v3064_v3  ;;  %vm3090_vm8 = vmor %vm3088_vm7, %vm3089_vm6 }
 0xc55   :  { %v3085_v47 = vsub.f32 1.0, %v3084_v14  ;;  %v10501_v14 = vld [vmem:[#allocation67_spill] sm:$0xff] }
 0xc56   :  { %v3066_v31 = vmul.f32 %v6245_v20, %v3065_v37  ;;  %v1332_v39 = vadd.f32 %v10501_v14, %v7677_v53  ;;  %v8810_v37 = vld [vmem:[#allocation9 + $0x230] sm:$0xff]  ;;  %v8919_v53 = vld [vmem:[#allocation9 + $0x1d8] sm:$0xff] }
 0xc57   :  { %v3086_v63 = vmul.f32 %v6247_v40, %v3085_v47  ;;  %3731 = vmatpush.msrb.mxu0 %v8810_v37  ;;  %v8815_v47 = vld [vmem:[#allocation9 + $0x218] sm:$0xff] }
 0xc58   :  { %v3067_v59 = vadd.f32 %v6245_v20, %v3066_v31 }
 0xc59   :  { %v3087_v3 = vadd.f32 %v6247_v40, %v3086_v63  ;;  %3732 = vmatpush.msrb.mxu0 %v8815_v47 }
 0xc5a   :  { %v3071_v4 = vsel %vm3070_vm4, %v6245_v20, %v3067_v59  ;;  %v3092_v20 = vand.u32 2147483647, %v8776_v56  ;;  %v8821_v59 = vld [vmem:[#allocation9 + $0x1e8] sm:$0xff]  ;;  %v8824_v56 = vld [vmem:[#allocation9 + $0x1d0] sm:$0xff] }
 0xc5b   :  { %v3076_v32 = vsel %vm3073_vm5, %v3075_v51, %v3071_v4  ;;  %v3091_v31 = vsel %vm3090_vm8, %v6247_v40, %v3087_v3  ;;  %3733 = vmatpush.msrb.mxu0 %v8818_v1  ;;  %v8831_v3 = vld [vmem:[#allocation9 + $0x1a0] sm:$0xff] }
 0xc5c   :  { %v3098_v19 = vmul.f32 %v3076_v32, %v3053_v36  ;;  %vm3093_vm9 = vcmp.eq.f32.partialorder %v3092_v20, 8.507059e+37  ;;  %v8827_v36 = vld [vmem:[#allocation9 + $0x1b8] sm:$0xff]  ;;  %v8852_v20 = vld [vmem:[#allocation9 + $0x2c8] sm:$0xff] }
 0xc5d   :  { %v3096_v63 = vsel %vm3093_vm9, %v3095_v45, %v3091_v31  ;;  %3734 = vmatpush.msrb.mxu0 %v8821_v59  ;;  %v8864_v31 = vld [vmem:[#allocation9 + $0x2b0] sm:$0xff]  ;;  %v8868_v45 = vld [vmem:[#allocation9 + $0x298] sm:$0xff] }
 0xc5e   :  { %v3099_v24 = vadd.f32 %v3098_v19, %v1332_v39  ;;  %v3101_v51 = vsub.f32 1.0, %v3096_v63  ;;  %v3103_v32 = vmul.f32 %v3096_v63, %v8705_v27  ;;  %v8840_v39 = vld [vmem:[#allocation9 + $0x2f8] sm:$0xff]  ;;  %v8843_v19 = vld [vmem:[#allocation9 + $0x188] sm:$0xff]  ;;  %v8874_v63 = vld [vmem:[#allocation9 + $0x280] sm:$0xff] }
 0xc5f   :  { %3735 = vmatpush.msrb.mxu0 %v8824_v56  ;;  %10502 = vst [vmem:[#allocation24_spill] sm:$0xff] %v8843_v19 }
 0xc60   :  { %6248 = vtanh.f32 %v3099_v24  ;;  %v10503_v24 = vmov 0.0  }
 0xc61   :  { %3736 = vmatpush.msrb.mxu0 %v8827_v36 }
 0xc63   :  { %3737 = vmatpush.msrb.mxu0 %v8831_v3 }
 0xc65   :  { %3738 = vmatpush.msrb.mxu0 %v8843_v19 }
 0xc66   :  { %v6249_v40 = vpop.eup %6248 }
 0xc67   :  { %v3102_v4 = vmul.f32 %v6249_v40, %v3101_v51  ;;  %3854 = vmatpush.msra.mxu0 %v8840_v39  ;;  %v8889_v51 = vld [vmem:[#allocation9 + $0x250] sm:$0xff]  ;;  %v8895_v40 = vld [vmem:[#allocation9 + $0x238] sm:$0xff] }
 0xc69   :  { %v8833_v14 = vadd.f32 %v3103_v32, %v3102_v4  ;;  %3855 = vmatpush.msra.mxu0 %v8846_v42  ;;  %v8908_v4 = vld [vmem:[#allocation9 + $0x208] sm:$0xff]  ;;  %v8913_v32 = vld [vmem:[#allocation9 + $0x1f0] sm:$0xff] }
 0xc6b   :  { %3122 = vmatmul.f32.vlgmr.msra.gmra.mxu1 %v8833_v14  ;;  %3142 = vmatmul.f32.vlgmr.msra.gmra.mxu2 %v8833_v14 }
 0xc6c   :  { %3162 = vmatmul.f32.vlgmr.msra.gmra.mxu3 %v8833_v14  ;;  %3349 = vmatmul.f32.gmra.mxu0 %v8833_v14 }
 0xc6d   :  { %3612 = vmatpush.msra.mxu3 %v8779_v7  ;;  %3743 = vmatpush.msra.mxu1 %v8840_v39 }
 0xc6e   :  { %3814 = vmatpush.msra.mxu2 %v8724_v43  ;;  %3856 = vmatpush.msra.mxu0 %v8852_v20 }
 0xc6f   :  { %3613 = vmatpush.msra.mxu3 %v8784_v57  ;;  %3744 = vmatpush.msra.mxu1 %v8846_v42 }
 0xc70   :  { %3815 = vmatpush.msra.mxu2 %v8727_v18  ;;  %3857 = vmatpush.msra.mxu0 %v8864_v31 }
 0xc71   :  { %3614 = vmatpush.msra.mxu3 %v8787_v30  ;;  %3745 = vmatpush.msra.mxu1 %v8852_v20 }
 0xc72   :  { %3816 = vmatpush.msra.mxu2 %v8730_v25  ;;  %3858 = vmatpush.msra.mxu0 %v8868_v45 }
 0xc73   :  { %3615 = vmatpush.msra.mxu3 %v8790_v15  ;;  %3372 = vmatmul.f32.vlgmr.msrb.gmra.mxu1 %v10488_v29 }
 0xc74   :  { %3437 = vmatmul.f32.vlgmr.msrb.gmra.mxu2 %v10488_v29  ;;  %3608 = vmatmul.f32.vlgmr.msrb.gmra.mxu3 %v10503_v24  ;;  %v8884_v29 = vld [vmem:[#allocation9 + $0x268] sm:$0xff] }
 0xc75   :  { %3616 = vmatpush.msra.mxu3 %v8794_v41  ;;  %3746 = vmatpush.msra.mxu1 %v8864_v31 }
 0xc76   :  { %3817 = vmatpush.msra.mxu2 %v8733_v35  ;;  %3859 = vmatpush.msra.mxu0 %v8874_v63 }
 0xc77   :  { %3617 = vmatpush.msra.mxu3 %v8797_v60  ;;  %3747 = vmatpush.msra.mxu1 %v8868_v45 }
 0xc78   :  { %3818 = vmatpush.msra.mxu2 %v8736_v26  ;;  %3860 = vmatpush.msra.mxu0 %v8884_v29 }
 0xc79   :  { %3618 = vmatpush.msra.mxu3 %v8800_v22  ;;  %3748 = vmatpush.msra.mxu1 %v8874_v63 }
 0xc7a   :  { %3819 = vmatpush.msra.mxu2 %v8739_v21  ;;  %3861 = vmatpush.msra.mxu0 %v8889_v51 }
 0xc7b   :  { %3619 = vmatpush.msra.mxu3 %v8804_v6  ;;  %3375 = vmatmul.f32.gmra.mxu1 %v10489_v54 }
 0xc7c   :  { %3440 = vmatmul.f32.gmra.mxu2 %v10489_v54  ;;  %3749 = vmatpush.msra.mxu1 %v8884_v29  ;;  %v8901_v54 = vld [vmem:[#allocation9 + $0x220] sm:$0xff] }
 0xc7d   :  { %3620 = vmatpush.msra.mxu3 %v8810_v37  ;;  %3820 = vmatpush.msra.mxu2 %v8742_v10 }
 0xc7e   :  { %3750 = vmatpush.msra.mxu1 %v8889_v51  ;;  %3862 = vmatpush.msra.mxu0 %v8895_v40 }
 0xc7f   :  { %3621 = vmatpush.msra.mxu3 %v8815_v47  ;;  %3821 = vmatpush.msra.mxu2 %v8745_v38 }
 0xc80   :  { %3751 = vmatpush.msra.mxu1 %v8895_v40  ;;  %3863 = vmatpush.msra.mxu0 %v8901_v54 }
 0xc81   :  { %3622 = vmatpush.msra.mxu3 %v8818_v1  ;;  %3822 = vmatpush.msra.mxu2 %v8754_v16 }
 0xc82   :  { %3752 = vmatpush.msra.mxu1 %v8901_v54  ;;  %3864 = vmatpush.msra.mxu0 %v8908_v4 }
 0xc83   :  { %3623 = vmatpush.msra.mxu3 %v8821_v59  ;;  %3378 = vmatmul.f32.gmra.mxu1 %v10490_v55 }
 0xc84   :  { %3443 = vmatmul.f32.gmra.mxu2 %v10490_v55  ;;  %3753 = vmatpush.msra.mxu1 %v8908_v4  ;;  %v8925_v55 = vld [vmem:[#allocation9 + $0x1c0] sm:$0xff] }
 0xc85   :  { %3624 = vmatpush.msra.mxu3 %v8824_v56  ;;  %3823 = vmatpush.msra.mxu2 %v8757_v46 }
 0xc86   :  { %3754 = vmatpush.msra.mxu1 %v8913_v32  ;;  %3865 = vmatpush.msra.mxu0 %v8913_v32 }
 0xc87   :  { %3625 = vmatpush.msra.mxu3 %v8827_v36  ;;  %3824 = vmatpush.msra.mxu2 %v8760_v0 }
 0xc88   :  { %3755 = vmatpush.msra.mxu1 %v8919_v53  ;;  %3866 = vmatpush.msra.mxu0 %v8919_v53 }
 0xc89   :  { %3626 = vmatpush.msra.mxu3 %v8831_v3  ;;  %3825 = vmatpush.msra.mxu2 %v8763_v52 }
 0xc8a   :  { %3756 = vmatpush.msra.mxu1 %v8925_v55  ;;  %3867 = vmatpush.msra.mxu0 %v8925_v55 }
 0xc8b   :  { %3627 = vmatpush.msra.mxu3 %v8843_v19  ;;  %3381 = vmatmul.f32.gmra.mxu1 %v10491_v2 }
 0xc8c   :  { %3628 = vmatmul.f32.vlgmr.msra.gmra.mxu3 %v10503_v24  ;;  %3446 = vmatmul.f32.gmra.mxu2 %v10491_v2 }
 0xc8d   :  { %3632 = vmatpush.msrb.mxu3 %v8840_v39  ;;  %3757 = vmatpush.msra.mxu1 %v8934_v61 }
 0xc8e   :  { %3826 = vmatpush.msra.mxu2 %v8766_v8  ;;  %3868 = vmatpush.msra.mxu0 %v8934_v61 }
 0xc8f   :  { %3633 = vmatpush.msrb.mxu3 %v8846_v42  ;;  %3758 = vmatpush.msra.mxu1 %v8938_v44 }
 0xc90   :  { %3827 = vmatpush.msra.mxu2 %v8769_v50  ;;  %3869 = vmatpush.msra.mxu0 %v8938_v44 }
 0xc91   :  { %3634 = vmatpush.msrb.mxu3 %v8852_v20  ;;  %3925 = vmatpush.msrb.mxu1 %v8724_v43 }
 0xc92   :  { %3828 = vmatpush.msra.mxu2 %v8772_v48 }
 0xc93   :  { %3635 = vmatpush.msrb.mxu3 %v8864_v31  ;;  %3384 = vmatmul.f32.gmra.mxu1 %v10492_v62 }
 0xc94   :  { %3449 = vmatmul.f32.gmra.mxu2 %v10492_v62  ;;  %3926 = vmatpush.msrb.mxu1 %v8727_v18 }
 0xc95   :  { %3636 = vmatpush.msrb.mxu3 %v8868_v45  ;;  %3829 = vmatpush.msra.mxu2 %v8774_v49 }
 0xc96   :  { %3927 = vmatpush.msrb.mxu1 %v8730_v25 }
 0xc97   :  { %3945 = vmatpush.msrb.mxu2 %v8779_v7  ;;  %3637 = vmatpush.msrb.mxu3 %v8874_v63 }
 0xc98   :  { %3928 = vmatpush.msrb.mxu1 %v8733_v35 }
 0xc99   :  { %3946 = vmatpush.msrb.mxu2 %v8784_v57  ;;  %3638 = vmatpush.msrb.mxu3 %v8884_v29 }
 0xc9a   :  { %3929 = vmatpush.msrb.mxu1 %v8736_v26 }
 0xc9b   :  { %3947 = vmatpush.msrb.mxu2 %v8787_v30  ;;  %3639 = vmatpush.msrb.mxu3 %v8889_v51 }
 0xc9c   :  { %3387 = vmatmul.f32.gmra.mxu1 %v10493_v5  ;;  %3452 = vmatmul.f32.gmra.mxu2 %v10493_v5 }
 0xc9d   :  { %3640 = vmatpush.msrb.mxu3 %v8895_v40  ;;  %3948 = vmatpush.msrb.mxu2 %v8790_v15 }
 0xc9e   :  { %3930 = vmatpush.msrb.mxu1 %v8739_v21 }
 0xc9f   :  { %3641 = vmatpush.msrb.mxu3 %v8901_v54  ;;  %3949 = vmatpush.msrb.mxu2 %v8794_v41 }
 0xca0   :  { %3931 = vmatpush.msrb.mxu1 %v8742_v10 }
 0xca1   :  { %3642 = vmatpush.msrb.mxu3 %v8908_v4  ;;  %3950 = vmatpush.msrb.mxu2 %v8797_v60 }
 0xca2   :  { %3932 = vmatpush.msrb.mxu1 %v8745_v38 }
 0xca3   :  { %3643 = vmatpush.msrb.mxu3 %v8913_v32  ;;  %3951 = vmatpush.msrb.mxu2 %v8800_v22 }
 0xca4   :  { %3390 = vmatmul.f32.gmra.mxu1 %v10494_v28  ;;  %3455 = vmatmul.f32.gmra.mxu2 %v10494_v28  ;;  %v10506_v28 = vld [vmem:[#allocation46_spill] sm:$0xff] }
 0xca5   :  { %3644 = vmatpush.msrb.mxu3 %v8919_v53  ;;  %3933 = vmatpush.msrb.mxu1 %v8754_v16 }
 0xca6   :  { %3952 = vmatpush.msrb.mxu2 %v8804_v6 }
 0xca7   :  { %3645 = vmatpush.msrb.mxu3 %v8925_v55  ;;  %3934 = vmatpush.msrb.mxu1 %v8757_v46 }
 0xca8   :  { %3953 = vmatpush.msrb.mxu2 %v8810_v37 }
 0xca9   :  { %3646 = vmatpush.msrb.mxu3 %v8934_v61  ;;  %3935 = vmatpush.msrb.mxu1 %v8760_v0 }
 0xcaa   :  { %3954 = vmatpush.msrb.mxu2 %v8815_v47 }
 0xcab   :  { %3647 = vmatpush.msrb.mxu3 %v8938_v44  ;;  %3936 = vmatpush.msrb.mxu1 %v8763_v52 }
 0xcac   :  { %3393 = vmatmul.f32.gmra.mxu1 %v10495_v9  ;;  %3648 = vmatmul.f32.vlgmr.msrb.gmra.mxu3 %v10503_v24  ;;  %v3308_v24 = vpop.f32.mrf.mxu0 }
 0xcad   :  { %3458 = vmatmul.f32.gmra.mxu2 %v10495_v9  ;;  %3703 = vmatpush.msra.mxu3 %v8724_v43  ;;  %v1270_v9 = vadd.f32 %v10506_v28, %v10480_v23 }
 0xcae   :  { %3955 = vmatpush.msrb.mxu2 %v8818_v1  ;;  %3937 = vmatpush.msrb.mxu1 %v8766_v8 }
 0xcaf   :  { %3704 = vmatpush.msra.mxu3 %v8727_v18 }
 0xcb0   :  { %3956 = vmatpush.msrb.mxu2 %v8821_v59  ;;  %3938 = vmatpush.msrb.mxu1 %v8769_v50 }
 0xcb1   :  { %3705 = vmatpush.msra.mxu3 %v8730_v25 }
 0xcb2   :  { %3939 = vmatpush.msrb.mxu1 %v8772_v48  ;;  %3957 = vmatpush.msrb.mxu2 %v8824_v56 }
 0xcb3   :  { %3706 = vmatpush.msra.mxu3 %v8733_v35 }
 0xcb4   :  { %3396 = vmatmul.f32.gmra.mxu1 %v10496_v12  ;;  %3958 = vmatpush.msrb.mxu2 %v8827_v36 }
 0xcb5   :  { %3461 = vmatmul.f32.gmra.mxu2 %v10496_v12  ;;  %3707 = vmatpush.msra.mxu3 %v8736_v26  ;;  %v10507_v12 = vld [vmem:[#allocation45_spill] sm:$0xff]  ;;  %v9066_v26 = vld [vmem:[%s10194_s7 + $0x3] sm:$0x7] }
 0xcb6   :  { %3940 = vmatpush.msrb.mxu1 %v8774_v49  ;;  %3959 = vmatpush.msrb.mxu2 %v8831_v3 }
 0xcb7   :  { %3708 = vmatpush.msra.mxu3 %v8739_v21 }
 0xcb8   :  { %3960 = vmatpush.msrb.mxu2 %v8843_v19 }
 0xcb9   :  { %3709 = vmatpush.msra.mxu3 %v8742_v10  ;;  %v9072_v10 = vperm.slane %v9066_v26, 0 }
 0xcbb   :  { %3710 = vmatpush.msra.mxu3 %v8745_v38  ;;  %10509 = vst [vmem:[#allocation26_spill] sm:$0xff] %v9072_v10 }
 0xcbc   :  { %3399 = vmatmul.f32.gmra.mxu1 %v10497_v58 }
 0xcbd   :  { %3464 = vmatmul.f32.gmra.mxu2 %v10497_v58  ;;  %3711 = vmatpush.msra.mxu3 %v8754_v16 }
 0xcbf   :  { %3712 = vmatpush.msra.mxu3 %v8757_v46 }
 0xcc1   :  { %3713 = vmatpush.msra.mxu3 %v8760_v0 }
 0xcc3   :  { %3714 = vmatpush.msra.mxu3 %v8763_v52 }
 0xcc4   :  { %3402 = vmatmul.f32.gmra.mxu1 %v8523_v34 }
 0xcc5   :  { %3467 = vmatmul.f32.gmra.mxu2 %v8523_v34  ;;  %3715 = vmatpush.msra.mxu3 %v8766_v8 }
 0xcc7   :  { %3716 = vmatpush.msra.mxu3 %v8769_v50 }
 0xcc9   :  { %3717 = vmatpush.msra.mxu3 %v8772_v48 }
 0xccb   :  { %3718 = vmatpush.msra.mxu3 %v8774_v49  ;;  %v10512_v49 = vld [vmem:[#allocation68_spill] sm:$0xff] }
 0xccc   :  { %3405 = vmatmul.f32.gmra.mxu1 %v8618_v13 }
 0xccd   :  { %3470 = vmatmul.f32.gmra.mxu2 %v8618_v13  ;;  %3834 = vmatpush.msrb.mxu3 %v8779_v7  ;;  %v10505_v13 = vld [vmem:[#allocation42_spill] sm:$0xff] }
 0xccf   :  { %3835 = vmatpush.msrb.mxu3 %v8784_v57 }
 0xcd1   :  { %3836 = vmatpush.msrb.mxu3 %v8787_v30 }
 0xcd3   :  { %3837 = vmatpush.msrb.mxu3 %v8790_v15 }
 0xcd4   :  { %3408 = vmatmul.f32.gmra.mxu1 %v8681_v33 }
 0xcd5   :  { %3473 = vmatmul.f32.gmra.mxu2 %v8681_v33  ;;  %3838 = vmatpush.msrb.mxu3 %v8794_v41  ;;  %v1205_v33 = vadd.f32 %v10505_v13, %v10478_v17  ;;  %v9061_v17 = vld [vmem:[%s10196_s9 + $0x3] sm:$0x7] }
 0xcd6   :  { %v9069_v23 = vperm.slane %v9061_v17, 0 }
 0xcd7   :  { %3839 = vmatpush.msrb.mxu3 %v8797_v60 }
 0xcd8   :  { %10508 = vst [vmem:[#allocation25_spill] sm:$0xff] %v9069_v23 }
 0xcd9   :  { %3840 = vmatpush.msrb.mxu3 %v8800_v22 }
 0xcdb   :  { %3841 = vmatpush.msrb.mxu3 %v8804_v6 }
 0xcdc   :  { %3411 = vmatmul.f32.gmra.mxu1 %v8705_v27 }
 0xcdd   :  { %3476 = vmatmul.f32.gmra.mxu2 %v8705_v27  ;;  %3842 = vmatpush.msrb.mxu3 %v8810_v37 }
 0xcdf   :  { %3843 = vmatpush.msrb.mxu3 %v8815_v47 }
 0xce1   :  { %3844 = vmatpush.msrb.mxu3 %v8818_v1 }
 0xce3   :  { %3845 = vmatpush.msrb.mxu3 %v8821_v59 }
 0xce4   :  { %3414 = vmatmul.f32.gmra.mxu1 %v8833_v14 }
 0xce5   :  { %3479 = vmatmul.f32.gmra.mxu2 %v8833_v14  ;;  %3846 = vmatpush.msrb.mxu3 %v8824_v56 }
 0xce7   :  { %3847 = vmatpush.msrb.mxu3 %v8827_v36 }
 0xce8   :  { %v3123_v34 = vpop.f32.mrf.mxu1 }
 0xce9   :  { %3848 = vmatpush.msrb.mxu3 %v8831_v3  ;;  %v3124_v27 = vadd.f32 %v3123_v34, %v10482_v11 }
 0xceb   :  { %3849 = vmatpush.msrb.mxu3 %v8843_v19  ;;  %v3169_v2 = vadd.f32 %v3124_v27, %v1205_v33  ;;  %v3309_v27 = vadd.f32 %v3308_v24, %v9072_v10  ;;  %v10510_v19 = vld [vmem:[#allocation47_spill] sm:$0xff]  ;;  %v10511_v10 = vld [vmem:[#allocation48_spill] sm:$0xff] }
 0xced   :  { %v6052_v62 = vmul.f32 -1.442695, %v3169_v2 }
 0xcee   :  { %v3143_v5 = vpop.f32.mrf.mxu2 }
 0xcef   :  { %6250 = vpow2.f32 %v6052_v62  ;;  %v3144_v58 = vadd.f32 %v3143_v5, %v10507_v12  ;;  %v3163_v43 = vpop.f32.mrf.mxu3 }
 0xcf1   :  { %v3189_v18 = vadd.f32 %v3144_v58, %v1270_v9 }
 0xcf3   :  { %v6053_v25 = vmul.f32 -1.442695, %v3189_v18 }
 0xcf5   :  { %v6251_v35 = vpop.eup %6250  ;;  %6252 = vpow2.f32 %v6053_v25 }
 0xcf6   :  { %v3173_v11 = vadd.f32 1.0, %v6251_v35 }
 0xcf7   :  { %v3609_v21 = vpop.f32.mrf.mxu3 }
 0xcf8   :  { %6254 = vrcp.f32 %v3173_v11  ;;  %v3610_v13 = vadd.f32 %v3609_v21, %v9069_v23  ;;  %v3185_v28 = vand.u32 2147483648, %v3173_v11  ;;  %v3183_v12 = vand.u32 2147483647, %v3173_v11 }
 0xcf9   :  { %vm3179_vm11 = vweird.f32 %v3173_v11  ;;  %v3164_v21 = vadd.f32 %v3163_v43, %v10510_v19  ;;  %v9083_v19 = vperm.slane %v9061_v17, 1  ;;  %v3373_v43 = vpop.f32.mrf.mxu1 }
 0xcfa   :  { %v3655_v62 = vadd.f32 %v3610_v13, %v3309_v27  ;;  %vm3184_vm13 = vcmp.eq.f32.partialorder %v3183_v12, 8.507059e+37  ;;  %v1335_v13 = vadd.f32 %v10512_v49, %v10511_v10 }
 0xcfb   :  { %v6253_v38 = vpop.eup %6252  ;;  %10514 = vst [vmem:[#allocation27_spill] sm:$0xff] %v9083_v19 }
 0xcfc   :  { %v3193_v34 = vadd.f32 1.0, %v6253_v38  ;;  %v6056_v18 = vmul.f32 -1.442695, %v3655_v62  ;;  %v3186_v38 = vor.u32 1.1754944e-38, %v3185_v28  ;;  %v9080_v28 = vperm.slane %v9066_v26, 1 }
 0xcfe   :  { %v6255_v33 = vpop.eup %6254  ;;  %6256 = vrcp.f32 %v3193_v34  ;;  %v3205_v44 = vand.u32 2147483648, %v3193_v34  ;;  %v3203_v62 = vand.u32 2147483647, %v3193_v34  ;;  %vm3199_vm15 = vweird.f32 %v3193_v34  ;;  %10513 = vst [vmem:[#allocation60_spill] sm:$0xff] %v9080_v28 }
 0xcff   :  { %v3175_v2 = vmul.f32 %v6255_v33, %v3173_v11  ;;  %vm3180_vm10 = vweird.f32 %v6255_v33  ;;  %6258 = vpow2.f32 %v6056_v18  ;;  %v3374_v18 = vadd.f32 %v3373_v43, %v9080_v28 }
 0xd00   :  { %vm3181_vm12 = vmor %vm3179_vm11, %vm3180_vm10  ;;  %vm3204_vm1 = vcmp.eq.f32.partialorder %v3203_v62, 8.507059e+37 }
 0xd01   :  { %v3176_v5 = vsub.f32 1.0, %v3175_v2 }
 0xd03   :  { %v3177_v9 = vmul.f32 %v6255_v33, %v3176_v5 }
 0xd04   :  { %v6257_v58 = vpop.eup %6256 }
 0xd05   :  { %v3178_v25 = vadd.f32 %v6255_v33, %v3177_v9  ;;  %v3195_v35 = vmul.f32 %v6257_v58, %v3193_v34  ;;  %vm3200_vm14 = vweird.f32 %v6257_v58  ;;  %v6259_v10 = vpop.eup %6258 }
 0xd06   :  { %vm3201_vm0 = vmor %vm3199_vm15, %vm3200_vm14  ;;  %v3659_v34 = vadd.f32 1.0, %v6259_v10 }
 0xd07   :  { %v3182_v23 = vsel %vm3181_vm12, %v6255_v33, %v3178_v25  ;;  %v3196_v24 = vsub.f32 1.0, %v3195_v35 }
 0xd08   :  { %v3187_v27 = vsel %vm3184_vm13, %v3186_v38, %v3182_v23  ;;  %v3206_v23 = vor.u32 1.1754944e-38, %v3205_v44  ;;  %vm3665_vm3 = vweird.f32 %v3659_v34 }
 0xd09   :  { %v3209_v2 = vmul.f32 %v3187_v27, %v3164_v21  ;;  %v3197_v5 = vmul.f32 %v6257_v58, %v3196_v24 }
 0xd0b   :  { %v3210_v9 = vadd.f32 %v3209_v2, %v1335_v13  ;;  %v3198_v11 = vadd.f32 %v6257_v58, %v3197_v5 }
 0xd0d   :  { %6260 = vtanh.f32 %v3210_v9  ;;  %v3202_v49 = vsel %vm3201_vm0, %v6257_v58, %v3198_v11 }
 0xd0e   :  { %v3207_v12 = vsel %vm3204_vm1, %v3206_v23, %v3202_v49  ;;  %6262 = vrcp.f32 %v3659_v34 }
 0xd0f   :  { %v3629_v33 = vpop.f32.mrf.mxu3  ;;  %v3212_v38 = vsub.f32 1.0, %v3207_v12  ;;  %v3214_v27 = vmul.f32 %v3207_v12, %v8833_v14  ;;  %v9089_v14 = vperm.slane %v9061_v17, 2  ;;  %v3669_v12 = vand.u32 2147483647, %v3659_v34 }
 0xd10   :  { %v3630_v25 = vadd.f32 %v3629_v33, %v9083_v19  ;;  %v3671_v33 = vand.u32 2147483648, %v3659_v34 }
 0xd11   :  { %vm3670_vm5 = vcmp.eq.f32.partialorder %v3669_v12, 8.507059e+37 }
 0xd12   :  { %v3675_v35 = vadd.f32 %v3630_v25, %v3374_v18  ;;  %v9091_v25 = vpop.f32.mrf.mxu0 }
 0xd13   :  { %v6261_v21 = vpop.eup %6260 }
 0xd14   :  { %v6057_v24 = vmul.f32 -1.442695, %v3675_v35  ;;  %v3213_v13 = vmul.f32 %v6261_v21, %v3212_v38  ;;  %v6263_v44 = vpop.eup %6262  ;;  %v9094_v35 = vperm.slane %v9066_v26, 2  ;;  %v3438_v21 = vpop.f32.mrf.mxu2 }
 0xd15   :  { %v3661_v62 = vmul.f32 %v6263_v44, %v3659_v34  ;;  %vm3666_vm2 = vweird.f32 %v6263_v44 }
 0xd16   :  { %6264 = vpow2.f32 %v6057_v24  ;;  %v3215_v58 = vadd.f32 %v3214_v27, %v3213_v13  ;;  %vm3667_vm4 = vmor %vm3665_vm3, %vm3666_vm2  ;;  %v3672_v13 = vor.u32 1.1754944e-38, %v3671_v33 }
 0xd17   :  { %v3662_v9 = vsub.f32 1.0, %v3661_v62 }
 0xd18   :  { %3352 = vmatmul.f32.gmra.mxu0 %v3215_v58  ;;  %3417 = vmatmul.f32.gmra.mxu1 %v3215_v58 }
 0xd19   :  { %3482 = vmatmul.f32.gmra.mxu2 %v3215_v58  ;;  %v3663_v49 = vmul.f32 %v6263_v44, %v3662_v9 }
 0xd1b   :  { %v3664_v10 = vadd.f32 %v6263_v44, %v3663_v49 }
 0xd1c   :  { %v6265_v2 = vpop.eup %6264 }
 0xd1d   :  { %v3679_v5 = vadd.f32 1.0, %v6265_v2  ;;  %v3668_v38 = vsel %vm3667_vm4, %v6263_v44, %v3664_v10  ;;  %v3439_v2 = vadd.f32 %v3438_v21, %v9094_v35  ;;  %v9098_v44 = vpop.f32.mrf.mxu0  ;;  %v9113_v21 = vld [vmem:[#allocation9 + $0x2d0] sm:$0xff] }
 0xd1e   :  { %v3673_v58 = vsel %vm3670_vm5, %v3672_v13, %v3668_v38  ;;  %v9123_v13 = vld [vmem:[#allocation9 + $0x2a0] sm:$0xff] }
 0xd1f   :  { %6266 = vrcp.f32 %v3679_v5  ;;  %v3691_v34 = vand.u32 2147483648, %v3679_v5  ;;  %vm3685_vm7 = vweird.f32 %v3679_v5  ;;  %v3689_v9 = vand.u32 2147483647, %v3679_v5 }
 0xd21   :  { %v3692_v49 = vor.u32 1.1754944e-38, %v3691_v34  ;;  %vm3690_vm9 = vcmp.eq.f32.partialorder %v3689_v9, 8.507059e+37 }
 0xd25   :  { %v6267_v11 = vpop.eup %6266 }
 0xd26   :  { %v3681_v43 = vmul.f32 %v6267_v11, %v3679_v5  ;;  %vm3686_vm6 = vweird.f32 %v6267_v11  ;;  %v9104_v5 = vpop.f32.mrf.mxu0 }
 0xd27   :  { %vm3687_vm8 = vmor %vm3685_vm7, %vm3686_vm6 }
 0xd28   :  { %v3682_v23 = vsub.f32 1.0, %v3681_v43 }
 0xd2a   :  { %v3683_v18 = vmul.f32 %v6267_v11, %v3682_v23 }
 0xd2c   :  { %v3684_v17 = vadd.f32 %v6267_v11, %v3683_v18 }
 0xd2e   :  { %v3688_v26 = vsel %vm3687_vm8, %v6267_v11, %v3684_v17  ;;  %v9108_v11 = vld [vmem:[#allocation9 + $0x2e8] sm:$0xff] }
 0xd2f   :  { %v3649_v24 = vpop.f32.mrf.mxu3  ;;  %v3693_v23 = vsel %vm3690_vm9, %v3692_v49, %v3688_v26 }
 0xd30   :  { %v3650_v27 = vadd.f32 %v3649_v24, %v9089_v14  ;;  %v3698_v10 = vsub.f32 1.0, %v3693_v23  ;;  %v3700_v38 = vmul.f32 0.0, %v3693_v23  ;;  %v9118_v24 = vld [vmem:[#allocation9 + $0x2b8] sm:$0xff] }
 0xd32   :  { %v3695_v62 = vmul.f32 %v3673_v58, %v3650_v27  ;;  %v3376_v27 = vpop.f32.mrf.mxu1 }
 0xd33   :  { %v3377_v23 = vadd.f32 %v3376_v27, %v9080_v28 }
 0xd34   :  { %v3696_v43 = vadd.f32 %v3695_v62, %v3439_v2 }
 0xd36   :  { %6268 = vtanh.f32 %v3696_v43 }
 0xd3c   :  { %v6269_v33 = vpop.eup %6268 }
 0xd3d   :  { %v3699_v12 = vmul.f32 %v6269_v33, %v3698_v10 }
 0xd3f   :  { %v9100_v18 = vadd.f32 %v3700_v38, %v3699_v12 }
 0xd41   :  { %10515 = vst [vmem:[#allocation28_spill] sm:$0xff] %v9100_v18  ;;  %3719 = vmatmul.f32.vlgmr.msra.gmra.mxu3 %v9100_v18  ;;  %3739 = vmatmul.f32.vlgmr.msrb.gmra.mxu0 %v9100_v18 }
 0xd42   :  { %3759 = vmatmul.f32.vlgmr.msra.gmra.mxu1 %v9100_v18  ;;  %3965 = vmatpush.msra.mxu3 %v8840_v39 }
 0xd43   :  { %4036 = vmatpush.msrb.mxu0 %v9108_v11  ;;  %4056 = vmatpush.msra.mxu1 %v8779_v7  ;;  %v9128_v7 = vld [vmem:[#allocation9 + $0x288] sm:$0xff] }
 0xd44   :  { %3966 = vmatpush.msra.mxu3 %v8846_v42 }
 0xd45   :  { %4037 = vmatpush.msrb.mxu0 %v9113_v21  ;;  %4057 = vmatpush.msra.mxu1 %v8784_v57  ;;  %v9132_v57 = vpop.f32.mrf.mxu0 }
 0xd46   :  { %3967 = vmatpush.msra.mxu3 %v8852_v20  ;;  %10516 = vst [vmem:[#allocation61_spill] sm:$0xff] %v9132_v57 }
 0xd47   :  { %4038 = vmatpush.msrb.mxu0 %v9118_v24  ;;  %4058 = vmatpush.msra.mxu1 %v8787_v30  ;;  %v9135_v30 = vld [vmem:[#allocation9 + $0x270] sm:$0xff] }
 0xd48   :  { %3968 = vmatpush.msra.mxu3 %v8864_v31 }
 0xd49   :  { %4039 = vmatpush.msrb.mxu0 %v9123_v13  ;;  %4059 = vmatpush.msra.mxu1 %v8790_v15  ;;  %v9140_v15 = vld [vmem:[#allocation9 + $0x258] sm:$0xff] }
 0xd4a   :  { %3969 = vmatpush.msra.mxu3 %v8868_v45 }
 0xd4b   :  { %4040 = vmatpush.msrb.mxu0 %v9128_v7  ;;  %4060 = vmatpush.msra.mxu1 %v8794_v41  ;;  %v9145_v41 = vld [vmem:[#allocation9 + $0x240] sm:$0xff] }
 0xd4c   :  { %3970 = vmatpush.msra.mxu3 %v8874_v63 }
 0xd4d   :  { %4041 = vmatpush.msrb.mxu0 %v9135_v30  ;;  %4061 = vmatpush.msra.mxu1 %v8797_v60  ;;  %v9155_v60 = vpop.f32.mrf.mxu0 }
 0xd4e   :  { %3971 = vmatpush.msra.mxu3 %v8884_v29  ;;  %10517 = vst [vmem:[#allocation30_spill] sm:$0xff] %v9155_v60 }
 0xd4f   :  { %4042 = vmatpush.msrb.mxu0 %v9140_v15  ;;  %4062 = vmatpush.msra.mxu1 %v8800_v22  ;;  %v9160_v22 = vpop.f32.mrf.mxu1 }
 0xd50   :  { %3972 = vmatpush.msra.mxu3 %v8889_v51 }
 0xd51   :  { %4043 = vmatpush.msrb.mxu0 %v9145_v41  ;;  %4063 = vmatpush.msra.mxu1 %v8804_v6 }
 0xd52   :  { %3973 = vmatpush.msra.mxu3 %v8895_v40 }
 0xd53   :  { %4044 = vmatpush.msrb.mxu0 %v8754_v16  ;;  %4064 = vmatpush.msra.mxu1 %v8810_v37 }
 0xd54   :  { %3974 = vmatpush.msra.mxu3 %v8901_v54 }
 0xd55   :  { %4045 = vmatpush.msrb.mxu0 %v8757_v46  ;;  %4065 = vmatpush.msra.mxu1 %v8815_v47  ;;  %v9174_v16 = vpop.f32.mrf.mxu0  ;;  %v10519_v46 = vld [vmem:[#allocation18_spill] sm:$0xff] }
 0xd56   :  { %3975 = vmatpush.msra.mxu3 %v8908_v4  ;;  %10518 = vst [vmem:[#allocation29_spill] sm:$0xff] %v9174_v16 }
 0xd57   :  { %4046 = vmatpush.msrb.mxu0 %v8760_v0  ;;  %4066 = vmatpush.msra.mxu1 %v8818_v1  ;;  %v10520_v0 = vld [vmem:[#allocation23_spill] sm:$0xff] }
 0xd58   :  { %3976 = vmatpush.msra.mxu3 %v8913_v32 }
 0xd59   :  { %4047 = vmatpush.msrb.mxu0 %v8763_v52  ;;  %4067 = vmatpush.msra.mxu1 %v8821_v59  ;;  %v10521_v52 = vld [vmem:[#allocation24_spill] sm:$0xff] }
 0xd5a   :  { %3977 = vmatpush.msra.mxu3 %v8919_v53 }
 0xd5b   :  { %4048 = vmatpush.msrb.mxu0 %v8766_v8  ;;  %4068 = vmatpush.msra.mxu1 %v8824_v56  ;;  %v9179_v8 = vpop.f32.mrf.mxu1 }
 0xd5c   :  { %3978 = vmatpush.msra.mxu3 %v8925_v55 }
 0xd5d   :  { %4049 = vmatpush.msrb.mxu0 %v8769_v50  ;;  %4069 = vmatpush.msra.mxu1 %v8827_v36  ;;  %v9181_v6 = vpop.f32.mrf.mxu0 }
 0xd5e   :  { %3979 = vmatpush.msra.mxu3 %v8934_v61  ;;  %10522 = vst [vmem:[#allocation62_spill] sm:$0xff] %v9181_v6 }
 0xd5f   :  { %4050 = vmatpush.msrb.mxu0 %v8772_v48  ;;  %4070 = vmatpush.msra.mxu1 %v8831_v3 }
 0xd60   :  { %3980 = vmatpush.msra.mxu3 %v10519_v46 }
 0xd61   :  { %4051 = vmatpush.msrb.mxu0 %v10520_v0  ;;  %4071 = vmatpush.msra.mxu1 %v10521_v52  ;;  %v10540_v0 = vld [vmem:[#allocation26_spill] sm:$0xff] }
 0xd62   :  { %v3312_v52 = vadd.f32 %v9091_v25, %v10540_v0 }
 0xd63   :  { %v9183_v50 = vpop.f32.mrf.mxu1 }
 0xd64   :  { %10523 = vst [vmem:[#allocation54_spill] sm:$0xff] %v9183_v50 }
 0xd65   :  { %v9185_v37 = vpop.f32.mrf.mxu0 }
 0xd66   :  { %10524 = vst [vmem:[#allocation58_spill] sm:$0xff] %v9185_v37 }
 0xd6b   :  { %v9187_v47 = vpop.f32.mrf.mxu1 }
 0xd6c   :  { %10525 = vst [vmem:[#allocation52_spill] sm:$0xff] %v9187_v47 }
 0xd6d   :  { %v9189_v48 = vpop.f32.mrf.mxu0 }
 0xd6e   :  { %10526 = vst [vmem:[#allocation50_spill] sm:$0xff] %v9189_v48 }
 0xd73   :  { %v9191_v1 = vpop.f32.mrf.mxu1 }
 0xd74   :  { %10527 = vst [vmem:[#allocation59_spill] sm:$0xff] %v9191_v1 }
 0xd75   :  { %v9193_v59 = vpop.f32.mrf.mxu0 }
 0xd76   :  { %10528 = vst [vmem:[#allocation22_spill] sm:$0xff] %v9193_v59 }
 0xd7b   :  { %v9195_v56 = vpop.f32.mrf.mxu1 }
 0xd7c   :  { %10529 = vst [vmem:[#allocation55_spill] sm:$0xff] %v9195_v56 }
 0xd7d   :  { %v9197_v36 = vpop.f32.mrf.mxu0 }
 0xd7e   :  { %10530 = vst [vmem:[#allocation21_spill] sm:$0xff] %v9197_v36 }
 0xd83   :  { %v9199_v3 = vpop.f32.mrf.mxu1 }
 0xd84   :  { %10531 = vst [vmem:[#allocation31_spill] sm:$0xff] %v9199_v3 }
 0xd85   :  { %v9201_v58 = vpop.f32.mrf.mxu0 }
 0xd86   :  { %10532 = vst [vmem:[#allocation32_spill] sm:$0xff] %v9201_v58 }
 0xd8b   :  { %v9203_v17 = vpop.f32.mrf.mxu1 }
 0xd8c   :  { %10533 = vst [vmem:[#allocation63_spill] sm:$0xff] %v9203_v17 }
 0xd8d   :  { %v9205_v2 = vpop.f32.mrf.mxu0 }
 0xd8e   :  { %10534 = vst [vmem:[#allocation33_spill] sm:$0xff] %v9205_v2  ;;  %v10541_v2 = vld [vmem:[#allocation25_spill] sm:$0xff] }
 0xd93   :  { %v9207_v34 = vpop.f32.mrf.mxu1 }
 0xd94   :  { %10535 = vst [vmem:[#allocation36_spill] sm:$0xff] %v9207_v34 }
 0xd95   :  { %v9209_v62 = vpop.f32.mrf.mxu0 }
 0xd96   :  { %10536 = vst [vmem:[#allocation64_spill] sm:$0xff] %v9209_v62 }
 0xd9b   :  { %v9211_v9 = vpop.f32.mrf.mxu1 }
 0xd9c   :  { %10537 = vst [vmem:[#allocation34_spill] sm:$0xff] %v9211_v9 }
 0xd9d   :  { %v9213_v43 = vpop.f32.mrf.mxu0 }
 0xd9e   :  { %10538 = vst [vmem:[#allocation37_spill] sm:$0xff] %v9213_v43 }
 0xda3   :  { %v9215_v26 = vpop.f32.mrf.mxu1 }
 0xda4   :  { %10539 = vst [vmem:[#allocation44_spill] sm:$0xff] %v9215_v26 }
 0xdab   :  { %v9222_v58 = vpop.f32.mrf.mxu1 }
 0xdac   :  { %10542 = vst [vmem:[#allocation38_spill] sm:$0xff] %v9222_v58 }
 0xdb3   :  { %v9224_v27 = vpop.f32.mrf.mxu1 }
 0xdb4   :  { %10543 = vst [vmem:[#allocation35_spill] sm:$0xff] %v9224_v27  ;;  %v3441_v27 = vpop.f32.mrf.mxu2 }
 0xdbe   :  { %v3740_v49 = vpop.f32.mrf.mxu0 }
 0xdbf   :  { %v3741_v10 = vadd.f32 %v3740_v49, %v9083_v19 }
 0xdc1   :  { %v3786_v33 = vadd.f32 %v3741_v10, %v3377_v23 }
 0xdc3   :  { %v6059_v12 = vmul.f32 -1.442695, %v3786_v33  ;;  %v9226_v33 = vpop.f32.mrf.mxu1 }
 0xdc4   :  { %v3720_v38 = vpop.f32.mrf.mxu3  ;;  %10544 = vst [vmem:[#allocation65_spill] sm:$0xff] %v9226_v33 }
 0xdc5   :  { %6270 = vpow2.f32 %v6059_v12  ;;  %v3721_v62 = vadd.f32 %v3720_v38, %v10541_v2 }
 0xdc7   :  { %v3766_v9 = vadd.f32 %v3721_v62, %v3312_v52 }
 0xdc9   :  { %v6058_v43 = vmul.f32 -1.442695, %v3766_v9 }
 0xdcb   :  { %v6271_v36 = vpop.eup %6270  ;;  %6272 = vpow2.f32 %v6058_v43 }
 0xdcc   :  { %v3790_v26 = vadd.f32 1.0, %v6271_v36  ;;  %v3760_v36 = vpop.f32.mrf.mxu1 }
 0xdcd   :  { %v3761_v48 = vadd.f32 %v3760_v36, %v9089_v14 }
 0xdce   :  { %6274 = vrcp.f32 %v3790_v26  ;;  %vm3796_vm15 = vweird.f32 %v3790_v26  ;;  %v3800_v37 = vand.u32 2147483647, %v3790_v26 }
 0xdd0   :  { %vm3801_vm1 = vcmp.eq.f32.partialorder %v3800_v37, 8.507059e+37  ;;  %v9240_v37 = vld [vmem:[#allocation9 + $0x2f0] sm:$0xff] }
 0xdd1   :  { %v6273_v49 = vpop.eup %6272 }
 0xdd2   :  { %v3770_v23 = vadd.f32 1.0, %v6273_v49 }
 0xdd4   :  { %6276 = vrcp.f32 %v3770_v23  ;;  %v6275_v10 = vpop.eup %6274  ;;  %v3782_v58 = vand.u32 2147483648, %v3770_v23  ;;  %v3780_v9 = vand.u32 2147483647, %v3770_v23  ;;  %vm3776_vm11 = vweird.f32 %v3770_v23 }
 0xdd5   :  { %v3792_v25 = vmul.f32 %v6275_v10, %v3790_v26  ;;  %vm3797_vm14 = vweird.f32 %v6275_v10 }
 0xdd6   :  { %v3783_v49 = vor.u32 1.1754944e-38, %v3782_v58  ;;  %vm3781_vm13 = vcmp.eq.f32.partialorder %v3780_v9, 8.507059e+37  ;;  %vm3798_vm0 = vmor %vm3796_vm15, %vm3797_vm14 }
 0xdd7   :  { %v3793_v38 = vsub.f32 1.0, %v3792_v25  ;;  %v3802_v25 = vand.u32 2147483648, %v3790_v26  ;;  %v9283_v26 = vld [vmem:[#allocation9 + $0x228] sm:$0xff] }
 0xdd9   :  { %v3794_v43 = vmul.f32 %v6275_v10, %v3793_v38 }
 0xdda   :  { %v6277_v12 = vpop.eup %6276 }
 0xddb   :  { %v3772_v34 = vmul.f32 %v6277_v12, %v3770_v23  ;;  %vm3777_vm10 = vweird.f32 %v6277_v12  ;;  %v3795_v3 = vadd.f32 %v6275_v10, %v3794_v43  ;;  %v3803_v23 = vor.u32 1.1754944e-38, %v3802_v25  ;;  %v9330_v25 = vld [vmem:[#allocation9 + $0x1a0] sm:$0xff] }
 0xddc   :  { %vm3778_vm12 = vmor %vm3776_vm11, %vm3777_vm10  ;;  %10551 = vst [vmem:[#allocation16_spill] sm:$0xff] %v9330_v25 }
 0xddd   :  { %v3773_v59 = vsub.f32 1.0, %v3772_v34  ;;  %v3442_v34 = vadd.f32 %v3441_v27, %v9094_v35  ;;  %v9290_v27 = vld [vmem:[#allocation9 + $0x210] sm:$0xff] }
 0xddf   :  { %v3774_v62 = vmul.f32 %v6277_v12, %v3773_v59 }
 0xde1   :  { %v3775_v52 = vadd.f32 %v6277_v12, %v3774_v62  ;;  %v3799_v62 = vsel %vm3798_vm0, %v6275_v10, %v3795_v3  ;;  %v9262_v3 = vld [vmem:[#allocation9 + $0x290] sm:$0xff]  ;;  %v9300_v10 = vld [vmem:[#allocation9 + $0x200] sm:$0xff] }
 0xde2   :  { %v3804_v58 = vsel %vm3801_vm1, %v3803_v23, %v3799_v62 }
 0xde3   :  { %v3779_v17 = vsel %vm3778_vm12, %v6277_v12, %v3775_v52  ;;  %v3809_v56 = vsub.f32 1.0, %v3804_v58  ;;  %v9230_v12 = vpop.f32.mrf.mxu2 }
 0xde4   :  { %v3784_v33 = vsel %vm3781_vm13, %v3783_v49, %v3779_v17  ;;  %v3811_v17 = vmul.f32 %v3804_v58, %v9100_v18  ;;  %v9316_v49 = vld [vmem:[#allocation9 + $0x1d0] sm:$0xff] }
 0xde5   :  { %v3806_v59 = vmul.f32 %v3784_v33, %v3761_v48  ;;  %v9245_v48 = vld [vmem:[#allocation9 + $0x2d8] sm:$0xff]  ;;  %v9307_v33 = vld [vmem:[#allocation9 + $0x1e8] sm:$0xff] }
 0xde7   :  { %v3807_v38 = vadd.f32 %v3806_v59, %v3442_v34  ;;  %v9323_v34 = vld [vmem:[#allocation9 + $0x1b8] sm:$0xff]  ;;  %v9337_v59 = vld [vmem:[#allocation9 + $0x188] sm:$0xff] }
 0xde8   :  { %10549 = vst [vmem:[#allocation53_spill] sm:$0xff] %v9323_v34 }
 0xde9   :  { %6278 = vtanh.f32 %v3807_v38  ;;  %10553 = vst [vmem:[#allocation20_spill] sm:$0xff] %v9337_v59 }
 0xdef   :  { %v6279_v36 = vpop.eup %6278 }
 0xdf0   :  { %v3810_v9 = vmul.f32 %v6279_v36, %v3809_v56  ;;  %v9248_v56 = vpop.f32.mrf.mxu2 }
 0xdf2   :  { %v9233_v43 = vadd.f32 %v3811_v17, %v3810_v9 }
 0xdf4   :  { %10545 = vst [vmem:[#allocation40_spill] sm:$0xff] %v9233_v43  ;;  %3830 = vmatmul.f32.vlgmr.msra.gmra.mxu2 %v9233_v43  ;;  %3850 = vmatmul.f32.vlgmr.msrb.gmra.mxu3 %v9233_v43 }
 0xdf5   :  { %3870 = vmatmul.f32.vlgmr.msra.gmra.mxu0 %v9233_v43  ;;  %4076 = vmatpush.msra.mxu2 %v8840_v39  ;;  %v9252_v39 = vld [vmem:[#allocation9 + $0x2c0] sm:$0xff] }
 0xdf6   :  { %4147 = vmatpush.msrb.mxu3 %v9108_v11  ;;  %4167 = vmatpush.msra.mxu0 %v9240_v37 }
 0xdf7   :  { %4077 = vmatpush.msra.mxu2 %v8846_v42  ;;  %v9257_v42 = vld [vmem:[#allocation9 + $0x2a8] sm:$0xff] }
 0xdf8   :  { %4148 = vmatpush.msrb.mxu3 %v9113_v21  ;;  %4168 = vmatpush.msra.mxu0 %v9245_v48 }
 0xdf9   :  { %4078 = vmatpush.msra.mxu2 %v8852_v20  ;;  %v9267_v20 = vld [vmem:[#allocation9 + $0x278] sm:$0xff] }
 0xdfa   :  { %4149 = vmatpush.msrb.mxu3 %v9118_v24  ;;  %4169 = vmatpush.msra.mxu0 %v9252_v39 }
 0xdfb   :  { %4079 = vmatpush.msra.mxu2 %v8864_v31  ;;  %v9272_v31 = vld [vmem:[#allocation9 + $0x260] sm:$0xff] }
 0xdfc   :  { %4150 = vmatpush.msrb.mxu3 %v9123_v13  ;;  %4170 = vmatpush.msra.mxu0 %v9257_v42 }
 0xdfd   :  { %4080 = vmatpush.msra.mxu2 %v8868_v45  ;;  %v9275_v45 = vpop.f32.mrf.mxu2 }
 0xdfe   :  { %4151 = vmatpush.msrb.mxu3 %v9128_v7  ;;  %4171 = vmatpush.msra.mxu0 %v9262_v3  ;;  %10546 = vst [vmem:[#allocation39_spill] sm:$0xff] %v9275_v45 }
 0xdff   :  { %4081 = vmatpush.msra.mxu2 %v8874_v63  ;;  %v9279_v63 = vld [vmem:[#allocation9 + $0x248] sm:$0xff] }
 0xe00   :  { %4152 = vmatpush.msrb.mxu3 %v9135_v30  ;;  %4172 = vmatpush.msra.mxu0 %v9267_v20 }
 0xe01   :  { %4082 = vmatpush.msra.mxu2 %v8884_v29  ;;  %v9286_v29 = vld [vmem:[#allocation9 + $0x230] sm:$0xff] }
 0xe02   :  { %4153 = vmatpush.msrb.mxu3 %v9140_v15  ;;  %4173 = vmatpush.msra.mxu0 %v9272_v31 }
 0xe03   :  { %4083 = vmatpush.msra.mxu2 %v8889_v51  ;;  %v9293_v51 = vld [vmem:[#allocation9 + $0x218] sm:$0xff] }
 0xe04   :  { %4154 = vmatpush.msrb.mxu3 %v9145_v41  ;;  %4174 = vmatpush.msra.mxu0 %v9279_v63 }
 0xe05   :  { %4084 = vmatpush.msra.mxu2 %v8895_v40  ;;  %v9297_v40 = vld [vmem:[#allocation9 + $0x1f8] sm:$0xff]  ;;  %v9310_v52 = vpop.f32.mrf.mxu2 }
 0xe06   :  { %4155 = vmatpush.msrb.mxu3 %v9283_v26  ;;  %4175 = vmatpush.msra.mxu0 %v9286_v29  ;;  %10547 = vst [vmem:[#allocation66_spill] sm:$0xff] %v9310_v52 }
 0xe07   :  { %4085 = vmatpush.msra.mxu2 %v8901_v54  ;;  %v9304_v54 = vld [vmem:[#allocation9 + $0x1e0] sm:$0xff] }
 0xe08   :  { %4156 = vmatpush.msrb.mxu3 %v9290_v27  ;;  %4176 = vmatpush.msra.mxu0 %v9293_v51 }
 0xe09   :  { %4086 = vmatpush.msra.mxu2 %v8908_v4  ;;  %v9313_v4 = vld [vmem:[#allocation9 + $0x1c8] sm:$0xff] }
 0xe0a   :  { %4157 = vmatpush.msrb.mxu3 %v9297_v40  ;;  %4177 = vmatpush.msra.mxu0 %v9300_v10 }
 0xe0b   :  { %4087 = vmatpush.msra.mxu2 %v8913_v32  ;;  %v9320_v32 = vld [vmem:[#allocation9 + $0x1b0] sm:$0xff] }
 0xe0c   :  { %4158 = vmatpush.msrb.mxu3 %v9304_v54  ;;  %4178 = vmatpush.msra.mxu0 %v9307_v33  ;;  %10548 = vst [vmem:[#allocation49_spill] sm:$0xff] %v9320_v32 }
 0xe0d   :  { %4088 = vmatpush.msra.mxu2 %v8919_v53  ;;  %v9327_v53 = vld [vmem:[#allocation9 + $0x198] sm:$0xff]  ;;  %v9340_v38 = vpop.f32.mrf.mxu2 }
 0xe0e   :  { %4159 = vmatpush.msrb.mxu3 %v9313_v4  ;;  %4179 = vmatpush.msra.mxu0 %v9316_v49  ;;  %10550 = vst [vmem:[#allocation15_spill] sm:$0xff] %v9327_v53 }
 0xe0f   :  { %4089 = vmatpush.msra.mxu2 %v8925_v55  ;;  %v9334_v55 = vld [vmem:[#allocation9 + $0x180] sm:$0xff]  ;;  %10554 = vst [vmem:[#allocation56_spill] sm:$0xff] %v9340_v38 }
 0xe10   :  { %4160 = vmatpush.msrb.mxu3 %v9320_v32  ;;  %4180 = vmatpush.msra.mxu0 %v9323_v34  ;;  %10552 = vst [vmem:[#allocation19_spill] sm:$0xff] %v9334_v55 }
 0xe11   :  { %4090 = vmatpush.msra.mxu2 %v8934_v61 }
 0xe12   :  { %4161 = vmatpush.msrb.mxu3 %v9327_v53  ;;  %4181 = vmatpush.msra.mxu0 %v9330_v25 }
 0xe13   :  { %4091 = vmatpush.msra.mxu2 %v10519_v46 }
 0xe14   :  { %4162 = vmatpush.msrb.mxu3 %v9334_v55  ;;  %4182 = vmatpush.msra.mxu0 %v9337_v59 }
 0xe15   :  { %v9342_v61 = vpop.f32.mrf.mxu2 }
 0xe16   :  { %10555 = vst [vmem:[#allocation51_spill] sm:$0xff] %v9342_v61  ;;  %v3315_v61 = vadd.f32 %v9098_v44, %v10540_v0 }
 0xe1d   :  { %v9344_v62 = vpop.f32.mrf.mxu2 }
 0xe1e   :  { %10556 = vst [vmem:[#allocation57_spill] sm:$0xff] %v9344_v62 }
 0xe25   :  { %v9346_v23 = vpop.f32.mrf.mxu2 }
 0xe26   :  { %10557 = vst [vmem:[#allocation17_spill] sm:$0xff] %v9346_v23  ;;  %v3380_v23 = vadd.f32 %v9160_v22, %v9080_v28 }
 0xe2d   :  { %v9348_v58 = vpop.f32.mrf.mxu2 }
 0xe2e   :  { %10558 = vst [vmem:[#allocation41_spill] sm:$0xff] %v9348_v58 }
 0xe35   :  { %v9350_v36 = vpop.f32.mrf.mxu2 }
 0xe36   :  { %10559 = vst [vmem:[#allocation43_spill] sm:$0xff] %v9350_v36 }
 0xe3d   :  { %v9352_v46 = vpop.f32.mrf.mxu2 }
 0xe3e   :  { %10560 = vst [vmem:[#allocation67_spill] sm:$0xff] %v9352_v46 }
 0xe45   :  { %v9354_v9 = vpop.f32.mrf.mxu2 }
 0xe46   :  { %10561 = vst [vmem:[#allocation42_spill] sm:$0xff] %v9354_v9 }
 0xe4d   :  { %v9356_v17 = vpop.f32.mrf.mxu2 }
 0xe4e   :  { %10562 = vst [vmem:[#allocation46_spill] sm:$0xff] %v9356_v17 }
 0xe55   :  { %v9358_v18 = vpop.f32.mrf.mxu2 }
 0xe56   :  { %10563 = vst [vmem:[#allocation45_spill] sm:$0xff] %v9358_v18 }
 0xe77   :  { %v3831_v6 = vpop.f32.mrf.mxu2  ;;  %v3851_v38 = vpop.f32.mrf.mxu3 }
 0xe78   :  { %v3832_v58 = vadd.f32 %v3831_v6, %v10541_v2  ;;  %v3852_v36 = vadd.f32 %v3851_v38, %v9083_v19 }
 0xe7a   :  { %v3877_v62 = vadd.f32 %v3832_v58, %v3315_v61  ;;  %v3897_v46 = vadd.f32 %v3852_v36, %v3380_v23 }
 0xe7c   :  { %v6060_v1 = vmul.f32 -1.442695, %v3877_v62  ;;  %v6061_v9 = vmul.f32 -1.442695, %v3897_v46  ;;  %v3871_v62 = vpop.f32.mrf.mxu0 }
 0xe7e   :  { %6280 = vpow2.f32 %v6060_v1 }
 0xe7f   :  { %6282 = vpow2.f32 %v6061_v9 }
 0xe84   :  { %v6281_v17 = vpop.eup %6280 }
 0xe85   :  { %v6283_v18 = vpop.eup %6282  ;;  %v3881_v16 = vadd.f32 1.0, %v6281_v17 }
 0xe86   :  { %v3901_v52 = vadd.f32 1.0, %v6283_v18  ;;  %v3872_v18 = vadd.f32 %v3871_v62, %v9089_v14 }
 0xe87   :  { %6284 = vrcp.f32 %v3881_v16  ;;  %v3893_v6 = vand.u32 2147483648, %v3881_v16  ;;  %v3891_v61 = vand.u32 2147483647, %v3881_v16  ;;  %vm3887_vm3 = vweird.f32 %v3881_v16 }
 0xe88   :  { %6286 = vrcp.f32 %v3901_v52  ;;  %vm3907_vm7 = vweird.f32 %v3901_v52 }
 0xe89   :  { %v3894_v58 = vor.u32 1.1754944e-38, %v3893_v6  ;;  %vm3892_vm5 = vcmp.eq.f32.partialorder %v3891_v61, 8.507059e+37 }
 0xe8d   :  { %v6285_v44 = vpop.eup %6284 }
 0xe8e   :  { %v6287_v60 = vpop.eup %6286  ;;  %v3883_v47 = vmul.f32 %v6285_v44, %v3881_v16  ;;  %vm3888_vm2 = vweird.f32 %v6285_v44 }
 0xe8f   :  { %v3903_v22 = vmul.f32 %v6287_v60, %v3901_v52  ;;  %vm3889_vm4 = vmor %vm3887_vm3, %vm3888_vm2  ;;  %vm3908_vm6 = vweird.f32 %v6287_v60 }
 0xe90   :  { %v3884_v45 = vsub.f32 1.0, %v3883_v47  ;;  %v3445_v47 = vadd.f32 %v9230_v12, %v9094_v35  ;;  %vm3909_vm8 = vmor %vm3907_vm7, %vm3908_vm6  ;;  %v9375_v12 = vld [vmem:[#allocation9 + $0x2f8] sm:$0xff] }
 0xe91   :  { %v3904_v50 = vsub.f32 1.0, %v3903_v22  ;;  %v3911_v22 = vand.u32 2147483647, %v3901_v52 }
 0xe92   :  { %v3885_v38 = vmul.f32 %v6285_v44, %v3884_v45  ;;  %v3913_v45 = vand.u32 2147483648, %v3901_v52  ;;  %v9385_v52 = vld [vmem:[#allocation9 + $0x2c8] sm:$0xff] }
 0xe93   :  { %v3905_v23 = vmul.f32 %v6287_v60, %v3904_v50  ;;  %vm3912_vm9 = vcmp.eq.f32.partialorder %v3911_v22, 8.507059e+37  ;;  %v9430_v22 = vld [vmem:[#allocation9 + $0x1f0] sm:$0xff] }
 0xe94   :  { %v3886_v1 = vadd.f32 %v6285_v44, %v3885_v38  ;;  %v3914_v16 = vor.u32 1.1754944e-38, %v3913_v45  ;;  %v9425_v45 = vld [vmem:[#allocation9 + $0x208] sm:$0xff] }
 0xe95   :  { %v3906_v9 = vadd.f32 %v6287_v60, %v3905_v23 }
 0xe96   :  { %v3890_v36 = vsel %vm3889_vm4, %v6285_v44, %v3886_v1 }
 0xe97   :  { %v3895_v46 = vsel %vm3892_vm5, %v3894_v58, %v3890_v36  ;;  %v3910_v38 = vsel %vm3909_vm8, %v6287_v60, %v3906_v9  ;;  %v9380_v60 = vld [vmem:[#allocation9 + $0x2e0] sm:$0xff]  ;;  %v9390_v58 = vld [vmem:[#allocation9 + $0x2b0] sm:$0xff] }
 0xe98   :  { %v3917_v17 = vmul.f32 %v3895_v46, %v3872_v18  ;;  %v3915_v6 = vsel %vm3912_vm9, %v3914_v16, %v3910_v38  ;;  %v9395_v18 = vld [vmem:[#allocation9 + $0x298] sm:$0xff]  ;;  %v9400_v36 = vld [vmem:[#allocation9 + $0x280] sm:$0xff]  ;;  %v9405_v46 = vld [vmem:[#allocation9 + $0x268] sm:$0xff] }
 0xe99   :  { %v3920_v62 = vsub.f32 1.0, %v3915_v6  ;;  %v3922_v1 = vmul.f32 %v3915_v6, %v9233_v43  ;;  %v9410_v9 = vld [vmem:[#allocation9 + $0x250] sm:$0xff]  ;;  %v9440_v38 = vld [vmem:[#allocation9 + $0x1c0] sm:$0xff]  ;;  %v9445_v16 = vld [vmem:[#allocation9 + $0x1a8] sm:$0xff] }
 0xe9a   :  { %v3918_v50 = vadd.f32 %v3917_v17, %v3445_v47  ;;  %v9415_v47 = vld [vmem:[#allocation9 + $0x238] sm:$0xff]  ;;  %v9420_v17 = vld [vmem:[#allocation9 + $0x220] sm:$0xff]  ;;  %10565 = vst [vmem:[#allocation48_spill] sm:$0xff] %v9440_v38  ;;  %v9450_v6 = vld [vmem:[#allocation9 + $0x190] sm:$0xff] }
 0xe9b   :  { %10566 = vst [vmem:[#allocation68_spill] sm:$0xff] %v9445_v16 }
 0xe9c   :  { %6288 = vtanh.f32 %v3918_v50  ;;  %v9435_v50 = vld [vmem:[#allocation9 + $0x1d8] sm:$0xff]  ;;  %10567 = vst [vmem:[#allocation18_spill] sm:$0xff] %v9450_v6 }
 0xea2   :  { %v6289_v44 = vpop.eup %6288 }
 0xea3   :  { %v3921_v61 = vmul.f32 %v6289_v44, %v3920_v62  ;;  %v3318_v44 = vadd.f32 %v9104_v5, %v10540_v0 }
 0xea5   :  { %v9370_v23 = vadd.f32 %v3922_v1, %v3921_v61 }
 0xea7   :  { %10564 = vst [vmem:[#allocation47_spill] sm:$0xff] %v9370_v23  ;;  %3941 = vmatmul.f32.vlgmr.msrb.gmra.mxu1 %v9370_v23  ;;  %3961 = vmatmul.f32.vlgmr.msrb.gmra.mxu2 %v9370_v23 }
 0xea8   :  { %3981 = vmatmul.f32.vlgmr.msra.gmra.mxu3 %v9370_v23  ;;  %4187 = vmatpush.msrb.mxu1 %v9375_v12 }
 0xea9   :  { %4258 = vmatpush.msrb.mxu2 %v9108_v11  ;;  %4278 = vmatpush.msra.mxu3 %v9240_v37 }
 0xeaa   :  { %4188 = vmatpush.msrb.mxu1 %v9380_v60 }
 0xeab   :  { %4259 = vmatpush.msrb.mxu2 %v9113_v21  ;;  %4279 = vmatpush.msra.mxu3 %v9245_v48 }
 0xeac   :  { %4189 = vmatpush.msrb.mxu1 %v9385_v52 }
 0xead   :  { %4260 = vmatpush.msrb.mxu2 %v9118_v24  ;;  %4280 = vmatpush.msra.mxu3 %v9252_v39 }
 0xeae   :  { %4190 = vmatpush.msrb.mxu1 %v9390_v58 }
 0xeaf   :  { %4261 = vmatpush.msrb.mxu2 %v9123_v13  ;;  %4281 = vmatpush.msra.mxu3 %v9257_v42 }
 0xeb0   :  { %4191 = vmatpush.msrb.mxu1 %v9395_v18 }
 0xeb1   :  { %4262 = vmatpush.msrb.mxu2 %v9128_v7  ;;  %4282 = vmatpush.msra.mxu3 %v9262_v3 }
 0xeb2   :  { %4192 = vmatpush.msrb.mxu1 %v9400_v36 }
 0xeb3   :  { %4263 = vmatpush.msrb.mxu2 %v9135_v30  ;;  %4283 = vmatpush.msra.mxu3 %v9267_v20 }
 0xeb4   :  { %4193 = vmatpush.msrb.mxu1 %v9405_v46 }
 0xeb5   :  { %4264 = vmatpush.msrb.mxu2 %v9140_v15  ;;  %4284 = vmatpush.msra.mxu3 %v9272_v31 }
 0xeb6   :  { %4194 = vmatpush.msrb.mxu1 %v9410_v9 }
 0xeb7   :  { %4265 = vmatpush.msrb.mxu2 %v9145_v41  ;;  %4285 = vmatpush.msra.mxu3 %v9279_v63 }
 0xeb8   :  { %4195 = vmatpush.msrb.mxu1 %v9415_v47 }
 0xeb9   :  { %4266 = vmatpush.msrb.mxu2 %v9283_v26  ;;  %4286 = vmatpush.msra.mxu3 %v9286_v29 }
 0xeba   :  { %4196 = vmatpush.msrb.mxu1 %v9420_v17 }
 0xebb   :  { %4267 = vmatpush.msrb.mxu2 %v9290_v27  ;;  %4287 = vmatpush.msra.mxu3 %v9293_v51 }
 0xebc   :  { %4197 = vmatpush.msrb.mxu1 %v9425_v45 }
 0xebd   :  { %4268 = vmatpush.msrb.mxu2 %v9297_v40  ;;  %4288 = vmatpush.msra.mxu3 %v9300_v10 }
 0xebe   :  { %4198 = vmatpush.msrb.mxu1 %v9430_v22 }
 0xebf   :  { %4269 = vmatpush.msrb.mxu2 %v9304_v54  ;;  %4289 = vmatpush.msra.mxu3 %v9307_v33 }
 0xec0   :  { %4199 = vmatpush.msrb.mxu1 %v9435_v50 }
 0xec1   :  { %4270 = vmatpush.msrb.mxu2 %v9313_v4  ;;  %4290 = vmatpush.msra.mxu3 %v9316_v49 }
 0xec2   :  { %4200 = vmatpush.msrb.mxu1 %v9440_v38 }
 0xec3   :  { %4271 = vmatpush.msrb.mxu2 %v9320_v32  ;;  %4291 = vmatpush.msra.mxu3 %v9323_v34 }
 0xec4   :  { %4201 = vmatpush.msrb.mxu1 %v9445_v16 }
 0xec5   :  { %4272 = vmatpush.msrb.mxu2 %v9327_v53  ;;  %4292 = vmatpush.msra.mxu3 %v9330_v25  ;;  %v3383_v25 = vadd.f32 %v9179_v8, %v9080_v28 }
 0xec6   :  { %4202 = vmatpush.msrb.mxu1 %v9450_v6 }
 0xec7   :  { %4273 = vmatpush.msrb.mxu2 %v9334_v55  ;;  %4293 = vmatpush.msra.mxu3 %v9337_v59 }
 0xf24   :  { %v3942_v62 = vpop.f32.mrf.mxu1 }
 0xf25   :  { %v3943_v61 = vadd.f32 %v3942_v62, %v10541_v2 }
 0xf27   :  { %v3988_v1 = vadd.f32 %v3943_v61, %v3318_v44 }
 0xf29   :  { %v6062_v43 = vmul.f32 -1.442695, %v3988_v1 }
 0xf2a   :  { %v3962_v57 = vpop.f32.mrf.mxu2 }
 0xf2b   :  { %6290 = vpow2.f32 %v6062_v43  ;;  %v3963_v53 = vadd.f32 %v3962_v57, %v9083_v19  ;;  %v3982_v43 = vpop.f32.mrf.mxu3 }
 0xf2d   :  { %v4008_v6 = vadd.f32 %v3963_v53, %v3383_v25 }
 0xf2f   :  { %v6063_v16 = vmul.f32 -1.442695, %v4008_v6 }
 0xf31   :  { %v6291_v55 = vpop.eup %6290  ;;  %6292 = vpow2.f32 %v6063_v16 }
 0xf32   :  { %v3992_v59 = vadd.f32 1.0, %v6291_v55  ;;  %v3983_v55 = vadd.f32 %v3982_v43, %v9089_v14 }
 0xf34   :  { %6294 = vrcp.f32 %v3992_v59  ;;  %v4004_v61 = vand.u32 2147483648, %v3992_v59  ;;  %v4002_v2 = vand.u32 2147483647, %v3992_v59  ;;  %vm3998_vm11 = vweird.f32 %v3992_v59 }
 0xf36   :  { %v4005_v53 = vor.u32 1.1754944e-38, %v4004_v61  ;;  %vm4003_vm13 = vcmp.eq.f32.partialorder %v4002_v2, 8.507059e+37 }
 0xf37   :  { %v6293_v34 = vpop.eup %6292 }
 0xf38   :  { %v4012_v32 = vadd.f32 1.0, %v6293_v34  ;;  %v3448_v34 = vadd.f32 %v9248_v56, %v9094_v35 }
 0xf3a   :  { %v6295_v5 = vpop.eup %6294  ;;  %6296 = vrcp.f32 %v4012_v32  ;;  %v4022_v0 = vand.u32 2147483647, %v4012_v32  ;;  %vm4018_vm15 = vweird.f32 %v4012_v32 }
 0xf3b   :  { %v3994_v62 = vmul.f32 %v6295_v5, %v3992_v59  ;;  %vm3999_vm10 = vweird.f32 %v6295_v5 }
 0xf3c   :  { %vm4000_vm12 = vmor %vm3998_vm11, %vm3999_vm10  ;;  %vm4023_vm1 = vcmp.eq.f32.partialorder %v4022_v0, 8.507059e+37  ;;  %v10570_v0 = vld [vmem:[#allocation49_spill] sm:$0xff] }
 0xf3d   :  { %v3995_v44 = vsub.f32 1.0, %v3994_v62 }
 0xf3f   :  { %v3996_v1 = vmul.f32 %v6295_v5, %v3995_v44  ;;  %v4024_v44 = vand.u32 2147483648, %v4012_v32 }
 0xf40   :  { %v6297_v8 = vpop.eup %6296 }
 0xf41   :  { %v4014_v28 = vmul.f32 %v6297_v8, %v4012_v32  ;;  %v3997_v57 = vadd.f32 %v6295_v5, %v3996_v1  ;;  %vm4019_vm14 = vweird.f32 %v6297_v8  ;;  %v4025_v59 = vor.u32 1.1754944e-38, %v4024_v44  ;;  %v10571_v32 = vld [vmem:[#allocation53_spill] sm:$0xff] }
 0xf42   :  { %vm4020_vm0 = vmor %vm4018_vm15, %vm4019_vm14  ;;  %v10579_v44 = vld [vmem:[#allocation61_spill] sm:$0xff] }
 0xf43   :  { %v4015_v25 = vsub.f32 1.0, %v4014_v28  ;;  %v4001_v16 = vsel %vm4000_vm12, %v6295_v5, %v3997_v57 }
 0xf44   :  { %v4006_v6 = vsel %vm4003_vm13, %v4005_v53, %v4001_v16  ;;  %v10574_v53 = vld [vmem:[#allocation16_spill] sm:$0xff] }
 0xf45   :  { %v4016_v62 = vmul.f32 %v6297_v8, %v4015_v25  ;;  %v4028_v19 = vmul.f32 %v4006_v6, %v3983_v55  ;;  %v10575_v25 = vld [vmem:[#allocation18_spill] sm:$0xff]  ;;  %v10576_v55 = vld [vmem:[#allocation19_spill] sm:$0xff]  ;;  %v10577_v16 = vld [vmem:[#allocation20_spill] sm:$0xff] }
 0xf47   :  { %v4017_v38 = vadd.f32 %v6297_v8, %v4016_v62  ;;  %v4029_v1 = vadd.f32 %v4028_v19, %v3448_v34  ;;  %v10569_v19 = vld [vmem:[#allocation48_spill] sm:$0xff]  ;;  %v10578_v62 = vld [vmem:[#allocation26_spill] sm:$0xff] }
 0xf49   :  { %v4021_v61 = vsel %vm4020_vm0, %v6297_v8, %v4017_v38  ;;  %6298 = vtanh.f32 %v4029_v1  ;;  %v10572_v38 = vld [vmem:[#allocation68_spill] sm:$0xff]  ;;  %v10573_v8 = vld [vmem:[#allocation15_spill] sm:$0xff]  ;;  %v3321_v1 = vadd.f32 %v10579_v44, %v10578_v62 }
 0xf4a   :  { %v4026_v28 = vsel %vm4023_vm1, %v4025_v59, %v4021_v61  ;;  %v10580_v59 = vld [vmem:[#allocation60_spill] sm:$0xff]  ;;  %v10581_v61 = vld [vmem:[#allocation54_spill] sm:$0xff] }
 0xf4b   :  { %v4031_v5 = vsub.f32 1.0, %v4026_v28  ;;  %v4033_v56 = vmul.f32 %v4026_v28, %v9370_v23  ;;  %v3386_v28 = vadd.f32 %v10581_v61, %v10580_v59 }
 0xf4f   :  { %v6299_v2 = vpop.eup %6298 }
 0xf50   :  { %v4032_v43 = vmul.f32 %v6299_v2, %v4031_v5  ;;  %v10582_v5 = vld [vmem:[#allocation25_spill] sm:$0xff] }
 0xf52   :  { %v9465_v57 = vadd.f32 %v4033_v56, %v4032_v43  ;;  %v10583_v43 = vld [vmem:[#allocation27_spill] sm:$0xff] }
 0xf54   :  { %10568 = vst [vmem:[#allocation23_spill] sm:$0xff] %v9465_v57  ;;  %4052 = vmatmul.f32.vlgmr.msrb.gmra.mxu0 %v9465_v57  ;;  %4072 = vmatmul.f32.vlgmr.msra.gmra.mxu1 %v9465_v57 }
 0xf55   :  { %4092 = vmatmul.f32.vlgmr.msra.gmra.mxu2 %v9465_v57  ;;  %4298 = vmatpush.msrb.mxu0 %v9375_v12 }
 0xf56   :  { %4369 = vmatpush.msra.mxu1 %v9108_v11  ;;  %4389 = vmatpush.msra.mxu2 %v9240_v37 }
 0xf57   :  { %4299 = vmatpush.msrb.mxu0 %v9380_v60 }
 0xf58   :  { %4370 = vmatpush.msra.mxu1 %v9113_v21  ;;  %4390 = vmatpush.msra.mxu2 %v9245_v48 }
 0xf59   :  { %4300 = vmatpush.msrb.mxu0 %v9385_v52 }
 0xf5a   :  { %4371 = vmatpush.msra.mxu1 %v9118_v24  ;;  %4391 = vmatpush.msra.mxu2 %v9252_v39 }
 0xf5b   :  { %4301 = vmatpush.msrb.mxu0 %v9390_v58 }
 0xf5c   :  { %4372 = vmatpush.msra.mxu1 %v9123_v13  ;;  %4392 = vmatpush.msra.mxu2 %v9257_v42 }
 0xf5d   :  { %4302 = vmatpush.msrb.mxu0 %v9395_v18 }
 0xf5e   :  { %4373 = vmatpush.msra.mxu1 %v9128_v7  ;;  %4393 = vmatpush.msra.mxu2 %v9262_v3 }
 0xf5f   :  { %4303 = vmatpush.msrb.mxu0 %v9400_v36 }
 0xf60   :  { %4374 = vmatpush.msra.mxu1 %v9135_v30  ;;  %4394 = vmatpush.msra.mxu2 %v9267_v20 }
 0xf61   :  { %4304 = vmatpush.msrb.mxu0 %v9405_v46 }
 0xf62   :  { %4375 = vmatpush.msra.mxu1 %v9140_v15  ;;  %4395 = vmatpush.msra.mxu2 %v9272_v31 }
 0xf63   :  { %4305 = vmatpush.msrb.mxu0 %v9410_v9 }
 0xf64   :  { %4376 = vmatpush.msra.mxu1 %v9145_v41  ;;  %4396 = vmatpush.msra.mxu2 %v9279_v63 }
 0xf65   :  { %4306 = vmatpush.msrb.mxu0 %v9415_v47 }
 0xf66   :  { %4377 = vmatpush.msra.mxu1 %v9283_v26  ;;  %4397 = vmatpush.msra.mxu2 %v9286_v29 }
 0xf67   :  { %4307 = vmatpush.msrb.mxu0 %v9420_v17 }
 0xf68   :  { %4378 = vmatpush.msra.mxu1 %v9290_v27  ;;  %4398 = vmatpush.msra.mxu2 %v9293_v51 }
 0xf69   :  { %4308 = vmatpush.msrb.mxu0 %v9425_v45 }
 0xf6a   :  { %4379 = vmatpush.msra.mxu1 %v9297_v40  ;;  %4399 = vmatpush.msra.mxu2 %v9300_v10 }
 0xf6b   :  { %4309 = vmatpush.msrb.mxu0 %v9430_v22 }
 0xf6c   :  { %4380 = vmatpush.msra.mxu1 %v9304_v54  ;;  %4400 = vmatpush.msra.mxu2 %v9307_v33 }
 0xf6d   :  { %4310 = vmatpush.msrb.mxu0 %v9435_v50 }
 0xf6e   :  { %4381 = vmatpush.msra.mxu1 %v9313_v4  ;;  %4401 = vmatpush.msra.mxu2 %v9316_v49 }
 0xf6f   :  { %4311 = vmatpush.msrb.mxu0 %v10569_v19 }
 0xf70   :  { %4382 = vmatpush.msra.mxu1 %v10570_v0  ;;  %4402 = vmatpush.msra.mxu2 %v10571_v32 }
 0xf71   :  { %4312 = vmatpush.msrb.mxu0 %v10572_v38 }
 0xf72   :  { %4383 = vmatpush.msra.mxu1 %v10573_v8  ;;  %4403 = vmatpush.msra.mxu2 %v10574_v53 }
 0xf73   :  { %4313 = vmatpush.msrb.mxu0 %v10575_v25 }
 0xf74   :  { %4384 = vmatpush.msra.mxu1 %v10576_v55  ;;  %4404 = vmatpush.msra.mxu2 %v10577_v16 }
 0xfd1   :  { %v4053_v34 = vpop.f32.mrf.mxu0  ;;  %v4073_v6 = vpop.f32.mrf.mxu1 }
 0xfd2   :  { %v4054_v2 = vadd.f32 %v4053_v34, %v10582_v5  ;;  %v4074_v56 = vadd.f32 %v4073_v6, %v10583_v43 }
 0xfd4   :  { %v4099_v23 = vadd.f32 %v4054_v2, %v3321_v1  ;;  %v4119_v53 = vadd.f32 %v4074_v56, %v3386_v28 }
 0xfd6   :  { %v6064_v8 = vmul.f32 -1.442695, %v4099_v23  ;;  %v6065_v25 = vmul.f32 -1.442695, %v4119_v53 }
 0xfd8   :  { %6300 = vpow2.f32 %v6064_v8  ;;  %v4093_v53 = vpop.f32.mrf.mxu2 }
 0xfd9   :  { %6302 = vpow2.f32 %v6065_v25 }
 0xfde   :  { %v6301_v55 = vpop.eup %6300 }
 0xfdf   :  { %v6303_v16 = vpop.eup %6302  ;;  %v4103_v38 = vadd.f32 1.0, %v6301_v55  ;;  %v4094_v55 = vadd.f32 %v4093_v53, %v9089_v14 }
 0xfe0   :  { %v4123_v32 = vadd.f32 1.0, %v6303_v16 }
 0xfe1   :  { %6304 = vrcp.f32 %v4103_v38  ;;  %v4115_v5 = vand.u32 2147483648, %v4103_v38  ;;  %v4113_v1 = vand.u32 2147483647, %v4103_v38  ;;  %vm4109_vm3 = vweird.f32 %v4103_v38 }
 0xfe2   :  { %6306 = vrcp.f32 %v4123_v32  ;;  %vm4129_vm7 = vweird.f32 %v4123_v32  ;;  %v4133_v43 = vand.u32 2147483647, %v4123_v32 }
 0xfe3   :  { %v4116_v25 = vor.u32 1.1754944e-38, %v4115_v5  ;;  %vm4114_vm5 = vcmp.eq.f32.partialorder %v4113_v1, 8.507059e+37 }
 0xfe4   :  { %vm4134_vm9 = vcmp.eq.f32.partialorder %v4133_v43, 8.507059e+37  ;;  %v10595_v43 = vld [vmem:[#allocation52_spill] sm:$0xff] }
 0xfe7   :  { %v6305_v44 = vpop.eup %6304 }
 0xfe8   :  { %v6307_v62 = vpop.eup %6306  ;;  %v4105_v0 = vmul.f32 %v6305_v44, %v4103_v38  ;;  %vm4110_vm2 = vweird.f32 %v6305_v44 }
 0xfe9   :  { %v4125_v61 = vmul.f32 %v6307_v62, %v4123_v32  ;;  %vm4111_vm4 = vmor %vm4109_vm3, %vm4110_vm2  ;;  %vm4130_vm6 = vweird.f32 %v6307_v62 }
 0xfea   :  { %v4106_v59 = vsub.f32 1.0, %v4105_v0  ;;  %v10584_v0 = vld [vmem:[#allocation39_spill] sm:$0xff]  ;;  %vm4131_vm8 = vmor %vm4129_vm7, %vm4130_vm6 }
 0xfeb   :  { %v4126_v34 = vsub.f32 1.0, %v4125_v61  ;;  %v3451_v56 = vadd.f32 %v10584_v0, %v9094_v35  ;;  %v4135_v61 = vand.u32 2147483648, %v4123_v32 }
 0xfec   :  { %v4107_v6 = vmul.f32 %v6305_v44, %v4106_v59 }
 0xfed   :  { %v4127_v23 = vmul.f32 %v6307_v62, %v4126_v34  ;;  %v4136_v38 = vor.u32 1.1754944e-38, %v4135_v61  ;;  %v10598_v61 = vld [vmem:[#allocation30_spill] sm:$0xff] }
 0xfee   :  { %v4108_v8 = vadd.f32 %v6305_v44, %v4107_v6 }
 0xfef   :  { %v4128_v2 = vadd.f32 %v6307_v62, %v4127_v23 }
 0xff0   :  { %v4112_v16 = vsel %vm4111_vm4, %v6305_v44, %v4108_v8 }
 0xff1   :  { %v4117_v28 = vsel %vm4114_vm5, %v4116_v25, %v4112_v16  ;;  %v4132_v6 = vsel %vm4131_vm8, %v6307_v62, %v4128_v2  ;;  %v10594_v62 = vld [vmem:[#allocation60_spill] sm:$0xff] }
 0xff2   :  { %v4139_v59 = vmul.f32 %v4117_v28, %v4094_v55  ;;  %v4137_v5 = vsel %vm4134_vm9, %v4136_v38, %v4132_v6  ;;  %v3389_v25 = vadd.f32 %v10595_v43, %v10594_v62  ;;  %v10596_v55 = vld [vmem:[#allocation27_spill] sm:$0xff] }
 0xff3   :  { %v4142_v53 = vsub.f32 1.0, %v4137_v5  ;;  %v4144_v8 = vmul.f32 %v4137_v5, %v9465_v57 }
 0xff4   :  { %v4140_v34 = vadd.f32 %v4139_v59, %v3451_v56  ;;  %v10597_v56 = vld [vmem:[#allocation26_spill] sm:$0xff] }
 0xff5   :  { %v3324_v59 = vadd.f32 %v10598_v61, %v10597_v56 }
 0xff6   :  { %6308 = vtanh.f32 %v4140_v34  ;;  %v10599_v34 = vld [vmem:[#allocation25_spill] sm:$0xff] }
 0xffc   :  { %v6309_v44 = vpop.eup %6308 }
 0xffd   :  { %v4143_v1 = vmul.f32 %v6309_v44, %v4142_v53 }
 0xfff   :  { %v9528_v23 = vadd.f32 %v4144_v8, %v4143_v1 }
0x1001   :  { %10585 = vst [vmem:[#allocation24_spill] sm:$0xff] %v9528_v23  ;;  %4163 = vmatmul.f32.vlgmr.msrb.gmra.mxu3 %v9528_v23  ;;  %4183 = vmatmul.f32.vlgmr.msra.gmra.mxu0 %v9528_v23 }
0x1002   :  { %4203 = vmatmul.f32.vlgmr.msrb.gmra.mxu1 %v9528_v23  ;;  %4409 = vmatpush.msrb.mxu3 %v9375_v12 }
0x1003   :  { %4480 = vmatpush.msra.mxu0 %v9108_v11  ;;  %4500 = vmatpush.msrb.mxu1 %v9240_v37  ;;  %v10586_v11 = vld [vmem:[#allocation49_spill] sm:$0xff] }
0x1004   :  { %4410 = vmatpush.msrb.mxu3 %v9380_v60 }
0x1005   :  { %4481 = vmatpush.msra.mxu0 %v9113_v21  ;;  %4501 = vmatpush.msrb.mxu1 %v9245_v48  ;;  %v10587_v21 = vld [vmem:[#allocation53_spill] sm:$0xff] }
0x1006   :  { %4411 = vmatpush.msrb.mxu3 %v9385_v52 }
0x1007   :  { %4482 = vmatpush.msra.mxu0 %v9118_v24  ;;  %4502 = vmatpush.msrb.mxu1 %v9252_v39  ;;  %v10588_v24 = vld [vmem:[#allocation68_spill] sm:$0xff] }
0x1008   :  { %4412 = vmatpush.msrb.mxu3 %v9390_v58 }
0x1009   :  { %4483 = vmatpush.msra.mxu0 %v9123_v13  ;;  %4503 = vmatpush.msrb.mxu1 %v9257_v42  ;;  %v10589_v13 = vld [vmem:[#allocation15_spill] sm:$0xff] }
0x100a   :  { %4413 = vmatpush.msrb.mxu3 %v9395_v18 }
0x100b   :  { %4484 = vmatpush.msra.mxu0 %v9128_v7  ;;  %4504 = vmatpush.msrb.mxu1 %v9262_v3  ;;  %v10590_v7 = vld [vmem:[#allocation16_spill] sm:$0xff] }
0x100c   :  { %4414 = vmatpush.msrb.mxu3 %v9400_v36 }
0x100d   :  { %4485 = vmatpush.msra.mxu0 %v9135_v30  ;;  %4505 = vmatpush.msrb.mxu1 %v9267_v20  ;;  %v10591_v30 = vld [vmem:[#allocation18_spill] sm:$0xff] }
0x100e   :  { %4415 = vmatpush.msrb.mxu3 %v9405_v46 }
0x100f   :  { %4486 = vmatpush.msra.mxu0 %v9140_v15  ;;  %4506 = vmatpush.msrb.mxu1 %v9272_v31  ;;  %v10592_v15 = vld [vmem:[#allocation19_spill] sm:$0xff] }
0x1010   :  { %4416 = vmatpush.msrb.mxu3 %v9410_v9 }
0x1011   :  { %4487 = vmatpush.msra.mxu0 %v9145_v41  ;;  %4507 = vmatpush.msrb.mxu1 %v9279_v63  ;;  %v10593_v41 = vld [vmem:[#allocation20_spill] sm:$0xff] }
0x1012   :  { %4417 = vmatpush.msrb.mxu3 %v9415_v47 }
0x1013   :  { %4488 = vmatpush.msra.mxu0 %v9283_v26  ;;  %4508 = vmatpush.msrb.mxu1 %v9286_v29 }
0x1014   :  { %4418 = vmatpush.msrb.mxu3 %v9420_v17 }
0x1015   :  { %4489 = vmatpush.msra.mxu0 %v9290_v27  ;;  %4509 = vmatpush.msrb.mxu1 %v9293_v51 }
0x1016   :  { %4419 = vmatpush.msrb.mxu3 %v9425_v45 }
0x1017   :  { %4490 = vmatpush.msra.mxu0 %v9297_v40  ;;  %4510 = vmatpush.msrb.mxu1 %v9300_v10 }
0x1018   :  { %4420 = vmatpush.msrb.mxu3 %v9430_v22 }
0x1019   :  { %4491 = vmatpush.msra.mxu0 %v9304_v54  ;;  %4511 = vmatpush.msrb.mxu1 %v9307_v33 }
0x101a   :  { %4421 = vmatpush.msrb.mxu3 %v9435_v50 }
0x101b   :  { %4492 = vmatpush.msra.mxu0 %v9313_v4  ;;  %4512 = vmatpush.msrb.mxu1 %v9316_v49 }
0x101c   :  { %4422 = vmatpush.msrb.mxu3 %v10569_v19 }
0x101d   :  { %4493 = vmatpush.msra.mxu0 %v10586_v11  ;;  %4513 = vmatpush.msrb.mxu1 %v10587_v21 }
0x101e   :  { %4423 = vmatpush.msrb.mxu3 %v10588_v24 }
0x101f   :  { %4494 = vmatpush.msra.mxu0 %v10589_v13  ;;  %4514 = vmatpush.msrb.mxu1 %v10590_v7 }
0x1020   :  { %4424 = vmatpush.msrb.mxu3 %v10591_v30 }
0x1021   :  { %4495 = vmatpush.msra.mxu0 %v10592_v15  ;;  %4515 = vmatpush.msrb.mxu1 %v10593_v41 }
0x107e   :  { %v4184_v32 = vpop.f32.mrf.mxu0 }
0x107f   :  { %v4185_v16 = vadd.f32 %v4184_v32, %v10596_v55 }
0x1081   :  { %v4230_v28 = vadd.f32 %v4185_v16, %v3389_v25 }
0x1083   :  { %v6067_v2 = vmul.f32 -1.442695, %v4230_v28 }
0x1084   :  { %v4164_v0 = vpop.f32.mrf.mxu3 }
0x1085   :  { %6310 = vpow2.f32 %v6067_v2  ;;  %v4165_v6 = vadd.f32 %v4164_v0, %v10599_v34 }
0x1087   :  { %v4210_v38 = vadd.f32 %v4165_v6, %v3324_v59  ;;  %v4204_v59 = vpop.f32.mrf.mxu1 }
0x1089   :  { %v6066_v5 = vmul.f32 -1.442695, %v4210_v38 }
0x108b   :  { %v6311_v53 = vpop.eup %6310  ;;  %6312 = vpow2.f32 %v6066_v5  ;;  %v4205_v5 = vadd.f32 %v4204_v59, %v9089_v14 }
0x108c   :  { %v4234_v44 = vadd.f32 1.0, %v6311_v53 }
0x108e   :  { %6314 = vrcp.f32 %v4234_v44  ;;  %v4246_v62 = vand.u32 2147483648, %v4234_v44  ;;  %vm4240_vm15 = vweird.f32 %v4234_v44  ;;  %v4244_v56 = vand.u32 2147483647, %v4234_v44 }
0x1090   :  { %vm4245_vm1 = vcmp.eq.f32.partialorder %v4244_v56, 8.507059e+37  ;;  %v9607_v56 = vld [vmem:[#allocation9 + $0x2b8] sm:$0xff] }
0x1091   :  { %v6313_v1 = vpop.eup %6312 }
0x1092   :  { %v4214_v8 = vadd.f32 1.0, %v6313_v1 }
0x1094   :  { %6316 = vrcp.f32 %v4214_v8  ;;  %v6315_v43 = vpop.eup %6314  ;;  %v4226_v55 = vand.u32 2147483648, %v4214_v8  ;;  %v4224_v2 = vand.u32 2147483647, %v4214_v8  ;;  %vm4220_vm11 = vweird.f32 %v4214_v8 }
0x1095   :  { %v4236_v32 = vmul.f32 %v6315_v43, %v4234_v44  ;;  %vm4241_vm14 = vweird.f32 %v6315_v43  ;;  %v9612_v44 = vld [vmem:[#allocation9 + $0x2a0] sm:$0xff] }
0x1096   :  { %v4227_v38 = vor.u32 1.1754944e-38, %v4226_v55  ;;  %vm4225_vm13 = vcmp.eq.f32.partialorder %v4224_v2, 8.507059e+37  ;;  %vm4242_vm0 = vmor %vm4240_vm15, %vm4241_vm14 }
0x1097   :  { %v4237_v28 = vsub.f32 1.0, %v4236_v32  ;;  %v10600_v32 = vld [vmem:[#allocation66_spill] sm:$0xff] }
0x1099   :  { %v4238_v0 = vmul.f32 %v6315_v43, %v4237_v28 }
0x109a   :  { %v6317_v25 = vpop.eup %6316 }
0x109b   :  { %v4216_v16 = vmul.f32 %v6317_v25, %v4214_v8  ;;  %vm4221_vm10 = vweird.f32 %v6317_v25  ;;  %v4239_v34 = vadd.f32 %v6315_v43, %v4238_v0  ;;  %v4247_v8 = vor.u32 1.1754944e-38, %v4246_v62  ;;  %v9602_v62 = vld [vmem:[#allocation9 + $0x2d0] sm:$0xff] }
0x109c   :  { %vm4222_vm12 = vmor %vm4220_vm11, %vm4221_vm10 }
0x109d   :  { %v4217_v57 = vsub.f32 1.0, %v4216_v16  ;;  %v3454_v16 = vadd.f32 %v10600_v32, %v9094_v35 }
0x109f   :  { %v4218_v61 = vmul.f32 %v6317_v25, %v4217_v57 }
0x10a1   :  { %v4219_v6 = vadd.f32 %v6317_v25, %v4218_v61  ;;  %v4243_v61 = vsel %vm4242_vm0, %v6315_v43, %v4239_v34  ;;  %v9597_v34 = vld [vmem:[#allocation9 + $0x2e8] sm:$0xff] }
0x10a2   :  { %v4248_v55 = vsel %vm4245_vm1, %v4247_v8, %v4243_v61 }
0x10a3   :  { %v4223_v53 = vsel %vm4222_vm12, %v6317_v25, %v4219_v6  ;;  %v4253_v59 = vsub.f32 1.0, %v4248_v55  ;;  %v4255_v6 = vmul.f32 %v4248_v55, %v9528_v23 }
0x10a4   :  { %v4228_v1 = vsel %vm4225_vm13, %v4227_v38, %v4223_v53 }
0x10a5   :  { %v4250_v57 = vmul.f32 %v4228_v1, %v4205_v5 }
0x10a7   :  { %v4251_v28 = vadd.f32 %v4250_v57, %v3454_v16 }
0x10a9   :  { %6318 = vtanh.f32 %v4251_v28 }
0x10af   :  { %v6319_v25 = vpop.eup %6318 }
0x10b0   :  { %v4254_v2 = vmul.f32 %v6319_v25, %v4253_v59 }
0x10b2   :  { %v9591_v0 = vadd.f32 %v4255_v6, %v4254_v2 }
0x10b4   :  { %10601 = vst [vmem:[#allocation48_spill] sm:$0xff] %v9591_v0  ;;  %4274 = vmatmul.f32.vlgmr.msrb.gmra.mxu2 %v9591_v0  ;;  %4294 = vmatmul.f32.vlgmr.msra.gmra.mxu3 %v9591_v0 }
0x10b5   :  { %4314 = vmatmul.f32.vlgmr.msrb.gmra.mxu0 %v9591_v0  ;;  %4520 = vmatpush.msrb.mxu2 %v9375_v12 }
0x10b6   :  { %4591 = vmatpush.msra.mxu3 %v9597_v34  ;;  %4611 = vmatpush.msrb.mxu0 %v9240_v37  ;;  %v9617_v37 = vld [vmem:[#allocation9 + $0x288] sm:$0xff] }
0x10b7   :  { %4521 = vmatpush.msrb.mxu2 %v9380_v60 }
0x10b8   :  { %4592 = vmatpush.msra.mxu3 %v9602_v62  ;;  %4612 = vmatpush.msrb.mxu0 %v9245_v48  ;;  %v9622_v48 = vld [vmem:[#allocation9 + $0x270] sm:$0xff] }
0x10b9   :  { %4522 = vmatpush.msrb.mxu2 %v9385_v52 }
0x10ba   :  { %4593 = vmatpush.msra.mxu3 %v9607_v56  ;;  %4613 = vmatpush.msrb.mxu0 %v9252_v39  ;;  %v9627_v39 = vld [vmem:[#allocation9 + $0x258] sm:$0xff] }
0x10bb   :  { %4523 = vmatpush.msrb.mxu2 %v9390_v58 }
0x10bc   :  { %4594 = vmatpush.msra.mxu3 %v9612_v44  ;;  %4614 = vmatpush.msrb.mxu0 %v9257_v42  ;;  %v9632_v42 = vld [vmem:[#allocation9 + $0x240] sm:$0xff] }
0x10bd   :  { %4524 = vmatpush.msrb.mxu2 %v9395_v18 }
0x10be   :  { %4595 = vmatpush.msra.mxu3 %v9617_v37  ;;  %4615 = vmatpush.msrb.mxu0 %v9262_v3 }
0x10bf   :  { %4525 = vmatpush.msrb.mxu2 %v9400_v36 }
0x10c0   :  { %4596 = vmatpush.msra.mxu3 %v9622_v48  ;;  %4616 = vmatpush.msrb.mxu0 %v9267_v20 }
0x10c1   :  { %4526 = vmatpush.msrb.mxu2 %v9405_v46 }
0x10c2   :  { %4597 = vmatpush.msra.mxu3 %v9627_v39  ;;  %4617 = vmatpush.msrb.mxu0 %v9272_v31  ;;  %v10602_v31 = vld [vmem:[#allocation26_spill] sm:$0xff] }
0x10c3   :  { %4527 = vmatpush.msrb.mxu2 %v9410_v9 }
0x10c4   :  { %4598 = vmatpush.msra.mxu3 %v9632_v42  ;;  %4618 = vmatpush.msrb.mxu0 %v9279_v63  ;;  %v10603_v63 = vld [vmem:[#allocation29_spill] sm:$0xff] }
0x10c5   :  { %4528 = vmatpush.msrb.mxu2 %v9415_v47 }
0x10c6   :  { %4599 = vmatpush.msra.mxu3 %v9283_v26  ;;  %4619 = vmatpush.msrb.mxu0 %v9286_v29  ;;  %v3327_v26 = vadd.f32 %v10603_v63, %v10602_v31  ;;  %v10604_v29 = vld [vmem:[#allocation60_spill] sm:$0xff] }
0x10c7   :  { %4529 = vmatpush.msrb.mxu2 %v9420_v17 }
0x10c8   :  { %4600 = vmatpush.msra.mxu3 %v9290_v27  ;;  %4620 = vmatpush.msrb.mxu0 %v9293_v51  ;;  %v10605_v27 = vld [vmem:[#allocation59_spill] sm:$0xff] }
0x10c9   :  { %4530 = vmatpush.msrb.mxu2 %v9425_v45  ;;  %v3392_v51 = vadd.f32 %v10605_v27, %v10604_v29 }
0x10ca   :  { %4601 = vmatpush.msra.mxu3 %v9297_v40  ;;  %4621 = vmatpush.msrb.mxu0 %v9300_v10  ;;  %v10606_v40 = vld [vmem:[#allocation25_spill] sm:$0xff] }
0x10cb   :  { %4531 = vmatpush.msrb.mxu2 %v9430_v22 }
0x10cc   :  { %4602 = vmatpush.msra.mxu3 %v9304_v54  ;;  %4622 = vmatpush.msrb.mxu0 %v9307_v33  ;;  %v10607_v54 = vld [vmem:[#allocation27_spill] sm:$0xff] }
0x10cd   :  { %4532 = vmatpush.msrb.mxu2 %v9435_v50 }
0x10ce   :  { %4603 = vmatpush.msra.mxu3 %v9313_v4  ;;  %4623 = vmatpush.msrb.mxu0 %v9316_v49 }
0x10cf   :  { %4533 = vmatpush.msrb.mxu2 %v10569_v19 }
0x10d0   :  { %4604 = vmatpush.msra.mxu3 %v10586_v11  ;;  %4624 = vmatpush.msrb.mxu0 %v10587_v21 }
0x10d1   :  { %4534 = vmatpush.msrb.mxu2 %v10588_v24 }
0x10d2   :  { %4605 = vmatpush.msra.mxu3 %v10589_v13  ;;  %4625 = vmatpush.msrb.mxu0 %v10590_v7 }
0x10d3   :  { %4535 = vmatpush.msrb.mxu2 %v10591_v30 }
0x10d4   :  { %4606 = vmatpush.msra.mxu3 %v10592_v15  ;;  %4626 = vmatpush.msrb.mxu0 %v10593_v41 }
0x1132   :  { %v4315_v61 = vpop.f32.mrf.mxu0 }
0x1133   :  { %v4316_v25 = vadd.f32 %v4315_v61, %v9089_v14 }
0x1137   :  { %v4275_v3 = vpop.f32.mrf.mxu2  ;;  %v4295_v20 = vpop.f32.mrf.mxu3 }
0x1138   :  { %v4276_v10 = vadd.f32 %v4275_v3, %v10606_v40  ;;  %v4296_v33 = vadd.f32 %v4295_v20, %v10607_v54  ;;  %v10608_v20 = vld [vmem:[#allocation56_spill] sm:$0xff] }
0x1139   :  { %v3457_v63 = vadd.f32 %v10608_v20, %v9094_v35 }
0x113a   :  { %v4321_v4 = vadd.f32 %v4276_v10, %v3327_v26  ;;  %v4341_v49 = vadd.f32 %v4296_v33, %v3392_v51 }
0x113c   :  { %v6068_v11 = vmul.f32 -1.442695, %v4321_v4  ;;  %v6069_v21 = vmul.f32 -1.442695, %v4341_v49 }
0x113e   :  { %6320 = vpow2.f32 %v6068_v11 }
0x113f   :  { %6322 = vpow2.f32 %v6069_v21 }
0x1144   :  { %v6321_v13 = vpop.eup %6320 }
0x1145   :  { %v6323_v7 = vpop.eup %6322  ;;  %v4325_v15 = vadd.f32 1.0, %v6321_v13 }
0x1146   :  { %v4345_v41 = vadd.f32 1.0, %v6323_v7 }
0x1147   :  { %6324 = vrcp.f32 %v4325_v15  ;;  %v4337_v32 = vand.u32 2147483648, %v4325_v15  ;;  %v4335_v28 = vand.u32 2147483647, %v4325_v15  ;;  %vm4331_vm3 = vweird.f32 %v4325_v15 }
0x1148   :  { %6326 = vrcp.f32 %v4345_v41  ;;  %v4357_v27 = vand.u32 2147483648, %v4345_v41  ;;  %vm4351_vm7 = vweird.f32 %v4345_v41  ;;  %v4355_v51 = vand.u32 2147483647, %v4345_v41 }
0x1149   :  { %v4338_v59 = vor.u32 1.1754944e-38, %v4337_v32  ;;  %vm4336_vm5 = vcmp.eq.f32.partialorder %v4335_v28, 8.507059e+37  ;;  %v9747_v32 = vld [vmem:[#allocation9 + $0x1d0] sm:$0xff]  ;;  %v9768_v28 = vld [vmem:[#allocation9 + $0x188] sm:$0xff] }
0x114a   :  { %v4358_v4 = vor.u32 1.1754944e-38, %v4357_v27  ;;  %vm4356_vm9 = vcmp.eq.f32.partialorder %v4355_v51, 8.507059e+37  ;;  %10615 = vst [vmem:[#allocation15_spill] sm:$0xff] %v9768_v28 }
0x114d   :  { %v6325_v43 = vpop.eup %6324 }
0x114e   :  { %v6327_v38 = vpop.eup %6326  ;;  %v4327_v5 = vmul.f32 %v6325_v43, %v4325_v15  ;;  %vm4332_vm2 = vweird.f32 %v6325_v43 }
0x114f   :  { %v4347_v53 = vmul.f32 %v6327_v38, %v4345_v41  ;;  %vm4333_vm4 = vmor %vm4331_vm3, %vm4332_vm2  ;;  %vm4352_vm6 = vweird.f32 %v6327_v38  ;;  %v9677_v41 = vld [vmem:[#allocation9 + $0x2f0] sm:$0xff] }
0x1150   :  { %v4328_v1 = vsub.f32 1.0, %v4327_v5  ;;  %vm4353_vm8 = vmor %vm4351_vm7, %vm4352_vm6  ;;  %v9723_v5 = vld [vmem:[#allocation9 + $0x210] sm:$0xff] }
0x1151   :  { %v4348_v16 = vsub.f32 1.0, %v4347_v53  ;;  %v9733_v53 = vld [vmem:[#allocation9 + $0x200] sm:$0xff] }
0x1152   :  { %v4329_v57 = vmul.f32 %v6325_v43, %v4328_v1  ;;  %v9740_v1 = vld [vmem:[#allocation9 + $0x1e8] sm:$0xff] }
0x1153   :  { %v4349_v8 = vmul.f32 %v6327_v38, %v4348_v16  ;;  %v9754_v16 = vld [vmem:[#allocation9 + $0x1b8] sm:$0xff] }
0x1154   :  { %v4330_v55 = vadd.f32 %v6325_v43, %v4329_v57  ;;  %10611 = vst [vmem:[#allocation39_spill] sm:$0xff] %v9754_v16  ;;  %v9761_v57 = vld [vmem:[#allocation9 + $0x1a0] sm:$0xff] }
0x1155   :  { %v4350_v3 = vadd.f32 %v6327_v38, %v4349_v8  ;;  %10613 = vst [vmem:[#allocation53_spill] sm:$0xff] %v9761_v57 }
0x1156   :  { %v4334_v2 = vsel %vm4333_vm4, %v6325_v43, %v4330_v55  ;;  %v9682_v43 = vld [vmem:[#allocation9 + $0x2d8] sm:$0xff] }
0x1157   :  { %v4339_v6 = vsel %vm4336_vm5, %v4338_v59, %v4334_v2  ;;  %v4354_v33 = vsel %vm4353_vm8, %v6327_v38, %v4350_v3  ;;  %v9687_v38 = vld [vmem:[#allocation9 + $0x2c0] sm:$0xff] }
0x1158   :  { %v4361_v26 = vmul.f32 %v4339_v6, %v4316_v25  ;;  %v4359_v49 = vsel %vm4356_vm9, %v4358_v4, %v4354_v33  ;;  %v10617_v6 = vld [vmem:[#allocation55_spill] sm:$0xff] }
0x1159   :  { %v4364_v11 = vsub.f32 1.0, %v4359_v49  ;;  %v4366_v7 = vmul.f32 %v4359_v49, %v9591_v0 }
0x115a   :  { %v4362_v10 = vadd.f32 %v4361_v26, %v3457_v63 }
0x115c   :  { %6328 = vtanh.f32 %v4362_v10 }
0x1162   :  { %v6329_v21 = vpop.eup %6328 }
0x1163   :  { %v4365_v13 = vmul.f32 %v6329_v21, %v4364_v11 }
0x1165   :  { %v9670_v15 = vadd.f32 %v4366_v7, %v4365_v13 }
0x1167   :  { %10609 = vst [vmem:[#allocation61_spill] sm:$0xff] %v9670_v15  ;;  %4385 = vmatmul.f32.vlgmr.msra.gmra.mxu1 %v9670_v15  ;;  %4405 = vmatmul.f32.vlgmr.msra.gmra.mxu2 %v9670_v15 }
0x1168   :  { %4425 = vmatmul.f32.vlgmr.msrb.gmra.mxu3 %v9670_v15  ;;  %4631 = vmatpush.msra.mxu1 %v9375_v12  ;;  %v9692_v12 = vld [vmem:[#allocation9 + $0x2a8] sm:$0xff] }
0x1169   :  { %4702 = vmatpush.msra.mxu2 %v9597_v34  ;;  %4722 = vmatpush.msrb.mxu3 %v9677_v41 }
0x116a   :  { %4632 = vmatpush.msra.mxu1 %v9380_v60  ;;  %v9697_v60 = vld [vmem:[#allocation9 + $0x290] sm:$0xff] }
0x116b   :  { %4703 = vmatpush.msra.mxu2 %v9602_v62  ;;  %4723 = vmatpush.msrb.mxu3 %v9682_v43 }
0x116c   :  { %4633 = vmatpush.msra.mxu1 %v9385_v52  ;;  %v9702_v52 = vld [vmem:[#allocation9 + $0x278] sm:$0xff] }
0x116d   :  { %4704 = vmatpush.msra.mxu2 %v9607_v56  ;;  %4724 = vmatpush.msrb.mxu3 %v9687_v38 }
0x116e   :  { %4634 = vmatpush.msra.mxu1 %v9390_v58  ;;  %v9707_v58 = vld [vmem:[#allocation9 + $0x260] sm:$0xff] }
0x116f   :  { %4705 = vmatpush.msra.mxu2 %v9612_v44  ;;  %4725 = vmatpush.msrb.mxu3 %v9692_v12 }
0x1170   :  { %4635 = vmatpush.msra.mxu1 %v9395_v18  ;;  %v9712_v18 = vld [vmem:[#allocation9 + $0x248] sm:$0xff] }
0x1171   :  { %4706 = vmatpush.msra.mxu2 %v9617_v37  ;;  %4726 = vmatpush.msrb.mxu3 %v9697_v60 }
0x1172   :  { %4636 = vmatpush.msra.mxu1 %v9400_v36  ;;  %v9716_v36 = vld [vmem:[#allocation9 + $0x228] sm:$0xff] }
0x1173   :  { %4707 = vmatpush.msra.mxu2 %v9622_v48  ;;  %4727 = vmatpush.msrb.mxu3 %v9702_v52 }
0x1174   :  { %4637 = vmatpush.msra.mxu1 %v9405_v46  ;;  %v9719_v46 = vld [vmem:[#allocation9 + $0x230] sm:$0xff] }
0x1175   :  { %4708 = vmatpush.msra.mxu2 %v9627_v39  ;;  %4728 = vmatpush.msrb.mxu3 %v9707_v58 }
0x1176   :  { %4638 = vmatpush.msra.mxu1 %v9410_v9  ;;  %v9726_v9 = vld [vmem:[#allocation9 + $0x218] sm:$0xff] }
0x1177   :  { %4709 = vmatpush.msra.mxu2 %v9632_v42  ;;  %4729 = vmatpush.msrb.mxu3 %v9712_v18 }
0x1178   :  { %4639 = vmatpush.msra.mxu1 %v9415_v47  ;;  %v9730_v47 = vld [vmem:[#allocation9 + $0x1f8] sm:$0xff] }
0x1179   :  { %4710 = vmatpush.msra.mxu2 %v9716_v36  ;;  %4730 = vmatpush.msrb.mxu3 %v9719_v46 }
0x117a   :  { %4640 = vmatpush.msra.mxu1 %v9420_v17  ;;  %v9737_v17 = vld [vmem:[#allocation9 + $0x1e0] sm:$0xff] }
0x117b   :  { %4711 = vmatpush.msra.mxu2 %v9723_v5  ;;  %4731 = vmatpush.msrb.mxu3 %v9726_v9 }
0x117c   :  { %4641 = vmatpush.msra.mxu1 %v9425_v45  ;;  %v9744_v45 = vld [vmem:[#allocation9 + $0x1c8] sm:$0xff] }
0x117d   :  { %4712 = vmatpush.msra.mxu2 %v9730_v47  ;;  %4732 = vmatpush.msrb.mxu3 %v9733_v53 }
0x117e   :  { %4642 = vmatpush.msra.mxu1 %v9430_v22  ;;  %v9751_v22 = vld [vmem:[#allocation9 + $0x1b0] sm:$0xff] }
0x117f   :  { %4713 = vmatpush.msra.mxu2 %v9737_v17  ;;  %4733 = vmatpush.msrb.mxu3 %v9740_v1  ;;  %10610 = vst [vmem:[#allocation54_spill] sm:$0xff] %v9751_v22 }
0x1180   :  { %4643 = vmatpush.msra.mxu1 %v9435_v50  ;;  %v9758_v50 = vld [vmem:[#allocation9 + $0x198] sm:$0xff] }
0x1181   :  { %4714 = vmatpush.msra.mxu2 %v9744_v45  ;;  %4734 = vmatpush.msrb.mxu3 %v9747_v32  ;;  %10612 = vst [vmem:[#allocation49_spill] sm:$0xff] %v9758_v50 }
0x1182   :  { %4644 = vmatpush.msra.mxu1 %v10569_v19  ;;  %v9765_v19 = vld [vmem:[#allocation9 + $0x180] sm:$0xff] }
0x1183   :  { %4715 = vmatpush.msra.mxu2 %v9751_v22  ;;  %4735 = vmatpush.msrb.mxu3 %v9754_v16  ;;  %10614 = vst [vmem:[#allocation68_spill] sm:$0xff] %v9765_v19 }
0x1184   :  { %4645 = vmatpush.msra.mxu1 %v10588_v24  ;;  %v10616_v24 = vld [vmem:[#allocation62_spill] sm:$0xff] }
0x1185   :  { %4716 = vmatpush.msra.mxu2 %v9758_v50  ;;  %4736 = vmatpush.msrb.mxu3 %v9761_v57  ;;  %v3330_v8 = vadd.f32 %v10616_v24, %v10602_v31 }
0x1186   :  { %4646 = vmatpush.msra.mxu1 %v10591_v30  ;;  %v3395_v30 = vadd.f32 %v10617_v6, %v10604_v29  ;;  %v10618_v6 = vld [vmem:[#allocation51_spill] sm:$0xff] }
0x1187   :  { %4717 = vmatpush.msra.mxu2 %v9765_v19  ;;  %4737 = vmatpush.msrb.mxu3 %v9768_v28 }
0x11e4   :  { %v4386_v61 = vpop.f32.mrf.mxu1 }
0x11e5   :  { %v4387_v55 = vadd.f32 %v4386_v61, %v10606_v40 }
0x11e7   :  { %v4432_v59 = vadd.f32 %v4387_v55, %v3330_v8 }
0x11e9   :  { %v6070_v25 = vmul.f32 -1.442695, %v4432_v59 }
0x11ea   :  { %v4406_v2 = vpop.f32.mrf.mxu2 }
0x11eb   :  { %6330 = vpow2.f32 %v6070_v25  ;;  %v4407_v3 = vadd.f32 %v4406_v2, %v10607_v54  ;;  %v4426_v61 = vpop.f32.mrf.mxu3 }
0x11ec   :  { %v4427_v25 = vadd.f32 %v4426_v61, %v9089_v14 }
0x11ed   :  { %v4452_v20 = vadd.f32 %v4407_v3, %v3395_v30  ;;  %v3460_v30 = vadd.f32 %v10618_v6, %v9094_v35  ;;  %v9816_v6 = vld [vmem:[#allocation9 + $0x268] sm:$0xff] }
0x11ef   :  { %v6071_v63 = vmul.f32 -1.442695, %v4452_v20 }
0x11f1   :  { %v6331_v26 = vpop.eup %6330  ;;  %6332 = vpow2.f32 %v6071_v63 }
0x11f2   :  { %v4436_v27 = vadd.f32 1.0, %v6331_v26 }
0x11f4   :  { %6334 = vrcp.f32 %v4436_v27  ;;  %v4448_v11 = vand.u32 2147483648, %v4436_v27  ;;  %v4446_v13 = vand.u32 2147483647, %v4436_v27  ;;  %vm4442_vm11 = vweird.f32 %v4436_v27 }
0x11f6   :  { %v4449_v55 = vor.u32 1.1754944e-38, %v4448_v11  ;;  %vm4447_vm13 = vcmp.eq.f32.partialorder %v4446_v13, 8.507059e+37 }
0x11f7   :  { %v6333_v51 = vpop.eup %6332 }
0x11f8   :  { %v4456_v10 = vadd.f32 1.0, %v6333_v51 }
0x11fa   :  { %v6335_v33 = vpop.eup %6334  ;;  %6336 = vrcp.f32 %v4456_v10  ;;  %v4468_v63 = vand.u32 2147483648, %v4456_v10  ;;  %v4466_v51 = vand.u32 2147483647, %v4456_v10  ;;  %vm4462_vm15 = vweird.f32 %v4456_v10 }
0x11fb   :  { %v4438_v4 = vmul.f32 %v6335_v33, %v4436_v27  ;;  %vm4443_vm10 = vweird.f32 %v6335_v33 }
0x11fc   :  { %vm4444_vm12 = vmor %vm4442_vm11, %vm4443_vm10  ;;  %v4469_v27 = vor.u32 1.1754944e-38, %v4468_v63  ;;  %vm4467_vm1 = vcmp.eq.f32.partialorder %v4466_v51, 8.507059e+37  ;;  %v9836_v63 = vld [vmem:[#allocation9 + $0x208] sm:$0xff]  ;;  %v9846_v51 = vld [vmem:[#allocation9 + $0x1d8] sm:$0xff] }
0x11fd   :  { %v4439_v49 = vsub.f32 1.0, %v4438_v4 }
0x11ff   :  { %v4440_v21 = vmul.f32 %v6335_v33, %v4439_v49 }
0x1200   :  { %v6337_v7 = vpop.eup %6336 }
0x1201   :  { %v4458_v24 = vmul.f32 %v6337_v7, %v4456_v10  ;;  %v4441_v8 = vadd.f32 %v6335_v33, %v4440_v21  ;;  %vm4463_vm14 = vweird.f32 %v6337_v7  ;;  %v9786_v10 = vld [vmem:[#allocation9 + $0x2f8] sm:$0xff] }
0x1202   :  { %vm4464_vm0 = vmor %vm4462_vm15, %vm4463_vm14 }
0x1203   :  { %v4459_v59 = vsub.f32 1.0, %v4458_v24  ;;  %v4445_v2 = vsel %vm4444_vm12, %v6335_v33, %v4441_v8 }
0x1204   :  { %v4450_v3 = vsel %vm4447_vm13, %v4449_v55, %v4445_v2  ;;  %v9796_v55 = vld [vmem:[#allocation9 + $0x2c8] sm:$0xff]  ;;  %v9811_v2 = vld [vmem:[#allocation9 + $0x280] sm:$0xff] }
0x1205   :  { %v4460_v20 = vmul.f32 %v6337_v7, %v4459_v59  ;;  %v4472_v26 = vmul.f32 %v4450_v3, %v4427_v25  ;;  %v9801_v59 = vld [vmem:[#allocation9 + $0x2b0] sm:$0xff]  ;;  %v9806_v25 = vld [vmem:[#allocation9 + $0x298] sm:$0xff] }
0x1206   :  { %v9826_v3 = vld [vmem:[#allocation9 + $0x238] sm:$0xff] }
0x1207   :  { %v4461_v4 = vadd.f32 %v6337_v7, %v4460_v20  ;;  %v4473_v49 = vadd.f32 %v4472_v26, %v3460_v30  ;;  %v9821_v30 = vld [vmem:[#allocation9 + $0x250] sm:$0xff]  ;;  %v9831_v20 = vld [vmem:[#allocation9 + $0x220] sm:$0xff] }
0x1208   :  { %v9841_v26 = vld [vmem:[#allocation9 + $0x1f0] sm:$0xff] }
0x1209   :  { %v4465_v11 = vsel %vm4464_vm0, %v6337_v7, %v4461_v4  ;;  %6338 = vtanh.f32 %v4473_v49  ;;  %v9791_v7 = vld [vmem:[#allocation9 + $0x2e0] sm:$0xff]  ;;  %v9856_v49 = vld [vmem:[#allocation9 + $0x1a8] sm:$0xff] }
0x120a   :  { %v4470_v21 = vsel %vm4467_vm1, %v4469_v27, %v4465_v11  ;;  %v9851_v4 = vld [vmem:[#allocation9 + $0x1c0] sm:$0xff]  ;;  %10620 = vst [vmem:[#allocation18_spill] sm:$0xff] %v9856_v49  ;;  %v9861_v27 = vld [vmem:[#allocation9 + $0x190] sm:$0xff] }
0x120b   :  { %v4475_v33 = vsub.f32 1.0, %v4470_v21  ;;  %v4477_v24 = vmul.f32 %v4470_v21, %v9670_v15  ;;  %10621 = vst [vmem:[#allocation19_spill] sm:$0xff] %v9861_v27 }
0x120f   :  { %v6339_v13 = vpop.eup %6338 }
0x1210   :  { %v4476_v61 = vmul.f32 %v6339_v13, %v4475_v33  ;;  %v10622_v33 = vld [vmem:[#allocation58_spill] sm:$0xff] }
0x1211   :  { %v3333_v13 = vadd.f32 %v10622_v33, %v10602_v31 }
0x1212   :  { %v9781_v8 = vadd.f32 %v4477_v24, %v4476_v61  ;;  %v10623_v61 = vld [vmem:[#allocation31_spill] sm:$0xff] }
0x1213   :  { %v3398_v24 = vadd.f32 %v10623_v61, %v10604_v29 }
0x1214   :  { %10619 = vst [vmem:[#allocation16_spill] sm:$0xff] %v9781_v8  ;;  %4496 = vmatmul.f32.vlgmr.msra.gmra.mxu0 %v9781_v8  ;;  %4516 = vmatmul.f32.vlgmr.msrb.gmra.mxu1 %v9781_v8 }
0x1215   :  { %4536 = vmatmul.f32.vlgmr.msrb.gmra.mxu2 %v9781_v8  ;;  %4742 = vmatpush.msra.mxu0 %v9786_v10 }
0x1216   :  { %4813 = vmatpush.msrb.mxu1 %v9597_v34  ;;  %4833 = vmatpush.msrb.mxu2 %v9677_v41 }
0x1217   :  { %4743 = vmatpush.msra.mxu0 %v9791_v7 }
0x1218   :  { %4814 = vmatpush.msrb.mxu1 %v9602_v62  ;;  %4834 = vmatpush.msrb.mxu2 %v9682_v43 }
0x1219   :  { %4744 = vmatpush.msra.mxu0 %v9796_v55 }
0x121a   :  { %4815 = vmatpush.msrb.mxu1 %v9607_v56  ;;  %4835 = vmatpush.msrb.mxu2 %v9687_v38 }
0x121b   :  { %4745 = vmatpush.msra.mxu0 %v9801_v59 }
0x121c   :  { %4816 = vmatpush.msrb.mxu1 %v9612_v44  ;;  %4836 = vmatpush.msrb.mxu2 %v9692_v12 }
0x121d   :  { %4746 = vmatpush.msra.mxu0 %v9806_v25 }
0x121e   :  { %4817 = vmatpush.msrb.mxu1 %v9617_v37  ;;  %4837 = vmatpush.msrb.mxu2 %v9697_v60 }
0x121f   :  { %4747 = vmatpush.msra.mxu0 %v9811_v2 }
0x1220   :  { %4818 = vmatpush.msrb.mxu1 %v9622_v48  ;;  %4838 = vmatpush.msrb.mxu2 %v9702_v52 }
0x1221   :  { %4748 = vmatpush.msra.mxu0 %v9816_v6 }
0x1222   :  { %4819 = vmatpush.msrb.mxu1 %v9627_v39  ;;  %4839 = vmatpush.msrb.mxu2 %v9707_v58 }
0x1223   :  { %4749 = vmatpush.msra.mxu0 %v9821_v30 }
0x1224   :  { %4820 = vmatpush.msrb.mxu1 %v9632_v42  ;;  %4840 = vmatpush.msrb.mxu2 %v9712_v18 }
0x1225   :  { %4750 = vmatpush.msra.mxu0 %v9826_v3 }
0x1226   :  { %4821 = vmatpush.msrb.mxu1 %v9716_v36  ;;  %4841 = vmatpush.msrb.mxu2 %v9719_v46 }
0x1227   :  { %4751 = vmatpush.msra.mxu0 %v9831_v20 }
0x1228   :  { %4822 = vmatpush.msrb.mxu1 %v9723_v5  ;;  %4842 = vmatpush.msrb.mxu2 %v9726_v9 }
0x1229   :  { %4752 = vmatpush.msra.mxu0 %v9836_v63 }
0x122a   :  { %4823 = vmatpush.msrb.mxu1 %v9730_v47  ;;  %4843 = vmatpush.msrb.mxu2 %v9733_v53 }
0x122b   :  { %4753 = vmatpush.msra.mxu0 %v9841_v26 }
0x122c   :  { %4824 = vmatpush.msrb.mxu1 %v9737_v17  ;;  %4844 = vmatpush.msrb.mxu2 %v9740_v1 }
0x122d   :  { %4754 = vmatpush.msra.mxu0 %v9846_v51 }
0x122e   :  { %4825 = vmatpush.msrb.mxu1 %v9744_v45  ;;  %4845 = vmatpush.msrb.mxu2 %v9747_v32 }
0x122f   :  { %4755 = vmatpush.msra.mxu0 %v9851_v4 }
0x1230   :  { %4826 = vmatpush.msrb.mxu1 %v9751_v22  ;;  %4846 = vmatpush.msrb.mxu2 %v9754_v16 }
0x1231   :  { %4756 = vmatpush.msra.mxu0 %v9856_v49 }
0x1232   :  { %4827 = vmatpush.msrb.mxu1 %v9758_v50  ;;  %4847 = vmatpush.msrb.mxu2 %v9761_v57 }
0x1233   :  { %4757 = vmatpush.msra.mxu0 %v9861_v27 }
0x1234   :  { %4828 = vmatpush.msrb.mxu1 %v9765_v19  ;;  %4848 = vmatpush.msrb.mxu2 %v9768_v28 }
0x1291   :  { %v4497_v11 = vpop.f32.mrf.mxu0  ;;  %v4517_v21 = vpop.f32.mrf.mxu1 }
0x1292   :  { %v4498_v15 = vadd.f32 %v4497_v11, %v10606_v40  ;;  %v4518_v0 = vadd.f32 %v4517_v21, %v10607_v54 }
0x1294   :  { %v4543_v23 = vadd.f32 %v4498_v15, %v3333_v13  ;;  %v4563_v57 = vadd.f32 %v4518_v0, %v3398_v24 }
0x1296   :  { %v6072_v50 = vmul.f32 -1.442695, %v4543_v23  ;;  %v6073_v27 = vmul.f32 -1.442695, %v4563_v57 }
0x1298   :  { %6340 = vpow2.f32 %v6072_v50  ;;  %v4537_v15 = vpop.f32.mrf.mxu2 }
0x1299   :  { %6342 = vpow2.f32 %v6073_v27 }
0x129e   :  { %v6341_v19 = vpop.eup %6340 }
0x129f   :  { %v6343_v28 = vpop.eup %6342  ;;  %v4547_v49 = vadd.f32 1.0, %v6341_v19  ;;  %v4538_v19 = vadd.f32 %v4537_v15, %v9089_v14 }
0x12a0   :  { %v4567_v16 = vadd.f32 1.0, %v6343_v28 }
0x12a1   :  { %6344 = vrcp.f32 %v4547_v49  ;;  %v4559_v40 = vand.u32 2147483648, %v4547_v49  ;;  %v4557_v0 = vand.u32 2147483647, %v4547_v49  ;;  %vm4553_vm3 = vweird.f32 %v4547_v49 }
0x12a2   :  { %6346 = vrcp.f32 %v4567_v16  ;;  %vm4573_vm7 = vweird.f32 %v4567_v16  ;;  %v4577_v54 = vand.u32 2147483647, %v4567_v16 }
0x12a3   :  { %v4560_v57 = vor.u32 1.1754944e-38, %v4559_v40  ;;  %vm4558_vm5 = vcmp.eq.f32.partialorder %v4557_v0, 8.507059e+37 }
0x12a4   :  { %vm4578_vm9 = vcmp.eq.f32.partialorder %v4577_v54, 8.507059e+37  ;;  %v10627_v54 = vld [vmem:[#allocation39_spill] sm:$0xff] }
0x12a7   :  { %v6345_v33 = vpop.eup %6344 }
0x12a8   :  { %v6347_v31 = vpop.eup %6346  ;;  %v4549_v22 = vmul.f32 %v6345_v33, %v4547_v49  ;;  %vm4554_vm2 = vweird.f32 %v6345_v33 }
0x12a9   :  { %v4569_v61 = vmul.f32 %v6347_v31, %v4567_v16  ;;  %vm4555_vm4 = vmor %vm4553_vm3, %vm4554_vm2  ;;  %vm4574_vm6 = vweird.f32 %v6347_v31 }
0x12aa   :  { %v4550_v29 = vsub.f32 1.0, %v4549_v22  ;;  %v10624_v22 = vld [vmem:[#allocation57_spill] sm:$0xff]  ;;  %vm4575_vm8 = vmor %vm4573_vm7, %vm4574_vm6 }
0x12ab   :  { %v4570_v11 = vsub.f32 1.0, %v4569_v61  ;;  %v3463_v24 = vadd.f32 %v10624_v22, %v9094_v35  ;;  %v4579_v61 = vand.u32 2147483648, %v4567_v16  ;;  %v10628_v16 = vld [vmem:[#allocation18_spill] sm:$0xff] }
0x12ac   :  { %v4551_v21 = vmul.f32 %v6345_v33, %v4550_v29 }
0x12ad   :  { %v4571_v23 = vmul.f32 %v6347_v31, %v4570_v11  ;;  %v4580_v49 = vor.u32 1.1754944e-38, %v4579_v61  ;;  %v10635_v61 = vld [vmem:[#allocation63_spill] sm:$0xff] }
0x12ae   :  { %v4552_v50 = vadd.f32 %v6345_v33, %v4551_v21 }
0x12af   :  { %v4572_v13 = vadd.f32 %v6347_v31, %v4571_v23 }
0x12b0   :  { %v4556_v28 = vsel %vm4555_vm4, %v6345_v33, %v4552_v50 }
0x12b1   :  { %v4561_v27 = vsel %vm4558_vm5, %v4560_v57, %v4556_v28  ;;  %v4576_v21 = vsel %vm4575_vm8, %v6347_v31, %v4572_v13  ;;  %v10626_v31 = vld [vmem:[#allocation54_spill] sm:$0xff]  ;;  %v10629_v57 = vld [vmem:[#allocation49_spill] sm:$0xff]  ;;  %v10631_v28 = vld [vmem:[#allocation19_spill] sm:$0xff] }
0x12b2   :  { %v4583_v29 = vmul.f32 %v4561_v27, %v4538_v19  ;;  %v4581_v40 = vsel %vm4578_vm9, %v4580_v49, %v4576_v21  ;;  %v10630_v19 = vld [vmem:[#allocation53_spill] sm:$0xff]  ;;  %v10632_v27 = vld [vmem:[#allocation68_spill] sm:$0xff]  ;;  %v10633_v13 = vld [vmem:[#allocation15_spill] sm:$0xff] }
0x12b3   :  { %v4586_v15 = vsub.f32 1.0, %v4581_v40  ;;  %v4588_v50 = vmul.f32 %v4581_v40, %v9781_v8  ;;  %v10639_v8 = vld [vmem:[#allocation25_spill] sm:$0xff] }
0x12b4   :  { %v4584_v11 = vadd.f32 %v4583_v29, %v3463_v24  ;;  %v10634_v24 = vld [vmem:[#allocation60_spill] sm:$0xff] }
0x12b5   :  { %v3401_v29 = vadd.f32 %v10635_v61, %v10634_v24 }
0x12b6   :  { %6348 = vtanh.f32 %v4584_v11  ;;  %v10636_v11 = vld [vmem:[#allocation27_spill] sm:$0xff] }
0x12bc   :  { %v6349_v33 = vpop.eup %6348 }
0x12bd   :  { %v4587_v0 = vmul.f32 %v6349_v33, %v4586_v15  ;;  %v10637_v33 = vld [vmem:[#allocation26_spill] sm:$0xff] }
0x12bf   :  { %v9876_v23 = vadd.f32 %v4588_v50, %v4587_v0  ;;  %v10638_v0 = vld [vmem:[#allocation50_spill] sm:$0xff] }
0x12c0   :  { %v3336_v50 = vadd.f32 %v10638_v0, %v10637_v33 }
0x12c1   :  { %10625 = vst [vmem:[#allocation20_spill] sm:$0xff] %v9876_v23  ;;  %4607 = vmatmul.f32.vlgmr.msra.gmra.mxu3 %v9876_v23  ;;  %4627 = vmatmul.f32.vlgmr.msrb.gmra.mxu0 %v9876_v23 }
0x12c2   :  { %4647 = vmatmul.f32.vlgmr.msra.gmra.mxu1 %v9876_v23  ;;  %4853 = vmatpush.msra.mxu3 %v9786_v10 }
0x12c3   :  { %4924 = vmatpush.msrb.mxu0 %v9597_v34  ;;  %4944 = vmatpush.msra.mxu1 %v9677_v41 }
0x12c4   :  { %4854 = vmatpush.msra.mxu3 %v9791_v7 }
0x12c5   :  { %4925 = vmatpush.msrb.mxu0 %v9602_v62  ;;  %4945 = vmatpush.msra.mxu1 %v9682_v43 }
0x12c6   :  { %4855 = vmatpush.msra.mxu3 %v9796_v55 }
0x12c7   :  { %4926 = vmatpush.msrb.mxu0 %v9607_v56  ;;  %4946 = vmatpush.msra.mxu1 %v9687_v38 }
0x12c8   :  { %4856 = vmatpush.msra.mxu3 %v9801_v59 }
0x12c9   :  { %4927 = vmatpush.msrb.mxu0 %v9612_v44  ;;  %4947 = vmatpush.msra.mxu1 %v9692_v12 }
0x12ca   :  { %4857 = vmatpush.msra.mxu3 %v9806_v25 }
0x12cb   :  { %4928 = vmatpush.msrb.mxu0 %v9617_v37  ;;  %4948 = vmatpush.msra.mxu1 %v9697_v60 }
0x12cc   :  { %4858 = vmatpush.msra.mxu3 %v9811_v2 }
0x12cd   :  { %4929 = vmatpush.msrb.mxu0 %v9622_v48  ;;  %4949 = vmatpush.msra.mxu1 %v9702_v52 }
0x12ce   :  { %4859 = vmatpush.msra.mxu3 %v9816_v6 }
0x12cf   :  { %4930 = vmatpush.msrb.mxu0 %v9627_v39  ;;  %4950 = vmatpush.msra.mxu1 %v9707_v58 }
0x12d0   :  { %4860 = vmatpush.msra.mxu3 %v9821_v30 }
0x12d1   :  { %4931 = vmatpush.msrb.mxu0 %v9632_v42  ;;  %4951 = vmatpush.msra.mxu1 %v9712_v18 }
0x12d2   :  { %4861 = vmatpush.msra.mxu3 %v9826_v3 }
0x12d3   :  { %4932 = vmatpush.msrb.mxu0 %v9716_v36  ;;  %4952 = vmatpush.msra.mxu1 %v9719_v46 }
0x12d4   :  { %4862 = vmatpush.msra.mxu3 %v9831_v20 }
0x12d5   :  { %4933 = vmatpush.msrb.mxu0 %v9723_v5  ;;  %4953 = vmatpush.msra.mxu1 %v9726_v9 }
0x12d6   :  { %4863 = vmatpush.msra.mxu3 %v9836_v63 }
0x12d7   :  { %4934 = vmatpush.msrb.mxu0 %v9730_v47  ;;  %4954 = vmatpush.msra.mxu1 %v9733_v53 }
0x12d8   :  { %4864 = vmatpush.msra.mxu3 %v9841_v26 }
0x12d9   :  { %4935 = vmatpush.msrb.mxu0 %v9737_v17  ;;  %4955 = vmatpush.msra.mxu1 %v9740_v1 }
0x12da   :  { %4865 = vmatpush.msra.mxu3 %v9846_v51 }
0x12db   :  { %4936 = vmatpush.msrb.mxu0 %v9744_v45  ;;  %4956 = vmatpush.msra.mxu1 %v9747_v32 }
0x12dc   :  { %4866 = vmatpush.msra.mxu3 %v9851_v4 }
0x12dd   :  { %4937 = vmatpush.msrb.mxu0 %v10626_v31  ;;  %4957 = vmatpush.msra.mxu1 %v10627_v54 }
0x12de   :  { %4867 = vmatpush.msra.mxu3 %v10628_v16 }
0x12df   :  { %4938 = vmatpush.msrb.mxu0 %v10629_v57  ;;  %4958 = vmatpush.msra.mxu1 %v10630_v19 }
0x12e0   :  { %4868 = vmatpush.msra.mxu3 %v10631_v28 }
0x12e1   :  { %4939 = vmatpush.msrb.mxu0 %v10632_v27  ;;  %4959 = vmatpush.msra.mxu1 %v10633_v13 }
0x133e   :  { %v4628_v22 = vpop.f32.mrf.mxu0 }
0x133f   :  { %v4629_v21 = vadd.f32 %v4628_v22, %v10636_v11 }
0x1341   :  { %v4674_v49 = vadd.f32 %v4629_v21, %v3401_v29 }
0x1343   :  { %v6075_v40 = vmul.f32 -1.442695, %v4674_v49 }
0x1344   :  { %v4608_v15 = vpop.f32.mrf.mxu3 }
0x1345   :  { %6350 = vpow2.f32 %v6075_v40  ;;  %v4609_v19 = vadd.f32 %v4608_v15, %v10639_v8 }
0x1347   :  { %v4654_v28 = vadd.f32 %v4609_v19, %v3336_v50  ;;  %v4648_v19 = vpop.f32.mrf.mxu1 }
0x1349   :  { %v6074_v57 = vmul.f32 -1.442695, %v4654_v28 }
0x134b   :  { %v6351_v27 = vpop.eup %6350  ;;  %6352 = vpow2.f32 %v6074_v57 }
0x134c   :  { %v4678_v13 = vadd.f32 1.0, %v6351_v27  ;;  %v4649_v27 = vadd.f32 %v4648_v19, %v9089_v14 }
0x134e   :  { %6354 = vrcp.f32 %v4678_v13  ;;  %v4690_v33 = vand.u32 2147483648, %v4678_v13  ;;  %vm4684_vm15 = vweird.f32 %v4678_v13  ;;  %v4688_v31 = vand.u32 2147483647, %v4678_v13 }
0x1350   :  { %vm4689_vm1 = vcmp.eq.f32.partialorder %v4688_v31, 8.507059e+37 }
0x1351   :  { %v6353_v16 = vpop.eup %6352 }
0x1352   :  { %v4658_v54 = vadd.f32 1.0, %v6353_v16 }
0x1354   :  { %6356 = vrcp.f32 %v4658_v54  ;;  %v6355_v61 = vpop.eup %6354  ;;  %v4670_v24 = vand.u32 2147483648, %v4658_v54  ;;  %v4668_v40 = vand.u32 2147483647, %v4658_v54  ;;  %vm4664_vm11 = vweird.f32 %v4658_v54 }
0x1355   :  { %v4680_v22 = vmul.f32 %v6355_v61, %v4678_v13  ;;  %vm4685_vm14 = vweird.f32 %v6355_v61  ;;  %v10649_v13 = vld [vmem:[#allocation26_spill] sm:$0xff] }
0x1356   :  { %v4671_v57 = vor.u32 1.1754944e-38, %v4670_v24  ;;  %vm4669_vm13 = vcmp.eq.f32.partialorder %v4668_v40, 8.507059e+37  ;;  %vm4686_vm0 = vmor %vm4684_vm15, %vm4685_vm14 }
0x1357   :  { %v4681_v49 = vsub.f32 1.0, %v4680_v22  ;;  %v10640_v22 = vld [vmem:[#allocation17_spill] sm:$0xff] }
0x1359   :  { %v4682_v15 = vmul.f32 %v6355_v61, %v4681_v49 }
0x135a   :  { %v6357_v29 = vpop.eup %6356 }
0x135b   :  { %v4660_v21 = vmul.f32 %v6357_v29, %v4658_v54  ;;  %vm4665_vm10 = vweird.f32 %v6357_v29  ;;  %v4683_v8 = vadd.f32 %v6355_v61, %v4682_v15  ;;  %v4691_v54 = vor.u32 1.1754944e-38, %v4690_v33  ;;  %v10650_v33 = vld [vmem:[#allocation22_spill] sm:$0xff] }
0x135c   :  { %vm4666_vm12 = vmor %vm4664_vm11, %vm4665_vm10 }
0x135d   :  { %v4661_v11 = vsub.f32 1.0, %v4660_v21  ;;  %v3466_v21 = vadd.f32 %v10640_v22, %v9094_v35 }
0x135f   :  { %v4662_v0 = vmul.f32 %v6357_v29, %v4661_v11 }
0x1361   :  { %v4663_v28 = vadd.f32 %v6357_v29, %v4662_v0  ;;  %v4687_v0 = vsel %vm4686_vm0, %v6355_v61, %v4683_v8  ;;  %v3339_v61 = vadd.f32 %v10650_v33, %v10649_v13 }
0x1362   :  { %v4692_v24 = vsel %vm4689_vm1, %v4691_v54, %v4687_v0 }
0x1363   :  { %v4667_v16 = vsel %vm4666_vm12, %v6357_v29, %v4663_v28  ;;  %v4697_v19 = vsub.f32 1.0, %v4692_v24  ;;  %v4699_v28 = vmul.f32 %v4692_v24, %v9876_v23 }
0x1364   :  { %v4672_v50 = vsel %vm4669_vm13, %v4671_v57, %v4667_v16  ;;  %v10651_v57 = vld [vmem:[#allocation60_spill] sm:$0xff] }
0x1365   :  { %v4694_v11 = vmul.f32 %v4672_v50, %v4649_v27  ;;  %v10652_v27 = vld [vmem:[#allocation36_spill] sm:$0xff]  ;;  %v10653_v50 = vld [vmem:[#allocation25_spill] sm:$0xff] }
0x1366   :  { %v3404_v16 = vadd.f32 %v10652_v27, %v10651_v57 }
0x1367   :  { %v4695_v49 = vadd.f32 %v4694_v11, %v3466_v21  ;;  %v10654_v21 = vld [vmem:[#allocation27_spill] sm:$0xff] }
0x1369   :  { %6358 = vtanh.f32 %v4695_v49 }
0x136f   :  { %v6359_v29 = vpop.eup %6358 }
0x1370   :  { %v4698_v40 = vmul.f32 %v6359_v29, %v4697_v19 }
0x1372   :  { %v9939_v15 = vadd.f32 %v4699_v28, %v4698_v40 }
0x1374   :  { %4718 = vmatmul.f32.vlgmr.msra.gmra.mxu2 %v9939_v15  ;;  %4738 = vmatmul.f32.vlgmr.msrb.gmra.mxu3 %v9939_v15 }
0x1375   :  { %4758 = vmatmul.f32.vlgmr.msra.gmra.mxu0 %v9939_v15  ;;  %4964 = vmatpush.msra.mxu2 %v9786_v10 }
0x1376   :  { %5035 = vmatpush.msrb.mxu3 %v9597_v34  ;;  %5055 = vmatpush.msra.mxu0 %v9677_v41  ;;  %v10641_v34 = vld [vmem:[#allocation54_spill] sm:$0xff] }
0x1377   :  { %4965 = vmatpush.msra.mxu2 %v9791_v7 }
0x1378   :  { %5036 = vmatpush.msrb.mxu3 %v9602_v62  ;;  %5056 = vmatpush.msra.mxu0 %v9682_v43  ;;  %v10642_v62 = vld [vmem:[#allocation39_spill] sm:$0xff] }
0x1379   :  { %4966 = vmatpush.msra.mxu2 %v9796_v55 }
0x137a   :  { %5037 = vmatpush.msrb.mxu3 %v9607_v56  ;;  %5057 = vmatpush.msra.mxu0 %v9687_v38  ;;  %v10643_v56 = vld [vmem:[#allocation18_spill] sm:$0xff] }
0x137b   :  { %4967 = vmatpush.msra.mxu2 %v9801_v59 }
0x137c   :  { %5038 = vmatpush.msrb.mxu3 %v9612_v44  ;;  %5058 = vmatpush.msra.mxu0 %v9692_v12  ;;  %v10644_v44 = vld [vmem:[#allocation49_spill] sm:$0xff] }
0x137d   :  { %4968 = vmatpush.msra.mxu2 %v9806_v25 }
0x137e   :  { %5039 = vmatpush.msrb.mxu3 %v9617_v37  ;;  %5059 = vmatpush.msra.mxu0 %v9697_v60  ;;  %v10645_v37 = vld [vmem:[#allocation53_spill] sm:$0xff] }
0x137f   :  { %4969 = vmatpush.msra.mxu2 %v9811_v2 }
0x1380   :  { %5040 = vmatpush.msrb.mxu3 %v9622_v48  ;;  %5060 = vmatpush.msra.mxu0 %v9702_v52  ;;  %v10646_v48 = vld [vmem:[#allocation19_spill] sm:$0xff] }
0x1381   :  { %4970 = vmatpush.msra.mxu2 %v9816_v6 }
0x1382   :  { %5041 = vmatpush.msrb.mxu3 %v9627_v39  ;;  %5061 = vmatpush.msra.mxu0 %v9707_v58  ;;  %v10647_v39 = vld [vmem:[#allocation68_spill] sm:$0xff] }
0x1383   :  { %4971 = vmatpush.msra.mxu2 %v9821_v30 }
0x1384   :  { %5042 = vmatpush.msrb.mxu3 %v9632_v42  ;;  %5062 = vmatpush.msra.mxu0 %v9712_v18  ;;  %v10648_v42 = vld [vmem:[#allocation15_spill] sm:$0xff] }
0x1385   :  { %4972 = vmatpush.msra.mxu2 %v9826_v3 }
0x1386   :  { %5043 = vmatpush.msrb.mxu3 %v9716_v36  ;;  %5063 = vmatpush.msra.mxu0 %v9719_v46 }
0x1387   :  { %4973 = vmatpush.msra.mxu2 %v9831_v20 }
0x1388   :  { %5044 = vmatpush.msrb.mxu3 %v9723_v5  ;;  %5064 = vmatpush.msra.mxu0 %v9726_v9 }
0x1389   :  { %4974 = vmatpush.msra.mxu2 %v9836_v63 }
0x138a   :  { %5045 = vmatpush.msrb.mxu3 %v9730_v47  ;;  %5065 = vmatpush.msra.mxu0 %v9733_v53 }
0x138b   :  { %4975 = vmatpush.msra.mxu2 %v9841_v26 }
0x138c   :  { %5046 = vmatpush.msrb.mxu3 %v9737_v17  ;;  %5066 = vmatpush.msra.mxu0 %v9740_v1 }
0x138d   :  { %4976 = vmatpush.msra.mxu2 %v9846_v51 }
0x138e   :  { %5047 = vmatpush.msrb.mxu3 %v9744_v45  ;;  %5067 = vmatpush.msra.mxu0 %v9747_v32 }
0x138f   :  { %4977 = vmatpush.msra.mxu2 %v9851_v4 }
0x1390   :  { %5048 = vmatpush.msrb.mxu3 %v10641_v34  ;;  %5068 = vmatpush.msra.mxu0 %v10642_v62 }
0x1391   :  { %4978 = vmatpush.msra.mxu2 %v10643_v56 }
0x1392   :  { %5049 = vmatpush.msrb.mxu3 %v10644_v44  ;;  %5069 = vmatpush.msra.mxu0 %v10645_v37 }
0x1393   :  { %4979 = vmatpush.msra.mxu2 %v10646_v48 }
0x1394   :  { %5050 = vmatpush.msrb.mxu3 %v10647_v39  ;;  %5070 = vmatpush.msra.mxu0 %v10648_v42 }
0x13f7   :  { %v4719_v8 = vpop.f32.mrf.mxu2  ;;  %v4739_v31 = vpop.f32.mrf.mxu3 }
0x13f8   :  { %v4720_v22 = vadd.f32 %v4719_v8, %v10653_v50  ;;  %v4740_v11 = vadd.f32 %v4739_v31, %v10654_v21 }
0x13fa   :  { %v4765_v49 = vadd.f32 %v4720_v22, %v3339_v61  ;;  %v4785_v0 = vadd.f32 %v4740_v11, %v3404_v16  ;;  %v4759_v16 = vpop.f32.mrf.mxu0 }
0x13fc   :  { %v6076_v54 = vmul.f32 -1.442695, %v4765_v49  ;;  %v6077_v24 = vmul.f32 -1.442695, %v4785_v0  ;;  %v4760_v0 = vadd.f32 %v4759_v16, %v9089_v14 }
0x13fe   :  { %6360 = vpow2.f32 %v6076_v54 }
0x13ff   :  { %6362 = vpow2.f32 %v6077_v24 }
0x1404   :  { %v6361_v19 = vpop.eup %6360 }
0x1405   :  { %v6363_v29 = vpop.eup %6362  ;;  %v4769_v40 = vadd.f32 1.0, %v6361_v19 }
0x1406   :  { %v4789_v28 = vadd.f32 1.0, %v6363_v29 }
0x1407   :  { %6364 = vrcp.f32 %v4769_v40  ;;  %v4781_v8 = vand.u32 2147483648, %v4769_v40  ;;  %v4779_v61 = vand.u32 2147483647, %v4769_v40  ;;  %vm4775_vm3 = vweird.f32 %v4769_v40 }
0x1408   :  { %6366 = vrcp.f32 %v4789_v28  ;;  %vm4795_vm7 = vweird.f32 %v4789_v28  ;;  %v4799_v21 = vand.u32 2147483647, %v4789_v28 }
0x1409   :  { %v4782_v49 = vor.u32 1.1754944e-38, %v4781_v8  ;;  %vm4780_vm5 = vcmp.eq.f32.partialorder %v4779_v61, 8.507059e+37 }
0x140a   :  { %vm4800_vm9 = vcmp.eq.f32.partialorder %v4799_v21, 8.507059e+37  ;;  %v10013_v21 = vld [vmem:[#allocation9 + $0x2d0] sm:$0xff] }
0x140d   :  { %v6365_v33 = vpop.eup %6364 }
0x140e   :  { %v6367_v23 = vpop.eup %6366  ;;  %v4771_v13 = vmul.f32 %v6365_v33, %v4769_v40  ;;  %vm4776_vm2 = vweird.f32 %v6365_v33 }
0x140f   :  { %v4791_v27 = vmul.f32 %v6367_v23, %v4789_v28  ;;  %vm4777_vm4 = vmor %vm4775_vm3, %vm4776_vm2  ;;  %vm4796_vm6 = vweird.f32 %v6367_v23 }
0x1410   :  { %v4772_v57 = vsub.f32 1.0, %v4771_v13  ;;  %v10655_v13 = vld [vmem:[#allocation41_spill] sm:$0xff]  ;;  %vm4797_vm8 = vmor %vm4795_vm7, %vm4796_vm6 }
0x1411   :  { %v4792_v50 = vsub.f32 1.0, %v4791_v27  ;;  %v3469_v29 = vadd.f32 %v10655_v13, %v9094_v35 }
0x1412   :  { %v4773_v31 = vmul.f32 %v6365_v33, %v4772_v57  ;;  %v4801_v57 = vand.u32 2147483648, %v4789_v28  ;;  %v10018_v28 = vld [vmem:[#allocation9 + $0x2b8] sm:$0xff] }
0x1413   :  { %v4793_v22 = vmul.f32 %v6367_v23, %v4792_v50 }
0x1414   :  { %v4774_v11 = vadd.f32 %v6365_v33, %v4773_v31  ;;  %v4802_v40 = vor.u32 1.1754944e-38, %v4801_v57 }
0x1415   :  { %v4794_v19 = vadd.f32 %v6367_v23, %v4793_v22 }
0x1416   :  { %v4778_v54 = vsel %vm4777_vm4, %v6365_v33, %v4774_v11 }
0x1417   :  { %v4783_v24 = vsel %vm4780_vm5, %v4782_v49, %v4778_v54  ;;  %v4798_v31 = vsel %vm4797_vm8, %v6367_v23, %v4794_v19  ;;  %v10008_v23 = vld [vmem:[#allocation9 + $0x2e8] sm:$0xff]  ;;  %v10023_v49 = vld [vmem:[#allocation9 + $0x2a0] sm:$0xff] }
0x1418   :  { %v4805_v27 = vmul.f32 %v4783_v24, %v4760_v0  ;;  %v4803_v8 = vsel %vm4800_vm9, %v4802_v40, %v4798_v31 }
0x1419   :  { %v4808_v16 = vsub.f32 1.0, %v4803_v8  ;;  %v4810_v11 = vmul.f32 %v4803_v8, %v9939_v15 }
0x141a   :  { %v4806_v50 = vadd.f32 %v4805_v27, %v3469_v29 }
0x141c   :  { %6368 = vtanh.f32 %v4806_v50 }
0x1422   :  { %v6369_v33 = vpop.eup %6368 }
0x1423   :  { %v4809_v61 = vmul.f32 %v6369_v33, %v4808_v16 }
0x1425   :  { %v10002_v22 = vadd.f32 %v4810_v11, %v4809_v61  ;;  %v10662_v61 = vld [vmem:[#allocation43_spill] sm:$0xff] }
0x1426   :  { %v3472_v11 = vadd.f32 %v10662_v61, %v9094_v35 }
0x1427   :  { %4829 = vmatmul.f32.vlgmr.msrb.gmra.mxu1 %v10002_v22  ;;  %4849 = vmatmul.f32.vlgmr.msrb.gmra.mxu2 %v10002_v22 }
0x1428   :  { %4869 = vmatmul.f32.vlgmr.msra.gmra.mxu3 %v10002_v22  ;;  %5075 = vmatpush.msrb.mxu1 %v9786_v10 }
0x1429   :  { %5146 = vmatpush.msrb.mxu2 %v10008_v23  ;;  %5166 = vmatpush.msra.mxu3 %v9677_v41  ;;  %v10028_v41 = vld [vmem:[#allocation9 + $0x288] sm:$0xff] }
0x142a   :  { %5076 = vmatpush.msrb.mxu1 %v9791_v7 }
0x142b   :  { %5147 = vmatpush.msrb.mxu2 %v10013_v21  ;;  %5167 = vmatpush.msra.mxu3 %v9682_v43  ;;  %v10033_v43 = vld [vmem:[#allocation9 + $0x270] sm:$0xff] }
0x142c   :  { %5077 = vmatpush.msrb.mxu1 %v9796_v55 }
0x142d   :  { %5148 = vmatpush.msrb.mxu2 %v10018_v28  ;;  %5168 = vmatpush.msra.mxu3 %v9687_v38  ;;  %v10038_v38 = vld [vmem:[#allocation9 + $0x258] sm:$0xff] }
0x142e   :  { %5078 = vmatpush.msrb.mxu1 %v9801_v59 }
0x142f   :  { %5149 = vmatpush.msrb.mxu2 %v10023_v49  ;;  %5169 = vmatpush.msra.mxu3 %v9692_v12  ;;  %v10043_v12 = vld [vmem:[#allocation9 + $0x240] sm:$0xff] }
0x1430   :  { %5079 = vmatpush.msrb.mxu1 %v9806_v25 }
0x1431   :  { %5150 = vmatpush.msrb.mxu2 %v10028_v41  ;;  %5170 = vmatpush.msra.mxu3 %v9697_v60 }
0x1432   :  { %5080 = vmatpush.msrb.mxu1 %v9811_v2 }
0x1433   :  { %5151 = vmatpush.msrb.mxu2 %v10033_v43  ;;  %5171 = vmatpush.msra.mxu3 %v9702_v52  ;;  %v10656_v52 = vld [vmem:[#allocation26_spill] sm:$0xff] }
0x1434   :  { %5081 = vmatpush.msrb.mxu1 %v9816_v6 }
0x1435   :  { %5152 = vmatpush.msrb.mxu2 %v10038_v38  ;;  %5172 = vmatpush.msra.mxu3 %v9707_v58  ;;  %v10657_v58 = vld [vmem:[#allocation21_spill] sm:$0xff] }
0x1436   :  { %5082 = vmatpush.msrb.mxu1 %v9821_v30 }
0x1437   :  { %5153 = vmatpush.msrb.mxu2 %v10043_v12  ;;  %5173 = vmatpush.msra.mxu3 %v9712_v18  ;;  %v3342_v18 = vadd.f32 %v10657_v58, %v10656_v52 }
0x1438   :  { %5083 = vmatpush.msrb.mxu1 %v9826_v3 }
0x1439   :  { %5154 = vmatpush.msrb.mxu2 %v9716_v36  ;;  %5174 = vmatpush.msra.mxu3 %v9719_v46  ;;  %v10658_v36 = vld [vmem:[#allocation25_spill] sm:$0xff] }
0x143a   :  { %5084 = vmatpush.msrb.mxu1 %v9831_v20 }
0x143b   :  { %5155 = vmatpush.msrb.mxu2 %v9723_v5  ;;  %5175 = vmatpush.msra.mxu3 %v9726_v9 }
0x143c   :  { %5085 = vmatpush.msrb.mxu1 %v9836_v63 }
0x143d   :  { %5156 = vmatpush.msrb.mxu2 %v9730_v47  ;;  %5176 = vmatpush.msra.mxu3 %v9733_v53  ;;  %v10659_v53 = vld [vmem:[#allocation60_spill] sm:$0xff] }
0x143e   :  { %5086 = vmatpush.msrb.mxu1 %v9841_v26 }
0x143f   :  { %5157 = vmatpush.msrb.mxu2 %v9737_v17  ;;  %5177 = vmatpush.msra.mxu3 %v9740_v1  ;;  %v10660_v17 = vld [vmem:[#allocation34_spill] sm:$0xff] }
0x1440   :  { %5087 = vmatpush.msrb.mxu1 %v9846_v51  ;;  %v3407_v1 = vadd.f32 %v10660_v17, %v10659_v53 }
0x1441   :  { %5158 = vmatpush.msrb.mxu2 %v9744_v45  ;;  %5178 = vmatpush.msra.mxu3 %v9747_v32  ;;  %v10661_v45 = vld [vmem:[#allocation27_spill] sm:$0xff] }
0x1442   :  { %5088 = vmatpush.msrb.mxu1 %v9851_v4 }
0x1443   :  { %5159 = vmatpush.msrb.mxu2 %v10641_v34  ;;  %5179 = vmatpush.msra.mxu3 %v10642_v62 }
0x1444   :  { %5089 = vmatpush.msrb.mxu1 %v10643_v56 }
0x1445   :  { %5160 = vmatpush.msrb.mxu2 %v10644_v44  ;;  %5180 = vmatpush.msra.mxu3 %v10645_v37 }
0x1446   :  { %5090 = vmatpush.msrb.mxu1 %v10646_v48 }
0x1447   :  { %5161 = vmatpush.msrb.mxu2 %v10647_v39  ;;  %5181 = vmatpush.msra.mxu3 %v10648_v42 }
0x14a4   :  { %v4830_v60 = vpop.f32.mrf.mxu1 }
0x14a5   :  { %v4831_v46 = vadd.f32 %v4830_v60, %v10658_v36 }
0x14a7   :  { %v4876_v5 = vadd.f32 %v4831_v46, %v3342_v18 }
0x14a9   :  { %v6078_v9 = vmul.f32 -1.442695, %v4876_v5 }
0x14aa   :  { %v4850_v47 = vpop.f32.mrf.mxu2 }
0x14ab   :  { %6370 = vpow2.f32 %v6078_v9  ;;  %v4851_v32 = vadd.f32 %v4850_v47, %v10661_v45  ;;  %v4870_v57 = vpop.f32.mrf.mxu3 }
0x14ac   :  { %v4871_v16 = vadd.f32 %v4870_v57, %v9089_v14 }
0x14ad   :  { %v4896_v34 = vadd.f32 %v4851_v32, %v3407_v1 }
0x14af   :  { %v6079_v62 = vmul.f32 -1.442695, %v4896_v34 }
0x14b1   :  { %v6371_v44 = vpop.eup %6370  ;;  %6372 = vpow2.f32 %v6079_v62 }
0x14b2   :  { %v4880_v37 = vadd.f32 1.0, %v6371_v44 }
0x14b4   :  { %6374 = vrcp.f32 %v4880_v37  ;;  %v4892_v19 = vand.u32 2147483648, %v4880_v37  ;;  %v4890_v29 = vand.u32 2147483647, %v4880_v37  ;;  %vm4886_vm11 = vweird.f32 %v4880_v37 }
0x14b6   :  { %v4893_v40 = vor.u32 1.1754944e-38, %v4892_v19  ;;  %vm4891_vm13 = vcmp.eq.f32.partialorder %v4890_v29, 8.507059e+37  ;;  %v10664_v29 = vld [vmem:[#allocation44_spill] sm:$0xff] }
0x14b7   :  { %v6373_v39 = vpop.eup %6372 }
0x14b8   :  { %v4900_v42 = vadd.f32 1.0, %v6373_v39 }
0x14ba   :  { %v6375_v0 = vpop.eup %6374  ;;  %6376 = vrcp.f32 %v4900_v42  ;;  %v4912_v18 = vand.u32 2147483648, %v4900_v42  ;;  %v4910_v5 = vand.u32 2147483647, %v4900_v42  ;;  %vm4906_vm15 = vweird.f32 %v4900_v42 }
0x14bb   :  { %v4882_v54 = vmul.f32 %v6375_v0, %v4880_v37  ;;  %vm4887_vm10 = vweird.f32 %v6375_v0 }
0x14bc   :  { %vm4888_vm12 = vmor %vm4886_vm11, %vm4887_vm10  ;;  %v4913_v17 = vor.u32 1.1754944e-38, %v4912_v18  ;;  %vm4911_vm1 = vcmp.eq.f32.partialorder %v4910_v5, 8.507059e+37 }
0x14bd   :  { %v4883_v24 = vsub.f32 1.0, %v4882_v54  ;;  %v6654_v54 = vld [vmem:[#allocation9 + $0x2c0] sm:$0xff] }
0x14bf   :  { %v4884_v13 = vmul.f32 %v6375_v0, %v4883_v24 }
0x14c0   :  { %v6377_v27 = vpop.eup %6376 }
0x14c1   :  { %v4902_v50 = vmul.f32 %v6377_v27, %v4900_v42  ;;  %v4885_v31 = vadd.f32 %v6375_v0, %v4884_v13  ;;  %vm4907_vm14 = vweird.f32 %v6377_v27  ;;  %v6652_v42 = vld [vmem:[#allocation9 + $0x2f0] sm:$0xff] }
0x14c2   :  { %vm4908_vm0 = vmor %vm4906_vm15, %vm4907_vm14 }
0x14c3   :  { %v4903_v8 = vsub.f32 1.0, %v4902_v50  ;;  %v4889_v33 = vsel %vm4888_vm12, %v6375_v0, %v4885_v31  ;;  %v6653_v0 = vld [vmem:[#allocation9 + $0x2d8] sm:$0xff] }
0x14c4   :  { %v4894_v60 = vsel %vm4891_vm13, %v4893_v40, %v4889_v33 }
0x14c5   :  { %v4904_v58 = vmul.f32 %v6377_v27, %v4903_v8  ;;  %v4916_v46 = vmul.f32 %v4894_v60, %v4871_v16 }
0x14c7   :  { %v4905_v9 = vadd.f32 %v6377_v27, %v4904_v58  ;;  %v4917_v47 = vadd.f32 %v4916_v46, %v3472_v11 }
0x14c9   :  { %v4909_v1 = vsel %vm4908_vm0, %v6377_v27, %v4905_v9  ;;  %6378 = vtanh.f32 %v4917_v47  ;;  %v3410_v27 = vadd.f32 %v10664_v29, %v10659_v53  ;;  %v6687_v29 = vld [vmem:[#allocation9 + $0x1f0] sm:$0xff] }
0x14ca   :  { %v4914_v32 = vsel %vm4911_vm1, %v4913_v17, %v4909_v1 }
0x14cb   :  { %v4919_v34 = vsub.f32 1.0, %v4914_v32  ;;  %v4921_v37 = vmul.f32 %v4914_v32, %v10002_v22 }
0x14cf   :  { %v6379_v62 = vpop.eup %6378 }
0x14d0   :  { %v4920_v44 = vmul.f32 %v6379_v62, %v4919_v34 }
0x14d2   :  { %v10081_v39 = vadd.f32 %v4921_v37, %v4920_v44 }
0x14d4   :  { %4940 = vmatmul.f32.vlgmr.msrb.gmra.mxu0 %v10081_v39  ;;  %4960 = vmatmul.f32.vlgmr.msra.gmra.mxu1 %v10081_v39 }
0x14d5   :  { %4980 = vmatmul.f32.vlgmr.msra.gmra.mxu2 %v10081_v39  ;;  %5186 = vmatpush.msrb.mxu0 %v9786_v10  ;;  %v6655_v10 = vld [vmem:[#allocation9 + $0x2a8] sm:$0xff] }
0x14d6   :  { %5257 = vmatpush.msra.mxu1 %v10008_v23  ;;  %5277 = vmatpush.msra.mxu2 %v6652_v42  ;;  %v6660_v23 = vld [vmem:[#allocation9 + $0x228] sm:$0xff] }
0x14d7   :  { %5187 = vmatpush.msrb.mxu0 %v9791_v7  ;;  %v6656_v7 = vld [vmem:[#allocation9 + $0x290] sm:$0xff] }
0x14d8   :  { %5258 = vmatpush.msra.mxu1 %v10013_v21  ;;  %5278 = vmatpush.msra.mxu2 %v6653_v0  ;;  %v6662_v21 = vld [vmem:[#allocation9 + $0x210] sm:$0xff] }
0x14d9   :  { %5188 = vmatpush.msrb.mxu0 %v9796_v55  ;;  %v6657_v55 = vld [vmem:[#allocation9 + $0x278] sm:$0xff] }
0x14da   :  { %5259 = vmatpush.msra.mxu1 %v10018_v28  ;;  %5279 = vmatpush.msra.mxu2 %v6654_v54  ;;  %v6664_v28 = vld [vmem:[#allocation9 + $0x1f8] sm:$0xff] }
0x14db   :  { %5189 = vmatpush.msrb.mxu0 %v9801_v59  ;;  %v6658_v59 = vld [vmem:[#allocation9 + $0x260] sm:$0xff] }
0x14dc   :  { %5260 = vmatpush.msra.mxu1 %v10023_v49  ;;  %5280 = vmatpush.msra.mxu2 %v6655_v10  ;;  %v6666_v49 = vld [vmem:[#allocation9 + $0x1e0] sm:$0xff] }
0x14dd   :  { %5190 = vmatpush.msrb.mxu0 %v9806_v25  ;;  %v6659_v25 = vld [vmem:[#allocation9 + $0x248] sm:$0xff]  ;;  %v10665_v10 = vld [vmem:[#allocation67_spill] sm:$0xff] }
0x14de   :  { %5261 = vmatpush.msra.mxu1 %v10028_v41  ;;  %5281 = vmatpush.msra.mxu2 %v6656_v7  ;;  %v6668_v41 = vld [vmem:[#allocation9 + $0x1c8] sm:$0xff]  ;;  %v3475_v7 = vadd.f32 %v10665_v10, %v9094_v35 }
0x14df   :  { %5191 = vmatpush.msrb.mxu0 %v9811_v2  ;;  %v6661_v2 = vld [vmem:[#allocation9 + $0x230] sm:$0xff] }
0x14e0   :  { %5262 = vmatpush.msra.mxu1 %v10033_v43  ;;  %5282 = vmatpush.msra.mxu2 %v6657_v55  ;;  %v6670_v43 = vld [vmem:[#allocation9 + $0x1b0] sm:$0xff] }
0x14e1   :  { %5192 = vmatpush.msrb.mxu0 %v9816_v6  ;;  %v6663_v6 = vld [vmem:[#allocation9 + $0x218] sm:$0xff] }
0x14e2   :  { %5263 = vmatpush.msra.mxu1 %v10038_v38  ;;  %5283 = vmatpush.msra.mxu2 %v6658_v59  ;;  %v6672_v38 = vld [vmem:[#allocation9 + $0x198] sm:$0xff] }
0x14e3   :  { %5193 = vmatpush.msrb.mxu0 %v9821_v30  ;;  %v6665_v30 = vld [vmem:[#allocation9 + $0x200] sm:$0xff] }
0x14e4   :  { %5264 = vmatpush.msra.mxu1 %v10043_v12  ;;  %5284 = vmatpush.msra.mxu2 %v6659_v25  ;;  %v6674_v12 = vld [vmem:[#allocation9 + $0x180] sm:$0xff] }
0x14e5   :  { %5194 = vmatpush.msrb.mxu0 %v9826_v3  ;;  %v6667_v3 = vld [vmem:[#allocation9 + $0x1e8] sm:$0xff] }
0x14e6   :  { %5265 = vmatpush.msra.mxu1 %v6660_v23  ;;  %5285 = vmatpush.msra.mxu2 %v6661_v2 }
0x14e7   :  { %5195 = vmatpush.msrb.mxu0 %v9831_v20  ;;  %v6669_v20 = vld [vmem:[#allocation9 + $0x1d0] sm:$0xff] }
0x14e8   :  { %5266 = vmatpush.msra.mxu1 %v6662_v21  ;;  %5286 = vmatpush.msra.mxu2 %v6663_v6 }
0x14e9   :  { %5196 = vmatpush.msrb.mxu0 %v9836_v63  ;;  %v6671_v63 = vld [vmem:[#allocation9 + $0x1b8] sm:$0xff] }
0x14ea   :  { %5267 = vmatpush.msra.mxu1 %v6664_v28  ;;  %5287 = vmatpush.msra.mxu2 %v6665_v30 }
0x14eb   :  { %5197 = vmatpush.msrb.mxu0 %v9841_v26  ;;  %v6673_v26 = vld [vmem:[#allocation9 + $0x1a0] sm:$0xff] }
0x14ec   :  { %5268 = vmatpush.msra.mxu1 %v6666_v49  ;;  %5288 = vmatpush.msra.mxu2 %v6667_v3 }
0x14ed   :  { %5198 = vmatpush.msrb.mxu0 %v9846_v51  ;;  %v6675_v51 = vld [vmem:[#allocation9 + $0x188] sm:$0xff] }
0x14ee   :  { %5269 = vmatpush.msra.mxu1 %v6668_v41  ;;  %5289 = vmatpush.msra.mxu2 %v6669_v20  ;;  %v6676_v20 = vld [vmem:[#allocation9 + $0x2f8] sm:$0xff] }
0x14ef   :  { %5199 = vmatpush.msrb.mxu0 %v9851_v4  ;;  %v10663_v4 = vld [vmem:[#allocation32_spill] sm:$0xff] }
0x14f0   :  { %5270 = vmatpush.msra.mxu1 %v6670_v43  ;;  %5290 = vmatpush.msra.mxu2 %v6671_v63  ;;  %v3345_v13 = vadd.f32 %v10663_v4, %v10656_v52  ;;  %v6677_v43 = vld [vmem:[#allocation9 + $0x2e0] sm:$0xff]  ;;  %v6678_v63 = vld [vmem:[#allocation9 + $0x2c8] sm:$0xff] }
0x14f1   :  { %5200 = vmatpush.msrb.mxu0 %v10643_v56  ;;  %v6685_v4 = vld [vmem:[#allocation9 + $0x220] sm:$0xff] }
0x14f2   :  { %5271 = vmatpush.msra.mxu1 %v6672_v38  ;;  %5291 = vmatpush.msra.mxu2 %v6673_v26  ;;  %v6679_v38 = vld [vmem:[#allocation9 + $0x2b0] sm:$0xff]  ;;  %v6680_v26 = vld [vmem:[#allocation9 + $0x298] sm:$0xff] }
0x14f3   :  { %5201 = vmatpush.msrb.mxu0 %v10646_v48 }
0x14f4   :  { %5272 = vmatpush.msra.mxu1 %v6674_v12  ;;  %5292 = vmatpush.msra.mxu2 %v6675_v51  ;;  %v6681_v12 = vld [vmem:[#allocation9 + $0x280] sm:$0xff]  ;;  %v6682_v51 = vld [vmem:[#allocation9 + $0x268] sm:$0xff] }
0x1551   :  { %v4941_v24 = vpop.f32.mrf.mxu0  ;;  %v4961_v19 = vpop.f32.mrf.mxu1 }
0x1552   :  { %v4942_v56 = vadd.f32 %v4941_v24, %v10658_v36  ;;  %v4962_v57 = vadd.f32 %v4961_v19, %v10661_v45  ;;  %v6683_v24 = vld [vmem:[#allocation9 + $0x250] sm:$0xff]  ;;  %v6684_v19 = vld [vmem:[#allocation9 + $0x238] sm:$0xff] }
0x1554   :  { %v4987_v50 = vadd.f32 %v4942_v56, %v3345_v13  ;;  %v5007_v31 = vadd.f32 %v4962_v57, %v3410_v27  ;;  %v6686_v13 = vld [vmem:[#allocation9 + $0x208] sm:$0xff]  ;;  %v6688_v27 = vld [vmem:[#allocation9 + $0x1d8] sm:$0xff]  ;;  %v6689_v56 = vld [vmem:[#allocation9 + $0x1c0] sm:$0xff] }
0x1555   :  { %v6690_v57 = vld [vmem:[#allocation9 + $0x1a8] sm:$0xff] }
0x1556   :  { %v6080_v40 = vmul.f32 -1.442695, %v4987_v50  ;;  %v6081_v8 = vmul.f32 -1.442695, %v5007_v31  ;;  %v5389_v50 = vld [vmem:[#allocation10 + $0x78] sm:$0xff]  ;;  %v5388_v31 = vld [vmem:[#allocation10 + $0x70] sm:$0xff] }
0x1558   :  { %6380 = vpow2.f32 %v6080_v40  ;;  %v4981_v34 = vpop.f32.mrf.mxu2  ;;  %v5387_v40 = vld [vmem:[#allocation10 + $0x68] sm:$0xff] }
0x1559   :  { %6382 = vpow2.f32 %v6081_v8  ;;  %v4982_v37 = vadd.f32 %v4981_v34, %v9089_v14  ;;  %v5386_v8 = vld [vmem:[#allocation10 + $0x60] sm:$0xff]  ;;  %v5380_v34 = vld [vmem:[#allocation10 + $0x30] sm:$0xff] }
0x155e   :  { %v6381_v16 = vpop.eup %6380 }
0x155f   :  { %v6383_v33 = vpop.eup %6382  ;;  %v4991_v61 = vadd.f32 1.0, %v6381_v16  ;;  %v5385_v16 = vld [vmem:[#allocation10 + $0x58] sm:$0xff] }
0x1560   :  { %v5011_v11 = vadd.f32 1.0, %v6383_v33 }
0x1561   :  { %6384 = vrcp.f32 %v4991_v61  ;;  %v5003_v47 = vand.u32 2147483648, %v4991_v61  ;;  %v5001_v1 = vand.u32 2147483647, %v4991_v61  ;;  %vm4997_vm3 = vweird.f32 %v4991_v61 }
0x1562   :  { %6386 = vrcp.f32 %v5011_v11  ;;  %v5023_v55 = vand.u32 2147483648, %v5011_v11  ;;  %vm5017_vm7 = vweird.f32 %v5011_v11  ;;  %v5021_v25 = vand.u32 2147483647, %v5011_v11 }
0x1563   :  { %v5004_v44 = vor.u32 1.1754944e-38, %v5003_v47  ;;  %vm5002_vm5 = vcmp.eq.f32.partialorder %v5001_v1, 8.507059e+37  ;;  %v10667_v47 = vld [vmem:[#allocation33_spill] sm:$0xff] }
0x1564   :  { %v5024_v21 = vor.u32 1.1754944e-38, %v5023_v55  ;;  %vm5022_vm9 = vcmp.eq.f32.partialorder %v5021_v25, 8.507059e+37  ;;  %v5375_v55 = vld [vmem:[#allocation10 + $0x8] sm:$0xff]  ;;  %v5374_v25 = vld [vmem:[#allocation10] sm:$0xff] }
0x1567   :  { %v6385_v60 = vpop.eup %6384 }
0x1568   :  { %v6387_v58 = vpop.eup %6386  ;;  %v4993_v18 = vmul.f32 %v6385_v60, %v4991_v61  ;;  %vm4998_vm2 = vweird.f32 %v6385_v60  ;;  %v10666_v61 = vld [vmem:[#allocation38_spill] sm:$0xff] }
0x1569   :  { %v5013_v46 = vmul.f32 %v6387_v58, %v5011_v11  ;;  %vm4999_vm4 = vmor %vm4997_vm3, %vm4998_vm2  ;;  %vm5018_vm6 = vweird.f32 %v6387_v58  ;;  %v3413_v11 = vadd.f32 %v10666_v61, %v10659_v53 }
0x156a   :  { %v4994_v5 = vsub.f32 1.0, %v4993_v18  ;;  %vm5019_vm8 = vmor %vm5017_vm7, %vm5018_vm6 }
0x156b   :  { %v5014_v9 = vsub.f32 1.0, %v5013_v46 }
0x156c   :  { %v4995_v17 = vmul.f32 %v6385_v60, %v4994_v5  ;;  %v5382_v5 = vld [vmem:[#allocation10 + $0x40] sm:$0xff] }
0x156d   :  { %v5015_v32 = vmul.f32 %v6387_v58, %v5014_v9 }
0x156e   :  { %v4996_v62 = vadd.f32 %v6385_v60, %v4995_v17  ;;  %v3348_v17 = vadd.f32 %v10667_v47, %v10656_v52  ;;  %v5540_v47 = vld [vmem:[#allocation10 + $0x250] sm:$0xff] }
0x156f   :  { %v5016_v54 = vadd.f32 %v6387_v58, %v5015_v32  ;;  %v5381_v32 = vld [vmem:[#allocation10 + $0x38] sm:$0xff] }
0x1570   :  { %v5000_v42 = vsel %vm4999_vm4, %v6385_v60, %v4996_v62 }
0x1571   :  { %v5005_v0 = vsel %vm5002_vm5, %v5004_v44, %v5000_v42  ;;  %v5020_v2 = vsel %vm5019_vm8, %v6387_v58, %v5016_v54  ;;  %v5384_v58 = vld [vmem:[#allocation10 + $0x50] sm:$0xff]  ;;  %v5379_v44 = vld [vmem:[#allocation10 + $0x28] sm:$0xff]  ;;  %v5378_v42 = vld [vmem:[#allocation10 + $0x20] sm:$0xff] }
0x1572   :  { %v5027_v59 = vmul.f32 %v5005_v0, %v4982_v37  ;;  %v5025_v6 = vsel %vm5022_vm9, %v5024_v21, %v5020_v2  ;;  %v5377_v54 = vld [vmem:[#allocation10 + $0x18] sm:$0xff] }
0x1573   :  { %v5030_v28 = vsub.f32 1.0, %v5025_v6  ;;  %v5032_v3 = vmul.f32 %v5025_v6, %v10081_v39 }
0x1574   :  { %v5028_v23 = vadd.f32 %v5027_v59, %v3475_v7  ;;  %v5376_v7 = vld [vmem:[#allocation10 + $0x10] sm:$0xff] }
0x1576   :  { %6388 = vtanh.f32 %v5028_v23 }
0x157c   :  { %v6389_v30 = vpop.eup %6388 }
0x157d   :  { %v5031_v49 = vmul.f32 %v6389_v30, %v5030_v28 }
0x157f   :  { %v10120_v41 = vadd.f32 %v5032_v3, %v5031_v49 }
0x1581   :  { %5051 = vmatmul.f32.vlgmr.msrb.gmra.mxu3 %v10120_v41  ;;  %5071 = vmatmul.f32.vlgmr.msra.gmra.mxu0 %v10120_v41 }
0x1582   :  { %5091 = vmatmul.f32.vlgmr.msrb.gmra.mxu1 %v10120_v41  ;;  %5297 = vmatpush.msrb.mxu3 %v6676_v20 }
0x1583   :  { %5390 = vmatpush.msra.mxu0 %v5389_v50 }
0x1584   :  { %5298 = vmatpush.msrb.mxu3 %v6677_v43 }
0x1585   :  { %5391 = vmatpush.msra.mxu0 %v5388_v31 }
0x1586   :  { %5299 = vmatpush.msrb.mxu3 %v6678_v63 }
0x1587   :  { %5392 = vmatpush.msra.mxu0 %v5387_v40 }
0x1588   :  { %5300 = vmatpush.msrb.mxu3 %v6679_v38 }
0x1589   :  { %5393 = vmatpush.msra.mxu0 %v5386_v8 }
0x158a   :  { %5301 = vmatpush.msrb.mxu3 %v6680_v26 }
0x158b   :  { %5394 = vmatpush.msra.mxu0 %v5385_v16 }
0x158c   :  { %5302 = vmatpush.msrb.mxu3 %v6681_v12 }
0x158d   :  { %5395 = vmatpush.msra.mxu0 %v5384_v58  ;;  %v5545_v58 = vld [vmem:[#allocation10 + $0x278] sm:$0xff] }
0x158e   :  { %5303 = vmatpush.msrb.mxu3 %v6682_v51 }
0x1590   :  { %5304 = vmatpush.msrb.mxu3 %v6683_v24 }
0x1592   :  { %5305 = vmatpush.msrb.mxu3 %v6684_v19 }
0x1594   :  { %5306 = vmatpush.msrb.mxu3 %v6685_v4 }
0x1596   :  { %5307 = vmatpush.msrb.mxu3 %v6686_v13  ;;  %v10668_v13 = vld [vmem:[#allocation42_spill] sm:$0xff] }
0x1598   :  { %5308 = vmatpush.msrb.mxu3 %v6687_v29  ;;  %v3478_v29 = vadd.f32 %v10668_v13, %v9094_v35  ;;  %v5852_v13 = vld [vmem:[#allocation10 + $0x650] sm:$0xff] }
0x159a   :  { %5309 = vmatpush.msrb.mxu3 %v6688_v27 }
0x159c   :  { %5310 = vmatpush.msrb.mxu3 %v6689_v56 }
0x159e   :  { %5311 = vmatpush.msrb.mxu3 %v6690_v57 }
0x15a0   :  { %5312 = vmatpush.msrb.mxu3 %v10646_v48  ;;  %v5383_v48 = vld [vmem:[#allocation10 + $0x48] sm:$0xff] }
0x15a1   :  { %5396 = vmatpush.msra.mxu0 %v5383_v48  ;;  %v5543_v48 = vld [vmem:[#allocation10 + $0x268] sm:$0xff] }
0x15a3   :  { %5397 = vmatpush.msra.mxu0 %v5382_v5  ;;  %v5541_v5 = vld [vmem:[#allocation10 + $0x258] sm:$0xff] }
0x15a5   :  { %5398 = vmatpush.msra.mxu0 %v5381_v32  ;;  %v5537_v32 = vld [vmem:[#allocation10 + $0x238] sm:$0xff] }
0x15a7   :  { %5399 = vmatpush.msra.mxu0 %v5380_v34  ;;  %v5536_v34 = vld [vmem:[#allocation10 + $0x230] sm:$0xff] }
0x15a9   :  { %5400 = vmatpush.msra.mxu0 %v5379_v44  ;;  %v5534_v44 = vld [vmem:[#allocation10 + $0x220] sm:$0xff] }
0x15ab   :  { %5401 = vmatpush.msra.mxu0 %v5378_v42  ;;  %v5532_v42 = vld [vmem:[#allocation10 + $0x210] sm:$0xff] }
0x15ad   :  { %5402 = vmatpush.msra.mxu0 %v5377_v54  ;;  %v5530_v54 = vld [vmem:[#allocation10 + $0x200] sm:$0xff] }
0x15af   :  { %5403 = vmatpush.msra.mxu0 %v5376_v7  ;;  %v10670_v7 = vld [vmem:[#allocation24_spill] sm:$0xff] }
0x15b1   :  { %5404 = vmatpush.msra.mxu0 %v5375_v55  ;;  %v5700_v55 = vld [vmem:[#allocation10 + $0x470] sm:$0xff] }
0x15b3   :  { %5405 = vmatpush.msra.mxu0 %v5374_v25  ;;  %v5698_v25 = vld [vmem:[#allocation10 + $0x460] sm:$0xff] }
0x15fe   :  { %v5072_v33 = vpop.f32.mrf.mxu0 }
0x15ff   :  { %v5073_v60 = vadd.f32 %v5072_v33, %v10661_v45  ;;  %v5092_v38 = vpop.f32.mrf.mxu1 }
0x1600   :  { %v5093_v51 = vadd.f32 %v5092_v38, %v9089_v14  ;;  %v5686_v38 = vld [vmem:[#allocation10 + $0x400] sm:$0xff] }
0x1601   :  { %v5118_v18 = vadd.f32 %v5073_v60, %v3413_v11 }
0x1603   :  { %v6083_v46 = vmul.f32 -1.442695, %v5118_v18  ;;  %v5544_v18 = vld [vmem:[#allocation10 + $0x270] sm:$0xff] }
0x1604   :  { %v5052_v9 = vpop.f32.mrf.mxu3 }
0x1605   :  { %6390 = vpow2.f32 %v6083_v46  ;;  %v5053_v1 = vadd.f32 %v5052_v9, %v10658_v36  ;;  %v5542_v46 = vld [vmem:[#allocation10 + $0x260] sm:$0xff]  ;;  %v10669_v9 = vld [vmem:[#allocation28_spill] sm:$0xff] }
0x1607   :  { %v5098_v62 = vadd.f32 %v5053_v1, %v3348_v17  ;;  %v5539_v17 = vld [vmem:[#allocation10 + $0x248] sm:$0xff]  ;;  %v5538_v1 = vld [vmem:[#allocation10 + $0x240] sm:$0xff] }
0x1609   :  { %v6082_v37 = vmul.f32 -1.442695, %v5098_v62  ;;  %v5535_v62 = vld [vmem:[#allocation10 + $0x228] sm:$0xff] }
0x160b   :  { %v6391_v0 = vpop.eup %6390  ;;  %6392 = vpow2.f32 %v6082_v37  ;;  %v5533_v37 = vld [vmem:[#allocation10 + $0x218] sm:$0xff] }
0x160c   :  { %v5122_v10 = vadd.f32 1.0, %v6391_v0  ;;  %v5531_v0 = vld [vmem:[#allocation10 + $0x208] sm:$0xff] }
0x160e   :  { %6394 = vrcp.f32 %v5122_v10  ;;  %v5134_v27 = vand.u32 2147483648, %v5122_v10  ;;  %vm5128_vm15 = vweird.f32 %v5122_v10  ;;  %v5132_v57 = vand.u32 2147483647, %v5122_v10 }
0x1610   :  { %v5135_v40 = vor.u32 1.1754944e-38, %v5134_v27  ;;  %vm5133_vm1 = vcmp.eq.f32.partialorder %v5132_v57, 8.507059e+37  ;;  %v5850_v27 = vld [vmem:[#allocation10 + $0x640] sm:$0xff]  ;;  %v5848_v57 = vld [vmem:[#allocation10 + $0x630] sm:$0xff] }
0x1611   :  { %v6393_v59 = vpop.eup %6392 }
0x1612   :  { %v5102_v23 = vadd.f32 1.0, %v6393_v59  ;;  %v5699_v59 = vld [vmem:[#allocation10 + $0x468] sm:$0xff] }
0x1614   :  { %6396 = vrcp.f32 %v5102_v23  ;;  %v6395_v2 = vpop.eup %6394  ;;  %v5114_v3 = vand.u32 2147483648, %v5102_v23  ;;  %v5112_v43 = vand.u32 2147483647, %v5102_v23  ;;  %vm5108_vm11 = vweird.f32 %v5102_v23 }
0x1615   :  { %v5124_v21 = vmul.f32 %v6395_v2, %v5122_v10  ;;  %vm5129_vm14 = vweird.f32 %v6395_v2  ;;  %v5701_v10 = vld [vmem:[#allocation10 + $0x478] sm:$0xff] }
0x1616   :  { %v5115_v12 = vor.u32 1.1754944e-38, %v5114_v3  ;;  %vm5113_vm13 = vcmp.eq.f32.partialorder %v5112_v43, 8.507059e+37  ;;  %vm5130_vm0 = vmor %vm5128_vm15, %vm5129_vm14  ;;  %v5690_v3 = vld [vmem:[#allocation10 + $0x420] sm:$0xff]  ;;  %v5688_v43 = vld [vmem:[#allocation10 + $0x410] sm:$0xff] }
0x1617   :  { %v5125_v30 = vsub.f32 1.0, %v5124_v21  ;;  %v5695_v21 = vld [vmem:[#allocation10 + $0x448] sm:$0xff] }
0x1619   :  { %v5126_v63 = vmul.f32 %v6395_v2, %v5125_v30  ;;  %v5692_v30 = vld [vmem:[#allocation10 + $0x430] sm:$0xff] }
0x161a   :  { %v6397_v6 = vpop.eup %6396 }
0x161b   :  { %v5104_v28 = vmul.f32 %v6397_v6, %v5102_v23  ;;  %vm5109_vm10 = vweird.f32 %v6397_v6  ;;  %v5127_v4 = vadd.f32 %v6395_v2, %v5126_v63  ;;  %v5697_v23 = vld [vmem:[#allocation10 + $0x458] sm:$0xff]  ;;  %v5687_v63 = vld [vmem:[#allocation10 + $0x408] sm:$0xff] }
0x161c   :  { %vm5110_vm12 = vmor %vm5108_vm11, %vm5109_vm10 }
0x161d   :  { %v5105_v49 = vsub.f32 1.0, %v5104_v28  ;;  %v5131_v31 = vsel %vm5130_vm0, %v6395_v2, %v5127_v4  ;;  %v5696_v2 = vld [vmem:[#allocation10 + $0x450] sm:$0xff]  ;;  %v5693_v28 = vld [vmem:[#allocation10 + $0x438] sm:$0xff] }
0x161e   :  { %v5136_v8 = vsel %vm5133_vm1, %v5135_v40, %v5131_v31  ;;  %v5853_v4 = vld [vmem:[#allocation10 + $0x658] sm:$0xff]  ;;  %v5846_v31 = vld [vmem:[#allocation10 + $0x620] sm:$0xff] }
0x161f   :  { %v5106_v20 = vmul.f32 %v6397_v6, %v5105_v49  ;;  %v5141_v16 = vsub.f32 1.0, %v5136_v8  ;;  %v5143_v11 = vmul.f32 %v5136_v8, %v10120_v41  ;;  %v5691_v49 = vld [vmem:[#allocation10 + $0x428] sm:$0xff]  ;;  %v5845_v40 = vld [vmem:[#allocation10 + $0x618] sm:$0xff]  ;;  %v5844_v8 = vld [vmem:[#allocation10 + $0x610] sm:$0xff] }
0x1621   :  { %v5107_v26 = vadd.f32 %v6397_v6, %v5106_v20  ;;  %v5689_v20 = vld [vmem:[#allocation10 + $0x418] sm:$0xff] }
0x1623   :  { %v5111_v24 = vsel %vm5110_vm12, %v6397_v6, %v5107_v26  ;;  %v5694_v6 = vld [vmem:[#allocation10 + $0x440] sm:$0xff]  ;;  %v5857_v26 = vld [vmem:[#allocation10 + $0x678] sm:$0xff] }
0x1624   :  { %v5116_v19 = vsel %vm5113_vm13, %v5115_v12, %v5111_v24  ;;  %v10671_v12 = vld [vmem:[#allocation20_spill] sm:$0xff] }
0x1625   :  { %v5138_v56 = vmul.f32 %v5116_v19, %v5093_v51  ;;  %v5856_v51 = vld [vmem:[#allocation10 + $0x670] sm:$0xff]  ;;  %v5855_v24 = vld [vmem:[#allocation10 + $0x668] sm:$0xff]  ;;  %v5854_v19 = vld [vmem:[#allocation10 + $0x660] sm:$0xff] }
0x1627   :  { %v5139_v50 = vadd.f32 %v5138_v56, %v3478_v29  ;;  %v5851_v29 = vld [vmem:[#allocation10 + $0x648] sm:$0xff]  ;;  %v5849_v56 = vld [vmem:[#allocation10 + $0x638] sm:$0xff] }
0x1629   :  { %6398 = vtanh.f32 %v5139_v50  ;;  %v5847_v50 = vld [vmem:[#allocation10 + $0x628] sm:$0xff] }
0x162f   :  { %v6399_v33 = vpop.eup %6398 }
0x1630   :  { %v5142_v61 = vmul.f32 %v6399_v33, %v5141_v16  ;;  %v5843_v16 = vld [vmem:[#allocation10 + $0x608] sm:$0xff]  ;;  %v5842_v33 = vld [vmem:[#allocation10 + $0x600] sm:$0xff] }
0x1632   :  { %v10136_v60 = vadd.f32 %v5143_v11, %v5142_v61  ;;  %v5428_v61 = vld [vmem:[#allocation10 + $0xf8] sm:$0xff] }
0x1633   :  { %v5467_v11 = vld [vmem:[#allocation10 + $0x178] sm:$0xff]  ;;  %5429 = vmatpush.msrb.mxu1 %v5428_v61  ;;  %v5493_v61 = vld [vmem:[#allocation10 + $0x190] sm:$0xff] }
0x1634   :  { %5162 = vmatmul.f32.vlgmr.msrb.gmra.mxu2 %v10136_v60  ;;  %5182 = vmatmul.f32.vlgmr.msra.gmra.mxu3 %v10136_v60 }
0x1635   :  { %5202 = vmatmul.f32.vlgmr.msrb.gmra.mxu0 %v10136_v60  ;;  %5468 = vmatpush.msrb.mxu2 %v5467_v11 }
0x1636   :  { %5546 = vmatpush.msrb.mxu0 %v5545_v58  ;;  %v5506_v58 = vld [vmem:[#allocation10 + $0x1f8] sm:$0xff] }
0x1637   :  { %5507 = vmatpush.msra.mxu3 %v5506_v58 }
0x1638   :  { %5547 = vmatpush.msrb.mxu0 %v5544_v18  ;;  %v5427_v18 = vld [vmem:[#allocation10 + $0xf0] sm:$0xff] }
0x1639   :  { %5430 = vmatpush.msrb.mxu1 %v5427_v18  ;;  %v5414_v18 = vld [vmem:[#allocation10 + $0x88] sm:$0xff] }
0x163a   :  { %5548 = vmatpush.msrb.mxu0 %v5543_v48  ;;  %v5466_v48 = vld [vmem:[#allocation10 + $0x170] sm:$0xff] }
0x163b   :  { %5469 = vmatpush.msrb.mxu2 %v5466_v48  ;;  %v5453_v48 = vld [vmem:[#allocation10 + $0x108] sm:$0xff] }
0x163c   :  { %5549 = vmatpush.msrb.mxu0 %v5542_v46  ;;  %v5505_v46 = vld [vmem:[#allocation10 + $0x1f0] sm:$0xff] }
0x163d   :  { %5406 = vmatmul.f32.vlgmr.msra.gmra.mxu0 %v10669_v9  ;;  %5508 = vmatpush.msra.mxu3 %v5505_v46  ;;  %v5465_v9 = vld [vmem:[#allocation10 + $0x168] sm:$0xff] }
0x163e   :  { %5550 = vmatpush.msrb.mxu0 %v5541_v5  ;;  %v5426_v5 = vld [vmem:[#allocation10 + $0xe8] sm:$0xff]  ;;  %5470 = vmatpush.msrb.mxu2 %v5465_v9  ;;  %v5413_v9 = vld [vmem:[#allocation10 + $0x80] sm:$0xff] }
0x163f   :  { %5431 = vmatpush.msrb.mxu1 %v5426_v5  ;;  %v5492_v5 = vld [vmem:[#allocation10 + $0x188] sm:$0xff] }
0x1640   :  { %5551 = vmatpush.msrb.mxu0 %v5540_v47  ;;  %v5504_v47 = vld [vmem:[#allocation10 + $0x1e8] sm:$0xff] }
0x1641   :  { %5509 = vmatpush.msra.mxu3 %v5504_v47  ;;  %v5452_v47 = vld [vmem:[#allocation10 + $0x100] sm:$0xff] }
0x1642   :  { %5552 = vmatpush.msrb.mxu0 %v5539_v17  ;;  %v5425_v17 = vld [vmem:[#allocation10 + $0xe0] sm:$0xff] }
0x1643   :  { %5432 = vmatpush.msrb.mxu1 %v5425_v17  ;;  %v5491_v17 = vld [vmem:[#allocation10 + $0x180] sm:$0xff] }
0x1644   :  { %5553 = vmatpush.msrb.mxu0 %v5538_v1  ;;  %v5503_v1 = vld [vmem:[#allocation10 + $0x1e0] sm:$0xff] }
0x1645   :  { %5510 = vmatpush.msra.mxu3 %v5503_v1 }
0x1646   :  { %5554 = vmatpush.msrb.mxu0 %v5537_v32  ;;  %v5424_v32 = vld [vmem:[#allocation10 + $0xd8] sm:$0xff] }
0x1647   :  { %5433 = vmatpush.msrb.mxu1 %v5424_v32 }
0x1648   :  { %5555 = vmatpush.msrb.mxu0 %v5536_v34  ;;  %v5463_v34 = vld [vmem:[#allocation10 + $0x158] sm:$0xff] }
0x164a   :  { %5556 = vmatpush.msrb.mxu0 %v5535_v62  ;;  %v5502_v62 = vld [vmem:[#allocation10 + $0x1d8] sm:$0xff] }
0x164b   :  { %5511 = vmatpush.msra.mxu3 %v5502_v62 }
0x164c   :  { %5557 = vmatpush.msrb.mxu0 %v5534_v44  ;;  %v5423_v44 = vld [vmem:[#allocation10 + $0xd0] sm:$0xff] }
0x164d   :  { %5434 = vmatpush.msrb.mxu1 %v5423_v44 }
0x164e   :  { %5558 = vmatpush.msrb.mxu0 %v5533_v37  ;;  %v5462_v37 = vld [vmem:[#allocation10 + $0x150] sm:$0xff] }
0x1650   :  { %5559 = vmatpush.msrb.mxu0 %v5532_v42  ;;  %v5501_v42 = vld [vmem:[#allocation10 + $0x1d0] sm:$0xff] }
0x1651   :  { %5512 = vmatpush.msra.mxu3 %v5501_v42 }
0x1652   :  { %5560 = vmatpush.msrb.mxu0 %v5531_v0  ;;  %v10672_v0 = vld [vmem:[#allocation64_spill] sm:$0xff] }
0x1654   :  { %5561 = vmatpush.msrb.mxu0 %v5530_v54  ;;  %v3351_v54 = vadd.f32 %v10672_v0, %v10656_v52 }
0x1655   :  { %5562 = vmatmul.f32.vlgmr.msrb.gmra.mxu0 %v10670_v7 }
0x1656   :  { %5702 = vmatpush.msra.mxu0 %v5701_v10 }
0x1658   :  { %5703 = vmatpush.msra.mxu0 %v5700_v55  ;;  %v5422_v55 = vld [vmem:[#allocation10 + $0xc8] sm:$0xff] }
0x1659   :  { %5435 = vmatpush.msrb.mxu1 %v5422_v55 }
0x165a   :  { %5704 = vmatpush.msra.mxu0 %v5699_v59  ;;  %v5461_v59 = vld [vmem:[#allocation10 + $0x148] sm:$0xff] }
0x165c   :  { %5705 = vmatpush.msra.mxu0 %v5698_v25  ;;  %v5500_v25 = vld [vmem:[#allocation10 + $0x1c8] sm:$0xff] }
0x165d   :  { %5513 = vmatpush.msra.mxu3 %v5500_v25 }
0x165e   :  { %5706 = vmatpush.msra.mxu0 %v5697_v23  ;;  %v10673_v23 = vld [vmem:[#allocation35_spill] sm:$0xff] }
0x1660   :  { %5707 = vmatpush.msra.mxu0 %v5696_v2  ;;  %v3416_v2 = vadd.f32 %v10673_v23, %v10659_v53 }
0x1662   :  { %5708 = vmatpush.msra.mxu0 %v5695_v21 }
0x1664   :  { %5709 = vmatpush.msra.mxu0 %v5694_v6 }
0x1666   :  { %5710 = vmatpush.msra.mxu0 %v5693_v28  ;;  %v5421_v28 = vld [vmem:[#allocation10 + $0xc0] sm:$0xff] }
0x1667   :  { %5436 = vmatpush.msrb.mxu1 %v5421_v28 }
0x1668   :  { %5711 = vmatpush.msra.mxu0 %v5692_v30  ;;  %v5460_v30 = vld [vmem:[#allocation10 + $0x140] sm:$0xff] }
0x166a   :  { %5712 = vmatpush.msra.mxu0 %v5691_v49  ;;  %v5499_v49 = vld [vmem:[#allocation10 + $0x1c0] sm:$0xff] }
0x166b   :  { %5514 = vmatpush.msra.mxu3 %v5499_v49 }
0x166c   :  { %5713 = vmatpush.msra.mxu0 %v5690_v3  ;;  %v5420_v3 = vld [vmem:[#allocation10 + $0xb8] sm:$0xff] }
0x166d   :  { %5437 = vmatpush.msrb.mxu1 %v5420_v3 }
0x166e   :  { %5714 = vmatpush.msra.mxu0 %v5689_v20  ;;  %v5459_v20 = vld [vmem:[#allocation10 + $0x138] sm:$0xff] }
0x1670   :  { %5715 = vmatpush.msra.mxu0 %v5688_v43 }
0x1672   :  { %5716 = vmatpush.msra.mxu0 %v5687_v63 }
0x1674   :  { %5717 = vmatpush.msra.mxu0 %v5686_v38  ;;  %v5498_v38 = vld [vmem:[#allocation10 + $0x1b8] sm:$0xff] }
0x1675   :  { %5718 = vmatmul.f32.vlgmr.msra.gmra.mxu0 %v10671_v12  ;;  %v5458_v12 = vld [vmem:[#allocation10 + $0x130] sm:$0xff]  ;;  %5515 = vmatpush.msra.mxu3 %v5498_v38 }
0x1676   :  { %5858 = vmatpush.msrb.mxu0 %v5857_v26  ;;  %v5419_v26 = vld [vmem:[#allocation10 + $0xb0] sm:$0xff] }
0x1677   :  { %5438 = vmatpush.msrb.mxu1 %v5419_v26 }
0x1678   :  { %5859 = vmatpush.msrb.mxu0 %v5856_v51 }
0x167a   :  { %5860 = vmatpush.msrb.mxu0 %v5855_v24 }
0x167c   :  { %5861 = vmatpush.msrb.mxu0 %v5854_v19  ;;  %v5497_v19 = vld [vmem:[#allocation10 + $0x1b0] sm:$0xff] }
0x167d   :  { %5516 = vmatpush.msra.mxu3 %v5497_v19  ;;  %v5584_v19 = vld [vmem:[#allocation10 + $0x2f8] sm:$0xff] }
0x167e   :  { %5862 = vmatpush.msrb.mxu0 %v5853_v4  ;;  %v5418_v4 = vld [vmem:[#allocation10 + $0xa8] sm:$0xff] }
0x167f   :  { %5439 = vmatpush.msrb.mxu1 %v5418_v4  ;;  %v5623_v4 = vld [vmem:[#allocation10 + $0x378] sm:$0xff] }
0x1680   :  { %5863 = vmatpush.msrb.mxu0 %v5852_v13  ;;  %v5457_v13 = vld [vmem:[#allocation10 + $0x128] sm:$0xff] }
0x1682   :  { %5864 = vmatpush.msrb.mxu0 %v5851_v29  ;;  %v5496_v29 = vld [vmem:[#allocation10 + $0x1a8] sm:$0xff] }
0x1683   :  { %5517 = vmatpush.msra.mxu3 %v5496_v29  ;;  %v5583_v29 = vld [vmem:[#allocation10 + $0x2f0] sm:$0xff] }
0x1684   :  { %5865 = vmatpush.msrb.mxu0 %v5850_v27  ;;  %v5417_v27 = vld [vmem:[#allocation10 + $0xa0] sm:$0xff] }
0x1685   :  { %5440 = vmatpush.msrb.mxu1 %v5417_v27  ;;  %v5622_v27 = vld [vmem:[#allocation10 + $0x370] sm:$0xff] }
0x1686   :  { %5866 = vmatpush.msrb.mxu0 %v5849_v56  ;;  %v5456_v56 = vld [vmem:[#allocation10 + $0x120] sm:$0xff] }
0x1688   :  { %5867 = vmatpush.msrb.mxu0 %v5848_v57  ;;  %v5495_v57 = vld [vmem:[#allocation10 + $0x1a0] sm:$0xff] }
0x1689   :  { %5518 = vmatpush.msra.mxu3 %v5495_v57  ;;  %v5582_v57 = vld [vmem:[#allocation10 + $0x2e8] sm:$0xff] }
0x168a   :  { %5868 = vmatpush.msrb.mxu0 %v5847_v50  ;;  %v5416_v50 = vld [vmem:[#allocation10 + $0x98] sm:$0xff] }
0x168b   :  { %5441 = vmatpush.msrb.mxu1 %v5416_v50  ;;  %v5621_v50 = vld [vmem:[#allocation10 + $0x368] sm:$0xff] }
0x168c   :  { %5869 = vmatpush.msrb.mxu0 %v5846_v31  ;;  %v5455_v31 = vld [vmem:[#allocation10 + $0x118] sm:$0xff] }
0x168e   :  { %5870 = vmatpush.msrb.mxu0 %v5845_v40  ;;  %v5494_v40 = vld [vmem:[#allocation10 + $0x198] sm:$0xff] }
0x168f   :  { %5519 = vmatpush.msra.mxu3 %v5494_v40  ;;  %v5581_v40 = vld [vmem:[#allocation10 + $0x2e0] sm:$0xff] }
0x1690   :  { %5871 = vmatpush.msrb.mxu0 %v5844_v8  ;;  %v5415_v8 = vld [vmem:[#allocation10 + $0x90] sm:$0xff] }
0x1691   :  { %5442 = vmatpush.msrb.mxu1 %v5415_v8  ;;  %5520 = vmatpush.msra.mxu3 %v5493_v61  ;;  %v5620_v8 = vld [vmem:[#allocation10 + $0x360] sm:$0xff]  ;;  %v5619_v61 = vld [vmem:[#allocation10 + $0x358] sm:$0xff] }
0x1692   :  { %5872 = vmatpush.msrb.mxu0 %v5843_v16  ;;  %v5454_v16 = vld [vmem:[#allocation10 + $0x110] sm:$0xff] }
0x1693   :  { %5443 = vmatpush.msrb.mxu1 %v5414_v18  ;;  %5521 = vmatpush.msra.mxu3 %v5492_v5  ;;  %v10676_v18 = vld [vmem:[#allocation47_spill] sm:$0xff]  ;;  %v5618_v5 = vld [vmem:[#allocation10 + $0x350] sm:$0xff] }
0x1694   :  { %5873 = vmatpush.msrb.mxu0 %v5842_v33 }
0x1695   :  { %5874 = vmatmul.f32.vlgmr.msrb.gmra.mxu0 %v10120_v41  ;;  %v5464_v41 = vld [vmem:[#allocation10 + $0x160] sm:$0xff]  ;;  %5444 = vmatpush.msrb.mxu1 %v5413_v9  ;;  %v5657_v9 = vld [vmem:[#allocation10 + $0x3d0] sm:$0xff] }
0x1696   :  { %5471 = vmatpush.msrb.mxu2 %v5464_v41  ;;  %5522 = vmatpush.msra.mxu3 %v5491_v17  ;;  %v5617_v17 = vld [vmem:[#allocation10 + $0x348] sm:$0xff] }
0x1698   :  { %5472 = vmatpush.msrb.mxu2 %v5463_v34 }
0x169a   :  { %5473 = vmatpush.msrb.mxu2 %v5462_v37 }
0x169c   :  { %5474 = vmatpush.msrb.mxu2 %v5461_v59 }
0x169e   :  { %5475 = vmatpush.msrb.mxu2 %v5460_v30 }
0x16a0   :  { %5476 = vmatpush.msrb.mxu2 %v5459_v20 }
0x16a2   :  { %5477 = vmatpush.msrb.mxu2 %v5458_v12 }
0x16a4   :  { %5478 = vmatpush.msrb.mxu2 %v5457_v13  ;;  %v5662_v13 = vld [vmem:[#allocation10 + $0x3f8] sm:$0xff] }
0x16a6   :  { %5479 = vmatpush.msrb.mxu2 %v5456_v56  ;;  %v5661_v56 = vld [vmem:[#allocation10 + $0x3f0] sm:$0xff] }
0x16a8   :  { %5480 = vmatpush.msrb.mxu2 %v5455_v31  ;;  %v5660_v31 = vld [vmem:[#allocation10 + $0x3e8] sm:$0xff] }
0x16aa   :  { %5481 = vmatpush.msrb.mxu2 %v5454_v16  ;;  %v5659_v16 = vld [vmem:[#allocation10 + $0x3e0] sm:$0xff] }
0x16ac   :  { %5482 = vmatpush.msrb.mxu2 %v5453_v48  ;;  %v5579_v48 = vld [vmem:[#allocation10 + $0x2d0] sm:$0xff] }
0x16ae   :  { %5483 = vmatpush.msrb.mxu2 %v5452_v47  ;;  %v5578_v47 = vld [vmem:[#allocation10 + $0x2c8] sm:$0xff] }
0x16b7   :  { %v5163_v10 = vpop.f32.mrf.mxu2  ;;  %v5183_v7 = vpop.f32.mrf.mxu3 }
0x16b8   :  { %v5164_v21 = vadd.f32 %v5163_v10, %v10658_v36  ;;  %v5184_v6 = vadd.f32 %v5183_v7, %v10661_v45 }
0x16ba   :  { %v5209_v43 = vadd.f32 %v5164_v21, %v3351_v54  ;;  %v5229_v63 = vadd.f32 %v5184_v6, %v3416_v2  ;;  %v5203_v54 = vpop.f32.mrf.mxu0  ;;  %v10674_v21 = vld [vmem:[#allocation46_spill] sm:$0xff] }
0x16bb   :  { %v5204_v59 = vadd.f32 %v5203_v54, %v9089_v14  ;;  %v3481_v6 = vadd.f32 %v10674_v21, %v9094_v35  ;;  %v5653_v54 = vld [vmem:[#allocation10 + $0x3b0] sm:$0xff]  ;;  %v5611_v21 = vld [vmem:[#allocation10 + $0x318] sm:$0xff] }
0x16bc   :  { %v6084_v51 = vmul.f32 -1.442695, %v5209_v43  ;;  %v6085_v24 = vmul.f32 -1.442695, %v5229_v63 }
0x16be   :  { %6400 = vpow2.f32 %v6084_v51 }
0x16bf   :  { %6402 = vpow2.f32 %v6085_v24 }
0x16c4   :  { %v6401_v33 = vpop.eup %6400 }
0x16c5   :  { %v6403_v11 = vpop.eup %6402  ;;  %v5213_v58 = vadd.f32 1.0, %v6401_v33  ;;  %v5580_v33 = vld [vmem:[#allocation10 + $0x2d8] sm:$0xff] }
0x16c6   :  { %v5233_v46 = vadd.f32 1.0, %v6403_v11  ;;  %v5658_v11 = vld [vmem:[#allocation10 + $0x3d8] sm:$0xff] }
0x16c7   :  { %6404 = vrcp.f32 %v5213_v58  ;;  %v5225_v44 = vand.u32 2147483648, %v5213_v58  ;;  %v5223_v0 = vand.u32 2147483647, %v5213_v58  ;;  %vm5219_vm3 = vweird.f32 %v5213_v58 }
0x16c8   :  { %6406 = vrcp.f32 %v5233_v46  ;;  %v5245_v30 = vand.u32 2147483648, %v5233_v46  ;;  %vm5239_vm7 = vweird.f32 %v5233_v46  ;;  %v5243_v49 = vand.u32 2147483647, %v5233_v46 }
0x16c9   :  { %v5226_v55 = vor.u32 1.1754944e-38, %v5225_v44  ;;  %vm5224_vm5 = vcmp.eq.f32.partialorder %v5223_v0, 8.507059e+37  ;;  %v5615_v44 = vld [vmem:[#allocation10 + $0x338] sm:$0xff]  ;;  %v5614_v0 = vld [vmem:[#allocation10 + $0x330] sm:$0xff] }
0x16ca   :  { %v5246_v43 = vor.u32 1.1754944e-38, %v5245_v30  ;;  %vm5244_vm9 = vcmp.eq.f32.partialorder %v5243_v49, 8.507059e+37  ;;  %v5610_v30 = vld [vmem:[#allocation10 + $0x310] sm:$0xff] }
0x16cb   :  { %v5649_v49 = vld [vmem:[#allocation10 + $0x390] sm:$0xff] }
0x16cd   :  { %v6405_v41 = vpop.eup %6404 }
0x16ce   :  { %v6407_v1 = vpop.eup %6406  ;;  %v5215_v32 = vmul.f32 %v6405_v41, %v5213_v58  ;;  %vm5220_vm2 = vweird.f32 %v6405_v41  ;;  %v10675_v58 = vld [vmem:[#allocation40_spill] sm:$0xff] }
0x16cf   :  { %v5235_v34 = vmul.f32 %v6407_v1, %v5233_v46  ;;  %vm5221_vm4 = vmor %vm5219_vm3, %vm5220_vm2  ;;  %vm5240_vm6 = vweird.f32 %v6407_v1  ;;  %v10677_v46 = vld [vmem:[#allocation23_spill] sm:$0xff] }
0x16d0   :  { %v5216_v62 = vsub.f32 1.0, %v5215_v32  ;;  %vm5241_vm8 = vmor %vm5239_vm7, %vm5240_vm6  ;;  %v5616_v32 = vld [vmem:[#allocation10 + $0x340] sm:$0xff] }
0x16d1   :  { %v5236_v37 = vsub.f32 1.0, %v5235_v34  ;;  %v5655_v34 = vld [vmem:[#allocation10 + $0x3c0] sm:$0xff] }
0x16d2   :  { %v5217_v42 = vmul.f32 %v6405_v41, %v5216_v62  ;;  %v5576_v62 = vld [vmem:[#allocation10 + $0x2b8] sm:$0xff] }
0x16d3   :  { %v5237_v10 = vmul.f32 %v6407_v1, %v5236_v37  ;;  %v5654_v37 = vld [vmem:[#allocation10 + $0x3b8] sm:$0xff] }
0x16d4   :  { %v5218_v7 = vadd.f32 %v6405_v41, %v5217_v42  ;;  %v5575_v42 = vld [vmem:[#allocation10 + $0x2b0] sm:$0xff] }
0x16d5   :  { %v5238_v2 = vadd.f32 %v6407_v1, %v5237_v10  ;;  %v5574_v10 = vld [vmem:[#allocation10 + $0x2a8] sm:$0xff] }
0x16d6   :  { %v5222_v25 = vsel %vm5221_vm4, %v6405_v41, %v5218_v7  ;;  %v5656_v41 = vld [vmem:[#allocation10 + $0x3c8] sm:$0xff] }
0x16d7   :  { %v5227_v23 = vsel %vm5224_vm5, %v5226_v55, %v5222_v25  ;;  %v5242_v20 = vsel %vm5241_vm8, %v6407_v1, %v5238_v2  ;;  %v5577_v1 = vld [vmem:[#allocation10 + $0x2c0] sm:$0xff]  ;;  %v5613_v7 = vld [vmem:[#allocation10 + $0x328] sm:$0xff]  ;;  %v5572_v2 = vld [vmem:[#allocation10 + $0x298] sm:$0xff] }
0x16d8   :  { %v5249_v28 = vmul.f32 %v5227_v23, %v5204_v59  ;;  %v5247_v63 = vsel %vm5244_vm9, %v5246_v43, %v5242_v20  ;;  %v5652_v55 = vld [vmem:[#allocation10 + $0x3a8] sm:$0xff]  ;;  %v5573_v59 = vld [vmem:[#allocation10 + $0x2a0] sm:$0xff] }
0x16d9   :  { %v5252_v38 = vsub.f32 1.0, %v5247_v63  ;;  %v5254_v51 = vmul.f32 %v5247_v63, %v10136_v60  ;;  %v5612_v25 = vld [vmem:[#allocation10 + $0x320] sm:$0xff]  ;;  %v5609_v20 = vld [vmem:[#allocation10 + $0x308] sm:$0xff] }
0x16da   :  { %v5250_v3 = vadd.f32 %v5249_v28, %v3481_v6  ;;  %v5651_v23 = vld [vmem:[#allocation10 + $0x3a0] sm:$0xff]  ;;  %v5650_v6 = vld [vmem:[#allocation10 + $0x398] sm:$0xff]  ;;  %v5571_v28 = vld [vmem:[#allocation10 + $0x290] sm:$0xff] }
0x16db   :  { %v5648_v43 = vld [vmem:[#allocation10 + $0x388] sm:$0xff]  ;;  %v5569_v63 = vld [vmem:[#allocation10 + $0x280] sm:$0xff] }
0x16dc   :  { %6408 = vtanh.f32 %v5250_v3  ;;  %v5570_v3 = vld [vmem:[#allocation10 + $0x288] sm:$0xff] }
0x16e2   :  { %v6409_v26 = vpop.eup %6408 }
0x16e3   :  { %v5253_v12 = vmul.f32 %v6409_v26, %v5252_v38  ;;  %v5608_v38 = vld [vmem:[#allocation10 + $0x300] sm:$0xff] }
0x16e4   :  { %v5647_v26 = vld [vmem:[#allocation10 + $0x380] sm:$0xff] }
0x16e5   :  { %v10155_v24 = vadd.f32 %v5254_v51, %v5253_v12  ;;  %v5740_v12 = vld [vmem:[#allocation10 + $0x4f8] sm:$0xff] }
0x16e6   :  { %v5779_v51 = vld [vmem:[#allocation10 + $0x578] sm:$0xff] }
0x16e7   :  { %5273 = vmatmul.f32.vlgmr.msra.gmra.mxu1 %v10155_v24  ;;  %5293 = vmatmul.f32.vlgmr.msra.gmra.mxu2 %v10155_v24 }
0x16e8   :  { %5313 = vmatmul.f32.vlgmr.msrb.gmra.mxu3 %v10155_v24  ;;  %5585 = vmatpush.msra.mxu1 %v5584_v19  ;;  %v5818_v19 = vld [vmem:[#allocation10 + $0x5f8] sm:$0xff] }
0x16e9   :  { %5624 = vmatpush.msra.mxu2 %v5623_v4  ;;  %5663 = vmatpush.msrb.mxu3 %v5662_v13  ;;  %v10678_v4 = vld [vmem:[#allocation48_spill] sm:$0xff]  ;;  %v10679_v13 = vld [vmem:[#allocation61_spill] sm:$0xff] }
0x16ea   :  { %5586 = vmatpush.msra.mxu1 %v5583_v29  ;;  %v5739_v29 = vld [vmem:[#allocation10 + $0x4f0] sm:$0xff] }
0x16eb   :  { %5625 = vmatpush.msra.mxu2 %v5622_v27  ;;  %5664 = vmatpush.msrb.mxu3 %v5661_v56  ;;  %v10680_v27 = vld [vmem:[#allocation16_spill] sm:$0xff]  ;;  %v5778_v56 = vld [vmem:[#allocation10 + $0x570] sm:$0xff] }
0x16ec   :  { %5587 = vmatpush.msra.mxu1 %v5582_v57  ;;  %v5817_v57 = vld [vmem:[#allocation10 + $0x5f0] sm:$0xff] }
0x16ed   :  { %5626 = vmatpush.msra.mxu2 %v5621_v50  ;;  %5665 = vmatpush.msrb.mxu3 %v5660_v31  ;;  %v5738_v50 = vld [vmem:[#allocation10 + $0x4e8] sm:$0xff] }
0x16ee   :  { %5588 = vmatpush.msra.mxu1 %v5581_v40  ;;  %v5777_v31 = vld [vmem:[#allocation10 + $0x568] sm:$0xff] }
0x16ef   :  { %5627 = vmatpush.msra.mxu2 %v5620_v8  ;;  %5666 = vmatpush.msrb.mxu3 %v5659_v16  ;;  %v5816_v40 = vld [vmem:[#allocation10 + $0x5e8] sm:$0xff]  ;;  %v5737_v8 = vld [vmem:[#allocation10 + $0x4e0] sm:$0xff] }
0x16f0   :  { %5445 = vmatmul.f32.vlgmr.msrb.gmra.mxu1 %v10675_v58  ;;  %5484 = vmatmul.f32.vlgmr.msrb.gmra.mxu2 %v10676_v18  ;;  %v5776_v16 = vld [vmem:[#allocation10 + $0x560] sm:$0xff]  ;;  %v5814_v58 = vld [vmem:[#allocation10 + $0x5d8] sm:$0xff]  ;;  %v5735_v18 = vld [vmem:[#allocation10 + $0x4d0] sm:$0xff] }
0x16f1   :  { %5523 = vmatmul.f32.vlgmr.msra.gmra.mxu3 %v10677_v46  ;;  %5589 = vmatpush.msra.mxu1 %v5580_v33  ;;  %v5815_v33 = vld [vmem:[#allocation10 + $0x5e0] sm:$0xff]  ;;  %v5813_v46 = vld [vmem:[#allocation10 + $0x5d0] sm:$0xff] }
0x16f2   :  { %5628 = vmatpush.msra.mxu2 %v5619_v61  ;;  %5667 = vmatpush.msrb.mxu3 %v5658_v11  ;;  %v5736_v61 = vld [vmem:[#allocation10 + $0x4d8] sm:$0xff] }
0x16f3   :  { %5590 = vmatpush.msra.mxu1 %v5579_v48  ;;  %v5775_v11 = vld [vmem:[#allocation10 + $0x558] sm:$0xff]  ;;  %v5774_v48 = vld [vmem:[#allocation10 + $0x550] sm:$0xff] }
0x16f4   :  { %5629 = vmatpush.msra.mxu2 %v5618_v5  ;;  %5668 = vmatpush.msrb.mxu3 %v5657_v9  ;;  %v5734_v5 = vld [vmem:[#allocation10 + $0x4c8] sm:$0xff] }
0x16f5   :  { %5591 = vmatpush.msra.mxu1 %v5578_v47  ;;  %v5773_v9 = vld [vmem:[#allocation10 + $0x548] sm:$0xff] }
0x16f6   :  { %5630 = vmatpush.msra.mxu2 %v5617_v17  ;;  %5669 = vmatpush.msrb.mxu3 %v5656_v41  ;;  %v5812_v47 = vld [vmem:[#allocation10 + $0x5c8] sm:$0xff]  ;;  %v5733_v17 = vld [vmem:[#allocation10 + $0x4c0] sm:$0xff] }
0x16f7   :  { %5592 = vmatpush.msra.mxu1 %v5577_v1  ;;  %v5772_v41 = vld [vmem:[#allocation10 + $0x540] sm:$0xff] }
0x16f8   :  { %5631 = vmatpush.msra.mxu2 %v5616_v32  ;;  %5670 = vmatpush.msrb.mxu3 %v5655_v34  ;;  %v5811_v1 = vld [vmem:[#allocation10 + $0x5c0] sm:$0xff]  ;;  %v5732_v32 = vld [vmem:[#allocation10 + $0x4b8] sm:$0xff] }
0x16f9   :  { %5593 = vmatpush.msra.mxu1 %v5576_v62  ;;  %v5771_v34 = vld [vmem:[#allocation10 + $0x538] sm:$0xff] }
0x16fa   :  { %5632 = vmatpush.msra.mxu2 %v5615_v44  ;;  %5671 = vmatpush.msrb.mxu3 %v5654_v37  ;;  %v5810_v62 = vld [vmem:[#allocation10 + $0x5b8] sm:$0xff]  ;;  %v5731_v44 = vld [vmem:[#allocation10 + $0x4b0] sm:$0xff] }
0x16fb   :  { %5594 = vmatpush.msra.mxu1 %v5575_v42  ;;  %v5770_v37 = vld [vmem:[#allocation10 + $0x530] sm:$0xff] }
0x16fc   :  { %5633 = vmatpush.msra.mxu2 %v5614_v0  ;;  %5672 = vmatpush.msrb.mxu3 %v5653_v54  ;;  %v5809_v42 = vld [vmem:[#allocation10 + $0x5b0] sm:$0xff]  ;;  %v5730_v0 = vld [vmem:[#allocation10 + $0x4a8] sm:$0xff] }
0x16fd   :  { %5595 = vmatpush.msra.mxu1 %v5574_v10  ;;  %v5769_v54 = vld [vmem:[#allocation10 + $0x528] sm:$0xff] }
0x16fe   :  { %5634 = vmatpush.msra.mxu2 %v5613_v7  ;;  %5673 = vmatpush.msrb.mxu3 %v5652_v55  ;;  %v5808_v10 = vld [vmem:[#allocation10 + $0x5a8] sm:$0xff]  ;;  %v5729_v7 = vld [vmem:[#allocation10 + $0x4a0] sm:$0xff] }
0x16ff   :  { %5596 = vmatpush.msra.mxu1 %v5573_v59  ;;  %v5768_v55 = vld [vmem:[#allocation10 + $0x520] sm:$0xff] }
0x1700   :  { %5635 = vmatpush.msra.mxu2 %v5612_v25  ;;  %5674 = vmatpush.msrb.mxu3 %v5651_v23  ;;  %v5807_v59 = vld [vmem:[#allocation10 + $0x5a0] sm:$0xff]  ;;  %v5728_v25 = vld [vmem:[#allocation10 + $0x498] sm:$0xff] }
0x1701   :  { %5597 = vmatpush.msra.mxu1 %v5572_v2  ;;  %v5767_v23 = vld [vmem:[#allocation10 + $0x518] sm:$0xff] }
0x1702   :  { %5636 = vmatpush.msra.mxu2 %v5611_v21  ;;  %5675 = vmatpush.msrb.mxu3 %v5650_v6  ;;  %v5806_v2 = vld [vmem:[#allocation10 + $0x598] sm:$0xff]  ;;  %v5727_v21 = vld [vmem:[#allocation10 + $0x490] sm:$0xff] }
0x1703   :  { %5598 = vmatpush.msra.mxu1 %v5571_v28  ;;  %v5766_v6 = vld [vmem:[#allocation10 + $0x510] sm:$0xff] }
0x1704   :  { %5637 = vmatpush.msra.mxu2 %v5610_v30  ;;  %5676 = vmatpush.msrb.mxu3 %v5649_v49  ;;  %v5805_v28 = vld [vmem:[#allocation10 + $0x590] sm:$0xff]  ;;  %v5726_v30 = vld [vmem:[#allocation10 + $0x488] sm:$0xff] }
0x1705   :  { %5599 = vmatpush.msra.mxu1 %v5570_v3  ;;  %v5765_v49 = vld [vmem:[#allocation10 + $0x508] sm:$0xff] }
0x1706   :  { %5638 = vmatpush.msra.mxu2 %v5609_v20  ;;  %5677 = vmatpush.msrb.mxu3 %v5648_v43  ;;  %v5804_v3 = vld [vmem:[#allocation10 + $0x588] sm:$0xff]  ;;  %v5725_v20 = vld [vmem:[#allocation10 + $0x480] sm:$0xff] }
0x1707   :  { %5600 = vmatpush.msra.mxu1 %v5569_v63  ;;  %v5764_v43 = vld [vmem:[#allocation10 + $0x500] sm:$0xff] }
0x1708   :  { %5639 = vmatpush.msra.mxu2 %v5608_v38  ;;  %5678 = vmatpush.msrb.mxu3 %v5647_v26  ;;  %v5803_v63 = vld [vmem:[#allocation10 + $0x580] sm:$0xff]  ;;  %v5896_v38 = vld [vmem:[#allocation10 + $0x6f8] sm:$0xff] }
0x1709   :  { %5601 = vmatmul.f32.vlgmr.msra.gmra.mxu1 %v10678_v4  ;;  %5640 = vmatmul.f32.vlgmr.msra.gmra.mxu2 %v10679_v13  ;;  %v5935_v26 = vld [vmem:[#allocation10 + $0x778] sm:$0xff]  ;;  %v5933_v4 = vld [vmem:[#allocation10 + $0x768] sm:$0xff]  ;;  %v5893_v13 = vld [vmem:[#allocation10 + $0x6e0] sm:$0xff] }
0x170a   :  { %5679 = vmatmul.f32.vlgmr.msrb.gmra.mxu3 %v10680_v27  ;;  %5741 = vmatpush.msrb.mxu1 %v5740_v12  ;;  %v5895_v12 = vld [vmem:[#allocation10 + $0x6f0] sm:$0xff]  ;;  %v5892_v27 = vld [vmem:[#allocation10 + $0x6d8] sm:$0xff] }
0x170b   :  { %5780 = vmatpush.msrb.mxu2 %v5779_v51  ;;  %5819 = vmatpush.msra.mxu3 %v5818_v19  ;;  %v5934_v51 = vld [vmem:[#allocation10 + $0x770] sm:$0xff]  ;;  %v5894_v19 = vld [vmem:[#allocation10 + $0x6e8] sm:$0xff] }
0x170c   :  { %5742 = vmatpush.msrb.mxu1 %v5739_v29  ;;  %v5932_v29 = vld [vmem:[#allocation10 + $0x760] sm:$0xff] }
0x170d   :  { %5781 = vmatpush.msrb.mxu2 %v5778_v56  ;;  %5820 = vmatpush.msra.mxu3 %v5817_v57  ;;  %v5931_v56 = vld [vmem:[#allocation10 + $0x758] sm:$0xff]  ;;  %v5929_v57 = vld [vmem:[#allocation10 + $0x748] sm:$0xff] }
0x170e   :  { %5743 = vmatpush.msrb.mxu1 %v5738_v50  ;;  %v5889_v50 = vld [vmem:[#allocation10 + $0x6c0] sm:$0xff] }
0x170f   :  { %5782 = vmatpush.msrb.mxu2 %v5777_v31  ;;  %5821 = vmatpush.msra.mxu3 %v5816_v40  ;;  %v5928_v31 = vld [vmem:[#allocation10 + $0x740] sm:$0xff]  ;;  %v5888_v40 = vld [vmem:[#allocation10 + $0x6b8] sm:$0xff] }
0x1710   :  { %5744 = vmatpush.msrb.mxu1 %v5737_v8  ;;  %v5927_v8 = vld [vmem:[#allocation10 + $0x738] sm:$0xff] }
0x1711   :  { %5783 = vmatpush.msrb.mxu2 %v5776_v16  ;;  %5822 = vmatpush.msra.mxu3 %v5815_v33  ;;  %v5887_v16 = vld [vmem:[#allocation10 + $0x6b0] sm:$0xff] }
0x1712   :  { %5745 = vmatpush.msrb.mxu1 %v5736_v61  ;;  %v5926_v33 = vld [vmem:[#allocation10 + $0x730] sm:$0xff]  ;;  %v5886_v61 = vld [vmem:[#allocation10 + $0x6a8] sm:$0xff] }
0x1713   :  { %5784 = vmatpush.msrb.mxu2 %v5775_v11  ;;  %5823 = vmatpush.msra.mxu3 %v5814_v58  ;;  %v5925_v11 = vld [vmem:[#allocation10 + $0x728] sm:$0xff]  ;;  %v5885_v58 = vld [vmem:[#allocation10 + $0x6a0] sm:$0xff] }
0x1714   :  { %5746 = vmatpush.msrb.mxu1 %v5735_v18  ;;  %v5924_v18 = vld [vmem:[#allocation10 + $0x720] sm:$0xff] }
0x1715   :  { %5785 = vmatpush.msrb.mxu2 %v5774_v48  ;;  %5824 = vmatpush.msra.mxu3 %v5813_v46  ;;  %v5884_v48 = vld [vmem:[#allocation10 + $0x698] sm:$0xff] }
0x1716   :  { %5747 = vmatpush.msrb.mxu1 %v5734_v5  ;;  %v5923_v46 = vld [vmem:[#allocation10 + $0x718] sm:$0xff]  ;;  %v5883_v5 = vld [vmem:[#allocation10 + $0x690] sm:$0xff] }
0x1717   :  { %5786 = vmatpush.msrb.mxu2 %v5773_v9  ;;  %5825 = vmatpush.msra.mxu3 %v5812_v47  ;;  %v5922_v9 = vld [vmem:[#allocation10 + $0x710] sm:$0xff]  ;;  %v5882_v47 = vld [vmem:[#allocation10 + $0x688] sm:$0xff] }
0x1718   :  { %5748 = vmatpush.msrb.mxu1 %v5733_v17  ;;  %v5921_v17 = vld [vmem:[#allocation10 + $0x708] sm:$0xff] }
0x1719   :  { %5787 = vmatpush.msrb.mxu2 %v5772_v41  ;;  %5826 = vmatpush.msra.mxu3 %v5811_v1  ;;  %v5881_v41 = vld [vmem:[#allocation10 + $0x680] sm:$0xff] }
0x171a   :  { %5749 = vmatpush.msrb.mxu1 %v5732_v32  ;;  %v5920_v1 = vld [vmem:[#allocation10 + $0x700] sm:$0xff]  ;;  %v5974_v32 = vld [vmem:[#allocation10 + $0x7f8] sm:$0xff] }
0x171b   :  { %5788 = vmatpush.msrb.mxu2 %v5771_v34  ;;  %5827 = vmatpush.msra.mxu3 %v5810_v62  ;;  %v5973_v34 = vld [vmem:[#allocation10 + $0x7f0] sm:$0xff]  ;;  %v5972_v62 = vld [vmem:[#allocation10 + $0x7e8] sm:$0xff] }
0x171c   :  { %5750 = vmatpush.msrb.mxu1 %v5731_v44  ;;  %v5971_v44 = vld [vmem:[#allocation10 + $0x7e0] sm:$0xff] }
0x171d   :  { %5789 = vmatpush.msrb.mxu2 %v5770_v37  ;;  %5828 = vmatpush.msra.mxu3 %v5809_v42  ;;  %v5970_v37 = vld [vmem:[#allocation10 + $0x7d8] sm:$0xff] }
0x171e   :  { %5751 = vmatpush.msrb.mxu1 %v5730_v0  ;;  %v10681_v0 = vld [vmem:[#allocation37_spill] sm:$0xff] }
0x171f   :  { %5790 = vmatpush.msrb.mxu2 %v5769_v54  ;;  %5829 = vmatpush.msra.mxu3 %v5808_v10  ;;  %v3354_v54 = vadd.f32 %v10681_v0, %v10656_v52 }
0x1720   :  { %5752 = vmatpush.msrb.mxu1 %v5729_v7  ;;  %v5969_v7 = vld [vmem:[#allocation10 + $0x7d0] sm:$0xff] }
0x1721   :  { %5791 = vmatpush.msrb.mxu2 %v5768_v55  ;;  %5830 = vmatpush.msra.mxu3 %v5807_v59  ;;  %v5968_v55 = vld [vmem:[#allocation10 + $0x7c8] sm:$0xff] }
0x1722   :  { %5753 = vmatpush.msrb.mxu1 %v5728_v25  ;;  %v5967_v25 = vld [vmem:[#allocation10 + $0x7c0] sm:$0xff] }
0x1723   :  { %5792 = vmatpush.msrb.mxu2 %v5767_v23  ;;  %5831 = vmatpush.msra.mxu3 %v5806_v2  ;;  %v10682_v2 = vld [vmem:[#allocation65_spill] sm:$0xff] }
0x1724   :  { %5754 = vmatpush.msrb.mxu1 %v5727_v21  ;;  %v3419_v21 = vadd.f32 %v10682_v2, %v10659_v53  ;;  %v5960_v53 = vld [vmem:[#allocation10 + $0x788] sm:$0xff] }
0x1725   :  { %5793 = vmatpush.msrb.mxu2 %v5766_v6  ;;  %5832 = vmatpush.msra.mxu3 %v5805_v28  ;;  %v5966_v28 = vld [vmem:[#allocation10 + $0x7b8] sm:$0xff] }
0x1726   :  { %5755 = vmatpush.msrb.mxu1 %v5726_v30  ;;  %v5965_v30 = vld [vmem:[#allocation10 + $0x7b0] sm:$0xff] }
0x1727   :  { %5794 = vmatpush.msrb.mxu2 %v5765_v49  ;;  %5833 = vmatpush.msra.mxu3 %v5804_v3  ;;  %v5964_v49 = vld [vmem:[#allocation10 + $0x7a8] sm:$0xff]  ;;  %v5963_v3 = vld [vmem:[#allocation10 + $0x7a0] sm:$0xff] }
0x1728   :  { %5756 = vmatpush.msrb.mxu1 %v5725_v20 }
0x1729   :  { %5795 = vmatpush.msrb.mxu2 %v5764_v43  ;;  %5834 = vmatpush.msra.mxu3 %v5803_v63  ;;  %v5962_v43 = vld [vmem:[#allocation10 + $0x798] sm:$0xff] }
0x172a   :  { %5757 = vmatmul.f32.vlgmr.msrb.gmra.mxu1 %v9939_v15  ;;  %5796 = vmatmul.f32.vlgmr.msrb.gmra.mxu2 %v10002_v22  ;;  %v5891_v15 = vld [vmem:[#allocation10 + $0x6d0] sm:$0xff] }
0x172b   :  { %5835 = vmatmul.f32.vlgmr.msra.gmra.mxu3 %v10081_v39  ;;  %5897 = vmatpush.msra.mxu1 %v5896_v38  ;;  %v5930_v22 = vld [vmem:[#allocation10 + $0x750] sm:$0xff]  ;;  %v5890_v39 = vld [vmem:[#allocation10 + $0x6c8] sm:$0xff] }
0x172c   :  { %5936 = vmatpush.msra.mxu2 %v5935_v26  ;;  %5975 = vmatpush.msrb.mxu3 %v5974_v32  ;;  %v5961_v38 = vld [vmem:[#allocation10 + $0x790] sm:$0xff]  ;;  %v5959_v26 = vld [vmem:[#allocation10 + $0x780] sm:$0xff] }
0x172d   :  { %5898 = vmatpush.msra.mxu1 %v5895_v12  ;;  %v6099_v32 = vld [vmem:[%s10198_s11] ss:$0 sm:$0xff] }
0x172e   :  { %5937 = vmatpush.msra.mxu2 %v5934_v51  ;;  %5976 = vmatpush.msrb.mxu3 %v5973_v34  ;;  %v5407_v34 = vpop.f32.mrf.mxu0 }
0x172f   :  { %5899 = vmatpush.msra.mxu1 %v5894_v19 }
0x1730   :  { %5938 = vmatpush.msra.mxu2 %v5933_v4  ;;  %5977 = vmatpush.msrb.mxu3 %v5972_v62 }
0x1731   :  { %5900 = vmatpush.msra.mxu1 %v5893_v13 }
0x1732   :  { %5939 = vmatpush.msra.mxu2 %v5932_v29  ;;  %5978 = vmatpush.msrb.mxu3 %v5971_v44  ;;  %v5410_v44 = vadd.f32 %v6099_v32, %v5407_v34 }
0x1733   :  { %5901 = vmatpush.msra.mxu1 %v5892_v27 }
0x1734   :  { %5940 = vmatpush.msra.mxu2 %v5931_v56  ;;  %5979 = vmatpush.msrb.mxu3 %v5970_v37 }
0x1735   :  { %5902 = vmatpush.msra.mxu1 %v5891_v15 }
0x1736   :  { %5941 = vmatpush.msra.mxu2 %v5930_v22  ;;  %5980 = vmatpush.msrb.mxu3 %v5969_v7  ;;  %v5563_v7 = vpop.f32.mrf.mxu0 }
0x1737   :  { %5903 = vmatpush.msra.mxu1 %v5890_v39 }
0x1738   :  { %5942 = vmatpush.msra.mxu2 %v5929_v57  ;;  %5981 = vmatpush.msrb.mxu3 %v5968_v55 }
0x1739   :  { %5904 = vmatpush.msra.mxu1 %v5889_v50 }
0x173a   :  { %5943 = vmatpush.msra.mxu2 %v5928_v31  ;;  %5982 = vmatpush.msrb.mxu3 %v5967_v25 }
0x173b   :  { %5905 = vmatpush.msra.mxu1 %v5888_v40 }
0x173c   :  { %5944 = vmatpush.msra.mxu2 %v5927_v8  ;;  %5983 = vmatpush.msrb.mxu3 %v5966_v28  ;;  %v10683_v8 = vld [vmem:[#allocation45_spill] sm:$0xff] }
0x173d   :  { %5906 = vmatpush.msra.mxu1 %v5887_v16  ;;  %v3484_v16 = vadd.f32 %v10683_v8, %v9094_v35 }
0x173e   :  { %5945 = vmatpush.msra.mxu2 %v5926_v33  ;;  %5984 = vmatpush.msrb.mxu3 %v5965_v30 }
0x173f   :  { %5907 = vmatpush.msra.mxu1 %v5886_v61 }
0x1740   :  { %5946 = vmatpush.msra.mxu2 %v5925_v11  ;;  %5985 = vmatpush.msrb.mxu3 %v5964_v49 }
0x1741   :  { %5908 = vmatpush.msra.mxu1 %v5885_v58 }
0x1742   :  { %5947 = vmatpush.msra.mxu2 %v5924_v18  ;;  %5986 = vmatpush.msrb.mxu3 %v5963_v3 }
0x1743   :  { %5909 = vmatpush.msra.mxu1 %v5884_v48 }
0x1744   :  { %5948 = vmatpush.msra.mxu2 %v5923_v46  ;;  %5987 = vmatpush.msrb.mxu3 %v5962_v43 }
0x1745   :  { %5910 = vmatpush.msra.mxu1 %v5883_v5 }
0x1746   :  { %5949 = vmatpush.msra.mxu2 %v5922_v9  ;;  %5988 = vmatpush.msrb.mxu3 %v5961_v38 }
0x1747   :  { %5911 = vmatpush.msra.mxu1 %v5882_v47 }
0x1748   :  { %5950 = vmatpush.msra.mxu2 %v5921_v17  ;;  %5989 = vmatpush.msrb.mxu3 %v5960_v53 }
0x1749   :  { %5912 = vmatpush.msra.mxu1 %v5881_v41 }
0x174a   :  { %5951 = vmatpush.msra.mxu2 %v5920_v1  ;;  %5913 = vmatmul.f32.vlgmr.msra.gmra.mxu1 %v10136_v60 }
0x174b   :  { %5952 = vmatmul.f32.vlgmr.msra.gmra.mxu2 %v10155_v24  ;;  %5990 = vmatpush.msrb.mxu3 %v5959_v26 }
0x1764   :  { %v5274_v42 = vpop.f32.mrf.mxu1 }
0x1765   :  { %v5275_v10 = vadd.f32 %v5274_v42, %v10658_v36 }
0x1767   :  { %v5320_v60 = vadd.f32 %v5275_v10, %v3354_v54 }
0x1769   :  { %v6086_v59 = vmul.f32 -1.442695, %v5320_v60 }
0x176a   :  { %v5294_v23 = vpop.f32.mrf.mxu2 }
0x176b   :  { %6410 = vpow2.f32 %v6086_v59  ;;  %v5295_v6 = vadd.f32 %v5294_v23, %v10661_v45  ;;  %v5314_v15 = vpop.f32.mrf.mxu3 }
0x176c   :  { %v5315_v31 = vadd.f32 %v5314_v15, %v9089_v14 }
0x176d   :  { %v5340_v52 = vadd.f32 %v5295_v6, %v3419_v21  ;;  %v5446_v62 = vpop.f32.mrf.mxu1  ;;  %v5719_v21 = vpop.f32.mrf.mxu0 }
0x176e   :  { %v5449_v42 = vadd.f32 %v5446_v62, %v5410_v44 }
0x176f   :  { %v6087_v36 = vmul.f32 -1.442695, %v5340_v52 }
0x1771   :  { %v6411_v20 = vpop.eup %6410  ;;  %6412 = vpow2.f32 %v6087_v36 }
0x1772   :  { %v5324_v63 = vadd.f32 1.0, %v6411_v20 }
0x1773   :  { %v5485_v37 = vpop.f32.mrf.mxu2 }
0x1774   :  { %6414 = vrcp.f32 %v5324_v63  ;;  %v5336_v13 = vand.u32 2147483648, %v5324_v63  ;;  %v5334_v27 = vand.u32 2147483647, %v5324_v63  ;;  %vm5330_vm11 = vweird.f32 %v5324_v63  ;;  %v5524_v54 = vpop.f32.mrf.mxu3 }
0x1775   :  { %v5488_v0 = vadd.f32 %v5485_v37, %v5449_v42  ;;  %v5875_v20 = vpop.f32.mrf.mxu0 }
0x1776   :  { %v5337_v57 = vor.u32 1.1754944e-38, %v5336_v13  ;;  %vm5335_vm13 = vcmp.eq.f32.partialorder %v5334_v27, 8.507059e+37 }
0x1777   :  { %v6413_v45 = vpop.eup %6412  ;;  %v5527_v10 = vadd.f32 %v5524_v54, %v5488_v0 }
0x1778   :  { %v5344_v12 = vadd.f32 1.0, %v6413_v45 }
0x1779   :  { %v5566_v55 = vadd.f32 %v5563_v7, %v5527_v10 }
0x177a   :  { %v6415_v51 = vpop.eup %6414  ;;  %6416 = vrcp.f32 %v5344_v12  ;;  %v5356_v11 = vand.u32 2147483648, %v5344_v12  ;;  %v5354_v18 = vand.u32 2147483647, %v5344_v12  ;;  %vm5350_vm15 = vweird.f32 %v5344_v12 }
0x177b   :  { %v5326_v19 = vmul.f32 %v6415_v51, %v5324_v63  ;;  %vm5331_vm10 = vweird.f32 %v6415_v51 }
0x177c   :  { %vm5332_vm12 = vmor %vm5330_vm11, %vm5331_vm10  ;;  %v5357_v5 = vor.u32 1.1754944e-38, %v5356_v11  ;;  %vm5355_vm1 = vcmp.eq.f32.partialorder %v5354_v18, 8.507059e+37 }
0x177d   :  { %v5327_v4 = vsub.f32 1.0, %v5326_v19 }
0x177f   :  { %v5328_v29 = vmul.f32 %v6415_v51, %v5327_v4 }
0x1780   :  { %v6417_v56 = vpop.eup %6416 }
0x1781   :  { %v5346_v22 = vmul.f32 %v6417_v56, %v5344_v12  ;;  %v5329_v39 = vadd.f32 %v6415_v51, %v5328_v29  ;;  %vm5351_vm14 = vweird.f32 %v6417_v56 }
0x1782   :  { %vm5352_vm0 = vmor %vm5350_vm15, %vm5351_vm14 }
0x1783   :  { %v5347_v50 = vsub.f32 1.0, %v5346_v22  ;;  %v5333_v40 = vsel %vm5332_vm12, %v6415_v51, %v5329_v39 }
0x1784   :  { %v5338_v33 = vsel %vm5335_vm13, %v5337_v57, %v5333_v40 }
0x1785   :  { %v5348_v61 = vmul.f32 %v6417_v56, %v5347_v50  ;;  %v5360_v58 = vmul.f32 %v5338_v33, %v5315_v31 }
0x1786   :  { %v5602_v60 = vpop.f32.mrf.mxu1 }
0x1787   :  { %v5349_v48 = vadd.f32 %v6417_v56, %v5348_v61  ;;  %v5361_v46 = vadd.f32 %v5360_v58, %v3484_v16  ;;  %v5605_v25 = vadd.f32 %v5602_v60, %v5566_v55 }
0x1789   :  { %v5353_v9 = vsel %vm5352_vm0, %v6417_v56, %v5349_v48  ;;  %6418 = vtanh.f32 %v5361_v46 }
0x178a   :  { %v5358_v14 = vsel %vm5355_vm1, %v5357_v5, %v5353_v9 }
0x178b   :  { %v5363_v47 = vsub.f32 1.0, %v5358_v14  ;;  %v5365_v35 = vmul.f32 %v5358_v14, %v10155_v24 }
0x178c   :  { %v5641_v59 = vpop.f32.mrf.mxu2 }
0x178d   :  { %v5644_v24 = vadd.f32 %v5641_v59, %v5605_v25  ;;  %v5680_v23 = vpop.f32.mrf.mxu3 }
0x178f   :  { %v6419_v17 = vpop.eup %6418  ;;  %v5683_v2 = vadd.f32 %v5680_v23, %v5644_v24 }
0x1790   :  { %v5364_v41 = vmul.f32 %v6419_v17, %v5363_v47 }
0x1791   :  { %v5722_v28 = vadd.f32 %v5719_v21, %v5683_v2 }
0x1792   :  { %v5366_v1 = vadd.f32 %v5365_v35, %v5364_v41 }
0x1794   :  { %5991 = vmatmul.f32.vlgmr.msrb.gmra.mxu3 %v5366_v1 }
0x17a7   :  { %v5758_v6 = vpop.f32.mrf.mxu1 }
0x17a8   :  { %v5761_v30 = vadd.f32 %v5758_v6, %v5722_v28 }
0x17ad   :  { %v5797_v52 = vpop.f32.mrf.mxu2 }
0x17ae   :  { %v5800_v36 = vadd.f32 %v5797_v52, %v5761_v30  ;;  %v5836_v49 = vpop.f32.mrf.mxu3 }
0x17b0   :  { %v5839_v3 = vadd.f32 %v5836_v49, %v5800_v36 }
0x17b2   :  { %v5878_v63 = vadd.f32 %v5875_v20, %v5839_v3 }
0x17c7   :  { %v5914_v43 = vpop.f32.mrf.mxu1 }
0x17c8   :  { %v5917_v53 = vadd.f32 %v5914_v43, %v5878_v63 }
0x17ce   :  { %v5953_v38 = vpop.f32.mrf.mxu2 }
0x17cf   :  { %v5956_v45 = vadd.f32 %v5953_v38, %v5917_v53 }
0x1817   :  { %v5992_v26 = vpop.f32.mrf.mxu3 }
0x1818   :  { %v5995_v12 = vadd.f32 %v5992_v26, %v5956_v45 }
0x181a   :  { %v5996_v51 = vmax.f32 %v5995_v12, 0.0 }
0x181c   :  { %5997 = vst [vmem:[%s10199_s12] sm:$0xff] %v5996_v51 }
0x181d   :  { %6002 = vsyncpa [#allocation6], 1 }
0x181e   :  { %6003 = vsyncpa [#allocation8], 1 }
0x181f   :  { %6004 = vsyncpa [#allocation11], 1 }

</bundles_post_ra>
